<compile_context>
chip_gen: v7x
topology: tpu7x:2x2x1
jax: 0.10.0
libtpu: 0.0.40
codegen_flags: <defaults>
</compile_context>

<pallas_src>
import functools
import math

import numpy as np
import jax
import jax.numpy as jnp
from jax import lax
from jax.experimental import pallas as pl
from jax.experimental.pallas import tpu as pltpu


def _pos_embed_kernel(mask_ref, wp_ref, hp_ref, cy_ref, cx_ref, ph_ref, out_ref,
                      *, normalize, scale, lane_chunk):
    # mask_ref : (Bt, H, W)  f32   -- > 0 means "masked"
    # wp_ref   : (1, T)      int32 -- global p % W for this HW tile
    # hp_ref   : (1, T)      int32 -- global p // W for this HW tile
    # cy/cx/ph : (2F, 1)     f32   -- per-channel 1/dim_t (y half / x half), phase
    # out_ref  : (Bt, 2F, T) out_dtype
    Bt, H, W = mask_ref.shape
    T = wp_ref.shape[1]

    # ---- regenerate the 0/1 helper matrices in registers (cheap VPU compares) ----
    wp = wp_ref[...]                                            # (1, T)
    hp = hp_ref[...]                                            # (1, T)
    iw = lax.broadcasted_iota(jnp.int32, (W, T), 0)
    ih = lax.broadcasted_iota(jnp.int32, (H, T), 0)
    # R[w',p]  = (w' == p % W)  : replicate columns        (MXU operand, exact 0/1 bf16)
    # Rx[w',p] = (w' <= p % W)  : cumulate-replicate (x)   (MXU operand, exact 0/1 bf16)
    # Lm[h',p] = (h' <= p // W) : y-cumsum reduction mask  (VPU)
    # Mr[h',p] = (h' == p // W) : row selector             (VPU)
    R = (iw == wp).astype(jnp.float32).astype(jnp.bfloat16)     # (W, T)
    Rx = (iw <= wp).astype(jnp.float32).astype(jnp.bfloat16)    # (W, T)
    Lm = (ih <= hp).astype(jnp.float32)                         # (H, T)
    Mr = (ih == hp).astype(jnp.float32)                         # (H, T)

    cy = cy_ref[...]                                            # (2F, 1)
    cx = cx_ref[...]
    ph = ph_ref[...]

    for i in range(Bt):                                         # static, small
        nm_f = (mask_ref[i] <= 0.0).astype(jnp.float32)         # not_mask, (H, W)
        nm_b = nm_f.astype(jnp.bfloat16)                        # exact: values are 0/1

        # MXU: y_rep[h',p] = nm[h', p%W] ; x_cum[h',p] = sum_{w' <= p%W} nm[h', w']
        y_rep = jnp.dot(nm_b, R, preferred_element_type=jnp.float32)    # (H, T)
        x_cum = jnp.dot(nm_b, Rx, preferred_element_type=jnp.float32)   # (H, T)

        # Masked sublane reductions land the cumsums directly in flattened form.
        y_row = jnp.sum(Lm * y_rep, axis=0, keepdims=True)      # (1, T)
        x_row = jnp.sum(Mr * x_cum, axis=0, keepdims=True)      # (1, T)

        if normalize:
            eps = 1e-6
            y_tot = jnp.sum(y_rep, axis=0, keepdims=True)       # column totals, (1, T)
            row_tot = jnp.sum(nm_f, axis=1, keepdims=True)      # row totals, (H, 1)
            x_tot = jnp.sum(Mr * row_tot, axis=0, keepdims=True)  # (1, T)
            # Exact f32 divide on the small (1, T) totals only.
            y_row = y_row * (scale / (y_tot + eps))
            x_row = x_row * (scale / (x_tot + eps))

        # Single fused transcendental: cos(v) == sin(v + pi/2).  Done in lane chunks so
        # no full (2F, T) broadcast temporaries are materialized in VMEM.
        c0 = 0
        while c0 < T:
            c1 = min(c0 + lane_chunk, T)
            arg = y_row[:, c0:c1] * cy + x_row[:, c0:c1] * cx + ph      # (2F, c1-c0)
            out_ref[i, :, c0:c1] = jnp.sin(arg).astype(out_ref.dtype)
            c0 = c1


def _make_channel_constants(num_pos_feats, temperature):
    """Tiny (2F,1) per-channel constants (exact, computed in float64 numpy)."""
    F = num_pos_feats
    F2 = 2 * F
    c = np.arange(F2)
    k = c % F                                        # channels [0,F)=y, [F,2F)=x
    dim_t = np.float64(temperature) ** (2.0 * (k // 2) / F)
    inv = (1.0 / dim_t).astype(np.float32)
    cy = np.where(c < F, inv, 0.0).astype(np.float32)[:, None]        # (2F, 1)
    cx = np.where(c >= F, inv, 0.0).astype(np.float32)[:, None]       # (2F, 1)
    ph = np.where(k % 2 == 0, 0.0, np.pi / 2).astype(np.float32)[:, None]
    return cy, cx, ph


def _pick_hw_tile(HW, max_lanes):
    """Largest divisor of HW that is a multiple of 128 and <= max_lanes, else HW."""
    if HW <= max_lanes:
        return HW
    t = (max_lanes // 128) * 128
    while t >= 128:
        if HW % t == 0:
            return t
        t -= 128
    return HW   # no 128-multiple divisor; single full-width tile (vmem limit raised)


def _pick_batch_group(B, F2, T, bytes_per_elem):
    """Group batch elements per grid step for small maps (amortize step overhead)."""
    if T > 1024:
        return 1
    budget = 2 * 1024 * 1024          # cap the output block at ~2 MB
    bt = 1
    for cand in range(1, B + 1):
        if B % cand == 0 and cand * F2 * T * bytes_per_elem <= budget:
            bt = cand
    return bt


def position_embedding_sine(mask, *, num_pos_feats=64, temperature=100,
                            normalize=False, scale=None,
                            out_dtype=jnp.float32, max_hw_lanes=4096):
    """mask: (B, 1, H, W). Returns pos: (B, 2*num_pos_feats, H, W) (NCHW)."""
    if scale is not None and not normalize:
        raise ValueError('normalize should be True if scale is passed')
    if scale is None:
        scale = 2 * math.pi

    B, _, H, W = mask.shape
    HW = H * W
    F2 = 2 * num_pos_feats
    mask2d = mask[:, 0].astype(jnp.float32)                      # (B, H, W)

    # Tiny index rows and per-channel constants (everything big is built in-kernel).
    p = np.arange(HW, dtype=np.int32)
    wp = jnp.asarray((p % W)[None, :])                           # (1, HW) int32
    hp = jnp.asarray((p // W)[None, :])                          # (1, HW) int32
    cy, cx, ph = _make_channel_constants(num_pos_feats, temperature)
    cy_f, cx_f, ph_f = jnp.asarray(cy), jnp.asarray(cx), jnp.asarray(ph)

    T = _pick_hw_tile(HW, max_hw_lanes)
    n_t = HW // T
    Bt = _pick_batch_group(B, F2, T, jnp.dtype(out_dtype).itemsize)
    n_g = B // Bt
    lane_chunk = min(512, T)

    kernel = functools.partial(_pos_embed_kernel, normalize=normalize,
                               scale=float(scale), lane_chunk=lane_chunk)

    out = pl.pallas_call(
        kernel,
        out_shape=jax.ShapeDtypeStruct((B, F2, HW), out_dtype),
        grid=(n_t, n_g),                                          # HW tiles outer
        in_specs=[
            pl.BlockSpec((Bt, H, W), lambda t, g: (g, 0, 0)),     # mask
            pl.BlockSpec((1, T), lambda t, g: (0, t)),            # p %  W (per tile)
            pl.BlockSpec((1, T), lambda t, g: (0, t)),            # p // W (per tile)
            pl.BlockSpec((F2, 1), lambda t, g: (0, 0)),           # coef_y
            pl.BlockSpec((F2, 1), lambda t, g: (0, 0)),           # coef_x
            pl.BlockSpec((F2, 1), lambda t, g: (0, 0)),           # phase
        ],
        out_specs=pl.BlockSpec((Bt, F2, T), lambda t, g: (g, 0, t)),
        compiler_params=pltpu.CompilerParams(
            dimension_semantics=("parallel", "parallel"),
            vmem_limit_bytes=64 * 1024 * 1024),
    )(mask2d, wp, hp, cy_f, cx_f, ph_f)

    # Contiguous split of the flattened spatial axis: free, no data movement.
    return out.reshape(B, F2, H, W)


def _reference_pos_embed(mask, *, num_pos_feats=64, temperature=100,
                         normalize=False, scale=None):
    """Pure-JAX transcription of the PyTorch forward, for verification."""
    if scale is None:
        scale = 2 * math.pi
    not_mask = jnp.logical_not(mask[:, 0] > 0).astype(jnp.float32)
    y_embed = jnp.cumsum(not_mask, axis=1)
    x_embed = jnp.cumsum(not_mask, axis=2)
    if normalize:
        eps = 1e-6
        y_embed = y_embed / (y_embed[:, -1:, :] + eps) * scale
        x_embed = x_embed / (x_embed[:, :, -1:] + eps) * scale
    dim_t = jnp.arange(num_pos_feats, dtype=jnp.float32)
    dim_t = temperature ** (2 * jnp.floor(dim_t / 2) / num_pos_feats)
    pos_x = x_embed[:, :, :, None] / dim_t
    pos_y = y_embed[:, :, :, None] / dim_t
    pos_x = jnp.stack(
        (jnp.sin(pos_x[:, :, :, 0::2]), jnp.cos(pos_x[:, :, :, 1::2])),
        axis=4).reshape(pos_x.shape[0], pos_x.shape[1], pos_x.shape[2], -1)
    pos_y = jnp.stack(
        (jnp.sin(pos_y[:, :, :, 0::2]), jnp.cos(pos_y[:, :, :, 1::2])),
        axis=4).reshape(pos_y.shape[0], pos_y.shape[1], pos_y.shape[2], -1)
    pos = jnp.concatenate((pos_y, pos_x), axis=3).transpose(0, 3, 1, 2)
    return pos


if __name__ == "__main__":
    key = jax.random.PRNGKey(0)
    B, H, W = 2, 16, 16
    num_pos_feats = 64   # -> output channels = 128

    # Deterministic binary mask (values in {0, 1}), shape (B, 1, H, W), NCHW.
    mask = (jax.random.uniform(key, (B, 1, H, W)) > 0.7).astype(jnp.float32)

    # 1) f32 output, single HW tile + batch-grouped path.
    for normalize in (False, True):
        pos = position_embedding_sine(mask, num_pos_feats=num_pos_feats,
                                      temperature=100, normalize=normalize)
        pos = jax.block_until_ready(pos)
        ref = _reference_pos_embed(mask, num_pos_feats=num_pos_feats,
                                   temperature=100, normalize=normalize)
        assert pos.shape == (B, 2 * num_pos_feats, H, W), pos.shape
        err = float(jnp.max(jnp.abs(pos - ref)))
        assert err < 1e-4, (normalize, err)

    # 2) Force the multi-tile HW path (128-lane tiles) -- same numerics.
    ref_n = _reference_pos_embed(mask, num_pos_feats=num_pos_feats,
                                 temperature=100, normalize=True)
    pos_t = position_embedding_sine(mask, num_pos_feats=num_pos_feats,
                                    temperature=100, normalize=True,
                                    max_hw_lanes=128)
    pos_t = jax.block_until_ready(pos_t)
    err_t = float(jnp.max(jnp.abs(pos_t - ref_n)))
    assert err_t < 1e-4, err_t

    # 3) bf16 output path (halves HBM writeback); tolerance = bf16 rounding of [-1, 1].
    pos_bf = position_embedding_sine(mask, num_pos_feats=num_pos_feats,
                                     temperature=100, normalize=True,
                                     out_dtype=jnp.bfloat16)
    pos_bf = jax.block_until_ready(pos_bf)
    err_bf = float(jnp.max(jnp.abs(pos_bf.astype(jnp.float32) - ref_n)))
    assert err_bf < 8e-3, err_bf

    print("KERNEL_OK")
</pallas_src>

<mosaic_0001>
module attributes {stable_mosaic.version = 11 : i64} {
  func.func @_pos_embed_kernel(%arg0: i32, %arg1: i32, %arg2: memref<2x16x16xf32, #tpu.memory_space<vmem>>, %arg3: memref<1x256xi32, #tpu.memory_space<vmem>>, %arg4: memref<1x256xi32, #tpu.memory_space<vmem>>, %arg5: memref<128x1xf32, #tpu.memory_space<vmem>>, %arg6: memref<128x1xf32, #tpu.memory_space<vmem>>, %arg7: memref<128x1xf32, #tpu.memory_space<vmem>>, %arg8: memref<2x128x256xf32, #tpu.memory_space<vmem>>) attributes {dimension_semantics = [#tpu.dimension_semantics<parallel>, #tpu.dimension_semantics<parallel>], iteration_bounds = array<i64: 1, 1>, scalar_prefetch = 0 : i64, scratch_operands = 0 : i64, tpu.core_type = #tpu.core_type<tc>, window_params = [{transform_indices = @transform_0, window_bounds = array<i64: 2, 16, 16>}, {transform_indices = @transform_1, window_bounds = array<i64: 1, 256>}, {transform_indices = @transform_2, window_bounds = array<i64: 1, 256>}, {pipeline_mode = #tpu.pipeline_mode<synchronous>, transform_indices = @transform_3, window_bounds = array<i64: 128, 1>}, {pipeline_mode = #tpu.pipeline_mode<synchronous>, transform_indices = @transform_4, window_bounds = array<i64: 128, 1>}, {pipeline_mode = #tpu.pipeline_mode<synchronous>, transform_indices = @transform_5, window_bounds = array<i64: 128, 1>}, {transform_indices = @transform_6, window_bounds = array<i64: 2, 128, 256>}]} {
    %c0 = arith.constant 0 : index
    %c0_0 = arith.constant 0 : index
    %0 = vector.load %arg3[%c0, %c0_0] : memref<1x256xi32, #tpu.memory_space<vmem>>, vector<1x256xi32>
    %c0_1 = arith.constant 0 : index
    %c0_2 = arith.constant 0 : index
    %1 = vector.load %arg4[%c0_1, %c0_2] : memref<1x256xi32, #tpu.memory_space<vmem>>, vector<1x256xi32>
    %2 = tpu.iota {dimensions = array<i32: 0>} : vector<16x256xi32>
    %3 = tpu.iota {dimensions = array<i32: 0>} : vector<16x256xi32>
    %4 = vector.broadcast %0 : vector<1x256xi32> to vector<16x256xi32>
    %5 = arith.cmpi eq, %2, %4 : vector<16x256xi32>
    %6 = arith.extui %5 : vector<16x256xi1> to vector<16x256xi32>
    %7 = arith.sitofp %6 : vector<16x256xi32> to vector<16x256xf32>
    %8 = arith.truncf %7 : vector<16x256xf32> to vector<16x256xbf16>
    %9 = vector.broadcast %0 : vector<1x256xi32> to vector<16x256xi32>
    %10 = arith.cmpi sle, %2, %9 : vector<16x256xi32>
    %11 = arith.extui %10 : vector<16x256xi1> to vector<16x256xi32>
    %12 = arith.sitofp %11 : vector<16x256xi32> to vector<16x256xf32>
    %13 = arith.truncf %12 : vector<16x256xf32> to vector<16x256xbf16>
    %14 = vector.broadcast %1 : vector<1x256xi32> to vector<16x256xi32>
    %15 = arith.cmpi sle, %3, %14 : vector<16x256xi32>
    %16 = arith.extui %15 : vector<16x256xi1> to vector<16x256xi32>
    %17 = arith.sitofp %16 : vector<16x256xi32> to vector<16x256xf32>
    %18 = vector.broadcast %1 : vector<1x256xi32> to vector<16x256xi32>
    %19 = arith.cmpi eq, %3, %18 : vector<16x256xi32>
    %20 = arith.extui %19 : vector<16x256xi1> to vector<16x256xi32>
    %21 = arith.sitofp %20 : vector<16x256xi32> to vector<16x256xf32>
    %c0_3 = arith.constant 0 : index
    %c0_4 = arith.constant 0 : index
    %22 = vector.load %arg5[%c0_3, %c0_4] : memref<128x1xf32, #tpu.memory_space<vmem>>, vector<128x1xf32>
    %c0_5 = arith.constant 0 : index
    %c0_6 = arith.constant 0 : index
    %23 = vector.load %arg6[%c0_5, %c0_6] : memref<128x1xf32, #tpu.memory_space<vmem>>, vector<128x1xf32>
    %c0_7 = arith.constant 0 : index
    %c0_8 = arith.constant 0 : index
    %24 = vector.load %arg7[%c0_7, %c0_8] : memref<128x1xf32, #tpu.memory_space<vmem>>, vector<128x1xf32>
    %c0_9 = arith.constant 0 : index
    %c0_10 = arith.constant 0 : index
    %c0_11 = arith.constant 0 : index
    %25 = vector.load %arg2[%c0_9, %c0_10, %c0_11] : memref<2x16x16xf32, #tpu.memory_space<vmem>>, vector<1x16x16xf32>
    %26 = vector.shape_cast %25 : vector<1x16x16xf32> to vector<16x16xf32>
    %cst = arith.constant 0.000000e+00 : f32
    %27 = vector.broadcast %cst : f32 to vector<16x16xf32>
    %28 = arith.cmpf ole, %26, %27 : vector<16x16xf32>
    %29 = arith.extui %28 : vector<16x16xi1> to vector<16x16xi32>
    %30 = arith.sitofp %29 : vector<16x16xi32> to vector<16x16xf32>
    %31 = arith.truncf %30 : vector<16x16xf32> to vector<16x16xbf16>
    %cst_12 = arith.constant dense<0.000000e+00> : vector<16x256xf32>
    %32 = tpu.matmul %31, %8, %cst_12 {dimension_numbers = #tpu.dot_dimension_numbers<[1], [0], [0], [1], [0, 0, 1, 1], [], []>} : vector<16x16xbf16>, vector<16x256xbf16>, vector<16x256xf32> -> vector<16x256xf32>
    %cst_13 = arith.constant dense<0.000000e+00> : vector<16x256xf32>
    %33 = tpu.matmul %31, %13, %cst_13 {dimension_numbers = #tpu.dot_dimension_numbers<[1], [0], [0], [1], [0, 0, 1, 1], [], []>} : vector<16x16xbf16>, vector<16x256xbf16>, vector<16x256xf32> -> vector<16x256xf32>
    %34 = arith.mulf %17, %32 : vector<16x256xf32>
    %cst_14 = arith.constant dense<0.000000e+00> : vector<256xf32>
    %35 = vector.multi_reduction <add>, %34, %cst_14 [0] : vector<16x256xf32> to vector<256xf32>
    %36 = vector.shape_cast %35 : vector<256xf32> to vector<1x256xf32>
    %37 = arith.mulf %21, %33 : vector<16x256xf32>
    %cst_15 = arith.constant dense<0.000000e+00> : vector<256xf32>
    %38 = vector.multi_reduction <add>, %37, %cst_15 [0] : vector<16x256xf32> to vector<256xf32>
    %39 = vector.shape_cast %38 : vector<256xf32> to vector<1x256xf32>
    %40 = vector.broadcast %36 : vector<1x256xf32> to vector<128x256xf32>
    %41 = vector.broadcast %22 : vector<128x1xf32> to vector<128x256xf32>
    %42 = arith.mulf %40, %41 : vector<128x256xf32>
    %43 = vector.broadcast %39 : vector<1x256xf32> to vector<128x256xf32>
    %44 = vector.broadcast %23 : vector<128x1xf32> to vector<128x256xf32>
    %45 = arith.mulf %43, %44 : vector<128x256xf32>
    %46 = arith.addf %42, %45 : vector<128x256xf32>
    %47 = vector.broadcast %24 : vector<128x1xf32> to vector<128x256xf32>
    %48 = arith.addf %46, %47 : vector<128x256xf32>
    %49 = math.sin %48 : vector<128x256xf32>
    %c0_16 = arith.constant 0 : index
    %c0_17 = arith.constant 0 : index
    %c0_18 = arith.constant 0 : index
    %50 = vector.load %arg8[%c0_16, %c0_17, %c0_18] : memref<2x128x256xf32, #tpu.memory_space<vmem>>, vector<1x128x256xf32>
    %51 = vector.shape_cast %50 : vector<1x128x256xf32> to vector<128x256xf32>
    %52 = vector.shape_cast %49 : vector<128x256xf32> to vector<1x128x256xf32>
    tpu.vector_store %arg8[%c0_16, %c0_17, %c0_18], %52 {strides = array<i32>} : memref<2x128x256xf32, #tpu.memory_space<vmem>>, vector<1x128x256xf32>,
    %c1 = arith.constant 1 : index
    %c0_19 = arith.constant 0 : index
    %c0_20 = arith.constant 0 : index
    %53 = vector.load %arg2[%c1, %c0_19, %c0_20] : memref<2x16x16xf32, #tpu.memory_space<vmem>>, vector<1x16x16xf32>
    %54 = vector.shape_cast %53 : vector<1x16x16xf32> to vector<16x16xf32>
    %cst_21 = arith.constant 0.000000e+00 : f32
    %55 = vector.broadcast %cst_21 : f32 to vector<16x16xf32>
    %56 = arith.cmpf ole, %54, %55 : vector<16x16xf32>
    %57 = arith.extui %56 : vector<16x16xi1> to vector<16x16xi32>
    %58 = arith.sitofp %57 : vector<16x16xi32> to vector<16x16xf32>
    %59 = arith.truncf %58 : vector<16x16xf32> to vector<16x16xbf16>
    %cst_22 = arith.constant dense<0.000000e+00> : vector<16x256xf32>
    %60 = tpu.matmul %59, %8, %cst_22 {dimension_numbers = #tpu.dot_dimension_numbers<[1], [0], [0], [1], [0, 0, 1, 1], [], []>} : vector<16x16xbf16>, vector<16x256xbf16>, vector<16x256xf32> -> vector<16x256xf32>
    %cst_23 = arith.constant dense<0.000000e+00> : vector<16x256xf32>
    %61 = tpu.matmul %59, %13, %cst_23 {dimension_numbers = #tpu.dot_dimension_numbers<[1], [0], [0], [1], [0, 0, 1, 1], [], []>} : vector<16x16xbf16>, vector<16x256xbf16>, vector<16x256xf32> -> vector<16x256xf32>
    %62 = arith.mulf %17, %60 : vector<16x256xf32>
    %cst_24 = arith.constant dense<0.000000e+00> : vector<256xf32>
    %63 = vector.multi_reduction <add>, %62, %cst_24 [0] : vector<16x256xf32> to vector<256xf32>
    %64 = vector.shape_cast %63 : vector<256xf32> to vector<1x256xf32>
    %65 = arith.mulf %21, %61 : vector<16x256xf32>
    %cst_25 = arith.constant dense<0.000000e+00> : vector<256xf32>
    %66 = vector.multi_reduction <add>, %65, %cst_25 [0] : vector<16x256xf32> to vector<256xf32>
    %67 = vector.shape_cast %66 : vector<256xf32> to vector<1x256xf32>
    %68 = vector.broadcast %64 : vector<1x256xf32> to vector<128x256xf32>
    %69 = vector.broadcast %22 : vector<128x1xf32> to vector<128x256xf32>
    %70 = arith.mulf %68, %69 : vector<128x256xf32>
    %71 = vector.broadcast %67 : vector<1x256xf32> to vector<128x256xf32>
    %72 = vector.broadcast %23 : vector<128x1xf32> to vector<128x256xf32>
    %73 = arith.mulf %71, %72 : vector<128x256xf32>
    %74 = arith.addf %70, %73 : vector<128x256xf32>
    %75 = vector.broadcast %24 : vector<128x1xf32> to vector<128x256xf32>
    %76 = arith.addf %74, %75 : vector<128x256xf32>
    %77 = math.sin %76 : vector<128x256xf32>
    %c1_26 = arith.constant 1 : index
    %c0_27 = arith.constant 0 : index
    %c0_28 = arith.constant 0 : index
    %78 = vector.load %arg8[%c1_26, %c0_27, %c0_28] : memref<2x128x256xf32, #tpu.memory_space<vmem>>, vector<1x128x256xf32>
    %79 = vector.shape_cast %78 : vector<1x128x256xf32> to vector<128x256xf32>
    %80 = vector.shape_cast %77 : vector<128x256xf32> to vector<1x128x256xf32>
    tpu.vector_store %arg8[%c1_26, %c0_27, %c0_28], %80 {strides = array<i32>} : memref<2x128x256xf32, #tpu.memory_space<vmem>>, vector<1x128x256xf32>,
    return
  }
  func.func @transform_0(%arg0: i32, %arg1: i32) -> (i32, i32, i32) {
    %c0_i32 = arith.constant 0 : i32
    %c0_i32_0 = arith.constant 0 : i32
    %c0_i32_1 = arith.constant 0 : i32
    return %arg1, %c0_i32, %c0_i32_0 : i32, i32, i32
  }
  func.func @transform_1(%arg0: i32, %arg1: i32) -> (i32, i32) {
    %c0_i32 = arith.constant 0 : i32
    %c0_i32_0 = arith.constant 0 : i32
    return %c0_i32, %arg0 : i32, i32
  }
  func.func @transform_2(%arg0: i32, %arg1: i32) -> (i32, i32) {
    %c0_i32 = arith.constant 0 : i32
    %c0_i32_0 = arith.constant 0 : i32
    return %c0_i32, %arg0 : i32, i32
  }
  func.func @transform_3(%arg0: i32, %arg1: i32) -> (i32, i32) {
    %c0_i32 = arith.constant 0 : i32
    %c0_i32_0 = arith.constant 0 : i32
    %c0_i32_1 = arith.constant 0 : i32
    return %c0_i32, %c0_i32_0 : i32, i32
  }
  func.func @transform_4(%arg0: i32, %arg1: i32) -> (i32, i32) {
    %c0_i32 = arith.constant 0 : i32
    %c0_i32_0 = arith.constant 0 : i32
    %c0_i32_1 = arith.constant 0 : i32
    return %c0_i32, %c0_i32_0 : i32, i32
  }
  func.func @transform_5(%arg0: i32, %arg1: i32) -> (i32, i32) {
    %c0_i32 = arith.constant 0 : i32
    %c0_i32_0 = arith.constant 0 : i32
    %c0_i32_1 = arith.constant 0 : i32
    return %c0_i32, %c0_i32_0 : i32, i32
  }
  func.func @transform_6(%arg0: i32, %arg1: i32) -> (i32, i32, i32) {
    %c0_i32 = arith.constant 0 : i32
    %c0_i32_0 = arith.constant 0 : i32
    return %arg1, %c0_i32, %arg0 : i32, i32, i32
  }
}

</mosaic_0001>

<bundles_post_ra>
// kernel: tpu_custom_call.1
= control target key start
LH: loop header
LB: loop body
LE: loop exit
PB: predicated region body
PF: predicated region fallthrough
CT: control target
= control target key end

     0   :  { %11 = vsyncpa [#allocation3], 0  ;;  %s14605_s0 = inlined_call_operand.hbm [shape: f32[2,16,16], index: 0, kind: input, shape index: {}]   ;;  %s14606_s1 = inlined_call_operand.hbm [shape: s32[1,256], index: 1, kind: input, shape index: {}]   ;;  %s14607_s2 = inlined_call_operand.hbm [shape: s32[1,256], index: 2, kind: input, shape index: {}]   ;;  %s14608_s3 = inlined_call_operand.hbm [shape: f32[128,1], index: 3, kind: input, shape index: {}]   ;;  %s14609_s4 = inlined_call_operand.hbm [shape: f32[128,1], index: 4, kind: input, shape index: {}]   ;;  %s14610_s5 = inlined_call_operand.hbm [shape: f32[128,1], index: 5, kind: input, shape index: {}]   ;;  %s14611_s6 = inlined_call_operand.hbm [shape: f32[2,128,256], index: 6, kind: output, shape index: {}]  }
   0x1   :  { %12 = vsyncpa [#allocation6], 0 }
   0x2   :  { %13 = vsyncpa [#allocation9], 0 }
   0x3   :  { %14 = vsyncpa [#allocation12], 0 }
   0x4   :  { %15 = vsyncpa [#allocation4], 0  ;;  %s8726_s21 = smov [#allocation5]   ;;  %s8562_s25 = scalar_lea.hbm %s14606_s1, 32 }
   0x5   :  { %s34_s22 = sshll.u32 %s8726_s21, 4  ;;  %p8563_p0 = scmp.ne.s32.totalorder %s14606_s1, %s8562_s25  ;;  %s35_s22 = int_to_ptr.vmem [resolvable:$true] %s34_s22 }
   0x6   :  { %p8566_p1 = scmp.lt.u32.totalorder %s8562_s25, %s14606_s1 }
   0x8   :  { %p8568_p2 = pnand %p8566_p1, %p8563_p0 }
   0xa   :  { %8571 = shalt.err (!%p8568_p2)
}
   0xb   :  { %s8572_s30 = scalar_lea.vmem %s35_s22, 32  ;;  %p8577_p4 = scmp.lt.s32.totalorder %s35_s22, %s35_s22 }
   0xc   :  { %p8573_p3 = scmp.ne.s32.totalorder %s35_s22, %s8572_s30  ;;  %p8578_p5 = scmp.lt.s32.totalorder %s8572_s30, %s8572_s30 }
   0xe   :  { %p8579_p6 = por %p8578_p5, %p8577_p4 }
  0x10   :  { %p8580_p7 = pnand %p8579_p6, %p8573_p3 }
  0x12   :  { %8583 = shalt.err (!%p8580_p7)
}
  0x13   :  { %37 = dma.hbm_to_vmem [thread:$0]  %s14606_s1, 32, %s35_s22, [#allocation6]  }
  0x14   :  { %s8727_s9 = smov [#allocation8]   ;;  %s8728_s11 = smov [#allocation2]  }
  0x15   :  { %s53_s10 = sshll.u32 %s8727_s9, 4  ;;  %s21_s12 = sshll.u32 %s8728_s11, 4  ;;  %s54_s10 = int_to_ptr.vmem [resolvable:$true] %s53_s10  ;;  %s22_s12 = int_to_ptr.vmem [resolvable:$true] %s21_s12 }
  0x16   :  { %s8584_s15 = scalar_lea.hbm %s14608_s3, 2048 }
  0x17   :  { %p8585_p8 = scmp.ne.s32.totalorder %s14608_s3, %s8584_s15  ;;  %p8588_p9 = scmp.lt.u32.totalorder %s8584_s15, %s14608_s3 }
  0x19   :  { %p8590_p10 = pnand %p8588_p9, %p8585_p8 }
  0x1b   :  { %8593 = shalt.err (!%p8590_p10)
}
  0x1c   :  { %s8594_s1 = scalar_lea.vmem %s54_s10, 2048  ;;  %p8599_p12 = scmp.lt.s32.totalorder %s54_s10, %s54_s10 }
  0x1d   :  { %p8595_p11 = scmp.ne.s32.totalorder %s54_s10, %s8594_s1  ;;  %p8600_p13 = scmp.lt.s32.totalorder %s8594_s1, %s8594_s1 }
  0x1f   :  { %p8601_p0 = por %p8600_p13, %p8599_p12 }
  0x21   :  { %p8602_p1 = pnand %p8601_p0, %p8595_p11 }
  0x23   :  { %8605 = shalt.err (!%p8602_p1)
}
  0x24   :  { %s8729_s20 = smov 128   ;;  %s8730_s21 = smov 8  }
  0x25   :  { %59 = dma.hbm_to_vmem [thread:$0]  %s14608_s3, 2048, %s54_s10, [#allocation9], %s8729_s20, %s8729_s20, %s8730_s21  }
  0x26   :  { %s8606_s26 = scalar_lea.hbm %s14605_s0, 512 }
  0x27   :  { %p8607_p2 = scmp.ne.s32.totalorder %s14605_s0, %s8606_s26  ;;  %p8610_p3 = scmp.lt.u32.totalorder %s8606_s26, %s14605_s0 }
  0x29   :  { %p8612_p4 = pnand %p8610_p3, %p8607_p2 }
  0x2b   :  { %8615 = shalt.err (!%p8612_p4)
}
  0x2c   :  { %s8616_s7 = scalar_lea.vmem %s22_s12, 512  ;;  %p8621_p6 = scmp.lt.s32.totalorder %s22_s12, %s22_s12 }
  0x2d   :  { %p8617_p5 = scmp.ne.s32.totalorder %s22_s12, %s8616_s7  ;;  %p8622_p7 = scmp.lt.s32.totalorder %s8616_s7, %s8616_s7 }
  0x2f   :  { %p8623_p8 = por %p8622_p7, %p8621_p6 }
  0x31   :  { %p8624_p9 = pnand %p8623_p8, %p8617_p5 }
  0x33   :  { %8627 = shalt.err (!%p8624_p9)
}
  0x34   :  { %27 = dma.hbm_to_vmem [thread:$0]  %s14605_s0, 512, %s22_s12, [#allocation3], %s8729_s20, %s8729_s20, %s8730_s21  }
  0x35   :  { %s8731_s9 = smov [#allocation7]   ;;  %s8732_s11 = smov [#allocation10]  }
  0x36   :  { %s44_s10 = sshll.u32 %s8731_s9, 4  ;;  %s65_s13 = sshll.u32 %s8732_s11, 4  ;;  %s45_s10 = int_to_ptr.vmem [resolvable:$true] %s44_s10  ;;  %s66_s13 = int_to_ptr.vmem [resolvable:$true] %s65_s13 }
  0x37   :  { %s8628_s16 = scalar_lea.hbm %s14607_s2, 32 }
  0x38   :  { %p8629_p10 = scmp.ne.s32.totalorder %s14607_s2, %s8628_s16  ;;  %p8632_p11 = scmp.lt.u32.totalorder %s8628_s16, %s14607_s2 }
  0x3a   :  { %p8634_p12 = pnand %p8632_p11, %p8629_p10 }
  0x3c   :  { %8637 = shalt.err (!%p8634_p12)
}
  0x3d   :  { %s8638_s0 = scalar_lea.vmem %s45_s10, 32  ;;  %p8643_p0 = scmp.lt.s32.totalorder %s45_s10, %s45_s10 }
  0x3e   :  { %p8639_p13 = scmp.ne.s32.totalorder %s45_s10, %s8638_s0  ;;  %p8644_p1 = scmp.lt.s32.totalorder %s8638_s0, %s8638_s0 }
  0x40   :  { %p8645_p2 = por %p8644_p1, %p8643_p0 }
  0x42   :  { %p8646_p3 = pnand %p8645_p2, %p8639_p13 }
  0x44   :  { %8649 = shalt.err (!%p8646_p3)
}
  0x45   :  { %47 = dma.hbm_to_vmem [thread:$0]  %s14607_s2, 32, %s45_s10, [#allocation6]  }
  0x46   :  { %s8650_s25 = scalar_lea.hbm %s14609_s4, 2048 }
  0x47   :  { %p8651_p4 = scmp.ne.s32.totalorder %s14609_s4, %s8650_s25  ;;  %p8654_p5 = scmp.lt.u32.totalorder %s8650_s25, %s14609_s4 }
  0x49   :  { %p8656_p6 = pnand %p8654_p5, %p8651_p4 }
  0x4b   :  { %8659 = shalt.err (!%p8656_p6)
}
  0x4c   :  { %s8660_s30 = scalar_lea.vmem %s66_s13, 2048  ;;  %p8665_p8 = scmp.lt.s32.totalorder %s66_s13, %s66_s13 }
  0x4d   :  { %p8661_p7 = scmp.ne.s32.totalorder %s66_s13, %s8660_s30  ;;  %p8666_p9 = scmp.lt.s32.totalorder %s8660_s30, %s8660_s30 }
  0x4f   :  { %p8667_p10 = por %p8666_p9, %p8665_p8 }
  0x51   :  { %p8668_p11 = pnand %p8667_p10, %p8661_p7 }
  0x53   :  { %8671 = shalt.err (!%p8668_p11)
}
  0x54   :  { %71 = dma.hbm_to_vmem [thread:$0]  %s14609_s4, 2048, %s66_s13, [#allocation9], %s8729_s20, %s8729_s20, %s8730_s21  }
  0x55   :  { %s8733_s3 = smov [#allocation11]   ;;  %s8672_s11 = scalar_lea.hbm %s14610_s5, 2048 }
  0x56   :  { %s77_s8 = sshll.u32 %s8733_s3, 4  ;;  %p8673_p12 = scmp.ne.s32.totalorder %s14610_s5, %s8672_s11  ;;  %s78_s8 = int_to_ptr.vmem [resolvable:$true] %s77_s8 }
  0x57   :  { %p8676_p13 = scmp.lt.u32.totalorder %s8672_s11, %s14610_s5 }
  0x59   :  { %p8678_p0 = pnand %p8676_p13, %p8673_p12 }
  0x5b   :  { %8681 = shalt.err (!%p8678_p0)
}
  0x5c   :  { %s8682_s18 = scalar_lea.vmem %s78_s8, 2048  ;;  %p8687_p2 = scmp.lt.s32.totalorder %s78_s8, %s78_s8 }
  0x5d   :  { %p8683_p1 = scmp.ne.s32.totalorder %s78_s8, %s8682_s18  ;;  %p8688_p3 = scmp.lt.s32.totalorder %s8682_s18, %s8682_s18 }
  0x5f   :  { %p8689_p4 = por %p8688_p3, %p8687_p2 }
  0x61   :  { %p8690_p5 = pnand %p8689_p4, %p8683_p1 }
  0x63   :  { %8693 = shalt.err (!%p8690_p5)
}
  0x64   :  { %83 = dma.hbm_to_vmem [thread:$0]  %s14610_s5, 2048, %s78_s8, [#allocation12], %s8729_s20, %s8729_s20, %s8730_s21  }
  0x65   :  { %8716 = dma.done.wait [#allocation3], 512  }
  0x66   :  { %8717 = vsyncadd [#allocation3], 4294966784 }
  0x67   :  { %8718 = dma.done.wait [#allocation6], 64  }
  0x68   :  { %8719 = vsyncadd [#allocation6], 4294967232 }
  0x69   :  { %8720 = dma.done.wait [#allocation9], 4096  }
  0x6a   :  { %8721 = vsyncadd [#allocation9], 4294963200 }
  0x6b   :  { %8722 = dma.done.wait [#allocation12], 2048  }
  0x6c   :  { %8723 = vsyncadd [#allocation12], 4294965248  ;;  %v105_v0 = vlaneseq  ;;  %v8734_v1 = vmov 0   ;;  %v178_v5 = vld [vmem:[#allocation8 + $0x10] sm:$0xff]  ;;  %v176_v6 = vld [vmem:[#allocation8] sm:$0xff]  ;;  %v14612_v17 = vmov 0.0  }
  0x6d   :  { %8304 = vset.pattern.permute.xlu1 %v8734_v1  ;;  %8303 = vset.pattern.permute.xlu0 %v8734_v1  ;;  %v179_v8 = vld [vmem:[#allocation8 + $0x18] sm:$0xff]  ;;  %v177_v10 = vld [vmem:[#allocation8 + $0x8] sm:$0xff]  ;;  %v8736_v19 = vmov 1.0|1.0   ;;  %v180_v25 = vld [vmem:[#allocation8 + $0x20] sm:$0xff]  ;;  %vm233_vm14 = vcmask 130048  }
  0x6e   :  { %v8867_v2 = vshrl.u32 %v105_v0, 7  ;;  %269 = vmatprep.mubr.bf16.mxu0 %v8734_v1  ;;  %312 = vmatprep.mubr.bf16.mxu1 %v8734_v1  ;;  %v103_v9 = vld [vmem:[#allocation5] sm:$0x3]  ;;  %v225_v14 = vld [vmem:[#allocation2 + $0x8] sm:$0xff]  ;;  %v4088_v22 = vld [vmem:[#allocation2 + $0x10] sm:$0xff]  ;;  %s8743_s5 = smov [#allocation13]  }
  0x6f   :  { %371 = vperm.xlu1 %8304, %v178_v5   ;;  %361 = vperm.xlu0 %8303, %v176_v6   ;;  %v224_v13 = vld [vmem:[#allocation2] sm:$0xff]  ;;  %vm227_vm1 = vcmp.le.f32.partialorder %v225_v14, 0.0  ;;  %v181_v16 = vld [vmem:[#allocation8 + $0x28] sm:$0xff]  ;;  %v4089_v23 = vld [vmem:[#allocation2 + $0x18] sm:$0xff]  ;;  %vm4090_vm15 = vcmp.le.f32.partialorder %v4088_v22, 0.0  ;;  %s7716_s20 = sshll.u32 %s8743_s5, 4  ;;  %s7717_s20 = int_to_ptr.vmem [resolvable:$true] %s7716_s20 }
  0x70   :  { %v14614_v3 = vsub.s32 1, %v8867_v2  ;;  %v110_v4 = vsub.s32 0, %v8867_v2  ;;  %v8874_v7 = vadd.s32 8, %v8867_v2  ;;  %vm226_vm0 = vcmp.le.f32.partialorder %v224_v13, 0.0  ;;  %v183_v28 = vld [vmem:[#allocation8 + $0x38] sm:$0xff]  ;;  %v182_v29 = vld [vmem:[#allocation8 + $0x30] sm:$0xff]  ;;  %p8699_p7 = scmp.lt.s32.totalorder %s7717_s20, %s7717_s20 }
  0x71   :  { %v7747_v18 = vsel %vm226_vm0, 1.0, %v14612_v17  ;;  %v7748_v21 = vsel %vm227_vm1, 1.0, %v14612_v17  ;;  %vm4091_vm0 = vcmp.le.f32.partialorder %v4089_v23, 0.0  ;;  %v7887_v30 = vsel %vm4090_vm15, 1.0, %v14612_v17  ;;  %v185_v32 = vld [vmem:[#allocation8 + $0x48] sm:$0xff]  ;;  %v184_v33 = vld [vmem:[#allocation8 + $0x40] sm:$0xff] }
  0x72   :  { %v115_v11 = vrot.slane %v103_v9, %v14614_v3  ;;  %v111_v12 = vrot.slane %v103_v9, %v110_v4  ;;  %v232_v26 = vpack.c.bf16 %v7748_v21, %v7747_v18  ;;  %v7888_v31 = vsel %vm4091_vm0, 1.0, %v14612_v17  ;;  %v187_v35 = vld [vmem:[#allocation8 + $0x58] sm:$0xff]  ;;  %v186_v36 = vld [vmem:[#allocation8 + $0x50] sm:$0xff]  ;;  %v189_v37 = vld [vmem:[#allocation8 + $0x68] sm:$0xff]  ;;  %s8694_s21 = scalar_lea.vmem %s7717_s20, 8192 }
  0x73   :  { %376 = vperm.xlu1 %8304, %v179_v8   ;;  %366 = vperm.xlu0 %8303, %v177_v10   ;;  %v4096_v34 = vpack.c.bf16 %v7888_v31, %v7887_v30  ;;  %v188_v38 = vld [vmem:[#allocation8 + $0x60] sm:$0xff]  ;;  %v191_v39 = vld [vmem:[#allocation8 + $0x78] sm:$0xff]  ;;  %v190_v40 = vld [vmem:[#allocation8 + $0x70] sm:$0xff]  ;;  %p8695_p6 = scmp.ne.s32.totalorder %s7717_s20, %s8694_s21  ;;  %p8700_p8 = scmp.lt.s32.totalorder %s8694_s21, %s8694_s21 }
  0x74   :  { %vm117_vm2 = vcmp.eq.s32.totalorder %v8867_v2, %v115_v11  ;;  %vm119_vm3 = vcmp.eq.s32.totalorder %v8874_v7, %v115_v11  ;;  %vm131_vm4 = vcmp.le.s32.totalorder %v8867_v2, %v115_v11  ;;  %vm133_vm5 = vcmp.le.s32.totalorder %v8874_v7, %v115_v11  ;;  %v193_v41 = vld [vmem:[#allocation10 + $0x8] sm:$0xff]  ;;  %v192_v42 = vld [vmem:[#allocation10] sm:$0xff]  ;;  %v195_v43 = vld [vmem:[#allocation10 + $0x18] sm:$0xff] }
  0x75   :  { %vm8884_vm6 = vmpackc.low %vm119_vm3, %vm117_vm2  ;;  %vm116_vm7 = vcmp.eq.s32.totalorder %v8867_v2, %v111_v12  ;;  %vm118_vm8 = vcmp.eq.s32.totalorder %v8874_v7, %v111_v12  ;;  %vm130_vm9 = vcmp.le.s32.totalorder %v8867_v2, %v111_v12  ;;  %vm132_vm11 = vcmp.le.s32.totalorder %v8874_v7, %v111_v12  ;;  %v194_v44 = vld [vmem:[#allocation10 + $0x10] sm:$0xff]  ;;  %v197_v45 = vld [vmem:[#allocation10 + $0x28] sm:$0xff]  ;;  %p8701_p9 = por %p8700_p8, %p8699_p7 }
  0x76   :  { %7750 = vmatprep.subr.msk.bf16.mxu0 %vm8884_vm6, %v8736_v19  ;;  %vm8894_vm10 = vmpackc.low %vm133_vm5, %vm131_vm4  ;;  %v196_v46 = vld [vmem:[#allocation10 + $0x20] sm:$0xff]  ;;  %v199_v47 = vld [vmem:[#allocation10 + $0x38] sm:$0xff] }
  0x77   :  { %7755 = vmatprep.subr.msk.bf16.mxu1 %vm8894_vm10, %v8736_v19  ;;  %vm8903_vm12 = vmpackc.low %vm118_vm8, %vm116_vm7  ;;  %386 = vperm.xlu1 %8304, %v181_v16   ;;  %v198_v48 = vld [vmem:[#allocation10 + $0x30] sm:$0xff]  ;;  %v201_v49 = vld [vmem:[#allocation10 + $0x48] sm:$0xff]  ;;  %p8702_p10 = pnand %p8701_p9, %p8695_p6 }
  0x78   :  { %7752 = vmatpush1.bf16.msk.msra.mxu0 %vm8903_vm12, %v8736_v19  ;;  %vm8911_vm13 = vmpackc.low %vm132_vm11, %vm130_vm9  ;;  %381 = vperm.xlu0 %8303, %v180_v25   ;;  %v200_v50 = vld [vmem:[#allocation10 + $0x40] sm:$0xff]  ;;  %v203_v51 = vld [vmem:[#allocation10 + $0x58] sm:$0xff] }
  0x79   :  { %7757 = vmatpush1.bf16.msk.msra.mxu1 %vm8911_vm13, %v8736_v19  ;;  %7890 = vmatprep.subr.msk.bf16.mxu0 %vm8884_vm6, %v8736_v19  ;;  %v202_v52 = vld [vmem:[#allocation10 + $0x50] sm:$0xff]  ;;  %v205_v53 = vld [vmem:[#allocation10 + $0x68] sm:$0xff]  ;;  %v204_v54 = vld [vmem:[#allocation10 + $0x60] sm:$0xff] }
  0x7a   :  { %7895 = vmatprep.subr.msk.bf16.mxu1 %vm8894_vm10, %v8736_v19  ;;  %v207_v55 = vld [vmem:[#allocation10 + $0x78] sm:$0xff]  ;;  %v206_v56 = vld [vmem:[#allocation10 + $0x70] sm:$0xff]  ;;  %v209_v57 = vld [vmem:[#allocation11 + $0x8] sm:$0xff] }
  0x7b   :  { %7753 = vmatmul.mubr.msk.bf16.vlgmr.msra.gmra.mrb[0].mxu0 %vm233_vm14, %v232_v26  ;;  %396 = vperm.xlu1 %8304, %v183_v28   ;;  %v208_v58 = vld [vmem:[#allocation11] sm:$0xff]  ;;  %v211_v59 = vld [vmem:[#allocation11 + $0x18] sm:$0xff]  ;;  %v210_v60 = vld [vmem:[#allocation11 + $0x10] sm:$0xff] }
  0x7c   :  { %7758 = vmatmul.mubr.msk.bf16.vlgmr.msra.gmra.mrb[0].mxu1 %vm233_vm14, %v232_v26  ;;  %7892 = vmatpush1.bf16.msk.msra.mxu0 %vm8903_vm12, %v8736_v19  ;;  %v213_v61 = vld [vmem:[#allocation11 + $0x28] sm:$0xff]  ;;  %v212_v62 = vld [vmem:[#allocation11 + $0x20] sm:$0xff]  ;;  %v215_v63 = vld [vmem:[#allocation11 + $0x38] sm:$0xff] }
  0x7d   :  { %7897 = vmatpush1.bf16.msk.msra.mxu1 %vm8911_vm13, %v8736_v19  ;;  %391 = vperm.xlu0 %8303, %v182_v29   ;;  %v214_v0 = vld [vmem:[#allocation11 + $0x30] sm:$0xff]  ;;  %v216_v5 = vld [vmem:[#allocation11 + $0x40] sm:$0xff]  ;;  %v219_v6 = vld [vmem:[#allocation11 + $0x58] sm:$0xff] }
  0x7e   :  { %4132 = vmatprep.mubr.bf16.mxu0 %v8734_v1  ;;  %4175 = vmatprep.mubr.bf16.mxu1 %v8734_v1  ;;  %v217_v1 = vld [vmem:[#allocation11 + $0x48] sm:$0xff]  ;;  %v218_v8 = vld [vmem:[#allocation11 + $0x50] sm:$0xff]  ;;  %v220_v10 = vld [vmem:[#allocation11 + $0x60] sm:$0xff] }
  0x7f   :  { %406 = vperm.xlu1 %8304, %v185_v32   ;;  %v221_v9 = vld [vmem:[#allocation11 + $0x68] sm:$0xff]  ;;  %v223_v11 = vld [vmem:[#allocation11 + $0x78] sm:$0xff]  ;;  %v222_v12 = vld [vmem:[#allocation11 + $0x70] sm:$0xff] }
  0x81   :  { %401 = vperm.xlu0 %8303, %v184_v33  }
  0x83   :  { %7893 = vmatmul.mubr.msk.bf16.vlgmr.msra.gmra.mrb[4].mxu0 %vm233_vm14, %v4096_v34  ;;  %416 = vperm.xlu1 %8304, %v187_v35  }
  0x84   :  { %7898 = vmatmul.mubr.msk.bf16.vlgmr.msra.gmra.mrb[4].mxu1 %vm233_vm14, %v4096_v34  ;;  %v104_v34 = vld [vmem:[#allocation7] sm:$0x3] }
  0x85   :  { %411 = vperm.xlu0 %8303, %v186_v36   ;;  %v147_v36 = vrot.slane %v104_v34, %v110_v4 }
  0x87   :  { %426 = vperm.xlu1 %8304, %v189_v37   ;;  %vm152_vm1 = vcmp.le.s32.totalorder %v8867_v2, %v147_v36  ;;  %vm154_vm2 = vcmp.le.s32.totalorder %v8874_v7, %v147_v36  ;;  %vm164_vm3 = vcmp.eq.s32.totalorder %v8867_v2, %v147_v36  ;;  %vm166_vm4 = vcmp.eq.s32.totalorder %v8874_v7, %v147_v36 }
  0x88   :  { %v8991_v4 = vsel %vm154_vm2, 1.0, %v14612_v17 }
  0x89   :  { %421 = vperm.xlu0 %8303, %v188_v38   ;;  %14789 = vst [vmem:[#allocation44_spill] sm:$0xff] %v8991_v4 }
  0x8b   :  { %436 = vperm.xlu1 %8304, %v191_v39  }
  0x8d   :  { %431 = vperm.xlu0 %8303, %v190_v40   ;;  %v8988_v40 = vsel %vm152_vm1, 1.0, %v14612_v17 }
  0x8e   :  { %14788 = vst [vmem:[#allocation43_spill] sm:$0xff] %v8988_v40 }
  0x8f   :  { %478 = vperm.xlu1 %8304, %v193_v41  }
  0x91   :  { %473 = vperm.xlu0 %8303, %v192_v42   ;;  %v8994_v42 = vsel %vm164_vm3, 1.0, %v14612_v17 }
  0x92   :  { %14790 = vst [vmem:[#allocation45_spill] sm:$0xff] %v8994_v42 }
  0x93   :  { %488 = vperm.xlu1 %8304, %v195_v43  }
  0x95   :  { %483 = vperm.xlu0 %8303, %v194_v44  }
  0x97   :  { %498 = vperm.xlu1 %8304, %v197_v45   ;;  %v8999_v45 = vsel %vm166_vm4, 1.0, %v14612_v17 }
  0x98   :  { %14791 = vst [vmem:[#allocation46_spill] sm:$0xff] %v8999_v45 }
  0x99   :  { %493 = vperm.xlu0 %8303, %v196_v46  }
  0x9b   :  { %508 = vperm.xlu1 %8304, %v199_v47  }
  0x9d   :  { %503 = vperm.xlu0 %8303, %v198_v48  }
  0x9f   :  { %518 = vperm.xlu1 %8304, %v201_v49  }
  0xa1   :  { %513 = vperm.xlu0 %8303, %v200_v50  }
  0xa3   :  { %528 = vperm.xlu1 %8304, %v203_v51  }
  0xa5   :  { %523 = vperm.xlu0 %8303, %v202_v52  }
  0xa7   :  { %538 = vperm.xlu1 %8304, %v205_v53  }
  0xa9   :  { %533 = vperm.xlu0 %8303, %v204_v54  }
  0xab   :  { %548 = vperm.xlu1 %8304, %v207_v55  }
  0xad   :  { %543 = vperm.xlu0 %8303, %v206_v56  }
  0xaf   :  { %622 = vperm.xlu1 %8304, %v209_v57  }
  0xb1   :  { %617 = vperm.xlu0 %8303, %v208_v58  }
  0xb3   :  { %632 = vperm.xlu1 %8304, %v211_v59  }
  0xb5   :  { %627 = vperm.xlu0 %8303, %v210_v60  }
  0xb7   :  { %642 = vperm.xlu1 %8304, %v213_v61  }
  0xb9   :  { %637 = vperm.xlu0 %8303, %v212_v62  }
  0xbb   :  { %652 = vperm.xlu1 %8304, %v215_v63  }
  0xbd   :  { %647 = vperm.xlu0 %8303, %v214_v0  }
  0xbf   :  { %662 = vperm.xlu1 %8304, %v217_v1  }
  0xc1   :  { %657 = vperm.xlu0 %8303, %v216_v5  }
  0xc3   :  { %672 = vperm.xlu1 %8304, %v219_v6  }
  0xc5   :  { %667 = vperm.xlu0 %8303, %v218_v8  }
  0xc7   :  { %682 = vperm.xlu1 %8304, %v221_v9  }
  0xc9   :  { %677 = vperm.xlu0 %8303, %v220_v10  }
  0xcb   :  { %692 = vperm.xlu1 %8304, %v223_v11  }
  0xcd   :  { %687 = vperm.xlu0 %8303, %v222_v12  }
  0xee   :  { %v8933_v13 = vpop.permute.xlu0 %361  ;;  %v8935_v14 = vpop.permute.xlu1 %371 }
  0xef   :  { %14764 = vst [vmem:[#allocation19_spill] sm:$0xff] %v8933_v13  ;;  %14765 = vst [vmem:[#allocation20_spill] sm:$0xff] %v8935_v14 }
  0xf2   :  { %v8937_v15 = vpop.permute.xlu0 %366  ;;  %v8939_v16 = vpop.permute.xlu1 %376 }
  0xf3   :  { %14766 = vst [vmem:[#allocation21_spill] sm:$0xff] %v8937_v15  ;;  %14767 = vst [vmem:[#allocation22_spill] sm:$0xff] %v8939_v16 }
  0xf6   :  { %v8943_v19 = vpop.permute.xlu1 %386 }
  0xf7   :  { %v8941_v18 = vpop.permute.xlu0 %381  ;;  %14769 = vst [vmem:[#allocation24_spill] sm:$0xff] %v8943_v19 }
  0xf8   :  { %14768 = vst [vmem:[#allocation23_spill] sm:$0xff] %v8941_v18 }
  0xfa   :  { %v8947_v21 = vpop.permute.xlu1 %396 }
  0xfb   :  { %14771 = vst [vmem:[#allocation26_spill] sm:$0xff] %v8947_v21 }
  0xfc   :  { %v8945_v20 = vpop.permute.xlu0 %391 }
  0xfd   :  { %14770 = vst [vmem:[#allocation25_spill] sm:$0xff] %v8945_v20 }
  0xfe   :  { %v8951_v23 = vpop.permute.xlu1 %406 }
  0xff   :  { %14773 = vst [vmem:[#allocation28_spill] sm:$0xff] %v8951_v23 }
 0x100   :  { %v8949_v22 = vpop.permute.xlu0 %401 }
 0x101   :  { %14772 = vst [vmem:[#allocation27_spill] sm:$0xff] %v8949_v22 }
 0x102   :  { %v8955_v25 = vpop.permute.xlu1 %416 }
 0x103   :  { %14775 = vst [vmem:[#allocation30_spill] sm:$0xff] %v8955_v25 }
 0x104   :  { %v8953_v24 = vpop.permute.xlu0 %411 }
 0x105   :  { %14774 = vst [vmem:[#allocation29_spill] sm:$0xff] %v8953_v24 }
 0x106   :  { %v8959_v27 = vpop.permute.xlu1 %426 }
 0x107   :  { %14777 = vst [vmem:[#allocation32_spill] sm:$0xff] %v8959_v27 }
 0x108   :  { %v8957_v26 = vpop.permute.xlu0 %421 }
 0x109   :  { %14776 = vst [vmem:[#allocation31_spill] sm:$0xff] %v8957_v26 }
 0x10a   :  { %v8963_v29 = vpop.permute.xlu1 %436 }
 0x10b   :  { %14779 = vst [vmem:[#allocation34_spill] sm:$0xff] %v8963_v29 }
 0x10c   :  { %v8961_v28 = vpop.permute.xlu0 %431 }
 0x10d   :  { %14778 = vst [vmem:[#allocation33_spill] sm:$0xff] %v8961_v28 }
 0x10e   :  { %v8967_v31 = vpop.permute.xlu1 %478 }
 0x10f   :  { %14781 = vst [vmem:[#allocation36_spill] sm:$0xff] %v8967_v31 }
 0x110   :  { %v8965_v30 = vpop.permute.xlu0 %473 }
 0x111   :  { %14780 = vst [vmem:[#allocation35_spill] sm:$0xff] %v8965_v30 }
 0x112   :  { %v8971_v33 = vpop.permute.xlu1 %488 }
 0x113   :  { %14783 = vst [vmem:[#allocation38_spill] sm:$0xff] %v8971_v33 }
 0x114   :  { %v8969_v32 = vpop.permute.xlu0 %483 }
 0x115   :  { %14782 = vst [vmem:[#allocation37_spill] sm:$0xff] %v8969_v32 }
 0x116   :  { %v8977_v37 = vpop.permute.xlu1 %498 }
 0x117   :  { %14785 = vst [vmem:[#allocation40_spill] sm:$0xff] %v8977_v37 }
 0x118   :  { %v8973_v35 = vpop.permute.xlu0 %493 }
 0x119   :  { %14784 = vst [vmem:[#allocation39_spill] sm:$0xff] %v8973_v35 }
 0x11a   :  { %v8985_v39 = vpop.permute.xlu1 %508 }
 0x11b   :  { %14787 = vst [vmem:[#allocation42_spill] sm:$0xff] %v8985_v39 }
 0x11c   :  { %v8979_v38 = vpop.permute.xlu0 %503 }
 0x11d   :  { %14786 = vst [vmem:[#allocation41_spill] sm:$0xff] %v8979_v38 }
 0x11e   :  { %v9009_v56 = vpop.permute.xlu1 %518 }
 0x11f   :  { %14793 = vst [vmem:[#allocation48_spill] sm:$0xff] %v9009_v56 }
 0x120   :  { %v9003_v48 = vpop.permute.xlu0 %513 }
 0x121   :  { %14792 = vst [vmem:[#allocation47_spill] sm:$0xff] %v9003_v48 }
 0x122   :  { %v9013_v0 = vpop.permute.xlu1 %528 }
 0x123   :  { %14795 = vst [vmem:[#allocation50_spill] sm:$0xff] %v9013_v0 }
 0x124   :  { %v9011_v59 = vpop.permute.xlu0 %523 }
 0x125   :  { %14794 = vst [vmem:[#allocation49_spill] sm:$0xff] %v9011_v59 }
 0x126   :  { %v9017_v12 = vpop.permute.xlu1 %538 }
 0x127   :  { %14797 = vst [vmem:[#allocation52_spill] sm:$0xff] %v9017_v12 }
 0x128   :  { %v9015_v6 = vpop.permute.xlu0 %533 }
 0x129   :  { %14796 = vst [vmem:[#allocation51_spill] sm:$0xff] %v9015_v6 }
 0x14e   :  { %v271_v41 = vpop.f32.mrb[0].mxu0 }
 0x14f   :  { %v314_v43 = vpop.f32.mrb[0].mxu1  ;;  %v8996_v44 = vpop.f32.mrb[1].mxu0  ;;  %v323_v49 = vmul.f32 %v8988_v40, %v271_v41 }
 0x150   :  { %v9001_v46 = vpop.f32.mrb[1].mxu1  ;;  %v275_v47 = vpop.f32.mrb[2].mxu0  ;;  %v341_v52 = vmul.f32 %v8994_v42, %v314_v43 }
 0x151   :  { %v325_v50 = vmul.f32 %v8991_v4, %v275_v47  ;;  %v318_v51 = vpop.f32.mrb[2].mxu1  ;;  %v9045_v42 = vpop.permute.xlu1 %548 }
 0x152   :  { %v343_v53 = vmul.f32 %v8999_v45, %v318_v51  ;;  %14799 = vst [vmem:[#allocation54_spill] sm:$0xff] %v9045_v42 }
 0x153   :  { %v327_v54 = vadd.f32 %v325_v50, %v323_v49 }
 0x154   :  { %v345_v55 = vadd.f32 %v343_v53, %v341_v52  ;;  %v9027_v52 = vpop.permute.xlu0 %543 }
 0x155   :  { %v328_v57 = vrot.slane %v327_v54, 4  ;;  %14798 = vst [vmem:[#allocation53_spill] sm:$0xff] %v9027_v52 }
 0x156   :  { %v346_v58 = vrot.slane %v345_v55, 4 }
 0x157   :  { %v329_v60 = vadd.f32 %v328_v57, %v327_v54 }
 0x158   :  { %v347_v61 = vadd.f32 %v346_v58, %v345_v55 }
 0x159   :  { %v330_v62 = vrot.slane %v329_v60, 2 }
 0x15a   :  { %v348_v63 = vrot.slane %v347_v61, 2 }
 0x15b   :  { %v331_v1 = vadd.f32 %v330_v62, %v329_v60 }
 0x15c   :  { %v349_v5 = vadd.f32 %v348_v63, %v347_v61 }
 0x15d   :  { %v332_v8 = vrot.slane %v331_v1, 1 }
 0x15e   :  { %v350_v9 = vrot.slane %v349_v5, 1 }
 0x15f   :  { %v333_v10 = vadd.f32 %v332_v8, %v331_v1 }
 0x160   :  { %v351_v11 = vadd.f32 %v350_v9, %v349_v5 }
 0x161   :  { %v439_v34 = vmul.f32 %v8933_v13, %v333_v10  ;;  %v441_v36 = vmul.f32 %v8937_v15, %v333_v10  ;;  %v443_v41 = vmul.f32 %v8935_v14, %v333_v10  ;;  %v445_v43 = vmul.f32 %v8939_v16, %v333_v10 }
 0x162   :  { %v447_v47 = vmul.f32 %v8941_v18, %v333_v10  ;;  %v449_v49 = vmul.f32 %v8943_v19, %v333_v10  ;;  %v451_v50 = vmul.f32 %v8945_v20, %v333_v10  ;;  %v453_v51 = vmul.f32 %v8947_v21, %v333_v10 }
 0x163   :  { %v455_v53 = vmul.f32 %v8949_v22, %v333_v10  ;;  %v457_v54 = vmul.f32 %v8951_v23, %v333_v10  ;;  %v459_v55 = vmul.f32 %v8953_v24, %v333_v10  ;;  %v461_v57 = vmul.f32 %v8955_v25, %v333_v10 }
 0x164   :  { %v463_v58 = vmul.f32 %v8957_v26, %v333_v10  ;;  %v465_v60 = vmul.f32 %v8959_v27, %v333_v10  ;;  %v467_v61 = vmul.f32 %v8961_v28, %v333_v10  ;;  %v469_v62 = vmul.f32 %v8963_v29, %v333_v10 }
 0x165   :  { %v551_v63 = vmul.f32 %v8965_v30, %v351_v11  ;;  %v553_v1 = vmul.f32 %v8967_v31, %v351_v11  ;;  %v555_v5 = vmul.f32 %v8969_v32, %v351_v11  ;;  %v557_v8 = vmul.f32 %v8971_v33, %v351_v11  ;;  %v9055_v31 = vpop.permute.xlu0 %617 }
 0x166   :  { %v559_v9 = vmul.f32 %v8973_v35, %v351_v11  ;;  %v561_v17 = vmul.f32 %v8977_v37, %v351_v11  ;;  %v563_v3 = vmul.f32 %v8979_v38, %v351_v11  ;;  %v565_v45 = vmul.f32 %v8985_v39, %v351_v11  ;;  %14800 = vst [vmem:[#allocation55_spill] sm:$0xff] %v9055_v31 }
 0x167   :  { %v567_v10 = vmul.f32 %v9003_v48, %v351_v11  ;;  %v569_v40 = vmul.f32 %v9009_v56, %v351_v11  ;;  %v571_v4 = vmul.f32 %v9011_v59, %v351_v11  ;;  %v573_v32 = vmul.f32 %v9013_v0, %v351_v11 }
 0x168   :  { %v575_v33 = vmul.f32 %v9015_v6, %v351_v11  ;;  %v577_v35 = vmul.f32 %v9017_v12, %v351_v11  ;;  %v579_v37 = vmul.f32 %v9027_v52, %v351_v11  ;;  %v581_v38 = vmul.f32 %v9045_v42, %v351_v11 }
 0x169   :  { %v583_v39 = vadd.f32 %v551_v63, %v439_v34  ;;  %v585_v30 = vadd.f32 %v553_v1, %v441_v36  ;;  %v587_v29 = vadd.f32 %v555_v5, %v443_v41  ;;  %v589_v48 = vadd.f32 %v557_v8, %v445_v43 }
 0x16a   :  { %v9057_v28 = vadd.f32 %v559_v9, %v447_v47  ;;  %v9059_v56 = vadd.f32 %v561_v17, %v449_v49  ;;  %v9061_v59 = vadd.f32 %v563_v3, %v451_v50  ;;  %v9063_v0 = vadd.f32 %v565_v45, %v453_v51  ;;  %v9081_v3 = vpop.permute.xlu1 %622 }
 0x16b   :  { %v9065_v6 = vadd.f32 %v567_v10, %v455_v53  ;;  %v9067_v12 = vadd.f32 %v569_v40, %v457_v54  ;;  %v9069_v52 = vadd.f32 %v571_v4, %v459_v55  ;;  %v9071_v11 = vadd.f32 %v573_v32, %v461_v57  ;;  %14801 = vst [vmem:[#allocation56_spill] sm:$0xff] %v9081_v3  ;;  %v9089_v4 = vpop.permute.xlu0 %627 }
 0x16c   :  { %v9073_v34 = vadd.f32 %v575_v33, %v463_v58  ;;  %v9075_v36 = vadd.f32 %v577_v35, %v465_v60  ;;  %v9077_v41 = vadd.f32 %v579_v37, %v467_v61  ;;  %v9079_v17 = vadd.f32 %v581_v38, %v469_v62  ;;  %14802 = vst [vmem:[#allocation57_spill] sm:$0xff] %v9089_v4 }
 0x16d   :  { %v9084_v45 = vadd.f32 %v9055_v31, %v583_v39  ;;  %v9087_v40 = vadd.f32 %v9081_v3, %v585_v30  ;;  %v9092_v32 = vadd.f32 %v9089_v4, %v587_v29 }
 0x16e   :  { %v9103_v50 = vpop.permute.xlu1 %632 }
 0x16f   :  { %v14655_v33 = vand.u32 2147483647, %v9084_v45  ;;  %v730_v35 = vand.u32 2139095040, %v9084_v45  ;;  %v14654_v37 = vand.u32 2147483647, %v9087_v40  ;;  %v938_v38 = vand.u32 2139095040, %v9087_v40 }
 0x170   :  { %v1146_v49 = vand.u32 2139095040, %v9092_v32  ;;  %14803 = vst [vmem:[#allocation58_spill] sm:$0xff] %v9103_v50  ;;  %v9106_v54 = vadd.f32 %v9103_v50, %v589_v48  ;;  %v14653_v61 = vand.u32 2147483647, %v9092_v32  ;;  %vm729_vm2 = vcmp.lt.s32.totalorder %v9084_v45, 0 }
 0x171   :  { %v731_v43 = vshrl.u32 %v730_v35, 23  ;;  %v734_v39 = vand.u32 8388607, %v14655_v33  ;;  %v939_v47 = vshrl.u32 %v938_v38, 23  ;;  %v942_v30 = vand.u32 8388607, %v14654_v37 }
 0x172   :  { %v1147_v53 = vshrl.u32 %v1146_v49, 23  ;;  %v9115_v48 = vand.u32 8388607, %v14653_v61  ;;  %v14682_v38 = vmov 1326507024  }
 0x173   :  { %v7759_v29 = vadd.s32 4294967169, %v731_v43  ;;  %v7767_v51 = vadd.s32 4294967169, %v939_v47  ;;  %v735_v55 = vor.u32 8388608, %v734_v39  ;;  %v943_v58 = vor.u32 8388608, %v942_v30 }
 0x174   :  { %v7775_v62 = vadd.s32 4294967169, %v1147_v53  ;;  %v14674_v39 = vmov 683565275   ;;  %v14668_v53 = vmov 2131351028  }
 0x175   :  { %v737_v57 = vadd.s32 1, %v7759_v29  ;;  %v945_v60 = vadd.s32 1, %v7767_v51  ;;  %v9109_v8 = vshll.u32 %v735_v55, 8  ;;  %v9111_v10 = vshll.u32 %v943_v58, 8 }
 0x176   :  { %v9117_v35 = vadd.s32 1, %v7775_v62  ;;  %v14672_v29 = vmov 2475754826  }
 0x177   :  { %vm738_vm5 = vcmp.gt.s32.totalorder %v737_v57, 0  ;;  %vm946_vm6 = vcmp.gt.s32.totalorder %v945_v60, 0 }
 0x178   :  { %v739_v63 = vsel %vm738_vm5, %v737_v57, 0  ;;  %v947_v9 = vsel %vm946_vm6, %v945_v60, 0  ;;  %v14670_v57 = vmov 2102212464   ;;  %v14676_v60 = vmov 920167782  }
 0x179   :  { %v740_v1 = vshrl.u32 %v739_v63, 5  ;;  %v741_v5 = vand.u32 31, %v739_v63  ;;  %v9121_v30 = vshrl.u32 %v947_v9, 5  ;;  %v949_v49 = vand.u32 31, %v947_v9 }
 0x17a   :  { %vm1154_vm11 = vcmp.gt.s32.totalorder %v9117_v35, 0 }
 0x17b   :  { %v742_v43 = vsub.s32 32, %v741_v5  ;;  %v744_v47 = vshll.u32 %v14674_v39, %v741_v5  ;;  %v747_v51 = vshll.u32 %v14672_v29, %v741_v5  ;;  %v750_v55 = vshll.u32 %v14668_v53, %v741_v5 }
 0x17c   :  { %v753_v58 = vshll.u32 %v14670_v57, %v741_v5  ;;  %v756_v62 = vshll.u32 %v14676_v60, %v741_v5  ;;  %vm759_vm7 = vcmp.lt.s32.totalorder %v740_v1, 1  ;;  %vm760_vm8 = vcmp.lt.s32.totalorder %v740_v1, 2 }
 0x17d   :  { %v745_v63 = vshrl.u32 %v14672_v29, %v742_v43  ;;  %v748_v61 = vshrl.u32 %v14668_v53, %v742_v43  ;;  %v751_v37 = vshrl.u32 %v14670_v57, %v742_v43  ;;  %v743_v9 = vshrl.u32 %v14674_v39, %v742_v43 }
 0x17e   :  { %v754_v33 = vshrl.u32 %v14676_v60, %v742_v43  ;;  %v757_v50 = vshrl.u32 %v14682_v38, %v742_v43  ;;  %v950_v42 = vsub.s32 32, %v949_v49  ;;  %vm761_vm9 = vcmp.lt.s32.totalorder %v740_v1, 3 }
 0x17f   :  { %v746_v4 = vor.u32 %v745_v63, %v744_v47  ;;  %v749_v3 = vor.u32 %v748_v61, %v747_v51  ;;  %v752_v31 = vor.u32 %v751_v37, %v750_v55  ;;  %vm762_vm10 = vcmp.lt.s32.totalorder %v740_v1, 4 }
 0x180   :  { %v755_v5 = vor.u32 %v754_v33, %v753_v58  ;;  %v758_v27 = vor.u32 %v757_v50, %v756_v62  ;;  %v14804_v43 = vmov 683565275   ;;  %v14805_v33 = vmov 2475754826  }
 0x181   :  { %v763_v53 = vsel %vm759_vm7, %v743_v9, %v746_v4  ;;  %v764_v57 = vsel %vm762_vm10, %v752_v31, 2102212464  ;;  %v767_v29 = vsel %vm759_vm7, %v746_v4, %v749_v3  ;;  %v771_v39 = vsel %vm759_vm7, %v749_v3, %v752_v31 }
 0x182   :  { %v765_v60 = vsel %vm761_vm9, %v749_v3, %v764_v57  ;;  %v768_v26 = vsel %vm762_vm10, %v755_v5, 920167782  ;;  %v772_v25 = vsel %vm762_vm10, %v758_v27, 1326507024  ;;  %v952_v38 = vshll.u32 %v14804_v43, %v949_v49 }
 0x183   :  { %v769_v37 = vsel %vm761_vm9, %v752_v31, %v768_v26  ;;  %v773_v61 = vsel %vm761_vm9, %v755_v5, %v772_v25  ;;  %v953_v50 = vshrl.u32 %v14805_v33, %v950_v42  ;;  %v955_v47 = vshll.u32 %v14805_v33, %v949_v49 }
 0x184   :  { %v766_v51 = vsel %vm760_vm8, %v763_v53, %v765_v60  ;;  %v770_v55 = vsel %vm760_vm8, %v767_v29, %v769_v37  ;;  %v774_v4 = vsel %vm760_vm8, %v771_v39, %v773_v61  ;;  %v14806_v58 = vmov 2131351028  }
 0x185   :  { %v956_v3 = vshrl.u32 %v14806_v58, %v950_v42  ;;  %v9145_v27 = vmul.u32.u64.low %v9109_v8, %v774_v4  ;;  %v9146_v57 = vmul.u32.u64.high %v9109_v8, %v774_v4, %v9145_v27  ;;  %v954_v25 = vor.u32 %v953_v50, %v952_v38 }
 0x186   :  { %v9149_v62 = vmul.u32.u64.low %v9109_v8, %v770_v55  ;;  %v9150_v26 = vmul.u32.u64.high %v9109_v8, %v770_v55, %v9149_v62  ;;  %v958_v63 = vshll.u32 %v14806_v58, %v949_v49  ;;  %v14807_v9 = vmov 2102212464  }
 0x187   :  { %v957_v31 = vor.u32 %v956_v3, %v955_v47  ;;  %v959_v53 = vshrl.u32 %v14807_v9, %v950_v42  ;;  %v951_v29 = vshrl.u32 %v14804_v43, %v950_v42  ;;  %v961_v1 = vshll.u32 %v14807_v9, %v949_v49 }
 0x188   :  { %v14808_v39 = vmov 920167782   ;;  %v14809_v5 = vmov 1326507024   ;;  %v782_v61 = vmul.u32 %v9109_v8, %v766_v51  ;;  %vm967_vm12 = vcmp.lt.s32.totalorder %v9121_v30, 1 }
 0x189   :  { %v962_v60 = vshrl.u32 %v14808_v39, %v950_v42  ;;  %v965_v37 = vshrl.u32 %v14809_v5, %v950_v42  ;;  %v960_v4 = vor.u32 %v959_v53, %v958_v63  ;;  %v964_v55 = vshll.u32 %v14808_v39, %v949_v49 }
 0x18a   :  { %vm784_vm13 = vc.u32 %v9146_v57, %v9149_v62  ;;  %v785_v38 = vadd.s32 1, %v9150_v26  ;;  %vm968_vm14 = vcmp.lt.s32.totalorder %v9121_v30, 2  ;;  %vm969_vm15 = vcmp.lt.s32.totalorder %v9121_v30, 3 }
 0x18b   :  { %v963_v50 = vor.u32 %v962_v60, %v961_v1  ;;  %v966_v47 = vor.u32 %v965_v37, %v964_v55  ;;  %vm970_vm0 = vcmp.lt.s32.totalorder %v9121_v30, 4  ;;  %v975_v42 = vsel %vm967_vm12, %v954_v25, %v957_v31 }
 0x18c   :  { %v786_v8 = vsel %vm784_vm13, %v785_v38, %v9150_v26  ;;  %v972_v51 = vsel %vm970_vm0, %v960_v4, 2102212464  ;;  %v979_v49 = vsel %vm967_vm12, %v957_v31, %v960_v4  ;;  %v971_v63 = vsel %vm967_vm12, %v951_v29, %v954_v25 }
 0x18d   :  { %v976_v3 = vsel %vm970_vm0, %v963_v50, 920167782  ;;  %v787_v27 = vadd.s32 %v786_v8, %v782_v61  ;;  %v980_v24 = vsel %vm970_vm0, %v966_v47, 1326507024  ;;  %v973_v23 = vsel %vm969_vm15, %v957_v31, %v972_v51 }
 0x18e   :  { %v977_v53 = vsel %vm969_vm15, %v960_v4, %v976_v3  ;;  %v981_v60 = vsel %vm969_vm15, %v963_v50, %v980_v24  ;;  %v1155_v37 = vsel %vm1154_vm11, %v9117_v35, 0  ;;  %v14690_v29 = vand.u32 2147483647, %v9106_v54 }
 0x18f   :  { %v978_v1 = vsel %vm968_vm14, %v975_v42, %v977_v53  ;;  %v788_v55 = vadd.s32 536870912, %v787_v27  ;;  %v982_v26 = vsel %vm968_vm14, %v979_v49, %v981_v60  ;;  %v974_v61 = vsel %vm968_vm14, %v971_v63, %v973_v23 }
 0x190   :  { %v9175_v38 = vmul.u32.u64.low %v9111_v10, %v978_v1  ;;  %v9176_v22 = vmul.u32.u64.high %v9111_v10, %v978_v1, %v9175_v38  ;;  %v9180_v25 = vmul.u32.u64.low %v9111_v10, %v982_v26  ;;  %v9181_v31 = vmul.u32.u64.high %v9111_v10, %v982_v26, %v9180_v25 }
 0x191   :  { %v789_v24 = vshrl.u32 %v788_v55, 30  ;;  %v1151_v35 = vor.u32 8388608, %v9115_v48  ;;  %v1157_v4 = vand.u32 31, %v1155_v37  ;;  %v14810_v8 = vand.u32 2139095040, %v9106_v54 }
 0x192   :  { %v993_v47 = vadd.s32 1, %v9176_v22  ;;  %v990_v3 = vmul.u32 %v9111_v10, %v974_v61  ;;  %vm992_vm1 = vc.u32 %v9181_v31, %v9175_v38  ;;  %v9195_v49 = vand.u32 8388607, %v14690_v29 }
 0x193   :  { %v790_v50 = vshll.u32 %v789_v24, 30  ;;  %v1158_v42 = vsub.s32 32, %v1157_v4  ;;  %v1355_v51 = vshrl.u32 %v14810_v8, 23  ;;  %v9201_v30 = vshll.u32 %v1151_v35, 8 }
 0x194   :  { %v994_v48 = vsel %vm992_vm1, %v993_v47, %v9176_v22  ;;  %v14811_v63 = vand.u32 2147483647, %v9084_v45  ;;  %v783_v10 = vadd.s32 %v9149_v62, %v9146_v57  ;;  %v9210_v60 = vshrl.u32 %v1155_v37, 5 }
 0x195   :  { %v9198_v23 = vsub.s32 %v787_v27, %v790_v50  ;;  %v995_v1 = vadd.s32 %v994_v48, %v990_v3  ;;  %v1161_v55 = vshrl.u32 %v14805_v33, %v1158_v42  ;;  %v1164_v26 = vshrl.u32 %v14806_v58, %v1158_v42 }
 0x196   :  { %vm9205_vm3 = vcmp.le.f32.partialorder %v14811_v63, 0.7853982  ;;  %v1167_v22 = vshrl.u32 %v14807_v9, %v1158_v42  ;;  %v7783_v25 = vadd.s32 4294967169, %v1355_v51  ;;  %v813_v61 = vsub.s32 4, %v789_v24 }
 0x197   :  { %v793_v27 = vsub.s32 0, %v9198_v23  ;;  %v996_v35 = vadd.s32 536870912, %v995_v1  ;;  %v1160_v50 = vshll.u32 %v14804_v43, %v1157_v4  ;;  %v1163_v62 = vshll.u32 %v14805_v33, %v1157_v4 }
 0x198   :  { %v1166_v37 = vshll.u32 %v14806_v58, %v1157_v4  ;;  %v1170_v8 = vshrl.u32 %v14808_v39, %v1158_v42  ;;  %v1169_v63 = vshll.u32 %v14807_v9, %v1157_v4  ;;  %v1173_v51 = vshrl.u32 %v14809_v5, %v1158_v42 }
 0x199   :  { %v7760_v57 = vmin.u32 %v793_v27, %v9198_v23  ;;  %v997_v3 = vshrl.u32 %v996_v35, 30  ;;  %v1162_v48 = vor.u32 %v1161_v55, %v1160_v50  ;;  %v1165_v21 = vor.u32 %v1164_v26, %v1163_v62 }
 0x19a   :  { %v1168_v20 = vor.u32 %v1167_v22, %v1166_v37  ;;  %v1172_v19 = vshll.u32 %v14808_v39, %v1157_v4  ;;  %v814_v27 = vsel %vm729_vm2, %v813_v61, %v789_v24  ;;  %v1171_v18 = vor.u32 %v1170_v8, %v1169_v63 }
 0x19b   :  { %v795_v29 = vclz %v7760_v57  ;;  %v998_v47 = vshll.u32 %v997_v3, 30  ;;  %vm1175_vm4 = vcmp.lt.s32.totalorder %v9210_v60, 1  ;;  %vm1176_vm5 = vcmp.lt.s32.totalorder %v9210_v60, 2 }
 0x19c   :  { %v1174_v14 = vor.u32 %v1173_v51, %v1172_v19  ;;  %vm1178_vm6 = vcmp.lt.s32.totalorder %v9210_v60, 4  ;;  %vm937_vm7 = vcmp.lt.s32.totalorder %v9087_v40, 0  ;;  %v1159_v26 = vshrl.u32 %v14804_v43, %v1158_v42 }
 0x19d   :  { %v7761_v16 = vadd.s32 4294967294, %v795_v29  ;;  %v9231_v55 = vsub.s32 %v995_v1, %v998_v47  ;;  %vm1177_vm8 = vcmp.lt.s32.totalorder %v9210_v60, 3  ;;  %v1184_v24 = vsel %vm1178_vm6, %v1171_v18, 920167782 }
 0x19e   :  { %v816_v29 = vsel %vm9205_vm3, 0, %v814_v27  ;;  %v1183_v19 = vsel %vm1175_vm4, %v1162_v48, %v1165_v21  ;;  %v1185_v4 = vsel %vm1177_vm8, %v1168_v20, %v1184_v24  ;;  %v1021_v61 = vsub.s32 4, %v997_v3 }
 0x19f   :  { %vm7762_vm9 = vcmp.lt.s32.totalorder %v7761_v16, 0  ;;  %v1001_v1 = vsub.s32 0, %v9231_v55  ;;  %v1187_v42 = vsel %vm1175_vm4, %v1165_v21, %v1168_v20  ;;  %v14814_v47 = vand.u32 2147483647, %v9087_v40 }
 0x1a0   :  { %v798_v22 = vsel %vm7762_vm9, 0, %v7761_v16  ;;  %v1180_v62 = vsel %vm1178_vm6, %v1168_v20, 2102212464  ;;  %v1188_v16 = vsel %vm1178_vm6, %v1174_v14, 1326507024  ;;  %v1186_v63 = vsel %vm1176_vm5, %v1183_v19, %v1185_v4 }
 0x1a1   :  { %v799_v35 = vsub.s32 32, %v798_v22  ;;  %v803_v50 = vsub.s32 4294967266, %v798_v22  ;;  %vm9248_vm10 = vcmp.le.f32.partialorder %v14814_v47, 0.7853982  ;;  %v800_v37 = vshll.u32 %v9198_v23, %v798_v22 }
 0x1a2   :  { %v7768_v8 = vmin.u32 %v1001_v1, %v9231_v55  ;;  %v1189_v51 = vsel %vm1177_vm8, %v1171_v18, %v1188_v16  ;;  %v1361_v15 = vadd.s32 1, %v7783_v25  ;;  %v820_v20 = vadd.s32 3, %v816_v29 }
 0x1a3   :  { %v801_v27 = vshrl.u32 %v783_v10, %v799_v35  ;;  %v804_v24 = vadd.s32 127, %v803_v50  ;;  %v1190_v47 = vsel %vm1176_vm5, %v1187_v42, %v1189_v51  ;;  %v1179_v14 = vsel %vm1175_vm4, %v1159_v26, %v1162_v48 }
 0x1a4   :  { %v1003_v13 = vclz %v7768_v8  ;;  %v1181_v23 = vsel %vm1177_vm8, %v1165_v21, %v1180_v62  ;;  %v9269_v19 = vmul.u32.u64.low %v9201_v30, %v1190_v47  ;;  %v9270_v4 = vmul.u32.u64.high %v9201_v30, %v1190_v47, %v9269_v19 }
 0x1a5   :  { %v802_v22 = vor.u32 %v801_v27, %v800_v37  ;;  %v805_v1 = vshll.u32 %v804_v24, 23  ;;  %v9273_v10 = vmul.u32.u64.low %v9201_v30, %v1186_v63  ;;  %v9274_v35 = vmul.u32.u64.high %v9201_v30, %v1186_v63, %v9273_v10 }
 0x1a6   :  { %v7769_v18 = vadd.s32 4294967294, %v1003_v13  ;;  %vm1362_vm11 = vcmp.gt.s32.totalorder %v1361_v15, 0  ;;  %v991_v48 = vadd.s32 %v9175_v38, %v9181_v31  ;;  %v1022_v21 = vsel %vm937_vm7, %v1021_v61, %v997_v3 }
 0x1a7   :  { %v806_v25 = vor.u32 4788187, %v805_v1  ;;  %v1363_v26 = vsel %vm1362_vm11, %v1361_v15, 0  ;;  %v9281_v29 = vand.u32 3, %v820_v20  ;;  %v1182_v13 = vsel %vm1176_vm5, %v1179_v14, %v1181_v23 }
 0x1a8   :  { %vm7770_vm12 = vcmp.lt.s32.totalorder %v7769_v18, 0  ;;  %v1365_v42 = vand.u32 31, %v1363_v26  ;;  %v809_v62 = vcvt.s32.f32 %v802_v22  ;;  %vm1200_vm13 = vc.u32 %v9270_v4, %v9273_v10 }
 0x1a9   :  { %v807_v50 = vand.u32 2147483647, %v806_v25  ;;  %v1006_v16 = vsel %vm7770_vm12, 0, %v7769_v18  ;;  %v1024_v38 = vsel %vm9248_vm10, 0, %v1022_v21  ;;  %v1201_v15 = vadd.s32 1, %v9274_v35 }
 0x1aa   :  { %v1007_v37 = vsub.s32 32, %v1006_v16  ;;  %v1011_v8 = vsub.s32 4294967266, %v1006_v16  ;;  %v1198_v3 = vmul.u32 %v9201_v30, %v1182_v13  ;;  %v9291_v61 = vshrl.u32 %v1363_v26, 5 }
 0x1ab   :  { %v810_v31 = vmul.f32 %v809_v62, %v807_v50  ;;  %v1366_v60 = vsub.s32 32, %v1365_v42  ;;  %v1008_v63 = vshll.u32 %v9231_v55, %v1006_v16  ;;  %v1202_v24 = vsel %vm1200_vm13, %v1201_v15, %v9274_v35 }
 0x1ac   :  { %v1009_v51 = vshrl.u32 %v991_v48, %v1007_v37  ;;  %v1012_v27 = vadd.s32 127, %v1011_v8  ;;  %v1203_v20 = vadd.s32 %v1202_v24, %v1198_v3  ;;  %v1368_v14 = vshll.u32 %v14804_v43, %v1365_v42  ;;  %v9310_v37 = vpop.permute.xlu0 %637  ;;  %v9313_v3 = vpop.permute.xlu1 %642 }
 0x1ad   :  { %v811_v47 = vxor.u32 2147483648, %v810_v31  ;;  %v1369_v23 = vshrl.u32 %v14805_v33, %v1366_v60  ;;  %v1371_v19 = vshll.u32 %v14805_v33, %v1365_v42  ;;  %v1372_v30 = vshrl.u32 %v14806_v58, %v1366_v60  ;;  %14817 = vst [vmem:[#allocation59_spill] sm:$0xff] %v9310_v37  ;;  %14818 = vst [vmem:[#allocation60_spill] sm:$0xff] %v9313_v3 }
 0x1ae   :  { %v1010_v22 = vor.u32 %v1009_v51, %v1008_v63  ;;  %v1013_v1 = vshll.u32 %v1012_v27, 23  ;;  %v1204_v55 = vadd.s32 536870912, %v1203_v20  ;;  %v1374_v25 = vshll.u32 %v14806_v58, %v1365_v42 }
 0x1af   :  { %v812_v18 = vsel %vm729_vm2, %v811_v47, %v810_v31  ;;  %v1375_v35 = vshrl.u32 %v14807_v9, %v1366_v60  ;;  %v1370_v26 = vor.u32 %v1369_v23, %v1368_v14  ;;  %v1377_v13 = vshll.u32 %v14807_v9, %v1365_v42 }
 0x1b0   :  { %v815_v48 = vsel %vm9205_vm3, %v9084_v45, %v812_v18  ;;  %v1014_v21 = vor.u32 4788187, %v1013_v1  ;;  %v1017_v50 = vcvt.s32.f32 %v1010_v22  ;;  %v9307_v62 = vshrl.u32 %v1204_v55, 30 }
 0x1b1   :  { %8305 = vcosq.f32 %v815_v48  ;;  %v1378_v16 = vshrl.u32 %v14808_v39, %v1366_v60  ;;  %v1373_v15 = vor.u32 %v1372_v30, %v1371_v19  ;;  %v1381_v31 = vshrl.u32 %v14809_v5, %v1366_v60 }
 0x1b2   :  { %8307 = vsinq.f32 %v815_v48  ;;  %v1015_v8 = vand.u32 2147483647, %v1014_v21  ;;  %v9317_v53 = vadd.f32 %v9310_v37, %v9057_v28  ;;  %v1206_v63 = vshll.u32 %v9307_v62, 30 }
 0x1b3   :  { %v1379_v51 = vor.u32 %v1378_v16, %v1377_v13  ;;  %v9322_v27 = vadd.f32 %v9313_v3, %v9059_v56  ;;  %v1376_v47 = vor.u32 %v1375_v35, %v1374_v25  ;;  %v1380_v14 = vshll.u32 %v14808_v39, %v1365_v42 }
 0x1b4   :  { %v1018_v24 = vmul.f32 %v1017_v50, %v1015_v8  ;;  %v1028_v23 = vadd.s32 3, %v1024_v38  ;;  %v9325_v22 = vsub.s32 %v1203_v20, %v1206_v63  ;;  %vm1383_vm14 = vcmp.lt.s32.totalorder %v9291_v61, 1 }
 0x1b5   :  { %v14819_v1 = vor.u32 8388608, %v9195_v49  ;;  %vm823_vm15 = vcmp.eq.s32.totalorder %v9281_v29, 0  ;;  %v1382_v30 = vor.u32 %v1381_v31, %v1380_v14  ;;  %vm1386_vm0 = vcmp.lt.s32.totalorder %v9291_v61, 4 }
 0x1b6   :  { %v1019_v19 = vxor.u32 2147483648, %v1018_v24  ;;  %v1391_v56 = vsel %vm1383_vm14, %v1370_v26, %v1373_v15  ;;  %vm822_vm1 = vcmp.lt.s32.totalorder %v9281_v29, 2  ;;  %v1209_v42 = vsub.s32 0, %v9325_v22 }
 0x1b7   :  { %v9330_v28 = vshll.u32 %v14819_v1, 8  ;;  %v1367_v38 = vshrl.u32 %v14804_v43, %v1366_v60  ;;  %vm1385_vm2 = vcmp.lt.s32.totalorder %v9291_v61, 3  ;;  %v1392_v49 = vsel %vm1386_vm0, %v1379_v51, 920167782 }
 0x1b8   :  { %vm819_vm3 = vweird.f32 %v9084_v45  ;;  %v1020_v20 = vsel %vm937_vm7, %v1019_v19, %v1018_v24  ;;  %vm1145_vm4 = vcmp.lt.s32.totalorder %v9092_v32, 0  ;;  %vm1384_vm5 = vcmp.lt.s32.totalorder %v9291_v61, 2 }
 0x1b9   :  { %v1388_v18 = vsel %vm1386_vm0, %v1376_v47, 2102212464  ;;  %v1393_v60 = vsel %vm1385_vm2, %v1376_v47, %v1392_v49  ;;  %v1023_v55 = vsel %vm9248_vm10, %v9087_v40, %v1020_v20  ;;  %v7776_v25 = vmin.u32 %v1209_v42, %v9325_v22 }
 0x1ba   :  { %v1394_v35 = vsel %vm1384_vm5, %v1391_v56, %v1393_v60  ;;  %v1395_v48 = vsel %vm1383_vm14, %v1373_v15, %v1376_v47  ;;  %8309 = vcosq.f32 %v1023_v55  ;;  %v1396_v21 = vsel %vm1386_vm0, %v1382_v30, 1326507024 }
 0x1bb   :  { %v9362_v13 = vmul.u32.u64.low %v9330_v28, %v1394_v35  ;;  %v9363_v50 = vmul.u32.u64.high %v9330_v28, %v1394_v35, %v9362_v13  ;;  %v8306_v16 = vpop.eup %8305  ;;  %vm826_vm6 = vcmp.eq.s32.totalorder %v9281_v29, 2  ;;  %8311 = vsinq.f32 %v1023_v55 }
 0x1bc   :  { %v9367_v57 = vand.u32 3, %v1028_v23  ;;  %v14820_v8 = vand.u32 2147483647, %v9092_v32  ;;  %v1211_v63 = vclz %v7776_v25  ;;  %v8308_v24 = vpop.eup %8307  ;;  %v827_v47 = vxor.u32 2147483648, %v8306_v16 }
 0x1bd   :  { %v1387_v14 = vsel %vm1383_vm14, %v1367_v38, %v1370_v26  ;;  %v1389_v1 = vsel %vm1385_vm2, %v1373_v15, %v1388_v18  ;;  %v1397_v19 = vsel %vm1385_vm2, %v1379_v51, %v1396_v21  ;;  %v824_v23 = vxor.u32 2147483648, %v8308_v24 }
 0x1be   :  { %vm9371_vm7 = vcmp.le.f32.partialorder %v14820_v8, 0.7853982  ;;  %v7777_v30 = vadd.s32 4294967294, %v1211_v63  ;;  %v1229_v56 = vsub.s32 4, %v9307_v62  ;;  %v1398_v42 = vsel %vm1384_vm5, %v1395_v48, %v1397_v19 }
 0x1bf   :  { %v828_v49 = vsel %vm826_vm6, %v827_v47, %v8308_v24  ;;  %v1199_v20 = vadd.s32 %v9273_v10, %v9270_v4  ;;  %v9387_v60 = vmul.u32.u64.low %v9330_v28, %v1398_v42  ;;  %v9388_v26 = vmul.u32.u64.high %v9330_v28, %v1398_v42, %v9387_v60 }
 0x1c0   :  { %v825_v15 = vsel %vm823_vm15, %v8306_v16, %v824_v23  ;;  %vm7778_vm8 = vcmp.lt.s32.totalorder %v7777_v30, 0  ;;  %v1390_v51 = vsel %vm1384_vm5, %v1387_v14, %v1389_v1  ;;  %v1409_v38 = vadd.s32 1, %v9363_v50 }
 0x1c1   :  { %v829_v18 = vsel %vm822_vm1, %v825_v15, %v828_v49  ;;  %vm1030_vm9 = vcmp.lt.s32.totalorder %v9367_v57, 2  ;;  %v1214_v55 = vsel %vm7778_vm8, 0, %v7777_v30  ;;  %v1559_v4 = vand.u32 2147483647, %v9317_v53 }
 0x1c2   :  { %v1562_v10 = vand.u32 2139095040, %v9317_v53  ;;  %v830_v25 = vsel %vm819_vm3, nan, %v829_v18  ;;  %vm1027_vm10 = vweird.f32 %v9087_v40  ;;  %v1215_v35 = vsub.s32 32, %v1214_v55 }
 0x1c3   :  { %v1219_v61 = vsub.s32 4294967266, %v1214_v55  ;;  %v1230_v48 = vsel %vm1145_vm4, %v1229_v56, %v9307_v62  ;;  %vm1031_vm11 = vcmp.eq.s32.totalorder %v9367_v57, 0  ;;  %v1406_v29 = vmul.u32 %v9330_v28, %v1390_v51  ;;  %4055 = vst [vmem:[#allocation13] sm:$0xff] %v830_v25 }
 0x1c4   :  { %vm1408_vm12 = vc.u32 %v9388_v26, %v9362_v13  ;;  %v1563_v21 = vshrl.u32 %v1562_v10, 23  ;;  %v1216_v45 = vshll.u32 %v9325_v22, %v1214_v55  ;;  %v1217_v16 = vshrl.u32 %v1199_v20, %v1215_v35  ;;  %v8310_v24 = vpop.eup %8309 }
 0x1c5   :  { %v1220_v8 = vadd.s32 127, %v1219_v61  ;;  %v1410_v63 = vsel %vm1408_vm12, %v1409_v38, %v9363_v50  ;;  %v1232_v47 = vsel %vm9371_vm7, 0, %v1230_v48  ;;  %v1566_v28 = vand.u32 8388607, %v1559_v4  ;;  %v8312_v1 = vpop.eup %8311  ;;  %v9423_v61 = vpop.permute.xlu0 %647 }
 0x1c6   :  { %v1411_v62 = vadd.s32 %v1410_v63, %v1406_v29  ;;  %v7791_v14 = vadd.s32 4294967169, %v1563_v21  ;;  %vm1034_vm13 = vcmp.eq.s32.totalorder %v9367_v57, 2  ;;  %v1035_v19 = vxor.u32 2147483648, %v8310_v24  ;;  %14823 = vst [vmem:[#allocation61_spill] sm:$0xff] %v9423_v61 }
 0x1c7   :  { %v1218_v23 = vor.u32 %v1217_v16, %v1216_v45  ;;  %v1221_v30 = vshll.u32 %v1220_v8, 23  ;;  %v1032_v22 = vxor.u32 2147483648, %v8312_v1  ;;  %v1767_v50 = vand.u32 2147483647, %v9322_v27 }
 0x1c8   :  { %v1412_v56 = vadd.s32 536870912, %v1411_v62  ;;  %v1569_v42 = vadd.s32 1, %v7791_v14  ;;  %v1036_v49 = vsel %vm1034_vm13, %v1035_v19, %v8312_v1  ;;  %v1236_v60 = vadd.s32 3, %v1232_v47 }
 0x1c9   :  { %v1222_v20 = vor.u32 4788187, %v1221_v30  ;;  %v1770_v15 = vand.u32 2139095040, %v9322_v27  ;;  %v1033_v51 = vsel %vm1031_vm11, %v8310_v24, %v1032_v22  ;;  %v1567_v18 = vor.u32 8388608, %v1566_v28 }
 0x1ca   :  { %v1413_v38 = vshrl.u32 %v1412_v56, 30  ;;  %vm1570_vm14 = vcmp.gt.s32.totalorder %v1569_v42, 0  ;;  %v1037_v55 = vsel %vm1030_vm9, %v1033_v51, %v1036_v49  ;;  %v1225_v25 = vcvt.s32.f32 %v1218_v23 }
 0x1cb   :  { %v1223_v10 = vand.u32 2147483647, %v1222_v20  ;;  %v1571_v35 = vsel %vm1570_vm14, %v1569_v42, 0  ;;  %v1038_v48 = vsel %vm1027_vm10, nan, %v1037_v55  ;;  %v1771_v21 = vshrl.u32 %v1770_v15, 23 }
 0x1cc   :  { %v1414_v29 = vshll.u32 %v1413_v38, 30  ;;  %v9429_v45 = vand.u32 8388607, %v1767_v50  ;;  %v9433_v16 = vadd.f32 %v9423_v61, %v9061_v59  ;;  %v1573_v8 = vand.u32 31, %v1571_v35  ;;  %4057 = vst [vmem:[#allocation13 + $0x10] sm:$0xff] %v1038_v48 }
 0x1cd   :  { %v1226_v57 = vmul.f32 %v1225_v25, %v1223_v10  ;;  %v9435_v63 = vand.u32 3, %v1236_v60  ;;  %vm1353_vm15 = vcmp.lt.s32.totalorder %v9106_v54, 0  ;;  %v1407_v40 = vadd.s32 %v9362_v13, %v9388_v26 }
 0x1ce   :  { %v9440_v24 = vsub.s32 %v1411_v62, %v1414_v29  ;;  %v1437_v14 = vsub.s32 4, %v1413_v38  ;;  %v9442_v28 = vshrl.u32 %v1571_v35, 5  ;;  %v1574_v1 = vsub.s32 32, %v1573_v8 }
 0x1cf   :  { %v1227_v47 = vxor.u32 2147483648, %v1226_v57  ;;  %v9445_v19 = vshll.u32 %v1567_v18, 8  ;;  %v7799_v23 = vadd.s32 4294967169, %v1771_v21  ;;  %v1775_v30 = vor.u32 8388608, %v9429_v45 }
 0x1d0   :  { %v1417_v59 = vsub.s32 0, %v9440_v24  ;;  %v1576_v56 = vshll.u32 %v14804_v43, %v1573_v8  ;;  %v1577_v13 = vshrl.u32 %v14805_v33, %v1574_v1  ;;  %v1580_v26 = vshrl.u32 %v14806_v58, %v1574_v1 }
 0x1d1   :  { %v1228_v22 = vsel %vm1145_vm4, %v1227_v47, %v1226_v57  ;;  %v1579_v49 = vshll.u32 %v14805_v33, %v1573_v8  ;;  %v1583_v20 = vshrl.u32 %v14807_v9, %v1574_v1  ;;  %v9461_v60 = vsel %vm1353_vm15, %v1437_v14, %v1413_v38 }
 0x1d2   :  { %v1231_v62 = vsel %vm9371_vm7, %v9092_v32, %v1228_v22  ;;  %v7784_v42 = vmin.u32 %v1417_v59, %v9440_v24  ;;  %v1582_v15 = vshll.u32 %v14806_v58, %v1573_v8  ;;  %vm1591_vm0 = vcmp.lt.s32.totalorder %v9442_v28, 1 }
 0x1d3   :  { %8313 = vcosq.f32 %v1231_v62  ;;  %v1578_v18 = vor.u32 %v1577_v13, %v1576_v56  ;;  %v1581_v31 = vor.u32 %v1580_v26, %v1579_v49  ;;  %v1575_v55 = vshrl.u32 %v14804_v43, %v1574_v1 }
 0x1d4   :  { %8315 = vsinq.f32 %v1231_v62  ;;  %v1419_v51 = vclz %v7784_v42  ;;  %v1584_v10 = vor.u32 %v1583_v20, %v1582_v15  ;;  %v1585_v25 = vshll.u32 %v14807_v9, %v1573_v8 }
 0x1d5   :  { %v1586_v35 = vshrl.u32 %v14808_v39, %v1574_v1  ;;  %v14824_v48 = vand.u32 2147483647, %v9106_v54  ;;  %v1588_v21 = vshll.u32 %v14808_v39, %v1573_v8  ;;  %v1589_v57 = vshrl.u32 %v14809_v5, %v1574_v1 }
 0x1d6   :  { %v7785_v29 = vadd.s32 4294967294, %v1419_v51  ;;  %vm1594_vm2 = vcmp.lt.s32.totalorder %v9442_v28, 4  ;;  %vm1242_vm3 = vcmp.eq.s32.totalorder %v9435_v63, 2  ;;  %vm1592_vm4 = vcmp.lt.s32.totalorder %v9442_v28, 2 }
 0x1d7   :  { %vm9470_vm1 = vcmp.le.f32.partialorder %v14824_v48, 0.7853982  ;;  %v1587_v47 = vor.u32 %v1586_v35, %v1585_v25  ;;  %vm1593_vm5 = vcmp.lt.s32.totalorder %v9442_v28, 3  ;;  %v1596_v14 = vsel %vm1594_vm2, %v1584_v10, 2102212464 }
 0x1d8   :  { %vm1239_vm6 = vcmp.eq.s32.totalorder %v9435_v63, 0  ;;  %vm7786_vm7 = vcmp.lt.s32.totalorder %v7785_v29, 0  ;;  %v1590_v59 = vor.u32 %v1589_v57, %v1588_v21  ;;  %v1595_v8 = vsel %vm1591_vm0, %v1575_v55, %v1578_v18 }
 0x1d9   :  { %v1599_v1 = vsel %vm1591_vm0, %v1578_v18, %v1581_v31  ;;  %vm1238_vm8 = vcmp.lt.s32.totalorder %v9435_v63, 2  ;;  %v1422_v22 = vsel %vm7786_vm7, 0, %v7785_v29  ;;  %v1597_v56 = vsel %vm1593_vm5, %v1581_v31, %v1596_v14 }
 0x1da   :  { %v1600_v13 = vsel %vm1594_vm2, %v1587_v47, 920167782  ;;  %v1777_v26 = vadd.s32 1, %v7799_v23  ;;  %vm1235_vm9 = vweird.f32 %v9092_v32  ;;  %v1423_v62 = vsub.s32 32, %v1422_v22 }
 0x1db   :  { %v1427_v42 = vsub.s32 4294967266, %v1422_v22  ;;  %v1601_v49 = vsel %vm1593_vm5, %v1584_v10, %v1600_v13  ;;  %v1603_v20 = vsel %vm1591_vm0, %v1581_v31, %v1584_v10  ;;  %v1424_v15 = vshll.u32 %v9440_v24, %v1422_v22 }
 0x1dc   :  { %v1602_v51 = vsel %vm1592_vm4, %v1599_v1, %v1601_v49  ;;  %v1604_v18 = vsel %vm1594_vm2, %v1590_v59, 1326507024  ;;  %vm1778_vm10 = vcmp.gt.s32.totalorder %v1777_v26, 0  ;;  %v1425_v23 = vshrl.u32 %v1407_v40, %v1423_v62 }
 0x1dd   :  { %v1428_v55 = vadd.s32 127, %v1427_v42  ;;  %v1605_v25 = vsel %vm1593_vm5, %v1587_v47, %v1604_v18  ;;  %v1779_v35 = vsel %vm1778_vm10, %v1777_v26, 0  ;;  %v8314_v48 = vpop.eup %8313  ;;  %v1598_v29 = vsel %vm1592_vm4, %v1595_v8, %v1597_v56 }
 0x1de   :  { %v1606_v24 = vsel %vm1592_vm4, %v1603_v20, %v1605_v25  ;;  %v9509_v31 = vmul.u32.u64.low %v9445_v19, %v1602_v51  ;;  %v9510_v10 = vmul.u32.u64.high %v9445_v19, %v1602_v51, %v9509_v31  ;;  %v8316_v21 = vpop.eup %8315  ;;  %v1243_v57 = vxor.u32 2147483648, %v8314_v48 }
 0x1df   :  { %v1426_v40 = vor.u32 %v1425_v23, %v1424_v15  ;;  %v1429_v14 = vshll.u32 %v1428_v55, 23  ;;  %v1781_v59 = vand.u32 31, %v1779_v35  ;;  %v1240_v1 = vxor.u32 2147483648, %v8316_v21 }
 0x1e0   :  { %v1440_v47 = vsel %vm9470_vm1, 0, %v9461_v60  ;;  %v9517_v8 = vmul.u32.u64.low %v9445_v19, %v1606_v24  ;;  %v9518_v22 = vmul.u32.u64.high %v9445_v19, %v1606_v24, %v9517_v8  ;;  %v1244_v28 = vsel %vm1242_vm3, %v1243_v57, %v8316_v21 }
 0x1e1   :  { %v1430_v56 = vor.u32 4788187, %v1429_v14  ;;  %v1614_v13 = vmul.u32 %v9445_v19, %v1598_v29  ;;  %v1782_v26 = vsub.s32 32, %v1781_v59  ;;  %v1241_v62 = vsel %vm1239_vm6, %v8314_v48, %v1240_v1 }
 0x1e2   :  { %v1433_v42 = vcvt.s32.f32 %v1426_v40  ;;  %v1617_v49 = vadd.s32 1, %v9510_v10  ;;  %v9526_v20 = vshrl.u32 %v1779_v35, 5  ;;  %v1245_v60 = vsel %vm1238_vm8, %v1241_v62, %v1244_v28 }
 0x1e3   :  { %v1431_v15 = vand.u32 2147483647, %v1430_v56  ;;  %v1784_v51 = vshll.u32 %v14804_v43, %v1781_v59  ;;  %v1785_v18 = vshrl.u32 %v14805_v33, %v1782_v26  ;;  %v1246_v19 = vsel %vm1235_vm9, nan, %v1245_v60 }
 0x1e4   :  { %vm1616_vm11 = vc.u32 %v9518_v22, %v9509_v31  ;;  %v1787_v23 = vshll.u32 %v14805_v33, %v1781_v59  ;;  %v1788_v55 = vshrl.u32 %v14806_v58, %v1782_v26  ;;  %v1790_v48 = vshll.u32 %v14806_v58, %v1781_v59  ;;  %4059 = vst [vmem:[#allocation13 + $0x20] sm:$0xff] %v1246_v19 }
 0x1e5   :  { %v1434_v25 = vmul.f32 %v1433_v42, %v1431_v15  ;;  %v1618_v35 = vsel %vm1616_vm11, %v1617_v49, %v9510_v10  ;;  %v1786_v63 = vor.u32 %v1785_v18, %v1784_v51  ;;  %v1791_v21 = vshrl.u32 %v14807_v9, %v1782_v26 }
 0x1e6   :  { %v1619_v29 = vadd.s32 %v1618_v35, %v1614_v13  ;;  %v1789_v24 = vor.u32 %v1788_v55, %v1787_v23  ;;  %v1793_v32 = vshll.u32 %v14807_v9, %v1781_v59  ;;  %v1794_v40 = vshrl.u32 %v14808_v39, %v1782_v26 }
 0x1e7   :  { %v1435_v57 = vxor.u32 2147483648, %v1434_v25  ;;  %v1796_v14 = vshll.u32 %v14808_v39, %v1781_v59  ;;  %v1797_v1 = vshrl.u32 %v14809_v5, %v1782_v26  ;;  %v1444_v8 = vadd.s32 3, %v1440_v47 }
 0x1e8   :  { %v1620_v28 = vadd.s32 536870912, %v1619_v29  ;;  %v1792_v10 = vor.u32 %v1791_v21, %v1790_v48  ;;  %vm1799_vm12 = vcmp.lt.s32.totalorder %v9526_v20, 1  ;;  %v1783_v13 = vshrl.u32 %v14804_v43, %v1782_v26 }
 0x1e9   :  { %v1436_v56 = vsel %vm1353_vm15, %v1435_v57, %v1434_v25  ;;  %v1795_v62 = vor.u32 %v1794_v40, %v1793_v32  ;;  %v1798_v42 = vor.u32 %v1797_v1, %v1796_v14  ;;  %vm1800_vm13 = vcmp.lt.s32.totalorder %v9526_v20, 2  ;;  %v9573_v40 = vpop.permute.xlu1 %652 }
 0x1ea   :  { %v1439_v49 = vsel %vm9470_vm1, %v9106_v54, %v1436_v56  ;;  %v1621_v60 = vshrl.u32 %v1620_v28, 30  ;;  %vm1802_vm14 = vcmp.lt.s32.totalorder %v9526_v20, 4  ;;  %v1807_v47 = vsel %vm1799_vm12, %v1786_v63, %v1789_v24  ;;  %14827 = vst [vmem:[#allocation62_spill] sm:$0xff] %v9573_v40 }
 0x1eb   :  { %8317 = vcosq.f32 %v1439_v49  ;;  %v1804_v59 = vsel %vm1802_vm14, %v1792_v10, 2102212464  ;;  %v1808_v15 = vsel %vm1802_vm14, %v1795_v62, 920167782  ;;  %vm1801_vm15 = vcmp.lt.s32.totalorder %v9526_v20, 3 }
 0x1ec   :  { %8319 = vsinq.f32 %v1439_v49  ;;  %v1622_v51 = vshll.u32 %v1621_v60, 30  ;;  %v1803_v26 = vsel %vm1799_vm12, %v1783_v13, %v1786_v63  ;;  %v1809_v38 = vsel %vm1801_vm15, %v1792_v10, %v1808_v15 }
 0x1ed   :  { %v1811_v18 = vsel %vm1799_vm12, %v1789_v24, %v1792_v10  ;;  %v1812_v19 = vsel %vm1802_vm14, %v1798_v42, 1326507024  ;;  %v1815_v23 = vshll.u32 %v1775_v30, 8  ;;  %v1805_v25 = vsel %vm1801_vm15, %v1789_v24, %v1804_v59 }
 0x1ee   :  { %v9563_v55 = vsub.s32 %v1619_v29, %v1622_v51  ;;  %v1810_v35 = vsel %vm1800_vm13, %v1807_v47, %v1809_v38  ;;  %v1813_v48 = vsel %vm1801_vm15, %v1795_v62, %v1812_v19  ;;  %v1645_v21 = vsub.s32 4, %v1621_v60 }
 0x1ef   :  { %v1814_v32 = vsel %vm1800_vm13, %v1811_v18, %v1813_v48  ;;  %v9569_v63 = vmul.u32.u64.low %v1815_v23, %v1810_v35  ;;  %v9570_v57 = vmul.u32.u64.high %v1815_v23, %v1810_v35, %v9569_v63  ;;  %v1445_v14 = vand.u32 3, %v1444_v8 }
 0x1f0   :  { %v1625_v45 = vsub.s32 0, %v9563_v55  ;;  %v9576_v30 = vmul.u32.u64.low %v1815_v23, %v1814_v32  ;;  %v9577_v29 = vmul.u32.u64.high %v1815_v23, %v1814_v32, %v9576_v30  ;;  %v9581_v24 = vadd.f32 %v9573_v40, %v9063_v0 }
 0x1f1   :  { %vm1561_vm0 = vcmp.lt.s32.totalorder %v9317_v53, 0  ;;  %v1806_v28 = vsel %vm1800_vm13, %v1803_v26, %v1805_v25  ;;  %v1978_v10 = vand.u32 2139095040, %v9433_v16  ;;  %vm1443_vm1 = vweird.f32 %v9106_v54 }
 0x1f2   :  { %v7792_v1 = vmin.u32 %v1625_v45, %v9563_v55  ;;  %v1646_v8 = vsel %vm1561_vm0, %v1645_v21, %v1621_v60  ;;  %v1825_v56 = vadd.s32 1, %v9570_v57  ;;  %v1975_v13 = vand.u32 2147483647, %v9433_v16 }
 0x1f3   :  { %vm1446_vm2 = vcmp.lt.s32.totalorder %v1445_v14, 2  ;;  %vm1447_vm3 = vcmp.eq.s32.totalorder %v1445_v14, 0  ;;  %vm9595_vm4 = vcmp.le.f32.partialorder %v1559_v4, 0.7853982  ;;  %vm1450_vm5 = vcmp.eq.s32.totalorder %v1445_v14, 2 }
 0x1f4   :  { %v1627_v20 = vclz %v7792_v1  ;;  %v1822_v42 = vmul.u32 %v1815_v23, %v1806_v28  ;;  %vm1824_vm6 = vc.u32 %v9577_v29, %v9569_v63  ;;  %v1979_v49 = vshrl.u32 %v1978_v10, 23 }
 0x1f5   :  { %v8318_v62 = vpop.eup %8317  ;;  %v1648_v15 = vsel %vm9595_vm4, 0, %v1646_v8  ;;  %v1826_v51 = vsel %vm1824_vm6, %v1825_v56, %v9570_v57  ;;  %v1982_v18 = vand.u32 8388607, %v1975_v13  ;;  %v1615_v23 = vadd.s32 %v9509_v31, %v9518_v22 }
 0x1f6   :  { %v8320_v60 = vpop.eup %8319  ;;  %v1451_v59 = vxor.u32 2147483648, %v8318_v62  ;;  %v7793_v47 = vadd.s32 4294967294, %v1627_v20  ;;  %v1827_v26 = vadd.s32 %v1826_v51, %v1822_v42  ;;  %v7807_v38 = vadd.s32 4294967169, %v1979_v49 }
 0x1f7   :  { %v1448_v4 = vxor.u32 2147483648, %v8320_v60  ;;  %v2186_v25 = vand.u32 2139095040, %v9581_v24  ;;  %v1652_v1 = vadd.s32 3, %v1648_v15  ;;  %v1983_v8 = vor.u32 8388608, %v1982_v18 }
 0x1f8   :  { %v1452_v19 = vsel %vm1450_vm5, %v1451_v59, %v8320_v60  ;;  %vm7794_vm7 = vcmp.lt.s32.totalorder %v7793_v47, 0  ;;  %v1828_v21 = vadd.s32 536870912, %v1827_v26  ;;  %v1985_v32 = vadd.s32 1, %v7807_v38 }
 0x1f9   :  { %v1449_v35 = vsel %vm1447_vm3, %v8318_v62, %v1448_v4  ;;  %v1630_v48 = vsel %vm7794_vm7, 0, %v7793_v47  ;;  %v2187_v49 = vshrl.u32 %v2186_v25, 23  ;;  %v9614_v59 = vand.u32 3, %v1652_v1 }
 0x1fa   :  { %v1453_v57 = vsel %vm1446_vm2, %v1449_v35, %v1452_v19  ;;  %v1631_v45 = vsub.s32 32, %v1630_v48  ;;  %v1635_v30 = vsub.s32 4294967266, %v1630_v48  ;;  %v1829_v10 = vshrl.u32 %v1828_v21, 30 }
 0x1fb   :  { %v1454_v28 = vsel %vm1443_vm1, nan, %v1453_v57  ;;  %vm1986_vm8 = vcmp.gt.s32.totalorder %v1985_v32, 0  ;;  %v1632_v31 = vshll.u32 %v9563_v55, %v1630_v48  ;;  %vm1769_vm9 = vcmp.lt.s32.totalorder %v9322_v27, 0 }
 0x1fc   :  { %v1633_v22 = vshrl.u32 %v1615_v23, %v1631_v45  ;;  %v1636_v56 = vadd.s32 127, %v1635_v30  ;;  %v1987_v20 = vsel %vm1986_vm8, %v1985_v32, 0  ;;  %4061 = vst [vmem:[#allocation13 + $0x30] sm:$0xff] %v1454_v28  ;;  %v1830_v62 = vshll.u32 %v1829_v10, 30 }
 0x1fd   :  { %v1989_v42 = vand.u32 31, %v1987_v20  ;;  %v1823_v55 = vadd.s32 %v9569_v63, %v9577_v29  ;;  %v1853_v51 = vsub.s32 4, %v1829_v10  ;;  %v9621_v4 = vshll.u32 %v1983_v8, 8 }
 0x1fe   :  { %v1634_v14 = vor.u32 %v1633_v22, %v1632_v31  ;;  %v1637_v60 = vshll.u32 %v1636_v56, 23  ;;  %v9617_v54 = vsub.s32 %v1827_v26, %v1830_v62  ;;  %v1988_v18 = vshrl.u32 %v1987_v20, 5 }
 0x1ff   :  { %v1990_v47 = vsub.s32 32, %v1989_v42  ;;  %v7815_v23 = vadd.s32 4294967169, %v2187_v49  ;;  %v1992_v32 = vshll.u32 %v14804_v43, %v1989_v42  ;;  %v1995_v63 = vshll.u32 %v14805_v33, %v1989_v42 }
 0x200   :  { %v1638_v15 = vor.u32 4788187, %v1637_v60  ;;  %v1833_v38 = vsub.s32 0, %v9617_v54  ;;  %v1641_v35 = vcvt.s32.f32 %v1634_v14  ;;  %v1998_v29 = vshll.u32 %v14806_v58, %v1989_v42 }
 0x201   :  { %v1993_v19 = vshrl.u32 %v14805_v33, %v1990_v47  ;;  %v1996_v48 = vshrl.u32 %v14806_v58, %v1990_v47  ;;  %v1999_v26 = vshrl.u32 %v14807_v9, %v1990_v47  ;;  %v9633_v45 = vsel %vm1769_vm9, %v1853_v51, %v1829_v10 }
 0x202   :  { %v1639_v25 = vand.u32 2147483647, %v1638_v15  ;;  %v7800_v21 = vmin.u32 %v1833_v38, %v9617_v54  ;;  %v2001_v30 = vshll.u32 %v14807_v9, %v1989_v42  ;;  %v2002_v1 = vshrl.u32 %v14808_v39, %v1990_v47 }
 0x203   :  { %v1994_v8 = vor.u32 %v1993_v19, %v1992_v32  ;;  %v1997_v31 = vor.u32 %v1996_v48, %v1995_v63  ;;  %v2000_v22 = vor.u32 %v1999_v26, %v1998_v29  ;;  %v2004_v62 = vshll.u32 %v14808_v39, %v1989_v42 }
 0x204   :  { %v1642_v57 = vmul.f32 %v1641_v35, %v1639_v25  ;;  %v1835_v28 = vclz %v7800_v21  ;;  %v2003_v20 = vor.u32 %v2002_v1, %v2001_v30  ;;  %v2005_v49 = vshrl.u32 %v14809_v5, %v1990_v47 }
 0x205   :  { %v1991_v60 = vshrl.u32 %v14804_v43, %v1990_v47  ;;  %vm2007_vm10 = vcmp.lt.s32.totalorder %v1988_v18, 1  ;;  %vm2008_vm11 = vcmp.lt.s32.totalorder %v1988_v18, 2  ;;  %vm2009_vm12 = vcmp.lt.s32.totalorder %v1988_v18, 3 }
 0x206   :  { %v1643_v56 = vxor.u32 2147483648, %v1642_v57  ;;  %v7801_v14 = vadd.s32 4294967294, %v1835_v28  ;;  %v2006_v15 = vor.u32 %v2005_v49, %v2004_v62  ;;  %vm2010_vm13 = vcmp.lt.s32.totalorder %v1988_v18, 4 }
 0x207   :  { %v2011_v42 = vsel %vm2007_vm10, %v1991_v60, %v1994_v8  ;;  %v2012_v38 = vsel %vm2010_vm13, %v2000_v22, 2102212464  ;;  %v2015_v47 = vsel %vm2007_vm10, %v1994_v8, %v1997_v31  ;;  %v2016_v25 = vsel %vm2010_vm13, %v2003_v20, 920167782 }
 0x208   :  { %v1644_v10 = vsel %vm1561_vm0, %v1643_v56, %v1642_v57  ;;  %vm7802_vm14 = vcmp.lt.s32.totalorder %v7801_v14, 0  ;;  %v2013_v26 = vsel %vm2009_vm12, %v1997_v31, %v2012_v38  ;;  %v2017_v0 = vsel %vm2009_vm12, %v2000_v22, %v2016_v25 }
 0x209   :  { %v1647_v51 = vsel %vm9595_vm4, %v9317_v53, %v1644_v10  ;;  %v1838_v19 = vsel %vm7802_vm14, 0, %v7801_v14  ;;  %v2019_v32 = vsel %vm2007_vm10, %v1997_v31, %v2000_v22  ;;  %v2020_v63 = vsel %vm2010_vm13, %v2006_v15, 1326507024  ;;  %v8561_v14 = vld [vmem:[#allocation7] sm:$0x3] }
 0x20a   :  { %8321 = vcosq.f32 %v1647_v51  ;;  %v1839_v35 = vsub.s32 32, %v1838_v19  ;;  %v1843_v48 = vsub.s32 4294967266, %v1838_v19  ;;  %v1840_v21 = vshll.u32 %v9617_v54, %v1838_v19  ;;  %v9663_v54 = vpop.permute.xlu0 %657 }
 0x20b   :  { %8323 = vsinq.f32 %v1647_v51  ;;  %v2018_v30 = vsel %vm2008_vm11, %v2015_v47, %v2017_v0  ;;  %v2021_v1 = vsel %vm2009_vm12, %v2003_v20, %v2020_v63  ;;  %v2014_v28 = vsel %vm2008_vm11, %v2011_v42, %v2013_v26  ;;  %14830 = vst [vmem:[#allocation63_spill] sm:$0xff] %v9663_v54 }
 0x20c   :  { %v1841_v29 = vshrl.u32 %v1823_v55, %v1839_v35  ;;  %v1844_v57 = vadd.s32 127, %v1843_v48  ;;  %v2022_v8 = vsel %vm2008_vm11, %v2019_v32, %v2021_v1  ;;  %v14831_v20 = vsub.s32 1, %v8867_v2 }
 0x20d   :  { %v9659_v56 = vmul.u32.u64.low %v9621_v4, %v2018_v30  ;;  %v9660_v62 = vmul.u32.u64.high %v9621_v4, %v2018_v30, %v9659_v56  ;;  %v9666_v55 = vmul.u32.u64.low %v9621_v4, %v2022_v8  ;;  %v9667_v49 = vmul.u32.u64.high %v9621_v4, %v2022_v8, %v9666_v55 }
 0x20e   :  { %v1842_v31 = vor.u32 %v1841_v29, %v1840_v21  ;;  %v1845_v22 = vshll.u32 %v1844_v57, 23  ;;  %v9671_v60 = vrot.slane %v8561_v14, %v14831_v20  ;;  %v9675_v18 = vadd.f32 %v9663_v54, %v9065_v6 }
 0x20f   :  { %vm9679_vm15 = vcmp.le.f32.partialorder %v1767_v50, 0.7853982  ;;  %v2193_v15 = vadd.s32 1, %v7815_v23  ;;  %vm1651_vm0 = vweird.f32 %v9317_v53  ;;  %vm1654_vm1 = vcmp.lt.s32.totalorder %v9614_v59, 2 }
 0x210   :  { %v1846_v51 = vor.u32 4788187, %v1845_v22  ;;  %v14708_v42 = vand.u32 2147483647, %v9581_v24  ;;  %v1856_v38 = vsel %vm9679_vm15, 0, %v9633_v45  ;;  %v2030_v6 = vmul.u32 %v9621_v4, %v2014_v28 }
 0x211   :  { %v2033_v19 = vadd.s32 1, %v9660_v62  ;;  %vm2194_vm2 = vcmp.gt.s32.totalorder %v2193_v15, 0  ;;  %v1849_v47 = vcvt.s32.f32 %v1842_v31  ;;  %vm2032_vm3 = vc.u32 %v9667_v49, %v9659_v56 }
 0x212   :  { %v1847_v50 = vand.u32 2147483647, %v1846_v51  ;;  %v2195_v23 = vsel %vm2194_vm2, %v2193_v15, 0  ;;  %vm1655_vm4 = vcmp.eq.s32.totalorder %v9614_v59, 0  ;;  %vm1658_vm5 = vcmp.eq.s32.totalorder %v9614_v59, 2 }
 0x213   :  { %v2034_v35 = vsel %vm2032_vm3, %v2033_v19, %v9660_v62  ;;  %v2197_v48 = vand.u32 31, %v2195_v23  ;;  %v2190_v0 = vand.u32 8388607, %v14708_v42  ;;  %v1860_v63 = vadd.s32 3, %v1856_v38 }
 0x214   :  { %v8322_v25 = vpop.eup %8321  ;;  %v1850_v4 = vmul.f32 %v1849_v47, %v1847_v50  ;;  %v2035_v21 = vadd.s32 %v2034_v35, %v2030_v6  ;;  %v2394_v57 = vand.u32 2139095040, %v9675_v18  ;;  %v2196_v19 = vshrl.u32 %v2195_v23, 5 }
 0x215   :  { %v8324_v45 = vpop.eup %8323  ;;  %v1659_v26 = vxor.u32 2147483648, %v8322_v25  ;;  %v2198_v29 = vsub.s32 32, %v2197_v48  ;;  %v2200_v8 = vshll.u32 %v14804_v43, %v2197_v48  ;;  %v2203_v22 = vshll.u32 %v14805_v33, %v2197_v48 }
 0x216   :  { %v1656_v32 = vxor.u32 2147483648, %v8324_v45  ;;  %v1851_v1 = vxor.u32 2147483648, %v1850_v4  ;;  %v2036_v28 = vadd.s32 536870912, %v2035_v21  ;;  %v2206_v50 = vshll.u32 %v14806_v58, %v2197_v48 }
 0x217   :  { %v1660_v30 = vsel %vm1658_vm5, %v1659_v26, %v8324_v45  ;;  %v2201_v31 = vshrl.u32 %v14805_v33, %v2198_v29  ;;  %v2204_v55 = vshrl.u32 %v14806_v58, %v2198_v29  ;;  %v2207_v51 = vshrl.u32 %v14807_v9, %v2198_v29 }
 0x218   :  { %v1657_v62 = vsel %vm1655_vm4, %v8322_v25, %v1656_v32  ;;  %v1852_v20 = vsel %vm1769_vm9, %v1851_v1, %v1850_v4  ;;  %v9709_v15 = vshrl.u32 %v2036_v28, 30  ;;  %v2209_v45 = vshll.u32 %v14807_v9, %v2197_v48 }
 0x219   :  { %v1661_v14 = vsel %vm1654_vm1, %v1657_v62, %v1660_v30  ;;  %v1855_v6 = vsel %vm9679_vm15, %v9322_v27, %v1852_v20  ;;  %v2202_v47 = vor.u32 %v2201_v31, %v2200_v8  ;;  %v2205_v25 = vor.u32 %v2204_v55, %v2203_v22 }
 0x21a   :  { %v1662_v38 = vsel %vm1651_vm0, nan, %v1661_v14  ;;  %8325 = vcosq.f32 %v1855_v6  ;;  %v2038_v59 = vshll.u32 %v9709_v15, 30  ;;  %v2208_v35 = vor.u32 %v2207_v51, %v2206_v50 }
 0x21b   :  { %4063 = vst [vmem:[#allocation13 + $0x40] sm:$0xff] %v1662_v38  ;;  %8327 = vsinq.f32 %v1855_v6  ;;  %v2210_v53 = vshrl.u32 %v14808_v39, %v2198_v29  ;;  %v1861_v26 = vand.u32 3, %v1860_v63  ;;  %v2212_v10 = vshll.u32 %v14808_v39, %v2197_v48 }
 0x21c   :  { %v9721_v4 = vsub.s32 %v2035_v21, %v2038_v59  ;;  %v2213_v23 = vshrl.u32 %v14809_v5, %v2198_v29  ;;  %v2191_v32 = vor.u32 8388608, %v2190_v0  ;;  %v14707_v1 = vand.u32 2147483647, %v9675_v18 }
 0x21d   :  { %v2211_v30 = vor.u32 %v2210_v53, %v2209_v45  ;;  %v2395_v28 = vshrl.u32 %v2394_v57, 23  ;;  %vm2215_vm6 = vcmp.lt.s32.totalorder %v2196_v19, 1  ;;  %vm2218_vm7 = vcmp.lt.s32.totalorder %v2196_v19, 4 }
 0x21e   :  { %v2041_v8 = vsub.s32 0, %v9721_v4  ;;  %v2214_v62 = vor.u32 %v2213_v23, %v2212_v10  ;;  %vm2217_vm8 = vcmp.lt.s32.totalorder %v2196_v19, 3  ;;  %v2220_v31 = vsel %vm2218_vm7, %v2208_v35, 2102212464 }
 0x21f   :  { %v2223_v63 = vsel %vm2215_vm6, %v2202_v47, %v2205_v25  ;;  %v2224_v21 = vsel %vm2218_vm7, %v2211_v30, 920167782  ;;  %vm1862_vm9 = vcmp.lt.s32.totalorder %v1861_v26, 2  ;;  %v2199_v22 = vshrl.u32 %v14804_v43, %v2198_v29 }
 0x220   :  { %v7808_v48 = vmin.u32 %v2041_v8, %v9721_v4  ;;  %vm2216_vm10 = vcmp.lt.s32.totalorder %v2196_v19, 2  ;;  %v2225_v0 = vsel %vm2217_vm8, %v2208_v35, %v2224_v21  ;;  %vm1859_vm11 = vweird.f32 %v9322_v27 }
 0x221   :  { %v2226_v57 = vsel %vm2216_vm10, %v2223_v63, %v2225_v0  ;;  %v2227_v55 = vsel %vm2215_vm6, %v2205_v25, %v2208_v35  ;;  %v2228_v14 = vsel %vm2218_vm7, %v2214_v62, 1326507024  ;;  %v2231_v20 = vshll.u32 %v2191_v32, 8 }
 0x222   :  { %vm1863_vm12 = vcmp.eq.s32.totalorder %v1861_v26, 0  ;;  %v2043_v51 = vclz %v7808_v48  ;;  %v2219_v38 = vsel %vm2215_vm6, %v2199_v22, %v2202_v47  ;;  %v2221_v6 = vsel %vm2217_vm8, %v2205_v25, %v2220_v31  ;;  %v9752_v31 = vpop.permute.xlu0 %667 }
 0x223   :  { %vm1866_vm13 = vcmp.eq.s32.totalorder %v1861_v26, 2  ;;  %v2229_v29 = vsel %vm2217_vm8, %v2211_v30, %v2228_v14  ;;  %v9737_v50 = vmul.u32.u64.low %v2231_v20, %v2226_v57  ;;  %v9738_v59 = vmul.u32.u64.high %v2231_v20, %v2226_v57, %v9737_v50  ;;  %v9750_v30 = vpop.permute.xlu1 %662  ;;  %14835 = vst [vmem:[#allocation65_spill] sm:$0xff] %v9752_v31 }
 0x224   :  { %v8326_v45 = vpop.eup %8325  ;;  %v7809_v53 = vadd.s32 4294967294, %v2043_v51  ;;  %v2230_v10 = vsel %vm2216_vm10, %v2227_v55, %v2229_v29  ;;  %v7823_v35 = vadd.s32 4294967169, %v2395_v28  ;;  %v9744_v23 = vand.u32 8388607, %v14707_v1  ;;  %14834 = vst [vmem:[#allocation64_spill] sm:$0xff] %v9750_v30 }
 0x225   :  { %v8328_v32 = vpop.eup %8327  ;;  %v1867_v47 = vxor.u32 2147483648, %v8326_v45  ;;  %v2222_v25 = vsel %vm2216_vm10, %v2219_v38, %v2221_v6  ;;  %v9747_v8 = vmul.u32.u64.low %v2231_v20, %v2230_v10  ;;  %v9748_v62 = vmul.u32.u64.high %v2231_v20, %v2230_v10, %v9747_v8 }
 0x226   :  { %v1864_v63 = vxor.u32 2147483648, %v8328_v32  ;;  %v2031_v21 = vadd.s32 %v9659_v56, %v9667_v49  ;;  %vm7810_vm14 = vcmp.lt.s32.totalorder %v7809_v53, 0  ;;  %v2401_v28 = vadd.s32 1, %v7823_v35  ;;  %v9774_v10 = vpop.permute.xlu0 %677 }
 0x227   :  { %v1868_v48 = vsel %vm1866_vm13, %v1867_v47, %v8328_v32  ;;  %v2046_v22 = vsel %vm7810_vm14, 0, %v7809_v53  ;;  %v2061_v0 = vsub.s32 4, %v9709_v15  ;;  %v2241_v19 = vadd.s32 1, %v9738_v59  ;;  %14837 = vst [vmem:[#allocation67_spill] sm:$0xff] %v9774_v10 }
 0x228   :  { %v1865_v57 = vsel %vm1863_vm12, %v8326_v45, %v1864_v63  ;;  %v2047_v55 = vsub.s32 32, %v2046_v22  ;;  %v2051_v14 = vsub.s32 4294967266, %v2046_v22  ;;  %v2238_v51 = vmul.u32 %v2231_v20, %v2222_v25 }
 0x229   :  { %v1869_v38 = vsel %vm1862_vm9, %v1865_v57, %v1868_v48  ;;  %v2048_v6 = vshll.u32 %v9721_v4, %v2046_v22  ;;  %vm2240_vm15 = vc.u32 %v9748_v62, %v9737_v50  ;;  %vm2402_vm0 = vcmp.gt.s32.totalorder %v2401_v28, 0  ;;  %v9772_v4 = vpop.permute.xlu1 %672 }
 0x22a   :  { %v1870_v56 = vsel %vm1859_vm11, nan, %v1869_v38  ;;  %v2049_v49 = vshrl.u32 %v2031_v21, %v2047_v55  ;;  %v2052_v29 = vadd.s32 127, %v2051_v14  ;;  %v2242_v53 = vsel %vm2240_vm15, %v2241_v19, %v9738_v59  ;;  %14836 = vst [vmem:[#allocation66_spill] sm:$0xff] %v9772_v4 }
 0x22b   :  { %v9769_v45 = vadd.f32 %v9750_v30, %v9067_v12  ;;  %vm1977_vm1 = vcmp.lt.s32.totalorder %v9433_v16, 0  ;;  %v2243_v26 = vadd.s32 %v2242_v53, %v2238_v51  ;;  %v2403_v20 = vsel %vm2402_vm0, %v2401_v28, 0  ;;  %4065 = vst [vmem:[#allocation13 + $0x50] sm:$0xff] %v1870_v56 }
 0x22c   :  { %v2050_v35 = vor.u32 %v2049_v49, %v2048_v6  ;;  %v2053_v27 = vshll.u32 %v2052_v29, 23  ;;  %v2062_v32 = vsel %vm1977_vm1, %v2061_v0, %v9709_v15  ;;  %v2405_v59 = vand.u32 31, %v2403_v20 }
 0x22d   :  { %v9781_v12 = vadd.f32 %v9752_v31, %v9069_v52  ;;  %v9785_v47 = vadd.f32 %v9772_v4, %v9071_v11  ;;  %v9789_v25 = vadd.f32 %v9774_v10, %v9073_v34  ;;  %v2244_v8 = vadd.s32 536870912, %v2243_v26  ;;  %v14897_v10 = vld [vmem:[#allocation53_spill] sm:$0xff]  ;;  %v14898_v4 = vld [vmem:[#allocation54_spill] sm:$0xff] }
 0x22e   :  { %vm9793_vm2 = vcmp.le.f32.partialorder %v1975_v13, 0.7853982  ;;  %v2054_v15 = vor.u32 4788187, %v2053_v27  ;;  %v2399_v21 = vor.u32 8388608, %v9744_v23  ;;  %v2406_v52 = vsub.s32 32, %v2405_v59 }
 0x22f   :  { %v2057_v28 = vcvt.s32.f32 %v2050_v35  ;;  %v2064_v11 = vsel %vm9793_vm2, 0, %v2062_v32  ;;  %v2245_v48 = vshrl.u32 %v2244_v8, 30  ;;  %v2602_v22 = vand.u32 2139095040, %v9769_v45 }
 0x230   :  { %v2055_v34 = vand.u32 2147483647, %v2054_v15  ;;  %vm2185_vm3 = vcmp.lt.s32.totalorder %v9581_v24, 0  ;;  %v2408_v0 = vshll.u32 %v14804_v43, %v2405_v59  ;;  %v2409_v13 = vshrl.u32 %v14805_v33, %v2406_v52 }
 0x231   :  { %v2412_v19 = vshrl.u32 %v14806_v58, %v2406_v52  ;;  %v2246_v57 = vshll.u32 %v2245_v48, 30  ;;  %v2411_v23 = vshll.u32 %v14805_v33, %v2405_v59  ;;  %v2415_v55 = vshrl.u32 %v14807_v9, %v2406_v52 }
 0x232   :  { %v2418_v14 = vshrl.u32 %v14808_v39, %v2406_v52  ;;  %v2058_v51 = vmul.f32 %v2057_v28, %v2055_v34  ;;  %v2404_v38 = vshrl.u32 %v2403_v20, 5  ;;  %v2414_v6 = vshll.u32 %v14806_v58, %v2405_v59 }
 0x233   :  { %v2417_v56 = vshll.u32 %v14807_v9, %v2405_v59  ;;  %v2068_v49 = vadd.s32 3, %v2064_v11  ;;  %v9810_v29 = vsub.s32 %v2243_v26, %v2246_v57  ;;  %v2410_v53 = vor.u32 %v2409_v13, %v2408_v0 }
 0x234   :  { %v2413_v35 = vor.u32 %v2412_v19, %v2411_v23  ;;  %v2059_v27 = vxor.u32 2147483648, %v2058_v51  ;;  %v2416_v32 = vor.u32 %v2415_v55, %v2414_v6  ;;  %v2421_v15 = vshrl.u32 %v14809_v5, %v2406_v52 }
 0x235   :  { %v2419_v8 = vor.u32 %v2418_v14, %v2417_v56  ;;  %v2249_v1 = vsub.s32 0, %v9810_v29  ;;  %v2269_v42 = vsub.s32 4, %v2245_v48  ;;  %v2420_v28 = vshll.u32 %v14808_v39, %v2405_v59 }
 0x236   :  { %v9815_v20 = vshll.u32 %v2399_v21, 8  ;;  %v2060_v34 = vsel %vm1977_vm1, %v2059_v27, %v2058_v51  ;;  %v2407_v26 = vshrl.u32 %v14804_v43, %v2406_v52  ;;  %vm2423_vm4 = vcmp.lt.s32.totalorder %v2404_v38, 1 }
 0x237   :  { %v2603_v11 = vshrl.u32 %v2602_v22, 23  ;;  %v2063_v0 = vsel %vm9793_vm2, %v9433_v16, %v2060_v34  ;;  %v7816_v13 = vmin.u32 %v2249_v1, %v9810_v29  ;;  %v2422_v19 = vor.u32 %v2421_v15, %v2420_v28 }
 0x238   :  { %vm2426_vm5 = vcmp.lt.s32.totalorder %v2404_v38, 4  ;;  %8329 = vcosq.f32 %v2063_v0  ;;  %v2431_v21 = vsel %vm2423_vm4, %v2410_v53, %v2413_v35  ;;  %v2270_v52 = vsel %vm2185_vm3, %v2269_v42, %v2245_v48 }
 0x239   :  { %v2428_v59 = vsel %vm2426_vm5, %v2416_v32, 2102212464  ;;  %v2432_v57 = vsel %vm2426_vm5, %v2419_v8, 920167782  ;;  %8331 = vsinq.f32 %v2063_v0  ;;  %v2251_v23 = vclz %v7816_v13 }
 0x23a   :  { %vm2425_vm6 = vcmp.lt.s32.totalorder %v2404_v38, 3  ;;  %vm2424_vm7 = vcmp.lt.s32.totalorder %v2404_v38, 2  ;;  %v2427_v63 = vsel %vm2423_vm4, %v2407_v26, %v2410_v53  ;;  %v2435_v1 = vsel %vm2423_vm4, %v2413_v35, %v2416_v32 }
 0x23b   :  { %v2433_v22 = vsel %vm2425_vm6, %v2416_v32, %v2432_v57  ;;  %v7817_v55 = vadd.s32 4294967294, %v2251_v23  ;;  %v2429_v14 = vsel %vm2425_vm6, %v2413_v35, %v2428_v59  ;;  %v2436_v6 = vsel %vm2426_vm5, %v2422_v19, 1326507024 }
 0x23c   :  { %v2434_v51 = vsel %vm2424_vm7, %v2431_v21, %v2433_v22  ;;  %v2437_v56 = vsel %vm2425_vm6, %v2419_v8, %v2436_v6  ;;  %v7831_v42 = vadd.s32 4294967169, %v2603_v11  ;;  %v14840_v48 = vand.u32 2147483647, %v9581_v24 }
 0x23d   :  { %v9834_v27 = vmul.u32.u64.low %v9815_v20, %v2434_v51  ;;  %v9835_v15 = vmul.u32.u64.high %v9815_v20, %v2434_v51, %v9834_v27  ;;  %v2239_v35 = vadd.s32 %v9737_v50, %v9748_v62  ;;  %vm7818_vm9 = vcmp.lt.s32.totalorder %v7817_v55, 0 }
 0x23e   :  { %vm9840_vm8 = vcmp.le.f32.partialorder %v14840_v48, 0.7853982  ;;  %v2438_v32 = vsel %vm2424_vm7, %v2435_v1, %v2437_v56  ;;  %v2254_v28 = vsel %vm7818_vm9, 0, %v7817_v55  ;;  %v2609_v26 = vadd.s32 1, %v7831_v42 }
 0x23f   :  { %v9848_v8 = vmul.u32.u64.low %v9815_v20, %v2438_v32  ;;  %v9849_v34 = vmul.u32.u64.high %v9815_v20, %v2438_v32, %v9848_v8  ;;  %vm2067_vm10 = vweird.f32 %v9433_v16  ;;  %v2255_v11 = vsub.s32 32, %v2254_v28 }
 0x240   :  { %v2259_v0 = vsub.s32 4294967266, %v2254_v28  ;;  %v2272_v13 = vsel %vm9840_vm8, 0, %v2270_v52  ;;  %v2430_v19 = vsel %vm2424_vm7, %v2427_v63, %v2429_v14  ;;  %v2069_v59 = vand.u32 3, %v2068_v49 }
 0x241   :  { %v2449_v50 = vadd.s32 1, %v9835_v15  ;;  %v2599_v62 = vand.u32 2147483647, %v9769_v45  ;;  %vm2610_vm11 = vcmp.gt.s32.totalorder %v2609_v26, 0  ;;  %v2256_v21 = vshll.u32 %v9810_v29, %v2254_v28 }
 0x242   :  { %v2257_v57 = vshrl.u32 %v2239_v35, %v2255_v11  ;;  %v2260_v23 = vadd.s32 127, %v2259_v0  ;;  %v2611_v22 = vsel %vm2610_vm11, %v2609_v26, 0  ;;  %v8330_v1 = vpop.eup %8329  ;;  %v2276_v55 = vadd.s32 3, %v2272_v13 }
 0x243   :  { %v2446_v51 = vmul.u32 %v9815_v20, %v2430_v19  ;;  %vm2448_vm12 = vc.u32 %v9849_v34, %v9834_v27  ;;  %v2613_v38 = vand.u32 31, %v2611_v22  ;;  %v8332_v52 = vpop.eup %8331  ;;  %v2075_v49 = vxor.u32 2147483648, %v8330_v1 }
 0x244   :  { %v2258_v63 = vor.u32 %v2257_v57, %v2256_v21  ;;  %v2261_v14 = vshll.u32 %v2260_v23, 23  ;;  %v2450_v6 = vsel %vm2448_vm12, %v2449_v50, %v9835_v15  ;;  %v2072_v56 = vxor.u32 2147483648, %v8332_v52 }
 0x245   :  { %vm2074_vm13 = vcmp.eq.s32.totalorder %v2069_v59, 2  ;;  %v2451_v29 = vadd.s32 %v2450_v6, %v2446_v51  ;;  %v2614_v42 = vsub.s32 32, %v2613_v38  ;;  %vm2070_vm14 = vcmp.lt.s32.totalorder %v2069_v59, 2 }
 0x246   :  { %vm2071_vm15 = vcmp.eq.s32.totalorder %v2069_v59, 0  ;;  %v2076_v48 = vsel %vm2074_vm13, %v2075_v49, %v8332_v52  ;;  %v2262_v35 = vor.u32 4788187, %v2261_v14  ;;  %v9862_v20 = vand.u32 3, %v2276_v55 }
 0x247   :  { %v2073_v32 = vsel %vm2071_vm15, %v8330_v1, %v2072_v56  ;;  %v2452_v28 = vadd.s32 536870912, %v2451_v29  ;;  %v2606_v8 = vand.u32 8388607, %v2599_v62  ;;  %v2265_v0 = vcvt.s32.f32 %v2258_v63 }
 0x248   :  { %v2077_v26 = vsel %vm2070_vm14, %v2073_v32, %v2076_v48  ;;  %v2263_v11 = vand.u32 2147483647, %v2262_v35  ;;  %v2617_v15 = vshrl.u32 %v14805_v33, %v2614_v42  ;;  %v2620_v59 = vshrl.u32 %v14806_v58, %v2614_v42 }
 0x249   :  { %v2078_v13 = vsel %vm2067_vm10, nan, %v2077_v26  ;;  %v2453_v19 = vshrl.u32 %v2452_v28, 30  ;;  %v2623_v50 = vshrl.u32 %v14807_v9, %v2614_v42  ;;  %v2612_v57 = vshrl.u32 %v2611_v22, 5 }
 0x24a   :  { %v2266_v21 = vmul.f32 %v2265_v0, %v2263_v11  ;;  %v2625_v23 = vshll.u32 %v14807_v9, %v2613_v38  ;;  %v2626_v1 = vshrl.u32 %v14808_v39, %v2614_v42  ;;  %4067 = vst [vmem:[#allocation13 + $0x60] sm:$0xff] %v2078_v13  ;;  %v2616_v51 = vshll.u32 %v14804_v43, %v2613_v38 }
 0x24b   :  { %v2454_v55 = vshll.u32 %v2453_v19, 30  ;;  %v2619_v52 = vshll.u32 %v14805_v33, %v2613_v38  ;;  %v2622_v16 = vshll.u32 %v14806_v58, %v2613_v38  ;;  %v2628_v14 = vshll.u32 %v14808_v39, %v2613_v38 }
 0x24c   :  { %v2267_v49 = vxor.u32 2147483648, %v2266_v21  ;;  %v2627_v63 = vor.u32 %v2626_v1, %v2625_v23  ;;  %v2629_v6 = vshrl.u32 %v14809_v5, %v2614_v42  ;;  %vm2393_vm0 = vcmp.lt.s32.totalorder %v9675_v18, 0 }
 0x24d   :  { %v9879_v22 = vsub.s32 %v2451_v29, %v2454_v55  ;;  %v2618_v56 = vor.u32 %v2617_v15, %v2616_v51  ;;  %v2621_v48 = vor.u32 %v2620_v59, %v2619_v52  ;;  %v2624_v35 = vor.u32 %v2623_v50, %v2622_v16 }
 0x24e   :  { %v2268_v32 = vsel %vm2185_vm3, %v2267_v49, %v2266_v21  ;;  %v2607_v28 = vor.u32 8388608, %v2606_v8  ;;  %v2630_v26 = vor.u32 %v2629_v6, %v2628_v14  ;;  %v2810_v11 = vand.u32 2139095040, %v9781_v12 }
 0x24f   :  { %v2271_v38 = vsel %vm9840_vm8, %v9581_v24, %v2268_v32  ;;  %v2457_v0 = vsub.s32 0, %v9879_v22  ;;  %v2615_v13 = vshrl.u32 %v14804_v43, %v2614_v42  ;;  %vm2634_vm1 = vcmp.lt.s32.totalorder %v2612_v57, 4 }
 0x250   :  { %8333 = vcosq.f32 %v2271_v38  ;;  %v14843_v29 = vand.u32 2147483647, %v9675_v18  ;;  %vm2631_vm3 = vcmp.lt.s32.totalorder %v2612_v57, 1  ;;  %vm2633_vm4 = vcmp.lt.s32.totalorder %v2612_v57, 3 }
 0x251   :  { %v2640_v8 = vsel %vm2634_vm1, %v2627_v63, 920167782  ;;  %8335 = vsinq.f32 %v2271_v38  ;;  %v7824_v59 = vmin.u32 %v2457_v0, %v9879_v22  ;;  %v2636_v53 = vsel %vm2634_vm1, %v2624_v35, 2102212464 }
 0x252   :  { %vm9891_vm2 = vcmp.le.f32.partialorder %v14843_v29, 0.7853982  ;;  %v2639_v50 = vsel %vm2631_vm3, %v2618_v56, %v2621_v48  ;;  %v2477_v21 = vsub.s32 4, %v2453_v19  ;;  %v2641_v23 = vsel %vm2633_vm4, %v2624_v35, %v2640_v8 }
 0x253   :  { %v2643_v42 = vsel %vm2631_vm3, %v2621_v48, %v2624_v35  ;;  %v2644_v1 = vsel %vm2634_vm1, %v2630_v26, 1326507024  ;;  %v2459_v55 = vclz %v7824_v59  ;;  %vm2632_vm5 = vcmp.lt.s32.totalorder %v2612_v57, 2 }
 0x254   :  { %v2635_v51 = vsel %vm2631_vm3, %v2615_v13, %v2618_v56  ;;  %v2647_v52 = vshll.u32 %v2607_v28, 8  ;;  %v2637_v16 = vsel %vm2633_vm4, %v2621_v48, %v2636_v53  ;;  %v2642_v49 = vsel %vm2632_vm5, %v2639_v50, %v2641_v23 }
 0x255   :  { %v2645_v14 = vsel %vm2633_vm4, %v2627_v63, %v2644_v1  ;;  %v2811_v6 = vshrl.u32 %v2810_v11, 23  ;;  %v7825_v32 = vadd.s32 4294967294, %v2459_v55  ;;  %v2478_v35 = vsel %vm2393_vm0, %v2477_v21, %v2453_v19 }
 0x256   :  { %v2646_v38 = vsel %vm2632_vm5, %v2643_v42, %v2645_v14  ;;  %v9901_v0 = vmul.u32.u64.low %v2647_v52, %v2642_v49  ;;  %v9902_v29 = vmul.u32.u64.high %v2647_v52, %v2642_v49, %v9901_v0  ;;  %vm2279_vm6 = vcmp.eq.s32.totalorder %v9862_v20, 0 }
 0x257   :  { %v9906_v26 = vmul.u32.u64.low %v2647_v52, %v2646_v38  ;;  %v9907_v8 = vmul.u32.u64.high %v2647_v52, %v2646_v38, %v9906_v26  ;;  %v7839_v56 = vadd.s32 4294967169, %v2811_v6  ;;  %vm2282_vm7 = vcmp.eq.s32.totalorder %v9862_v20, 2 }
 0x258   :  { %vm7826_vm8 = vcmp.lt.s32.totalorder %v7825_v32, 0  ;;  %v2638_v63 = vsel %vm2632_vm5, %v2635_v51, %v2637_v16  ;;  %v2447_v48 = vadd.s32 %v9834_v27, %v9849_v34  ;;  %v2807_v11 = vand.u32 2147483647, %v9781_v12 }
 0x259   :  { %v2462_v28 = vsel %vm7826_vm8, 0, %v7825_v32  ;;  %v2817_v13 = vadd.s32 1, %v7839_v56  ;;  %v2480_v53 = vsel %vm9891_vm2, 0, %v2478_v35  ;;  %v2657_v50 = vadd.s32 1, %v9902_v29 }
 0x25a   :  { %v2463_v59 = vsub.s32 32, %v2462_v28  ;;  %v2467_v19 = vsub.s32 4294967266, %v2462_v28  ;;  %v8334_v21 = vpop.eup %8333  ;;  %v2464_v23 = vshll.u32 %v9879_v22, %v2462_v28  ;;  %v2654_v42 = vmul.u32 %v2647_v52, %v2638_v63  ;;  %v9925_v52 = vpop.permute.xlu1 %682 }
 0x25b   :  { %vm2656_vm9 = vc.u32 %v9907_v8, %v9901_v0  ;;  %vm2818_vm10 = vcmp.gt.s32.totalorder %v2817_v13, 0  ;;  %v8336_v57 = vpop.eup %8335  ;;  %v2283_v27 = vxor.u32 2147483648, %v8334_v21  ;;  %v2484_v16 = vadd.s32 3, %v2480_v53  ;;  %14846 = vst [vmem:[#allocation68_spill] sm:$0xff] %v9925_v52 }
 0x25c   :  { %v2465_v34 = vshrl.u32 %v2447_v48, %v2463_v59  ;;  %v2468_v1 = vadd.s32 127, %v2467_v19  ;;  %v2658_v55 = vsel %vm2656_vm9, %v2657_v50, %v9902_v29  ;;  %v2280_v51 = vxor.u32 2147483648, %v8336_v57 }
 0x25d   :  { %v2659_v49 = vadd.s32 %v2658_v55, %v2654_v42  ;;  %v2819_v14 = vsel %vm2818_vm10, %v2817_v13, 0  ;;  %v2284_v6 = vsel %vm2282_vm7, %v2283_v27, %v8336_v57  ;;  %v2814_v22 = vand.u32 8388607, %v2807_v11 }
 0x25e   :  { %v2466_v32 = vor.u32 %v2465_v34, %v2464_v23  ;;  %v2469_v38 = vshll.u32 %v2468_v1, 23  ;;  %vm2278_vm11 = vcmp.lt.s32.totalorder %v9862_v20, 2  ;;  %v2281_v35 = vsel %vm2279_vm6, %v8334_v21, %v2280_v51 }
 0x25f   :  { %v2660_v29 = vadd.s32 536870912, %v2659_v49  ;;  %v2821_v26 = vand.u32 31, %v2819_v14  ;;  %v9932_v56 = vadd.f32 %v9925_v52, %v9075_v36  ;;  %vm2275_vm12 = vweird.f32 %v9581_v24 }
 0x260   :  { %v2285_v63 = vsel %vm2278_vm11, %v2281_v35, %v2284_v6  ;;  %v2470_v48 = vor.u32 4788187, %v2469_v38  ;;  %v9935_v13 = vand.u32 3, %v2484_v16  ;;  %v2473_v50 = vcvt.s32.f32 %v2466_v32 }
 0x261   :  { %v2286_v28 = vsel %vm2275_vm12, nan, %v2285_v63  ;;  %v2661_v59 = vshrl.u32 %v2660_v29, 30  ;;  %v2822_v19 = vsub.s32 32, %v2821_v26  ;;  %v2815_v23 = vor.u32 8388608, %v2814_v22  ;;  %v9952_v22 = vpop.f32.mrb[3].mxu0 }
 0x262   :  { %v2471_v53 = vand.u32 2147483647, %v2470_v48  ;;  %v3018_v20 = vand.u32 2139095040, %v9785_v47  ;;  %4069 = vst [vmem:[#allocation13 + $0x70] sm:$0xff] %v2286_v28  ;;  %v9939_v21 = vadd.s32 %v9901_v0, %v9907_v8  ;;  %v2824_v42 = vshll.u32 %v14804_v43, %v2821_v26 }
 0x263   :  { %v2662_v36 = vshll.u32 %v2661_v59, 30  ;;  %v2825_v24 = vshrl.u32 %v14805_v33, %v2822_v19  ;;  %v2828_v27 = vshrl.u32 %v14806_v58, %v2822_v19  ;;  %v2831_v34 = vshrl.u32 %v14807_v9, %v2822_v19 }
 0x264   :  { %v2474_v57 = vmul.f32 %v2473_v50, %v2471_v53  ;;  %v2834_v1 = vshrl.u32 %v14808_v39, %v2822_v19  ;;  %v2820_v51 = vshrl.u32 %v2819_v14, 5  ;;  %v2827_v16 = vshll.u32 %v14805_v33, %v2821_v26 }
 0x265   :  { %v9946_v55 = vsub.s32 %v2659_v49, %v2662_v36  ;;  %v2830_v0 = vshll.u32 %v14806_v58, %v2821_v26  ;;  %v2826_v6 = vor.u32 %v2825_v24, %v2824_v42  ;;  %v2833_v32 = vshll.u32 %v14807_v9, %v2821_v26 }
 0x266   :  { %v2475_v8 = vxor.u32 2147483648, %v2474_v57  ;;  %v2836_v38 = vshll.u32 %v14808_v39, %v2821_v26  ;;  %vm2601_vm13 = vcmp.lt.s32.totalorder %v9769_v45, 0  ;;  %v2829_v29 = vor.u32 %v2828_v27, %v2827_v16 }
 0x267   :  { %v2665_v35 = vsub.s32 0, %v9946_v55  ;;  %v2832_v49 = vor.u32 %v2831_v34, %v2830_v0  ;;  %v2837_v14 = vshrl.u32 %v14809_v5, %v2822_v19  ;;  %v2835_v48 = vor.u32 %v2834_v1, %v2833_v32 }
 0x268   :  { %v2476_v63 = vsel %vm2393_vm0, %v2475_v8, %v2474_v57  ;;  %v2855_v28 = vshll.u32 %v2815_v23, 8  ;;  %v3019_v53 = vshrl.u32 %v3018_v20, 23  ;;  %vm2839_vm14 = vcmp.lt.s32.totalorder %v2820_v51, 1 }
 0x269   :  { %v2479_v26 = vsel %vm9891_vm2, %v9675_v18, %v2476_v63  ;;  %v7832_v50 = vmin.u32 %v2665_v35, %v9946_v55  ;;  %v2838_v36 = vor.u32 %v2837_v14, %v2836_v38  ;;  %v2685_v42 = vsub.s32 4, %v2661_v59 }
 0x26a   :  { %8337 = vcosq.f32 %v2479_v26  ;;  %v2823_v24 = vshrl.u32 %v14804_v43, %v2822_v19  ;;  %vm2842_vm15 = vcmp.lt.s32.totalorder %v2820_v51, 4  ;;  %v2847_v57 = vsel %vm2839_vm14, %v2826_v6, %v2829_v29 }
 0x26b   :  { %8339 = vsinq.f32 %v2479_v26  ;;  %v2667_v27 = vclz %v7832_v50  ;;  %v2844_v34 = vsel %vm2842_vm15, %v2832_v49, 2102212464  ;;  %vm2840_vm0 = vcmp.lt.s32.totalorder %v2820_v51, 2 }
 0x26c   :  { %vm2841_vm1 = vcmp.lt.s32.totalorder %v2820_v51, 3  ;;  %v2848_v23 = vsel %vm2842_vm15, %v2835_v48, 920167782  ;;  %v2851_v20 = vsel %vm2839_vm14, %v2829_v29, %v2832_v49  ;;  %v2843_v15 = vsel %vm2839_vm14, %v2823_v24, %v2826_v6 }
 0x26d   :  { %v7833_v1 = vadd.s32 4294967294, %v2667_v27  ;;  %v2849_v16 = vsel %vm2841_vm1, %v2832_v49, %v2848_v23  ;;  %v2852_v0 = vsel %vm2842_vm15, %v2838_v36, 1326507024  ;;  %v2845_v8 = vsel %vm2841_vm1, %v2829_v29, %v2844_v34  ;;  %v9975_v49 = vpop.f32.mrb[3].mxu1 }
 0x26e   :  { %v2850_v32 = vsel %vm2840_vm0, %v2847_v57, %v2849_v16  ;;  %v2853_v38 = vsel %vm2841_vm1, %v2835_v48, %v2852_v0  ;;  %v7847_v35 = vadd.s32 4294967169, %v3019_v53  ;;  %v2686_v50 = vsel %vm2601_vm13, %v2685_v42, %v2661_v59 }
 0x26f   :  { %vm7834_vm2 = vcmp.lt.s32.totalorder %v7833_v1, 0  ;;  %v2854_v19 = vsel %vm2840_vm0, %v2851_v20, %v2853_v38  ;;  %v9966_v14 = vmul.u32.u64.low %v2855_v28, %v2850_v32  ;;  %v9967_v63 = vmul.u32.u64.high %v2855_v28, %v2850_v32, %v9966_v14 }
 0x270   :  { %v2670_v26 = vsel %vm7834_vm2, 0, %v7833_v1  ;;  %v9972_v27 = vmul.u32.u64.low %v2855_v28, %v2854_v19  ;;  %v9973_v6 = vmul.u32.u64.high %v2855_v28, %v2854_v19, %v9972_v27  ;;  %v2846_v48 = vsel %vm2840_vm0, %v2843_v15, %v2845_v8 }
 0x271   :  { %v2671_v29 = vsub.s32 32, %v2670_v26  ;;  %v2675_v36 = vsub.s32 4294967266, %v2670_v26  ;;  %v3025_v53 = vadd.s32 1, %v7847_v35  ;;  %vm2490_vm3 = vcmp.eq.s32.totalorder %v9935_v13, 2 }
 0x272   :  { %vm9981_vm4 = vcmp.le.f32.partialorder %v2599_v62, 0.7853982  ;;  %v2672_v59 = vshll.u32 %v9946_v55, %v2670_v26  ;;  %v3015_v42 = vand.u32 2147483647, %v9785_v47  ;;  %v2865_v23 = vadd.s32 1, %v9967_v63 }
 0x273   :  { %v2673_v34 = vshrl.u32 %v9939_v21, %v2671_v29  ;;  %v2676_v57 = vadd.s32 127, %v2675_v36  ;;  %vm3026_vm5 = vcmp.gt.s32.totalorder %v3025_v53, 0  ;;  %v2688_v20 = vsel %vm9981_vm4, 0, %v2686_v50 }
 0x274   :  { %v8338_v51 = vpop.eup %8337  ;;  %v2862_v1 = vmul.u32 %v2855_v28, %v2846_v48  ;;  %vm2864_vm6 = vc.u32 %v9973_v6, %v9966_v14  ;;  %v3027_v62 = vsel %vm3026_vm5, %v3025_v53, 0  ;;  %v3022_v38 = vand.u32 8388607, %v3015_v42 }
 0x275   :  { %v8340_v15 = vpop.eup %8339  ;;  %v2491_v16 = vxor.u32 2147483648, %v8338_v51  ;;  %v2674_v55 = vor.u32 %v2673_v34, %v2672_v59  ;;  %v2677_v0 = vshll.u32 %v2676_v57, 23  ;;  %v2866_v8 = vsel %vm2864_vm6, %v2865_v23, %v9967_v63 }
 0x276   :  { %v2488_v21 = vxor.u32 2147483648, %v8340_v15  ;;  %v2867_v32 = vadd.s32 %v2866_v8, %v2862_v1  ;;  %v3029_v35 = vand.u32 31, %v3027_v62  ;;  %vm2483_vm7 = vweird.f32 %v9675_v18 }
 0x277   :  { %vm2487_vm8 = vcmp.eq.s32.totalorder %v9935_v13, 0  ;;  %v2492_v28 = vsel %vm2490_vm3, %v2491_v16, %v8340_v15  ;;  %v2678_v19 = vor.u32 4788187, %v2677_v0  ;;  %vm2486_vm9 = vcmp.lt.s32.totalorder %v9935_v13, 2 }
 0x278   :  { %v2489_v26 = vsel %vm2487_vm8, %v8338_v51, %v2488_v21  ;;  %v2868_v50 = vadd.s32 536870912, %v2867_v32  ;;  %v3030_v27 = vsub.s32 32, %v3029_v35  ;;  %v2681_v36 = vcvt.s32.f32 %v2674_v55 }
 0x279   :  { %v2493_v63 = vsel %vm2486_vm9, %v2489_v26, %v2492_v28  ;;  %v2679_v29 = vand.u32 2147483647, %v2678_v19  ;;  %v2692_v48 = vadd.s32 3, %v2688_v20  ;;  %v3023_v34 = vor.u32 8388608, %v3022_v38 }
 0x27a   :  { %v2494_v53 = vsel %vm2483_vm7, nan, %v2493_v63  ;;  %v2869_v59 = vshrl.u32 %v2868_v50, 30  ;;  %v3033_v18 = vshrl.u32 %v14805_v33, %v3030_v27  ;;  %v10002_v23 = vshrl.u32 %v3027_v62, 5 }
 0x27b   :  { %v2682_v57 = vmul.f32 %v2681_v36, %v2679_v29  ;;  %v3036_v1 = vshrl.u32 %v14806_v58, %v3030_v27  ;;  %v3039_v15 = vshrl.u32 %v14807_v9, %v3030_v27  ;;  %4071 = vst [vmem:[#allocation13 + $0x80] sm:$0xff] %v2494_v53  ;;  %v3032_v51 = vshll.u32 %v14804_v43, %v3029_v35 }
 0x27c   :  { %v2870_v13 = vshll.u32 %v2869_v59, 30  ;;  %v3035_v16 = vshll.u32 %v14805_v33, %v3029_v35  ;;  %v3042_v20 = vshrl.u32 %v14808_v39, %v3030_v27  ;;  %v2893_v0 = vsub.s32 4, %v2869_v59 }
 0x27d   :  { %v2683_v55 = vxor.u32 2147483648, %v2682_v57  ;;  %v3038_v8 = vshll.u32 %v14806_v58, %v3029_v35  ;;  %v3041_v21 = vshll.u32 %v14807_v9, %v3029_v35  ;;  %v3034_v38 = vor.u32 %v3033_v18, %v3032_v51 }
 0x27e   :  { %v10011_v62 = vsub.s32 %v2867_v32, %v2870_v13  ;;  %v3037_v28 = vor.u32 %v3036_v1, %v3035_v16  ;;  %v3045_v19 = vshrl.u32 %v14809_v5, %v3030_v27  ;;  %vm10018_vm10 = vcmp.le.f32.partialorder %v2807_v11, 0.7853982 }
 0x27f   :  { %v2684_v26 = vsel %vm2601_vm13, %v2683_v55, %v2682_v57  ;;  %v3040_v63 = vor.u32 %v3039_v15, %v3038_v8  ;;  %v3043_v29 = vor.u32 %v3042_v20, %v3041_v21  ;;  %v3044_v36 = vshll.u32 %v14808_v39, %v3029_v35 }
 0x280   :  { %v2687_v32 = vsel %vm9981_vm4, %v9769_v45, %v2684_v26  ;;  %v10026_v53 = vand.u32 3, %v2692_v48  ;;  %vm2809_vm11 = vcmp.lt.s32.totalorder %v9781_v12, 0  ;;  %v2873_v18 = vsub.s32 0, %v10011_v62 }
 0x281   :  { %8341 = vcosq.f32 %v2687_v32  ;;  %v3031_v11 = vshrl.u32 %v14804_v43, %v3030_v27  ;;  %v3046_v57 = vor.u32 %v3045_v19, %v3044_v36  ;;  %v3063_v1 = vshll.u32 %v3023_v34, 8 }
 0x282   :  { %8343 = vsinq.f32 %v2687_v32  ;;  %v7840_v15 = vmin.u32 %v2873_v18, %v10011_v62  ;;  %vm3047_vm12 = vcmp.lt.s32.totalorder %v10002_v23, 1  ;;  %vm3050_vm13 = vcmp.lt.s32.totalorder %v10002_v23, 4 }
 0x283   :  { %v2894_v24 = vsel %vm2809_vm11, %v2893_v0, %v2869_v59  ;;  %v3052_v35 = vsel %vm3050_vm13, %v3040_v63, 2102212464  ;;  %v3055_v48 = vsel %vm3047_vm12, %v3034_v38, %v3037_v28  ;;  %v3056_v13 = vsel %vm3050_vm13, %v3043_v29, 920167782 }
 0x284   :  { %v2875_v51 = vclz %v7840_v15  ;;  %vm3048_vm14 = vcmp.lt.s32.totalorder %v10002_v23, 2  ;;  %vm3049_vm15 = vcmp.lt.s32.totalorder %v10002_v23, 3  ;;  %v3059_v27 = vsel %vm3047_vm12, %v3037_v28, %v3040_v63 }
 0x285   :  { %v3051_v34 = vsel %vm3047_vm12, %v3031_v11, %v3034_v38  ;;  %v3057_v16 = vsel %vm3049_vm15, %v3040_v63, %v3056_v13  ;;  %v3060_v20 = vsel %vm3050_vm13, %v3046_v57, 1326507024  ;;  %v3226_v55 = vand.u32 2139095040, %v9789_v25 }
 0x286   :  { %v7841_v8 = vadd.s32 4294967294, %v2875_v51  ;;  %v3053_v21 = vsel %vm3049_vm15, %v3037_v28, %v3052_v35  ;;  %v3058_v19 = vsel %vm3048_vm14, %v3055_v48, %v3057_v16  ;;  %v3061_v59 = vsel %vm3049_vm15, %v3043_v29, %v3060_v20 }
 0x287   :  { %vm153_vm0 = vcmp.le.s32.totalorder %v8867_v2, %v9671_v60  ;;  %vm165_vm1 = vcmp.eq.s32.totalorder %v8867_v2, %v9671_v60  ;;  %vm2694_vm2 = vcmp.lt.s32.totalorder %v10026_v53, 2  ;;  %v3062_v0 = vsel %vm3048_vm14, %v3059_v27, %v3061_v59 }
 0x288   :  { %v10048_v38 = vmul.u32.u64.low %v3063_v1, %v3058_v19  ;;  %v10049_v26 = vmul.u32.u64.high %v3063_v1, %v3058_v19, %v10048_v38  ;;  %v3227_v28 = vshrl.u32 %v3226_v55, 23  ;;  %vm7842_vm3 = vcmp.lt.s32.totalorder %v7841_v8, 0 }
 0x289   :  { %v2896_v63 = vsel %vm10018_vm10, 0, %v2894_v24  ;;  %v10054_v29 = vmul.u32.u64.low %v3063_v1, %v3062_v0  ;;  %v10055_v36 = vmul.u32.u64.high %v3063_v1, %v3062_v0, %v10054_v29  ;;  %vm2695_vm4 = vcmp.eq.s32.totalorder %v10026_v53, 0 }
 0x28a   :  { %vm2698_vm5 = vcmp.eq.s32.totalorder %v10026_v53, 2  ;;  %v2878_v32 = vsel %vm7842_vm3, 0, %v7841_v8  ;;  %v7855_v18 = vadd.s32 4294967169, %v3227_v28  ;;  %v2863_v11 = vadd.s32 %v9966_v14, %v9973_v6 }
 0x28b   :  { %v2879_v57 = vsub.s32 32, %v2878_v32  ;;  %v2883_v15 = vsub.s32 4294967266, %v2878_v32  ;;  %v3054_v35 = vsel %vm3048_vm14, %v3051_v34, %v3053_v21  ;;  %v8342_v48 = vpop.eup %8341  ;;  %v2900_v13 = vadd.s32 3, %v2896_v63 }
 0x28c   :  { %v3073_v24 = vadd.s32 1, %v10049_v26  ;;  %v14709_v51 = vand.u32 2147483647, %v9789_v25  ;;  %v3233_v27 = vadd.s32 1, %v7855_v18  ;;  %v8344_v16 = vpop.eup %8343  ;;  %v2699_v20 = vxor.u32 2147483648, %v8342_v48 }
 0x28d   :  { %v2880_v55 = vshll.u32 %v10011_v62, %v2878_v32  ;;  %v2881_v8 = vshrl.u32 %v2863_v11, %v2879_v57  ;;  %v2884_v19 = vadd.s32 127, %v2883_v15  ;;  %v2696_v59 = vxor.u32 2147483648, %v8344_v16 }
 0x28e   :  { %v3070_v14 = vmul.u32 %v3063_v1, %v3054_v35  ;;  %vm3072_vm6 = vc.u32 %v10055_v36, %v10048_v38  ;;  %vm3234_vm7 = vcmp.gt.s32.totalorder %v3233_v27, 0  ;;  %v2700_v6 = vsel %vm2698_vm5, %v2699_v20, %v8344_v16 }
 0x28f   :  { %v2882_v23 = vor.u32 %v2881_v8, %v2880_v55  ;;  %v2885_v34 = vshll.u32 %v2884_v19, 23  ;;  %v3074_v21 = vsel %vm3072_vm6, %v3073_v24, %v10049_v26  ;;  %v2697_v0 = vsel %vm2695_vm4, %v8342_v48, %v2696_v59 }
 0x290   :  { %v3075_v28 = vadd.s32 %v3074_v21, %v3070_v14  ;;  %v3230_v62 = vand.u32 8388607, %v14709_v51  ;;  %v3235_v63 = vsel %vm3234_vm7, %v3233_v27, 0  ;;  %vm2691_vm8 = vweird.f32 %v9769_v45 }
 0x291   :  { %v2701_v1 = vsel %vm2694_vm2, %v2697_v0, %v2700_v6  ;;  %v2886_v29 = vor.u32 4788187, %v2885_v34  ;;  %v3434_v32 = vand.u32 2139095040, %v9932_v56  ;;  %v3237_v57 = vand.u32 31, %v3235_v63 }
 0x292   :  { %v2702_v18 = vsel %vm2691_vm8, nan, %v2701_v1  ;;  %v3076_v11 = vadd.s32 536870912, %v3075_v28  ;;  %v14851_v26 = vmov 0.0   ;;  %v2889_v35 = vcvt.s32.f32 %v2882_v23 }
 0x293   :  { %v10083_v15 = vsel %vm153_vm0, 1.0, %v14851_v26  ;;  %v10089_v45 = vsel %vm165_vm1, 1.0, %v14851_v26  ;;  %v2887_v53 = vand.u32 2147483647, %v2886_v29  ;;  %4073 = vst [vmem:[#allocation13 + $0x90] sm:$0xff] %v2702_v18  ;;  %v10091_v48 = vand.u32 3, %v2900_v13 }
 0x294   :  { %14852 = vst [vmem:[#allocation69_spill] sm:$0xff] %v10083_v15  ;;  %14853 = vst [vmem:[#allocation70_spill] sm:$0xff] %v10089_v45  ;;  %v3077_v24 = vshrl.u32 %v3076_v11, 30  ;;  %v3231_v27 = vor.u32 8388608, %v3230_v62  ;;  %v3238_v16 = vsub.s32 32, %v3237_v57  ;;  %v3236_v55 = vshrl.u32 %v3235_v63, 5 }
 0x295   :  { %v2890_v20 = vmul.f32 %v2889_v35, %v2887_v53  ;;  %v3240_v8 = vshll.u32 %v14804_v43, %v3237_v57  ;;  %v3435_v19 = vshrl.u32 %v3434_v32, 23  ;;  %v3243_v2 = vshll.u32 %v14805_v33, %v3237_v57 }
 0x296   :  { %v3078_v59 = vshll.u32 %v3077_v24, 30  ;;  %v3241_v14 = vshrl.u32 %v14805_v33, %v3238_v16  ;;  %v3246_v6 = vshll.u32 %v14806_v58, %v3237_v57  ;;  %vm3017_vm9 = vcmp.lt.s32.totalorder %v9785_v47, 0 }
 0x297   :  { %v2891_v34 = vxor.u32 2147483648, %v2890_v20  ;;  %v3244_v13 = vshrl.u32 %v14806_v58, %v3238_v16  ;;  %v3247_v23 = vshrl.u32 %v14807_v9, %v3238_v16  ;;  %v3250_v21 = vshrl.u32 %v14808_v39, %v3238_v16 }
 0x298   :  { %v10101_v0 = vsub.s32 %v3075_v28, %v3078_v59  ;;  %v3249_v62 = vshll.u32 %v14807_v9, %v3237_v57  ;;  %v3252_v63 = vshll.u32 %v14808_v39, %v3237_v57  ;;  %v3253_v1 = vshrl.u32 %v14809_v5, %v3238_v16 }
 0x299   :  { %v2892_v29 = vsel %vm2809_vm11, %v2891_v34, %v2890_v20  ;;  %v3242_v32 = vor.u32 %v3241_v14, %v3240_v8  ;;  %v3245_v18 = vor.u32 %v3244_v13, %v3243_v2  ;;  %v3248_v11 = vor.u32 %v3247_v23, %v3246_v6 }
 0x29a   :  { %v2895_v53 = vsel %vm10018_vm10, %v9781_v12, %v2892_v29  ;;  %v3081_v35 = vsub.s32 0, %v10101_v0  ;;  %v3251_v28 = vor.u32 %v3250_v21, %v3249_v62  ;;  %vm3255_vm12 = vcmp.lt.s32.totalorder %v3236_v55, 1 }
 0x29b   :  { %8345 = vcosq.f32 %v2895_v53  ;;  %v3101_v59 = vsub.s32 4, %v3077_v24  ;;  %v3254_v51 = vor.u32 %v3253_v1, %v3252_v63  ;;  %vm3258_vm13 = vcmp.lt.s32.totalorder %v3236_v55, 4 }
 0x29c   :  { %8347 = vsinq.f32 %v2895_v53  ;;  %vm10114_vm14 = vcmp.le.f32.partialorder %v3015_v42, 0.7853982  ;;  %v7848_v20 = vmin.u32 %v3081_v35, %v10101_v0  ;;  %v3239_v50 = vshrl.u32 %v14804_v43, %v3238_v16 }
 0x29d   :  { %v3260_v8 = vsel %vm3258_vm13, %v3248_v11, 2102212464  ;;  %vm3257_vm10 = vcmp.lt.s32.totalorder %v3236_v55, 3  ;;  %v3263_v14 = vsel %vm3255_vm12, %v3242_v32, %v3245_v18  ;;  %v3264_v2 = vsel %vm3258_vm13, %v3251_v28, 920167782 }
 0x29e   :  { %v3271_v6 = vshll.u32 %v3231_v27, 8  ;;  %v3083_v34 = vclz %v7848_v20  ;;  %v3259_v13 = vsel %vm3255_vm12, %v3239_v50, %v3242_v32  ;;  %v3261_v23 = vsel %vm3257_vm10, %v3245_v18, %v3260_v8 }
 0x29f   :  { %v3267_v42 = vsel %vm3255_vm12, %v3245_v18, %v3248_v11  ;;  %vm3256_vm11 = vcmp.lt.s32.totalorder %v3236_v55, 2  ;;  %v3265_v21 = vsel %vm3257_vm10, %v3248_v11, %v3264_v2  ;;  %v3268_v62 = vsel %vm3258_vm13, %v3254_v51, 1326507024 }
 0x2a0   :  { %v7863_v63 = vadd.s32 4294967169, %v3435_v19  ;;  %v7849_v16 = vadd.s32 4294967294, %v3083_v34  ;;  %v3102_v1 = vsel %vm3017_vm9, %v3101_v59, %v3077_v24  ;;  %v3266_v29 = vsel %vm3256_vm11, %v3263_v14, %v3265_v21 }
 0x2a1   :  { %v3269_v53 = vsel %vm3257_vm10, %v3251_v28, %v3268_v62  ;;  %v3262_v35 = vsel %vm3256_vm11, %v3259_v13, %v3261_v23  ;;  %v10128_v27 = vmul.u32.u64.low %v3271_v6, %v3266_v29  ;;  %v10129_v20 = vmul.u32.u64.high %v3271_v6, %v3266_v29, %v10128_v27 }
 0x2a2   :  { %v3270_v52 = vsel %vm3256_vm11, %v3267_v42, %v3269_v53  ;;  %vm7850_vm15 = vcmp.lt.s32.totalorder %v7849_v16, 0  ;;  %v3441_v11 = vadd.s32 1, %v7863_v63  ;;  %vm2903_vm0 = vcmp.eq.s32.totalorder %v10091_v48, 0 }
 0x2a3   :  { %v10132_v32 = vmul.u32.u64.low %v3271_v6, %v3270_v52  ;;  %v10133_v18 = vmul.u32.u64.high %v3271_v6, %v3270_v52, %v10132_v32  ;;  %vm2906_vm1 = vcmp.eq.s32.totalorder %v10091_v48, 2  ;;  %v3086_v51 = vsel %vm7850_vm15, 0, %v7849_v16 }
 0x2a4   :  { %v3431_v24 = vand.u32 2147483647, %v9932_v56  ;;  %v3071_v55 = vadd.s32 %v10048_v38, %v10055_v36  ;;  %v3087_v19 = vsub.s32 32, %v3086_v51  ;;  %v3091_v28 = vsub.s32 4294967266, %v3086_v51 }
 0x2a5   :  { %vm3442_vm2 = vcmp.gt.s32.totalorder %v3441_v11, 0  ;;  %v8346_v59 = vpop.eup %8345  ;;  %v3104_v50 = vsel %vm10114_vm14, 0, %v3102_v1  ;;  %v3278_v52 = vmul.u32 %v3271_v6, %v3262_v35  ;;  %v3281_v8 = vadd.s32 1, %v10129_v20  ;;  %v10151_v1 = vpop.permute.xlu0 %687 }
 0x2a6   :  { %v3443_v14 = vsel %vm3442_vm2, %v3441_v11, 0  ;;  %v8348_v2 = vpop.eup %8347  ;;  %v2907_v34 = vxor.u32 2147483648, %v8346_v59  ;;  %v3088_v13 = vshll.u32 %v10101_v0, %v3086_v51  ;;  %v3089_v23 = vshrl.u32 %v3071_v55, %v3087_v19  ;;  %14856 = vst [vmem:[#allocation71_spill] sm:$0xff] %v10151_v1 }
 0x2a7   :  { %v3092_v42 = vadd.s32 127, %v3091_v28  ;;  %v2904_v21 = vxor.u32 2147483648, %v8348_v2  ;;  %vm3280_vm3 = vc.u32 %v10133_v18, %v10128_v27  ;;  %v3438_v38 = vand.u32 8388607, %v3431_v24 }
 0x2a8   :  { %v3445_v36 = vand.u32 31, %v3443_v14  ;;  %v2908_v6 = vsel %vm2906_vm1, %v2907_v34, %v8348_v2  ;;  %v3090_v62 = vor.u32 %v3089_v23, %v3088_v13  ;;  %v3282_v16 = vsel %vm3280_vm3, %v3281_v8, %v10129_v20 }
 0x2a9   :  { %v3093_v63 = vshll.u32 %v3092_v42, 23  ;;  %vm2902_vm4 = vcmp.lt.s32.totalorder %v10091_v48, 2  ;;  %v2905_v0 = vsel %vm2903_vm0, %v8346_v59, %v2904_v21  ;;  %v3283_v29 = vadd.s32 %v3282_v16, %v3278_v52 }
 0x2aa   :  { %v3446_v53 = vsub.s32 32, %v3445_v36  ;;  %v10158_v35 = vadd.f32 %v10151_v1, %v9077_v41  ;;  %vm2899_vm5 = vweird.f32 %v9781_v12  ;;  %v2909_v32 = vsel %vm2902_vm4, %v2905_v0, %v2908_v6 }
 0x2ab   :  { %v3094_v11 = vor.u32 4788187, %v3093_v63  ;;  %v2910_v51 = vsel %vm2899_vm5, nan, %v2909_v32  ;;  %v3108_v55 = vadd.s32 3, %v3104_v50  ;;  %v3284_v20 = vadd.s32 536870912, %v3283_v29 }
 0x2ac   :  { %v3449_v19 = vshrl.u32 %v14805_v33, %v3446_v53  ;;  %v3097_v8 = vcvt.s32.f32 %v3090_v62  ;;  %v3439_v2 = vor.u32 8388608, %v3438_v38  ;;  %v3452_v48 = vshrl.u32 %v14806_v58, %v3446_v53  ;;  %4075 = vst [vmem:[#allocation13 + $0xa0] sm:$0xff] %v2910_v51 }
 0x2ad   :  { %v3095_v28 = vand.u32 2147483647, %v3094_v11  ;;  %v3285_v59 = vshrl.u32 %v3284_v20, 30  ;;  %v3448_v52 = vshll.u32 %v14804_v43, %v3445_v36  ;;  %v3455_v41 = vshrl.u32 %v14807_v9, %v3446_v53 }
 0x2ae   :  { %v3458_v12 = vshrl.u32 %v14808_v39, %v3446_v53  ;;  %v3444_v13 = vshrl.u32 %v3443_v14, 5  ;;  %v3451_v50 = vshll.u32 %v14805_v33, %v3445_v36  ;;  %v3457_v23 = vshll.u32 %v14807_v9, %v3445_v36 }
 0x2af   :  { %v3098_v34 = vmul.f32 %v3097_v8, %v3095_v28  ;;  %v3286_v42 = vshll.u32 %v3285_v59, 30  ;;  %v3450_v21 = vor.u32 %v3449_v19, %v3448_v52  ;;  %v3454_v38 = vshll.u32 %v14806_v58, %v3445_v36  ;;  %v10187_v52 = vpop.permute.xlu1 %692 }
 0x2b0   :  { %v3461_v6 = vshrl.u32 %v14809_v5, %v3446_v53  ;;  %v3453_v63 = vor.u32 %v3452_v48, %v3451_v50  ;;  %v3459_v16 = vor.u32 %v3458_v12, %v3457_v23  ;;  %v3460_v0 = vshll.u32 %v14808_v39, %v3445_v36  ;;  %14857 = vst [vmem:[#allocation72_spill] sm:$0xff] %v10187_v52 }
 0x2b1   :  { %v3099_v62 = vxor.u32 2147483648, %v3098_v34  ;;  %v10171_v32 = vand.u32 3, %v3108_v55  ;;  %v10173_v11 = vsub.s32 %v3283_v29, %v3286_v42  ;;  %v3456_v14 = vor.u32 %v3455_v41, %v3454_v38 }
 0x2b2   :  { %v10175_v51 = vshll.u32 %v3439_v2, 8  ;;  %v3447_v19 = vshrl.u32 %v14804_v43, %v3446_v53  ;;  %v3462_v28 = vor.u32 %v3461_v6, %v3460_v0  ;;  %vm3463_vm6 = vcmp.lt.s32.totalorder %v3444_v13, 1 }
 0x2b3   :  { %v3100_v20 = vsel %vm3017_vm9, %v3099_v62, %v3098_v34  ;;  %v3289_v36 = vsub.s32 0, %v10173_v11  ;;  %vm3464_vm7 = vcmp.lt.s32.totalorder %v3444_v13, 2  ;;  %vm3466_vm8 = vcmp.lt.s32.totalorder %v3444_v13, 4 }
 0x2b4   :  { %v3103_v8 = vsel %vm10114_vm14, %v9785_v47, %v3100_v20  ;;  %vm3465_vm12 = vcmp.lt.s32.totalorder %v3444_v13, 3  ;;  %v3471_v29 = vsel %vm3463_vm6, %v3450_v21, %v3453_v63  ;;  %v3472_v55 = vsel %vm3466_vm8, %v3459_v16, 920167782 }
 0x2b5   :  { %8349 = vcosq.f32 %v3103_v8  ;;  %v7856_v2 = vmin.u32 %v3289_v36, %v10173_v11  ;;  %v3468_v48 = vsel %vm3466_vm8, %v3456_v14, 2102212464  ;;  %v3473_v53 = vsel %vm3465_vm12, %v3456_v14, %v3472_v55 }
 0x2b6   :  { %8351 = vsinq.f32 %v3103_v8  ;;  %v3309_v41 = vsub.s32 4, %v3285_v59  ;;  %v3474_v57 = vsel %vm3464_vm7, %v3471_v29, %v3473_v53  ;;  %v3475_v12 = vsel %vm3463_vm6, %v3453_v63, %v3456_v14 }
 0x2b7   :  { %v3476_v34 = vsel %vm3466_vm8, %v3462_v28, 1326507024  ;;  %v10193_v50 = vadd.f32 %v10187_v52, %v9079_v17  ;;  %vm3225_vm9 = vcmp.lt.s32.totalorder %v9789_v25, 0  ;;  %v3291_v23 = vclz %v7856_v2  ;;  %v14895_v52 = vld [vmem:[#allocation51_spill] sm:$0xff] }
 0x2b8   :  { %v3467_v42 = vsel %vm3463_vm6, %v3447_v19, %v3450_v21  ;;  %v3469_v38 = vsel %vm3465_vm12, %v3453_v63, %v3468_v48  ;;  %v3477_v6 = vsel %vm3465_vm12, %v3459_v16, %v3476_v34  ;;  %v14858_v14 = vand.u32 2147483647, %v9789_v25 }
 0x2b9   :  { %v10200_v62 = vmul.u32.u64.low %v10175_v51, %v3474_v57  ;;  %v10201_v0 = vmul.u32.u64.high %v10175_v51, %v3474_v57, %v10200_v62  ;;  %v7857_v17 = vadd.s32 4294967294, %v3291_v23  ;;  %v3478_v28 = vsel %vm3464_vm7, %v3475_v12, %v3477_v6 }
 0x2ba   :  { %vm10206_vm13 = vcmp.le.f32.partialorder %v14858_v14, 0.7853982  ;;  %v3642_v21 = vand.u32 2139095040, %v10158_v35  ;;  %vm3110_vm14 = vcmp.lt.s32.totalorder %v10171_v32, 2  ;;  %v3310_v63 = vsel %vm3225_vm9, %v3309_v41, %v3285_v59 }
 0x2bb   :  { %v10216_v16 = vmul.u32.u64.low %v10175_v51, %v3478_v28  ;;  %v10217_v19 = vmul.u32.u64.high %v10175_v51, %v3478_v28, %v10216_v16  ;;  %v3639_v8 = vand.u32 2147483647, %v10158_v35  ;;  %vm3107_vm10 = vweird.f32 %v9785_v47 }
 0x2bc   :  { %vm3114_vm11 = vcmp.eq.s32.totalorder %v10171_v32, 2  ;;  %vm7858_vm15 = vcmp.lt.s32.totalorder %v7857_v17, 0  ;;  %v3470_v36 = vsel %vm3464_vm7, %v3467_v42, %v3469_v38  ;;  %v3643_v29 = vshrl.u32 %v3642_v21, 23 }
 0x2bd   :  { %v3279_v55 = vadd.s32 %v10128_v27, %v10133_v18  ;;  %v3294_v2 = vsel %vm7858_vm15, 0, %v7857_v17  ;;  %v3489_v59 = vadd.s32 1, %v10201_v0  ;;  %v3850_v48 = vand.u32 2139095040, %v10193_v50 }
 0x2be   :  { %v3295_v53 = vsub.s32 32, %v3294_v2  ;;  %v3299_v41 = vsub.s32 4294967266, %v3294_v2  ;;  %v3312_v57 = vsel %vm10206_vm13, 0, %v3310_v63  ;;  %v7871_v12 = vadd.s32 4294967169, %v3643_v29 }
 0x2bf   :  { %v8350_v34 = vpop.eup %8349  ;;  %v3296_v23 = vshll.u32 %v10173_v11, %v3294_v2  ;;  %v3486_v13 = vmul.u32 %v10175_v51, %v3470_v36  ;;  %vm3488_vm0 = vc.u32 %v10217_v19, %v10200_v62  ;;  %v3646_v27 = vand.u32 8388607, %v3639_v8 }
 0x2c0   :  { %v8352_v18 = vpop.eup %8351  ;;  %v3115_v42 = vxor.u32 2147483648, %v8350_v34  ;;  %v3297_v38 = vshrl.u32 %v3279_v55, %v3295_v53  ;;  %v3300_v6 = vadd.s32 127, %v3299_v41  ;;  %v3490_v14 = vsel %vm3488_vm0, %v3489_v59, %v10201_v0 }
 0x2c1   :  { %v3112_v17 = vxor.u32 2147483648, %v8352_v18  ;;  %v3491_v28 = vadd.s32 %v3490_v14, %v3486_v13  ;;  %v3649_v21 = vadd.s32 1, %v7871_v12  ;;  %v3851_v63 = vshrl.u32 %v3850_v48, 23 }
 0x2c2   :  { %vm3111_vm1 = vcmp.eq.s32.totalorder %v10171_v32, 0  ;;  %v3116_v11 = vsel %vm3114_vm11, %v3115_v42, %v8352_v18  ;;  %v3298_v51 = vor.u32 %v3297_v38, %v3296_v23  ;;  %v3301_v16 = vshll.u32 %v3300_v6, 23 }
 0x2c3   :  { %v3113_v36 = vsel %vm3111_vm1, %v8350_v34, %v3112_v17  ;;  %v3316_v29 = vadd.s32 3, %v3312_v57  ;;  %v3492_v2 = vadd.s32 536870912, %v3491_v28  ;;  %vm3650_vm2 = vcmp.gt.s32.totalorder %v3649_v21, 0 }
 0x2c4   :  { %v3117_v55 = vsel %vm3110_vm14, %v3113_v36, %v3116_v11  ;;  %v3302_v53 = vor.u32 4788187, %v3301_v16  ;;  %v3647_v0 = vor.u32 8388608, %v3646_v27  ;;  %v3651_v59 = vsel %vm3650_vm2, %v3649_v21, 0 }
 0x2c5   :  { %v3118_v48 = vsel %vm3107_vm10, nan, %v3117_v55  ;;  %v3493_v41 = vshrl.u32 %v3492_v2, 30  ;;  %v3653_v12 = vand.u32 31, %v3651_v59  ;;  %v7879_v13 = vadd.s32 4294967169, %v3851_v63 }
 0x2c6   :  { %v10245_v23 = vmul.f32 %v10083_v15, %v8996_v44  ;;  %v3303_v34 = vand.u32 2147483647, %v3302_v53  ;;  %v3305_v57 = vcvt.s32.f32 %v3298_v51  ;;  %vm3433_vm3 = vcmp.lt.s32.totalorder %v9932_v56, 0  ;;  %4077 = vst [vmem:[#allocation13 + $0xb0] sm:$0xff] %v3118_v48  ;;  %v14884_v15 = vld [vmem:[#allocation36_spill] sm:$0xff] }
 0x2c7   :  { %v10248_v32 = vand.u32 3, %v3316_v29  ;;  %vm10252_vm4 = vcmp.le.f32.partialorder %v3431_v24, 0.7853982  ;;  %v3494_v47 = vshll.u32 %v3493_v41, 30  ;;  %v3654_v18 = vsub.s32 32, %v3653_v12 }
 0x2c8   :  { %v14712_v42 = vand.u32 2147483647, %v10193_v50  ;;  %v3306_v38 = vmul.f32 %v3305_v57, %v3303_v34  ;;  %v3487_v44 = vadd.s32 %v10200_v62, %v10217_v19  ;;  %v3517_v6 = vsub.s32 4, %v3493_v41 }
 0x2c9   :  { %v10259_v14 = vshll.u32 %v3647_v0, 8  ;;  %v10261_v17 = vsub.s32 %v3491_v28, %v3494_v47  ;;  %v10263_v21 = vshrl.u32 %v3651_v59, 5  ;;  %v3657_v24 = vshrl.u32 %v14805_v33, %v3654_v18 }
 0x2ca   :  { %v3857_v63 = vadd.s32 1, %v7879_v13  ;;  %v3307_v11 = vxor.u32 2147483648, %v3306_v38  ;;  %v3656_v51 = vshll.u32 %v14804_v43, %v3653_v12  ;;  %v3660_v16 = vshrl.u32 %v14806_v58, %v3654_v18 }
 0x2cb   :  { %v3663_v36 = vshrl.u32 %v14807_v9, %v3654_v18  ;;  %v3497_v29 = vsub.s32 0, %v10261_v17  ;;  %v3659_v62 = vshll.u32 %v14805_v33, %v3653_v12  ;;  %v3662_v19 = vshll.u32 %v14806_v58, %v3653_v12 }
 0x2cc   :  { %v3666_v28 = vshrl.u32 %v14808_v39, %v3654_v18  ;;  %v3308_v2 = vsel %vm3225_vm9, %v3307_v11, %v3306_v38  ;;  %v3518_v55 = vsel %vm3433_vm3, %v3517_v6, %v3493_v41  ;;  %v3658_v53 = vor.u32 %v3657_v24, %v3656_v51 }
 0x2cd   :  { %v3665_v0 = vshll.u32 %v14807_v9, %v3653_v12  ;;  %v3311_v59 = vsel %vm10206_vm13, %v9789_v25, %v3308_v2  ;;  %v7864_v48 = vmin.u32 %v3497_v29, %v10261_v17  ;;  %v3661_v13 = vor.u32 %v3660_v16, %v3659_v62 }
 0x2ce   :  { %v3664_v34 = vor.u32 %v3663_v36, %v3662_v19  ;;  %8353 = vcosq.f32 %v3311_v59  ;;  %v3668_v47 = vshll.u32 %v14808_v39, %v3653_v12  ;;  %v3669_v38 = vshrl.u32 %v14809_v5, %v3654_v18 }
 0x2cf   :  { %v3667_v57 = vor.u32 %v3666_v28, %v3665_v0  ;;  %8355 = vsinq.f32 %v3311_v59  ;;  %v3499_v11 = vclz %v7864_v48  ;;  %v10286_v41 = vand.u32 8388607, %v14712_v42 }
 0x2d0   :  { %vm3858_vm5 = vcmp.gt.s32.totalorder %v3857_v63, 0  ;;  %v3520_v20 = vsel %vm10252_vm4, 0, %v3518_v55  ;;  %v3655_v6 = vshrl.u32 %v14804_v43, %v3654_v18  ;;  %v3670_v24 = vor.u32 %v3669_v38, %v3668_v47 }
 0x2d1   :  { %vm3671_vm6 = vcmp.lt.s32.totalorder %v10263_v21, 1  ;;  %v7865_v51 = vadd.s32 4294967294, %v3499_v11  ;;  %vm3673_vm7 = vcmp.lt.s32.totalorder %v10263_v21, 3  ;;  %vm3674_vm8 = vcmp.lt.s32.totalorder %v10263_v21, 4 }
 0x2d2   :  { %v3679_v12 = vsel %vm3671_vm6, %v3658_v53, %v3661_v13  ;;  %v3676_v16 = vsel %vm3674_vm8, %v3664_v34, 2102212464  ;;  %v3680_v36 = vsel %vm3674_vm8, %v3667_v57, 920167782  ;;  %v3683_v29 = vsel %vm3671_vm6, %v3661_v13, %v3664_v34 }
 0x2d3   :  { %v3684_v62 = vsel %vm3674_vm8, %v3670_v24, 1326507024  ;;  %vm7866_vm12 = vcmp.lt.s32.totalorder %v7865_v51, 0  ;;  %vm3672_vm9 = vcmp.lt.s32.totalorder %v10263_v21, 2  ;;  %v3681_v19 = vsel %vm3673_vm7, %v3664_v34, %v3680_v36 }
 0x2d4   :  { %v3685_v18 = vsel %vm3673_vm7, %v3667_v57, %v3684_v62  ;;  %v3502_v28 = vsel %vm7866_vm12, 0, %v7865_v51  ;;  %v3675_v2 = vsel %vm3671_vm6, %v3655_v6, %v3658_v53  ;;  %v3682_v55 = vsel %vm3672_vm9, %v3679_v12, %v3681_v19 }
 0x2d5   :  { %v3686_v0 = vsel %vm3672_vm9, %v3683_v29, %v3685_v18  ;;  %vm3315_vm13 = vweird.f32 %v9789_v25  ;;  %v3503_v59 = vsub.s32 32, %v3502_v28  ;;  %v3507_v48 = vsub.s32 4294967266, %v3502_v28 }
 0x2d6   :  { %v3677_v47 = vsel %vm3673_vm7, %v3661_v13, %v3676_v16  ;;  %v3859_v34 = vsel %vm3858_vm5, %v3857_v63, 0  ;;  %v10308_v38 = vmul.u32.u64.low %v10259_v14, %v3686_v0  ;;  %v10309_v57 = vmul.u32.u64.high %v10259_v14, %v3686_v0, %v10308_v38 }
 0x2d7   :  { %v10312_v53 = vmul.u32.u64.low %v10259_v14, %v3682_v55  ;;  %v10313_v11 = vmul.u32.u64.high %v10259_v14, %v3682_v55, %v10312_v53  ;;  %v3504_v6 = vshll.u32 %v10261_v17, %v3502_v28  ;;  %v3505_v24 = vshrl.u32 %v3487_v44, %v3503_v59 }
 0x2d8   :  { %v3508_v51 = vadd.s32 127, %v3507_v48  ;;  %v3861_v12 = vand.u32 31, %v3859_v34  ;;  %v8354_v36 = vpop.eup %8353  ;;  %vm3318_vm14 = vcmp.lt.s32.totalorder %v10248_v32, 2  ;;  %vm3319_vm10 = vcmp.eq.s32.totalorder %v10248_v32, 0 }
 0x2d9   :  { %v3524_v63 = vadd.s32 3, %v3520_v20  ;;  %v3678_v13 = vsel %vm3672_vm9, %v3675_v2, %v3677_v47  ;;  %v8356_v16 = vpop.eup %8355  ;;  %v3323_v29 = vxor.u32 2147483648, %v8354_v36  ;;  %v3506_v62 = vor.u32 %v3505_v24, %v3504_v6 }
 0x2da   :  { %v3509_v19 = vshll.u32 %v3508_v51, 23  ;;  %v3862_v18 = vsub.s32 32, %v3861_v12  ;;  %v3320_v55 = vxor.u32 2147483648, %v8356_v16  ;;  %vm3322_vm11 = vcmp.eq.s32.totalorder %v10248_v32, 2 }
 0x2db   :  { %vm3696_vm15 = vc.u32 %v10309_v57, %v10312_v53  ;;  %v3697_v44 = vadd.s32 1, %v10313_v11  ;;  %v3324_v17 = vsel %vm3322_vm11, %v3323_v29, %v8356_v16  ;;  %v3694_v20 = vmul.u32 %v10259_v14, %v3678_v13 }
 0x2dc   :  { %v3510_v28 = vor.u32 4788187, %v3509_v19  ;;  %v3855_v21 = vor.u32 8388608, %v10286_v41  ;;  %v3321_v2 = vsel %vm3319_vm10, %v8354_v36, %v3320_v55  ;;  %v3513_v0 = vcvt.s32.f32 %v3506_v62 }
 0x2dd   :  { %v10329_v59 = vand.u32 3, %v3524_v63  ;;  %v3698_v48 = vsel %vm3696_vm15, %v3697_v44, %v10313_v11  ;;  %v3325_v47 = vsel %vm3318_vm14, %v3321_v2, %v3324_v17  ;;  %v3865_v24 = vshrl.u32 %v14805_v33, %v3862_v18 }
 0x2de   :  { %v3511_v38 = vand.u32 2147483647, %v3510_v28  ;;  %v3699_v6 = vadd.s32 %v3698_v48, %v3694_v20  ;;  %v3326_v14 = vsel %vm3315_vm13, nan, %v3325_v47  ;;  %v10337_v51 = vshrl.u32 %v3859_v34, 5 }
 0x2df   :  { %v3864_v41 = vshll.u32 %v14804_v43, %v3861_v12  ;;  %v3868_v36 = vshrl.u32 %v14806_v58, %v3862_v18  ;;  %v3867_v11 = vshll.u32 %v14805_v33, %v3861_v12  ;;  %v3871_v32 = vshrl.u32 %v14807_v9, %v3862_v18  ;;  %4079 = vst [vmem:[#allocation13 + $0xc0] sm:$0xff] %v3326_v14 }
 0x2e0   :  { %v3514_v63 = vmul.f32 %v3513_v0, %v3511_v38  ;;  %v3700_v13 = vadd.s32 536870912, %v3699_v6  ;;  %v3870_v16 = vshll.u32 %v14806_v58, %v3861_v12  ;;  %v3873_v29 = vshll.u32 %v14807_v9, %v3861_v12 }
 0x2e1   :  { %v3874_v25 = vshrl.u32 %v14808_v39, %v3862_v18  ;;  %v3877_v34 = vshrl.u32 %v14809_v5, %v3862_v18  ;;  %v3866_v55 = vor.u32 %v3865_v24, %v3864_v41  ;;  %v3869_v44 = vor.u32 %v3868_v36, %v3867_v11 }
 0x2e2   :  { %v3515_v62 = vxor.u32 2147483648, %v3514_v63  ;;  %v10347_v19 = vshrl.u32 %v3700_v13, 30  ;;  %v3872_v17 = vor.u32 %v3871_v32, %v3870_v16  ;;  %v3876_v20 = vshll.u32 %v14808_v39, %v3861_v12 }
 0x2e3   :  { %v3875_v28 = vor.u32 %v3874_v25, %v3873_v29  ;;  %v10350_v2 = vshll.u32 %v3855_v21, 8  ;;  %vm155_vm0 = vcmp.le.s32.totalorder %v8874_v7, %v9671_v60  ;;  %vm167_vm1 = vcmp.eq.s32.totalorder %v8874_v7, %v9671_v60 }
 0x2e4   :  { %v3516_v0 = vsel %vm3433_vm3, %v3515_v62, %v3514_v63  ;;  %v3702_v48 = vshll.u32 %v10347_v19, 30  ;;  %v3863_v38 = vshrl.u32 %v14804_v43, %v3862_v18  ;;  %v3878_v12 = vor.u32 %v3877_v34, %v3876_v20 }
 0x2e5   :  { %v3519_v47 = vsel %vm10252_vm4, %v9932_v56, %v3516_v0  ;;  %vm3879_vm2 = vcmp.lt.s32.totalorder %v10337_v51, 1  ;;  %vm3882_vm3 = vcmp.lt.s32.totalorder %v10337_v51, 4  ;;  %vm3881_vm5 = vcmp.lt.s32.totalorder %v10337_v51, 3 }
 0x2e6   :  { %8357 = vcosq.f32 %v3519_v47  ;;  %v10364_v21 = vsub.s32 %v3699_v6, %v3702_v48  ;;  %v3887_v24 = vsel %vm3879_vm2, %v3866_v55, %v3869_v44  ;;  %v3884_v14 = vsel %vm3882_vm3, %v3872_v17, 2102212464 }
 0x2e7   :  { %8359 = vsinq.f32 %v3519_v47  ;;  %v3888_v41 = vsel %vm3882_vm3, %v3875_v28, 920167782  ;;  %vm3880_vm4 = vcmp.lt.s32.totalorder %v10337_v51, 2  ;;  %v3891_v18 = vsel %vm3879_vm2, %v3869_v44, %v3872_v17 }
 0x2e8   :  { %v3705_v36 = vsub.s32 0, %v10364_v21  ;;  %v3889_v27 = vsel %vm3881_vm5, %v3872_v17, %v3888_v41  ;;  %v3883_v63 = vsel %vm3879_vm2, %v3863_v38, %v3866_v55  ;;  %v3892_v6 = vsel %vm3882_vm3, %v3878_v12, 1326507024 }
 0x2e9   :  { %v3890_v13 = vsel %vm3880_vm4, %v3887_v24, %v3889_v27  ;;  %v10376_v11 = vsel %vm155_vm0, 1.0, %v14851_v26  ;;  %v3885_v16 = vsel %vm3881_vm5, %v3869_v44, %v3884_v14  ;;  %v3893_v29 = vsel %vm3881_vm5, %v3875_v28, %v3892_v6 }
 0x2ea   :  { %14863 = vst [vmem:[#allocation73_spill] sm:$0xff] %v10376_v11  ;;  %v7872_v32 = vmin.u32 %v3705_v36, %v10364_v21  ;;  %v326_v25 = vmul.f32 %v10376_v11, %v9952_v22  ;;  %v3894_v34 = vsel %vm3880_vm4, %v3891_v18, %v3893_v29  ;;  %v10392_v17 = vsel %vm167_vm1, 1.0, %v14851_v26  ;;  %v14883_v11 = vld [vmem:[#allocation35_spill] sm:$0xff] }
 0x2eb   :  { %v10384_v62 = vmul.u32.u64.low %v10350_v2, %v3890_v13  ;;  %v10385_v55 = vmul.u32.u64.high %v10350_v2, %v3890_v13, %v10384_v62  ;;  %14864 = vst [vmem:[#allocation74_spill] sm:$0xff] %v10392_v17  ;;  %v342_v44 = vmul.f32 %v10089_v45, %v9001_v46  ;;  %vm3523_vm6 = vweird.f32 %v9932_v56 }
 0x2ec   :  { %v3707_v28 = vclz %v7872_v32  ;;  %v10398_v22 = vmul.u32.u64.low %v10350_v2, %v3894_v34  ;;  %v10399_v20 = vmul.u32.u64.high %v10350_v2, %v3894_v34, %v10398_v22  ;;  %v334_v0 = vadd.f32 %v326_v25, %v10245_v23 }
 0x2ed   :  { %v344_v48 = vmul.f32 %v10392_v17, %v9975_v49  ;;  %vm3526_vm7 = vcmp.lt.s32.totalorder %v10329_v59, 2  ;;  %vm3641_vm8 = vcmp.lt.s32.totalorder %v10158_v35, 0  ;;  %v3886_v46 = vsel %vm3880_vm4, %v3883_v63, %v3885_v16  ;;  %v14882_v17 = vld [vmem:[#allocation34_spill] sm:$0xff] }
 0x2ee   :  { %v7873_v7 = vadd.s32 4294967294, %v3707_v28  ;;  %vm3527_vm12 = vcmp.eq.s32.totalorder %v10329_v59, 0  ;;  %v3905_v60 = vadd.s32 1, %v10385_v55  ;;  %v335_v26 = vrot.slane %v334_v0, 4 }
 0x2ef   :  { %v352_v47 = vadd.f32 %v344_v48, %v342_v44  ;;  %vm3530_vm9 = vcmp.eq.s32.totalorder %v10329_v59, 2  ;;  %v3695_v49 = vadd.s32 %v10312_v53, %v10309_v57  ;;  %v3725_v23 = vsub.s32 4, %v10347_v19 }
 0x2f0   :  { %v8358_v38 = vpop.eup %8357  ;;  %vm7874_vm13 = vcmp.lt.s32.totalorder %v7873_v7, 0  ;;  %v3902_v51 = vmul.u32 %v10350_v2, %v3886_v46  ;;  %vm3904_vm14 = vc.u32 %v10399_v20, %v10384_v62  ;;  %v336_v57 = vadd.f32 %v335_v26, %v334_v0 }
 0x2f1   :  { %v8360_v12 = vpop.eup %8359  ;;  %v3531_v24 = vxor.u32 2147483648, %v8358_v38  ;;  %v3710_v14 = vsel %vm7874_vm13, 0, %v7873_v7  ;;  %v3906_v13 = vsel %vm3904_vm14, %v3905_v60, %v10385_v55  ;;  %v353_v53 = vrot.slane %v352_v47, 4 }
 0x2f2   :  { %v3528_v41 = vxor.u32 2147483648, %v8360_v12  ;;  %v3711_v36 = vsub.s32 32, %v3710_v14  ;;  %v3712_v27 = vshll.u32 %v10364_v21, %v3710_v14  ;;  %v3715_v18 = vsub.s32 4294967266, %v3710_v14 }
 0x2f3   :  { %v3532_v63 = vsel %vm3530_vm9, %v3531_v24, %v8360_v12  ;;  %v3907_v29 = vadd.s32 %v3906_v13, %v3902_v51  ;;  %v3726_v25 = vsel %vm3641_vm8, %v3725_v23, %v10347_v19  ;;  %v337_v21 = vrot.slane %v336_v57, 2 }
 0x2f4   :  { %v3529_v6 = vsel %vm3527_vm12, %v8358_v38, %v3528_v41  ;;  %v3713_v32 = vshrl.u32 %v3695_v49, %v3711_v36  ;;  %v3716_v16 = vadd.s32 127, %v3715_v18  ;;  %v354_v34 = vadd.f32 %v353_v53, %v352_v47 }
 0x2f5   :  { %v3533_v2 = vsel %vm3526_vm7, %v3529_v6, %v3532_v63  ;;  %v3908_v22 = vadd.s32 536870912, %v3907_v29  ;;  %vm10430_vm10 = vcmp.le.f32.partialorder %v3639_v8, 0.7853982  ;;  %v338_v59 = vadd.f32 %v337_v21, %v336_v57  ;;  %v14867_v57 = vld [vmem:[#allocation19_spill] sm:$0xff]  ;;  %v14868_v6 = vld [vmem:[#allocation21_spill] sm:$0xff] }
 0x2f6   :  { %v3534_v55 = vsel %vm3523_vm6, nan, %v3533_v2  ;;  %v3714_v44 = vor.u32 %v3713_v32, %v3712_v27  ;;  %v3717_v28 = vshll.u32 %v3716_v16, 23  ;;  %v355_v48 = vrot.slane %v354_v34, 2 }
 0x2f7   :  { %4081 = vst [vmem:[#allocation13 + $0xd0] sm:$0xff] %v3534_v55  ;;  %v3728_v19 = vsel %vm10430_vm10, 0, %v3726_v25  ;;  %v3909_v46 = vshrl.u32 %v3908_v22, 30  ;;  %v339_v60 = vrot.slane %v338_v59, 1  ;;  %vm3849_vm11 = vcmp.lt.s32.totalorder %v10193_v50, 0  ;;  %v14871_v25 = vld [vmem:[#allocation23_spill] sm:$0xff] }
 0x2f8   :  { %v3718_v7 = vor.u32 4788187, %v3717_v28  ;;  %v3721_v26 = vcvt.s32.f32 %v3714_v44  ;;  %v3732_v38 = vadd.s32 3, %v3728_v19  ;;  %v356_v23 = vadd.f32 %v355_v48, %v354_v34  ;;  %v14872_v55 = vld [vmem:[#allocation24_spill] sm:$0xff]  ;;  %v14873_v28 = vld [vmem:[#allocation25_spill] sm:$0xff] }
 0x2f9   :  { %v3910_v47 = vshll.u32 %v3909_v46, 30  ;;  %v3933_v49 = vsub.s32 4, %v3909_v46  ;;  %v340_v24 = vadd.f32 %v339_v60, %v338_v59  ;;  %v3903_v36 = vadd.s32 %v10384_v62, %v10399_v20  ;;  %v14870_v20 = vld [vmem:[#allocation22_spill] sm:$0xff] }
 0x2fa   :  { %v3719_v56 = vand.u32 2147483647, %v3718_v7  ;;  %v10440_v41 = vand.u32 3, %v3732_v38  ;;  %v357_v18 = vrot.slane %v356_v23, 1  ;;  %v14874_v59 = vld [vmem:[#allocation26_spill] sm:$0xff]  ;;  %v14875_v7 = vld [vmem:[#allocation27_spill] sm:$0xff]  ;;  %vm3731_vm3 = vweird.f32 %v10158_v35 }
 0x2fb   :  { %v10436_v8 = vsub.s32 %v3907_v29, %v3910_v47  ;;  %v10446_v27 = vsel %vm3849_vm11, %v3933_v49, %v3909_v46  ;;  %v440_v53 = vmul.f32 %v14867_v57, %v340_v24  ;;  %v442_v32 = vmul.f32 %v14868_v6, %v340_v24  ;;  %v14869_v29 = vld [vmem:[#allocation20_spill] sm:$0xff]  ;;  %v14878_v47 = vld [vmem:[#allocation30_spill] sm:$0xff] }
 0x2fc   :  { %v3722_v12 = vmul.f32 %v3721_v26, %v3719_v56  ;;  %v444_v62 = vmul.f32 %v14869_v29, %v340_v24  ;;  %v446_v2 = vmul.f32 %v14870_v20, %v340_v24  ;;  %v448_v21 = vmul.f32 %v14871_v25, %v340_v24  ;;  %v14876_v46 = vld [vmem:[#allocation28_spill] sm:$0xff]  ;;  %v14877_v56 = vld [vmem:[#allocation29_spill] sm:$0xff]  ;;  %v14894_v6 = vld [vmem:[#allocation50_spill] sm:$0xff] }
 0x2fd   :  { %v3913_v51 = vsub.s32 0, %v10436_v8  ;;  %v450_v44 = vmul.f32 %v14872_v55, %v340_v24  ;;  %v452_v22 = vmul.f32 %v14873_v28, %v340_v24  ;;  %v454_v48 = vmul.f32 %v14874_v59, %v340_v24  ;;  %v14891_v55 = vld [vmem:[#allocation47_spill] sm:$0xff]  ;;  %v14892_v25 = vld [vmem:[#allocation48_spill] sm:$0xff]  ;;  %v14893_v20 = vld [vmem:[#allocation49_spill] sm:$0xff] }
 0x2fe   :  { %v3723_v14 = vxor.u32 2147483648, %v3722_v12  ;;  %v456_v19 = vmul.f32 %v14875_v7, %v340_v24  ;;  %v458_v0 = vmul.f32 %v14876_v46, %v340_v24  ;;  %v460_v26 = vmul.f32 %v14877_v56, %v340_v24  ;;  %v14885_v46 = vld [vmem:[#allocation37_spill] sm:$0xff]  ;;  %v14888_v7 = vld [vmem:[#allocation40_spill] sm:$0xff] }
 0x2ff   :  { %v7880_v13 = vmin.u32 %v3913_v51, %v10436_v8  ;;  %v462_v38 = vmul.f32 %v14878_v47, %v340_v24  ;;  %v358_v49 = vadd.f32 %v357_v18, %v356_v23  ;;  %v14880_v51 = vld [vmem:[#allocation32_spill] sm:$0xff]  ;;  %vm3738_vm15 = vcmp.eq.s32.totalorder %v10440_v41, 2  ;;  %v14886_v18 = vld [vmem:[#allocation38_spill] sm:$0xff]  ;;  %v14887_v47 = vld [vmem:[#allocation39_spill] sm:$0xff] }
 0x300   :  { %v3724_v63 = vsel %vm3641_vm8, %v3723_v14, %v3722_v12  ;;  %v14879_v12 = vld [vmem:[#allocation31_spill] sm:$0xff]  ;;  %vm3735_vm1 = vcmp.eq.s32.totalorder %v10440_v41, 0  ;;  %vm3734_vm2 = vcmp.lt.s32.totalorder %v10440_v41, 2  ;;  %vm3939_vm4 = vweird.f32 %v10193_v50 }
 0x301   :  { %v3727_v16 = vsel %vm10430_vm10, %v10158_v35, %v3724_v63  ;;  %v3915_v34 = vclz %v7880_v13  ;;  %v464_v14 = vmul.f32 %v14879_v12, %v340_v24  ;;  %v466_v63 = vmul.f32 %v14880_v51, %v340_v24  ;;  %v14881_v13 = vld [vmem:[#allocation33_spill] sm:$0xff] }
 0x302   :  { %8361 = vcosq.f32 %v3727_v16  ;;  %v468_v42 = vmul.f32 %v14881_v13, %v340_v24  ;;  %v552_v45 = vmul.f32 %v14883_v11, %v358_v49  ;;  %v556_v56 = vmul.f32 %v14885_v46, %v358_v49  ;;  %v14889_v11 = vld [vmem:[#allocation41_spill] sm:$0xff]  ;;  %v14890_v46 = vld [vmem:[#allocation42_spill] sm:$0xff] }
 0x303   :  { %8363 = vsinq.f32 %v3727_v16  ;;  %v7881_v60 = vadd.s32 4294967294, %v3915_v34  ;;  %v470_v16 = vmul.f32 %v14882_v17, %v340_v24  ;;  %v554_v34 = vmul.f32 %v14884_v15, %v358_v49 }
 0x304   :  { %v558_v12 = vmul.f32 %v14886_v18, %v358_v49  ;;  %v560_v51 = vmul.f32 %v14887_v47, %v358_v49  ;;  %v562_v13 = vmul.f32 %v14888_v7, %v358_v49  ;;  %v564_v28 = vmul.f32 %v14889_v11, %v358_v49 }
 0x305   :  { %vm7882_vm0 = vcmp.lt.s32.totalorder %v7881_v60, 0  ;;  %v566_v15 = vmul.f32 %v14890_v46, %v358_v49  ;;  %v570_v18 = vmul.f32 %v14892_v25, %v358_v49  ;;  %v572_v47 = vmul.f32 %v14893_v20, %v358_v49 }
 0x306   :  { %v3918_v23 = vsel %vm7882_vm0, 0, %v7881_v60  ;;  %v568_v60 = vmul.f32 %v14891_v55, %v358_v49  ;;  %v574_v57 = vmul.f32 %v14894_v6, %v358_v49  ;;  %v576_v1 = vmul.f32 %v14895_v52, %v358_v49 }
 0x307   :  { %v3919_v24 = vsub.s32 32, %v3918_v23  ;;  %v3920_v17 = vshll.u32 %v10436_v8, %v3918_v23  ;;  %v3923_v59 = vsub.s32 4294967266, %v3918_v23  ;;  %v14896_v8 = vld [vmem:[#allocation52_spill] sm:$0xff]  ;;  %v580_v11 = vmul.f32 %v14897_v10, %v358_v49 }
 0x308   :  { %v578_v23 = vmul.f32 %v14896_v8, %v358_v49  ;;  %v582_v31 = vmul.f32 %v14898_v4, %v358_v49  ;;  %v584_v30 = vadd.f32 %v552_v45, %v440_v53  ;;  %v586_v40 = vadd.f32 %v554_v34, %v442_v32  ;;  %v14903_v34 = vld [vmem:[#allocation58_spill] sm:$0xff] }
 0x309   :  { %v3921_v29 = vshrl.u32 %v3903_v36, %v3919_v24  ;;  %v3924_v7 = vadd.s32 127, %v3923_v59  ;;  %v588_v25 = vadd.f32 %v556_v56, %v444_v62  ;;  %v590_v36 = vadd.f32 %v558_v12, %v446_v2 }
 0x30a   :  { %v10491_v59 = vadd.f32 %v560_v51, %v448_v21  ;;  %v10493_v24 = vadd.f32 %v562_v13, %v450_v44  ;;  %v10495_v3 = vadd.f32 %v564_v28, %v452_v22  ;;  %v10499_v53 = vadd.f32 %v566_v15, %v454_v48  ;;  %v14901_v22 = vld [vmem:[#allocation56_spill] sm:$0xff] }
 0x30b   :  { %v3922_v54 = vor.u32 %v3921_v29, %v3920_v17  ;;  %v3925_v55 = vshll.u32 %v3924_v7, 23  ;;  %v10501_v17 = vadd.f32 %v568_v60, %v456_v19  ;;  %v10503_v32 = vadd.f32 %v570_v18, %v458_v0  ;;  %v14902_v7 = vld [vmem:[#allocation57_spill] sm:$0xff] }
 0x30c   :  { %v8362_v46 = vpop.eup %8361  ;;  %v10507_v2 = vadd.f32 %v572_v47, %v460_v26  ;;  %v10509_v21 = vadd.f32 %v574_v57, %v462_v38  ;;  %v10517_v15 = vadd.f32 %v580_v11, %v468_v42  ;;  %v10521_v28 = vadd.f32 %v582_v31, %v470_v16  ;;  %v14900_v57 = vld [vmem:[#allocation55_spill] sm:$0xff] }
 0x30d   :  { %v8364_v61 = vpop.eup %8363  ;;  %v3739_v20 = vxor.u32 2147483648, %v8362_v46  ;;  %v3926_v6 = vor.u32 4788187, %v3925_v55  ;;  %v3929_v8 = vcvt.s32.f32 %v3922_v54  ;;  %v10513_v55 = vadd.f32 %v576_v1, %v464_v14 }
 0x30e   :  { %v3736_v52 = vxor.u32 2147483648, %v8364_v61  ;;  %v10530_v48 = vadd.f32 %v14901_v22, %v586_v40  ;;  %v10537_v19 = vadd.f32 %v14902_v7, %v588_v25  ;;  %v10550_v18 = vadd.f32 %v14903_v34, %v590_v36 }
 0x30f   :  { %v3740_v45 = vsel %vm3738_vm15, %v3739_v20, %v8364_v61  ;;  %v3927_v62 = vand.u32 2147483647, %v3926_v6  ;;  %v10515_v61 = vadd.f32 %v578_v23, %v466_v63  ;;  %v10526_v6 = vadd.f32 %v14900_v57, %v584_v30 }
 0x310   :  { %v3737_v29 = vsel %vm3735_vm1, %v8362_v46, %v3736_v52  ;;  %v14899_v52 = vand.u32 2147483647, %v10193_v50  ;;  %v14739_v46 = vand.u32 2147483647, %v10530_v48  ;;  %v1042_v0 = vand.u32 2139095040, %v10530_v48 }
 0x311   :  { %v3741_v54 = vsel %vm3734_vm2, %v3737_v29, %v3740_v45  ;;  %v3930_v44 = vmul.f32 %v3929_v8, %v3927_v62  ;;  %v831_v11 = vand.u32 2147483647, %v10526_v6  ;;  %v834_v30 = vand.u32 2139095040, %v10526_v6 }
 0x312   :  { %v3742_v20 = vsel %vm3731_vm3, nan, %v3741_v54  ;;  %vm3848_vm5 = vcmp.le.f32.partialorder %v14899_v52, 0.7853982  ;;  %v1046_v56 = vand.u32 8388607, %v14739_v46  ;;  %v1043_v38 = vshrl.u32 %v1042_v0, 23 }
 0x313   :  { %4083 = vst [vmem:[#allocation13 + $0xe0] sm:$0xff] %v3742_v20  ;;  %v3931_v41 = vxor.u32 2147483648, %v3930_v44  ;;  %v3936_v1 = vsel %vm3848_vm5, 0, %v10446_v27  ;;  %v838_v40 = vand.u32 8388607, %v831_v11  ;;  %v835_v27 = vshrl.u32 %v834_v30, 23 }
 0x314   :  { %v3940_v31 = vadd.s32 3, %v3936_v1  ;;  %v1250_v25 = vand.u32 2139095040, %v10537_v19  ;;  %v7771_v14 = vadd.s32 4294967169, %v1043_v38  ;;  %v1047_v51 = vor.u32 8388608, %v1046_v56 }
 0x315   :  { %v3932_v35 = vsel %vm3849_vm11, %v3931_v41, %v3930_v44  ;;  %v7763_v47 = vadd.s32 4294967169, %v835_v27  ;;  %v839_v49 = vor.u32 8388608, %v838_v40  ;;  %v14737_v63 = vand.u32 2147483647, %v10537_v19 }
 0x316   :  { %v3935_v42 = vsel %vm3848_vm5, %v10193_v50, %v3932_v35  ;;  %v3941_v26 = vand.u32 3, %v3940_v31  ;;  %v1251_v13 = vshrl.u32 %v1250_v25, 23  ;;  %v1049_v16 = vadd.s32 1, %v7771_v14 }
 0x317   :  { %8365 = vcosq.f32 %v3935_v42  ;;  %v841_v12 = vadd.s32 1, %v7763_v47  ;;  %v10552_v8 = vshll.u32 %v839_v49, 8  ;;  %v10554_v29 = vshll.u32 %v1047_v51, 8 }
 0x318   :  { %8367 = vsinq.f32 %v3935_v42  ;;  %vm3942_vm6 = vcmp.lt.s32.totalorder %v3941_v26, 2  ;;  %vm3943_vm7 = vcmp.eq.s32.totalorder %v3941_v26, 0  ;;  %vm3946_vm12 = vcmp.eq.s32.totalorder %v3941_v26, 2 }
 0x319   :  { %vm842_vm8 = vcmp.gt.s32.totalorder %v841_v12, 0  ;;  %vm1050_vm9 = vcmp.gt.s32.totalorder %v1049_v16, 0  ;;  %v10558_v62 = vand.u32 8388607, %v14737_v63  ;;  %v7779_v41 = vadd.s32 4294967169, %v1251_v13 }
 0x31a   :  { %v843_v60 = vsel %vm842_vm8, %v841_v12, 0  ;;  %v1051_v52 = vsel %vm1050_vm9, %v1049_v16, 0  ;;  %vm1041_vm8 = vcmp.lt.s32.totalorder %v10530_v48, 0 }
 0x31b   :  { %v845_v45 = vand.u32 31, %v843_v60  ;;  %v844_v44 = vshrl.u32 %v843_v60, 5 }
 0x31d   :  { %v846_v36 = vsub.s32 32, %v845_v45  ;;  %v848_v35 = vshll.u32 %v14804_v43, %v845_v45  ;;  %v851_v42 = vshll.u32 %v14805_v33, %v845_v45  ;;  %v854_v30 = vshll.u32 %v14806_v58, %v845_v45 }
 0x31e   :  { %v857_v40 = vshll.u32 %v14807_v9, %v845_v45  ;;  %v860_v27 = vshll.u32 %v14808_v39, %v845_v45  ;;  %vm863_vm13 = vcmp.lt.s32.totalorder %v844_v44, 1  ;;  %vm864_vm14 = vcmp.lt.s32.totalorder %v844_v44, 2 }
 0x31f   :  { %v847_v56 = vshrl.u32 %v14804_v43, %v846_v36  ;;  %v849_v47 = vshrl.u32 %v14805_v33, %v846_v36  ;;  %v852_v38 = vshrl.u32 %v14806_v58, %v846_v36  ;;  %v855_v49 = vshrl.u32 %v14807_v9, %v846_v36 }
 0x320   :  { %v858_v12 = vshrl.u32 %v14808_v39, %v846_v36  ;;  %v861_v14 = vshrl.u32 %v14809_v5, %v846_v36  ;;  %vm865_vm10 = vcmp.lt.s32.totalorder %v844_v44, 3  ;;  %vm866_vm11 = vcmp.lt.s32.totalorder %v844_v44, 4 }
 0x321   :  { %v8366_v23 = vpop.eup %8365  ;;  %v850_v13 = vor.u32 %v849_v47, %v848_v35  ;;  %v853_v16 = vor.u32 %v852_v38, %v851_v42  ;;  %v856_v60 = vor.u32 %v855_v49, %v854_v30  ;;  %v1053_v38 = vand.u32 31, %v1051_v52 }
 0x322   :  { %v8368_v54 = vpop.eup %8367  ;;  %v3947_v20 = vxor.u32 2147483648, %v8366_v23  ;;  %v862_v45 = vor.u32 %v861_v14, %v860_v27  ;;  %v1458_v14 = vand.u32 2139095040, %v10550_v18 }
 0x323   :  { %v3944_v1 = vxor.u32 2147483648, %v8368_v54  ;;  %v867_v26 = vsel %vm863_vm13, %v847_v56, %v850_v13  ;;  %v1054_v49 = vsub.s32 32, %v1053_v38 }
 0x324   :  { %v3948_v31 = vsel %vm3946_vm12, %v3947_v20, %v8368_v54  ;;  %v871_v54 = vsel %vm863_vm13, %v850_v13, %v853_v16  ;;  %v868_v20 = vsel %vm866_vm11, %v856_v60, 2102212464  ;;  %v1065_v13 = vshll.u32 %v14807_v9, %v1053_v38 }
 0x325   :  { %v3945_v0 = vsel %vm3943_vm7, %v8366_v23, %v3944_v1  ;;  %v859_v23 = vor.u32 %v858_v12, %v857_v40  ;;  %v869_v36 = vsel %vm865_vm10, %v853_v16, %v868_v20  ;;  %v1257_v12 = vadd.s32 1, %v7779_v41 }
 0x326   :  { %v3949_v25 = vsel %vm3942_vm6, %v3945_v0, %v3948_v31  ;;  %v875_v31 = vsel %vm863_vm13, %v853_v16, %v856_v60  ;;  %v876_v0 = vsel %vm866_vm11, %v862_v45, 1326507024  ;;  %v870_v35 = vsel %vm864_vm14, %v867_v26, %v869_v36 }
 0x327   :  { %v3950_v51 = vsel %vm3939_vm4, nan, %v3949_v25  ;;  %v872_v1 = vsel %vm866_vm11, %v859_v23, 920167782  ;;  %v877_v50 = vsel %vm865_vm10, %v859_v23, %v876_v0  ;;  %v1052_v25 = vshrl.u32 %v1051_v52, 5 }
 0x328   :  { %4085 = vst [vmem:[#allocation13 + $0xf0] sm:$0xff] %v3950_v51  ;;  %v873_v63 = vsel %vm865_vm10, %v856_v60, %v872_v1  ;;  %v878_v47 = vsel %vm864_vm14, %v875_v31, %v877_v50  ;;  %v886_v56 = vmul.u32 %v10552_v8, %v870_v35  ;;  %v1056_v51 = vshll.u32 %v14804_v43, %v1053_v38 }
 0x329   :  { %v874_v42 = vsel %vm864_vm14, %v871_v54, %v873_v63  ;;  %v10577_v30 = vmul.u32.u64.low %v10552_v8, %v878_v47  ;;  %v10578_v40 = vmul.u32.u64.high %v10552_v8, %v878_v47, %v10577_v30  ;;  %v1059_v63 = vshll.u32 %v14805_v33, %v1053_v38 }
 0x32a   :  { %v10581_v44 = vmul.u32.u64.low %v10552_v8, %v874_v42  ;;  %v10582_v27 = vmul.u32.u64.high %v10552_v8, %v874_v42, %v10581_v44  ;;  %v1062_v52 = vshll.u32 %v14806_v58, %v1053_v38  ;;  %v1057_v16 = vshrl.u32 %v14805_v33, %v1054_v49 }
 0x32b   :  { %v1060_v60 = vshrl.u32 %v14806_v58, %v1054_v49  ;;  %v1063_v23 = vshrl.u32 %v14807_v9, %v1054_v49  ;;  %v1068_v8 = vshll.u32 %v14808_v39, %v1053_v38  ;;  %v1066_v45 = vshrl.u32 %v14808_v39, %v1054_v49 }
 0x32c   :  { %vm888_vm15 = vc.u32 %v10578_v40, %v10581_v44  ;;  %v889_v41 = vadd.s32 1, %v10582_v27  ;;  %vm1071_vm0 = vcmp.lt.s32.totalorder %v1052_v25, 1  ;;  %v1058_v26 = vor.u32 %v1057_v16, %v1056_v51 }
 0x32d   :  { %v1061_v54 = vor.u32 %v1060_v60, %v1059_v63  ;;  %v1064_v20 = vor.u32 %v1063_v23, %v1062_v52  ;;  %v1069_v1 = vshrl.u32 %v14809_v5, %v1054_v49  ;;  %v1055_v0 = vshrl.u32 %v14804_v43, %v1054_v49 }
 0x32e   :  { %v890_v31 = vsel %vm888_vm15, %v889_v41, %v10582_v27  ;;  %v1067_v36 = vor.u32 %v1066_v45, %v1065_v13  ;;  %vm1072_vm1 = vcmp.lt.s32.totalorder %v1052_v25, 2  ;;  %vm1073_vm2 = vcmp.lt.s32.totalorder %v1052_v25, 3 }
 0x32f   :  { %v891_v50 = vadd.s32 %v890_v31, %v886_v56  ;;  %v1070_v35 = vor.u32 %v1069_v1, %v1068_v8  ;;  %vm1074_vm3 = vcmp.lt.s32.totalorder %v1052_v25, 4  ;;  %v1079_v47 = vsel %vm1071_vm0, %v1058_v26, %v1061_v54 }
 0x330   :  { %v1076_v42 = vsel %vm1074_vm3, %v1064_v20, 2102212464  ;;  %v1080_v38 = vsel %vm1074_vm3, %v1067_v36, 920167782  ;;  %v1083_v30 = vsel %vm1071_vm0, %v1061_v54, %v1064_v20  ;;  %v1075_v63 = vsel %vm1071_vm0, %v1055_v0, %v1058_v26 }
 0x331   :  { %v892_v51 = vadd.s32 536870912, %v891_v50  ;;  %v1081_v52 = vsel %vm1073_vm2, %v1064_v20, %v1080_v38  ;;  %v1084_v16 = vsel %vm1074_vm3, %v1070_v35, 1326507024  ;;  %v1077_v27 = vsel %vm1073_vm2, %v1061_v54, %v1076_v42 }
 0x332   :  { %v1082_v49 = vsel %vm1072_vm1, %v1079_v47, %v1081_v52  ;;  %v1085_v13 = vsel %vm1073_vm2, %v1067_v36, %v1084_v16  ;;  %vm1258_vm5 = vcmp.gt.s32.totalorder %v1257_v12, 0  ;;  %v1078_v54 = vsel %vm1072_vm1, %v1075_v63, %v1077_v27 }
 0x333   :  { %v893_v56 = vshrl.u32 %v892_v51, 30  ;;  %v1086_v60 = vsel %vm1072_vm1, %v1083_v30, %v1085_v13  ;;  %v10608_v23 = vmul.u32.u64.low %v10554_v29, %v1082_v49  ;;  %v10609_v8 = vmul.u32.u64.high %v10554_v29, %v1082_v49, %v10608_v23 }
 0x334   :  { %v10613_v41 = vmul.u32.u64.low %v10554_v29, %v1086_v60  ;;  %v10614_v45 = vmul.u32.u64.high %v10554_v29, %v1086_v60, %v10613_v41  ;;  %v1259_v26 = vsel %vm1258_vm5, %v1257_v12, 0  ;;  %v1459_v31 = vshrl.u32 %v1458_v14, 23 }
 0x335   :  { %v894_v20 = vshll.u32 %v893_v56, 30  ;;  %v1261_v1 = vand.u32 31, %v1259_v26  ;;  %v1097_v36 = vadd.s32 1, %v10609_v8  ;;  %v1255_v35 = vor.u32 8388608, %v10558_v62 }
 0x336   :  { %v14738_v42 = vand.u32 2147483647, %v10550_v18  ;;  %v1094_v47 = vmul.u32 %v10554_v29, %v1078_v54  ;;  %vm1096_vm4 = vc.u32 %v10614_v45, %v10608_v23  ;;  %v917_v25 = vsub.s32 4, %v893_v56 }
 0x337   :  { %v10617_v0 = vsub.s32 %v891_v50, %v894_v20  ;;  %v1262_v38 = vsub.s32 32, %v1261_v1  ;;  %v1098_v30 = vsel %vm1096_vm4, %v1097_v36, %v10609_v8  ;;  %v7787_v14 = vadd.s32 4294967169, %v1459_v31 }
 0x338   :  { %vm833_vm6 = vcmp.lt.s32.totalorder %v10526_v6, 0  ;;  %v1099_v50 = vadd.s32 %v1098_v30, %v1094_v47  ;;  %v887_v62 = vadd.s32 %v10581_v44, %v10578_v40  ;;  %v10631_v63 = vshll.u32 %v1255_v35, 8 }
 0x339   :  { %v897_v12 = vsub.s32 0, %v10617_v0  ;;  %v10635_v29 = vand.u32 8388607, %v14738_v42  ;;  %v10637_v16 = vshrl.u32 %v1259_v26, 5  ;;  %v1265_v27 = vshrl.u32 %v14805_v33, %v1262_v38 }
 0x33a   :  { %v1100_v52 = vadd.s32 536870912, %v1099_v50  ;;  %v1268_v49 = vshrl.u32 %v14806_v58, %v1262_v38  ;;  %v10643_v60 = vsel %vm833_vm6, %v917_v25, %v893_v56  ;;  %v1271_v40 = vshrl.u32 %v14807_v9, %v1262_v38 }
 0x33b   :  { %v7764_v51 = vmin.u32 %v897_v12, %v10617_v0  ;;  %v10646_v44 = vadd.s32 1, %v7787_v14  ;;  %v1264_v41 = vshll.u32 %v14804_v43, %v1261_v1  ;;  %v1267_v20 = vshll.u32 %v14805_v33, %v1261_v1 }
 0x33c   :  { %v1101_v8 = vshrl.u32 %v1100_v52, 30  ;;  %v1274_v26 = vshrl.u32 %v14808_v39, %v1262_v38  ;;  %vm10653_vm7 = vcmp.le.f32.partialorder %v831_v11, 0.7853982  ;;  %v1270_v56 = vshll.u32 %v14806_v58, %v1261_v1 }
 0x33d   :  { %v899_v13 = vclz %v7764_v51  ;;  %v1273_v36 = vshll.u32 %v14807_v9, %v1261_v1  ;;  %v1277_v35 = vshrl.u32 %v14809_v5, %v1262_v38  ;;  %v1263_v12 = vshrl.u32 %v14804_v43, %v1262_v38 }
 0x33e   :  { %v1102_v47 = vshll.u32 %v1101_v8, 30  ;;  %v1266_v25 = vor.u32 %v1265_v27, %v1264_v41  ;;  %v1269_v30 = vor.u32 %v1268_v49, %v1267_v20  ;;  %v1272_v14 = vor.u32 %v1271_v40, %v1270_v56 }
 0x33f   :  { %v7765_v31 = vadd.s32 4294967294, %v899_v13  ;;  %v1275_v11 = vor.u32 %v1274_v26, %v1273_v36  ;;  %v1276_v51 = vshll.u32 %v14808_v39, %v1261_v1  ;;  %vm1279_vm9 = vcmp.lt.s32.totalorder %v10637_v16, 1 }
 0x340   :  { %v10663_v13 = vsub.s32 %v1099_v50, %v1102_v47  ;;  %vm1280_vm13 = vcmp.lt.s32.totalorder %v10637_v16, 2  ;;  %v1125_v34 = vsub.s32 4, %v1101_v8  ;;  %vm1281_vm14 = vcmp.lt.s32.totalorder %v10637_v16, 3 }
 0x341   :  { %vm7766_vm12 = vcmp.lt.s32.totalorder %v7765_v31, 0  ;;  %v1278_v7 = vor.u32 %v1277_v35, %v1276_v51  ;;  %vm1282_vm10 = vcmp.lt.s32.totalorder %v10637_v16, 4  ;;  %v1287_v1 = vsel %vm1279_vm9, %v1266_v25, %v1269_v30 }
 0x342   :  { %v902_v52 = vsel %vm7766_vm12, 0, %v7765_v31  ;;  %v1105_v38 = vsub.s32 0, %v10663_v13  ;;  %v14906_v40 = vand.u32 2147483647, %v10530_v48  ;;  %v1288_v20 = vsel %vm1282_vm10, %v1275_v11, 920167782 }
 0x343   :  { %v903_v42 = vsub.s32 32, %v902_v52  ;;  %v907_v46 = vsub.s32 4294967266, %v902_v52  ;;  %v904_v50 = vshll.u32 %v10617_v0, %v902_v52  ;;  %v1284_v31 = vsel %vm1282_vm10, %v1272_v14, 2102212464 }
 0x344   :  { %vm10675_vm11 = vcmp.le.f32.partialorder %v14906_v40, 0.7853982  ;;  %v7772_v26 = vmin.u32 %v1105_v38, %v10663_v13  ;;  %v1289_v56 = vsel %vm1281_vm14, %v1272_v14, %v1288_v20  ;;  %v1291_v36 = vsel %vm1279_vm9, %v1269_v30, %v1272_v14 }
 0x345   :  { %v905_v27 = vshrl.u32 %v887_v62, %v903_v42  ;;  %v908_v49 = vadd.s32 127, %v907_v46  ;;  %v1290_v46 = vsel %vm1280_vm13, %v1287_v1, %v1289_v56  ;;  %v1292_v42 = vsel %vm1282_vm10, %v1278_v7, 1326507024 }
 0x346   :  { %v920_v62 = vsel %vm10653_vm7, 0, %v10643_v60  ;;  %v1107_v47 = vclz %v7772_v26  ;;  %v1126_v51 = vsel %vm1041_vm8, %v1125_v34, %v1101_v8  ;;  %v1283_v52 = vsel %vm1279_vm9, %v1263_v12, %v1266_v25 }
 0x347   :  { %v906_v35 = vor.u32 %v905_v27, %v904_v50  ;;  %v909_v0 = vshll.u32 %v908_v49, 23  ;;  %v1285_v14 = vsel %vm1281_vm14, %v1269_v30, %v1284_v31  ;;  %v1293_v1 = vsel %vm1281_vm14, %v1275_v11, %v1292_v42 }
 0x348   :  { %v7773_v7 = vadd.s32 4294967294, %v1107_v47  ;;  %v1294_v50 = vsel %vm1280_vm13, %v1291_v36, %v1293_v1  ;;  %v10700_v60 = vmul.u32.u64.low %v10631_v63, %v1290_v46  ;;  %v10701_v27 = vmul.u32.u64.high %v10631_v63, %v1290_v46, %v10700_v60 }
 0x349   :  { %v910_v38 = vor.u32 4788187, %v909_v0  ;;  %v913_v40 = vcvt.s32.f32 %v906_v35  ;;  %v10705_v8 = vmul.u32.u64.low %v10631_v63, %v1294_v50  ;;  %v10706_v12 = vmul.u32.u64.high %v10631_v63, %v1294_v50, %v10705_v8 }
 0x34a   :  { %vm1466_vm15 = vcmp.gt.s32.totalorder %v10646_v44, 0  ;;  %v1095_v25 = vadd.s32 %v10608_v23, %v10614_v45  ;;  %vm7774_vm0 = vcmp.lt.s32.totalorder %v7773_v7, 0  ;;  %v1286_v30 = vsel %vm1280_vm13, %v1283_v52, %v1285_v14 }
 0x34b   :  { %v911_v34 = vand.u32 2147483647, %v910_v38  ;;  %v1467_v11 = vsel %vm1466_vm15, %v10646_v44, 0  ;;  %v924_v20 = vadd.s32 3, %v920_v62  ;;  %v1110_v26 = vsel %vm7774_vm0, 0, %v7773_v7 }
 0x34c   :  { %v1469_v31 = vand.u32 31, %v1467_v11  ;;  %v1111_v56 = vsub.s32 32, %v1110_v26  ;;  %v1115_v36 = vsub.s32 4294967266, %v1110_v26  ;;  %v1128_v35 = vsel %vm10675_vm11, 0, %v1126_v51  ;;  %v14909_v51 = vld [vmem:[#allocation60_spill] sm:$0xff] }
 0x34d   :  { %v914_v49 = vmul.f32 %v913_v40, %v911_v34  ;;  %v1305_v0 = vadd.s32 1, %v10701_v27  ;;  %v1112_v23 = vshll.u32 %v10663_v13, %v1110_v26  ;;  %v1302_v45 = vmul.u32 %v10631_v63, %v1286_v30 }
 0x34e   :  { %vm1304_vm1 = vc.u32 %v10706_v12, %v10700_v60  ;;  %v1113_v16 = vshrl.u32 %v1095_v25, %v1111_v56  ;;  %v1116_v44 = vadd.s32 127, %v1115_v36  ;;  %v1470_v62 = vsub.s32 32, %v1469_v31 }
 0x34f   :  { %v915_v46 = vxor.u32 2147483648, %v914_v49  ;;  %v1306_v42 = vsel %vm1304_vm1, %v1305_v0, %v10701_v27  ;;  %v10724_v47 = vadd.f32 %v9310_v37, %v10491_v59  ;;  %v10728_v52 = vadd.f32 %v14909_v51, %v10493_v24 }
 0x350   :  { %v1307_v63 = vadd.s32 %v1306_v42, %v1302_v45  ;;  %v1114_v40 = vor.u32 %v1113_v16, %v1112_v23  ;;  %v1117_v14 = vshll.u32 %v1116_v44, 23  ;;  %v1463_v1 = vor.u32 8388608, %v10635_v29 }
 0x351   :  { %v916_v13 = vsel %vm833_vm6, %v915_v46, %v914_v49  ;;  %v10736_v7 = vand.u32 3, %v924_v20  ;;  %v1132_v59 = vadd.s32 3, %v1128_v35  ;;  %v1473_v27 = vshrl.u32 %v14805_v33, %v1470_v62 }
 0x352   :  { %v919_v38 = vsel %vm10653_vm7, %v10526_v6, %v916_v13  ;;  %v1308_v50 = vadd.s32 536870912, %v1307_v63  ;;  %v1118_v24 = vor.u32 4788187, %v1117_v14  ;;  %v1476_v34 = vshrl.u32 %v14806_v58, %v1470_v62 }
 0x353   :  { %8369 = vcosq.f32 %v919_v38  ;;  %v1121_v8 = vcvt.s32.f32 %v1114_v40  ;;  %v1478_v54 = vshll.u32 %v14806_v58, %v1469_v31  ;;  %v1479_v30 = vshrl.u32 %v14807_v9, %v1470_v62 }
 0x354   :  { %8371 = vsinq.f32 %v919_v38  ;;  %v10740_v25 = vshrl.u32 %v1308_v50, 30  ;;  %v1119_v49 = vand.u32 2147483647, %v1118_v24  ;;  %v1481_v29 = vshll.u32 %v14807_v9, %v1469_v31 }
 0x355   :  { %v1482_v20 = vshrl.u32 %v14808_v39, %v1470_v62  ;;  %v1485_v26 = vshrl.u32 %v14809_v5, %v1470_v62  ;;  %vm930_vm2 = vcmp.eq.s32.totalorder %v10736_v7, 2  ;;  %v10749_v36 = vshrl.u32 %v1467_v11, 5 }
 0x356   :  { %v1310_v56 = vshll.u32 %v10740_v25, 30  ;;  %v1472_v35 = vshll.u32 %v14804_v43, %v1469_v31  ;;  %v1475_v0 = vshll.u32 %v14805_v33, %v1469_v31  ;;  %vm927_vm3 = vcmp.eq.s32.totalorder %v10736_v7, 0 }
 0x357   :  { %v1122_v46 = vmul.f32 %v1121_v8, %v1119_v49  ;;  %v1480_v23 = vor.u32 %v1479_v30, %v1478_v54  ;;  %v1483_v45 = vor.u32 %v1482_v20, %v1481_v29  ;;  %v1484_v16 = vshll.u32 %v14808_v39, %v1469_v31 }
 0x358   :  { %vm926_vm5 = vcmp.lt.s32.totalorder %v10736_v7, 2  ;;  %v10756_v44 = vand.u32 3, %v1132_v59  ;;  %v10758_v42 = vsub.s32 %v1307_v63, %v1310_v56  ;;  %v1474_v13 = vor.u32 %v1473_v27, %v1472_v35 }
 0x359   :  { %v1477_v11 = vor.u32 %v1476_v34, %v1475_v0  ;;  %vm923_vm4 = vweird.f32 %v10526_v6  ;;  %v1123_v38 = vxor.u32 2147483648, %v1122_v46  ;;  %v1471_v40 = vshrl.u32 %v14804_v43, %v1470_v62 }
 0x35a   :  { %v1486_v14 = vor.u32 %v1485_v26, %v1484_v16  ;;  %v10762_v50 = vshll.u32 %v1463_v1, 8  ;;  %v1313_v24 = vsub.s32 0, %v10758_v42  ;;  %v1333_v31 = vsub.s32 4, %v10740_v25 }
 0x35b   :  { %vm1487_vm6 = vcmp.lt.s32.totalorder %v10749_v36, 1  ;;  %vm1490_vm7 = vcmp.lt.s32.totalorder %v10749_v36, 4  ;;  %v1124_v63 = vsel %vm1041_vm8, %v1123_v38, %v1122_v46  ;;  %vm1249_vm12 = vcmp.lt.s32.totalorder %v10537_v19, 0 }
 0x35c   :  { %vm1489_vm9 = vcmp.lt.s32.totalorder %v10749_v36, 3  ;;  %v1492_v59 = vsel %vm1490_vm7, %v1480_v23, 2102212464  ;;  %v1496_v62 = vsel %vm1490_vm7, %v1483_v45, 920167782  ;;  %v1127_v1 = vsel %vm10675_vm11, %v10530_v48, %v1124_v63 }
 0x35d   :  { %v8370_v27 = vpop.eup %8369  ;;  %v7780_v34 = vmin.u32 %v1313_v24, %v10758_v42  ;;  %v1495_v8 = vsel %vm1487_vm6, %v1474_v13, %v1477_v11  ;;  %v1497_v54 = vsel %vm1489_vm9, %v1480_v23, %v1496_v62  ;;  %8373 = vcosq.f32 %v1127_v1 }
 0x35e   :  { %v8372_v30 = vpop.eup %8371  ;;  %v931_v49 = vxor.u32 2147483648, %v8370_v27  ;;  %v1499_v29 = vsel %vm1487_vm6, %v1477_v11, %v1480_v23  ;;  %v1500_v20 = vsel %vm1490_vm7, %v1486_v14, 1326507024  ;;  %8375 = vsinq.f32 %v1127_v1 }
 0x35f   :  { %v928_v26 = vxor.u32 2147483648, %v8372_v30  ;;  %v1315_v56 = vclz %v7780_v34  ;;  %vm1488_vm8 = vcmp.lt.s32.totalorder %v10749_v36, 2  ;;  %v1491_v35 = vsel %vm1487_vm6, %v1471_v40, %v1474_v13 }
 0x360   :  { %v932_v41 = vsel %vm930_vm2, %v931_v49, %v8372_v30  ;;  %v1498_v0 = vsel %vm1488_vm8, %v1495_v8, %v1497_v54  ;;  %v1501_v46 = vsel %vm1489_vm9, %v1483_v45, %v1500_v20  ;;  %v1493_v38 = vsel %vm1489_vm9, %v1477_v11, %v1492_v59 }
 0x361   :  { %v929_v23 = vsel %vm927_vm3, %v8370_v27, %v928_v26  ;;  %v7781_v16 = vadd.s32 4294967294, %v1315_v56  ;;  %v1502_v14 = vsel %vm1488_vm8, %v1499_v29, %v1501_v46  ;;  %v1666_v63 = vand.u32 2139095040, %v10724_v47 }
 0x362   :  { %v933_v24 = vsel %vm926_vm5, %v929_v23, %v932_v41  ;;  %v10800_v13 = vmul.u32.u64.low %v10762_v50, %v1502_v14  ;;  %v10801_v40 = vmul.u32.u64.high %v10762_v50, %v1502_v14, %v10800_v13  ;;  %v14910_v11 = vand.u32 2147483647, %v10537_v19 }
 0x363   :  { %v934_v45 = vsel %vm923_vm4, nan, %v933_v24  ;;  %vm7782_vm13 = vcmp.lt.s32.totalorder %v7781_v16, 0  ;;  %v10807_v62 = vmul.u32.u64.low %v10762_v50, %v1498_v0  ;;  %v10808_v27 = vmul.u32.u64.high %v10762_v50, %v1498_v0, %v10807_v62 }
 0x364   :  { %vm10813_vm14 = vcmp.le.f32.partialorder %v14910_v11, 0.7853982  ;;  %v1303_v59 = vadd.s32 %v10700_v60, %v10706_v12  ;;  %v1318_v1 = vsel %vm7782_vm13, 0, %v7781_v16  ;;  %v1667_v34 = vshrl.u32 %v1666_v63, 23  ;;  %4056 = vst [vmem:[#allocation13 + $0x8] sm:$0xff] %v934_v45 }
 0x365   :  { %v1319_v6 = vsub.s32 32, %v1318_v1  ;;  %v1323_v8 = vsub.s32 4294967266, %v1318_v1  ;;  %v1334_v54 = vsel %vm1249_vm12, %v1333_v31, %v10740_v25  ;;  %v1494_v30 = vsel %vm1488_vm8, %v1491_v35, %v1493_v38 }
 0x366   :  { %vm1134_vm10 = vcmp.lt.s32.totalorder %v10756_v44, 2  ;;  %vm1512_vm11 = vc.u32 %v10801_v40, %v10807_v62  ;;  %v1663_v49 = vand.u32 2147483647, %v10724_v47  ;;  %v7795_v60 = vadd.s32 4294967169, %v1667_v34 }
 0x367   :  { %v1320_v12 = vshll.u32 %v10758_v42, %v1318_v1  ;;  %v1321_v29 = vshrl.u32 %v1303_v59, %v1319_v6  ;;  %v1324_v20 = vadd.s32 127, %v1323_v8  ;;  %v1513_v26 = vadd.s32 1, %v10808_v27  ;;  %v8374_v56 = vpop.eup %8373 }
 0x368   :  { %vm1135_vm15 = vcmp.eq.s32.totalorder %v10756_v44, 0  ;;  %v1336_v25 = vsel %vm10813_vm14, 0, %v1334_v54  ;;  %v1510_v36 = vmul.u32 %v10762_v50, %v1494_v30  ;;  %v1673_v31 = vadd.s32 1, %v7795_v60  ;;  %v8376_v41 = vpop.eup %8375 }
 0x369   :  { %v1139_v35 = vxor.u32 2147483648, %v8374_v56  ;;  %v1322_v0 = vor.u32 %v1321_v29, %v1320_v12  ;;  %v1325_v46 = vshll.u32 %v1324_v20, 23  ;;  %v1514_v42 = vsel %vm1512_vm11, %v1513_v26, %v10808_v27 }
 0x36a   :  { %v1136_v23 = vxor.u32 2147483648, %v8376_v41  ;;  %vm1138_vm0 = vcmp.eq.s32.totalorder %v10756_v44, 2  ;;  %v1515_v16 = vadd.s32 %v1514_v42, %v1510_v36  ;;  %vm1674_vm1 = vcmp.gt.s32.totalorder %v1673_v31, 0 }
 0x36b   :  { %v1140_v38 = vsel %vm1138_vm0, %v1139_v35, %v8376_v41  ;;  %v1326_v14 = vor.u32 4788187, %v1325_v46  ;;  %v1340_v24 = vadd.s32 3, %v1336_v25  ;;  %v1675_v13 = vsel %vm1674_vm1, %v1673_v31, 0 }
 0x36c   :  { %v1137_v50 = vsel %vm1135_vm15, %v8374_v56, %v1136_v23  ;;  %v1516_v63 = vadd.s32 536870912, %v1515_v16  ;;  %v1670_v45 = vand.u32 8388607, %v1663_v49  ;;  %v1677_v11 = vand.u32 31, %v1675_v13 }
 0x36d   :  { %vm1131_vm2 = vweird.f32 %v10530_v48  ;;  %v1141_v27 = vsel %vm1134_vm10, %v1137_v50, %v1140_v38  ;;  %v1327_v59 = vand.u32 2147483647, %v1326_v14  ;;  %v1329_v1 = vcvt.s32.f32 %v1322_v0 }
 0x36e   :  { %v1142_v34 = vsel %vm1131_vm2, nan, %v1141_v27  ;;  %v1517_v6 = vshrl.u32 %v1516_v63, 30  ;;  %v1678_v8 = vsub.s32 32, %v1677_v11  ;;  %v1874_v54 = vand.u32 2139095040, %v10728_v52 }
 0x36f   :  { %v1330_v30 = vmul.f32 %v1329_v1, %v1327_v59  ;;  %v10847_v60 = vand.u32 3, %v1340_v24  ;;  %v1871_v12 = vand.u32 2147483647, %v10728_v52  ;;  %4058 = vst [vmem:[#allocation13 + $0x18] sm:$0xff] %v1142_v34  ;;  %v1671_v20 = vor.u32 8388608, %v1670_v45 }
 0x370   :  { %v1518_v29 = vshll.u32 %v1517_v6, 30  ;;  %v1680_v48 = vshll.u32 %v14804_v43, %v1677_v11  ;;  %v1681_v44 = vshrl.u32 %v14805_v33, %v1678_v8  ;;  %v1684_v56 = vshrl.u32 %v14806_v58, %v1678_v8 }
 0x371   :  { %v1331_v26 = vxor.u32 2147483648, %v1330_v30  ;;  %v1687_v25 = vshrl.u32 %v14807_v9, %v1678_v8  ;;  %v1690_v36 = vshrl.u32 %v14808_v39, %v1678_v8  ;;  %vm1457_vm3 = vcmp.lt.s32.totalorder %v10550_v18, 0 }
 0x372   :  { %v10856_v31 = vsub.s32 %v1515_v16, %v1518_v29  ;;  %v1676_v41 = vshrl.u32 %v1675_v13, 5  ;;  %v1683_v35 = vshll.u32 %v14805_v33, %v1677_v11  ;;  %v1875_v0 = vshrl.u32 %v1874_v54, 23 }
 0x373   :  { %v1332_v46 = vsel %vm1249_vm12, %v1331_v26, %v1330_v30  ;;  %v1682_v42 = vor.u32 %v1681_v44, %v1680_v48  ;;  %v1686_v23 = vshll.u32 %v14806_v58, %v1677_v11  ;;  %v1689_v38 = vshll.u32 %v14807_v9, %v1677_v11 }
 0x374   :  { %v1335_v14 = vsel %vm10813_vm14, %v10537_v19, %v1332_v46  ;;  %v1521_v24 = vsub.s32 0, %v10856_v31  ;;  %v1685_v16 = vor.u32 %v1684_v56, %v1683_v35  ;;  %v1692_v13 = vshll.u32 %v14808_v39, %v1677_v11 }
 0x375   :  { %8377 = vcosq.f32 %v1335_v14  ;;  %v1688_v50 = vor.u32 %v1687_v25, %v1686_v23  ;;  %v1691_v63 = vor.u32 %v1690_v36, %v1689_v38  ;;  %v1693_v45 = vshrl.u32 %v14809_v5, %v1678_v8 }
 0x376   :  { %8379 = vsinq.f32 %v1335_v14  ;;  %v14913_v27 = vand.u32 2147483647, %v10550_v18  ;;  %v7788_v7 = vmin.u32 %v1521_v24, %v10856_v31  ;;  %v1711_v1 = vshll.u32 %v1671_v20, 8 }
 0x377   :  { %v7803_v34 = vadd.s32 4294967169, %v1875_v0  ;;  %v1541_v54 = vsub.s32 4, %v1517_v6  ;;  %v1679_v30 = vshrl.u32 %v14804_v43, %v1678_v8  ;;  %v1694_v11 = vor.u32 %v1693_v45, %v1692_v13 }
 0x378   :  { %vm10871_vm5 = vcmp.le.f32.partialorder %v14913_v27, 0.7853982  ;;  %vm1695_vm4 = vcmp.lt.s32.totalorder %v1676_v41, 1  ;;  %v1523_v29 = vclz %v7788_v7  ;;  %vm1697_vm6 = vcmp.lt.s32.totalorder %v1676_v41, 3 }
 0x379   :  { %vm1698_vm7 = vcmp.lt.s32.totalorder %v1676_v41, 4  ;;  %v1703_v48 = vsel %vm1695_vm4, %v1682_v42, %v1685_v16  ;;  %v1707_v56 = vsel %vm1695_vm4, %v1685_v16, %v1688_v50  ;;  %vm1343_vm12 = vcmp.eq.s32.totalorder %v10847_v60, 0 }
 0x37a   :  { %v1700_v44 = vsel %vm1698_vm7, %v1688_v50, 2102212464  ;;  %v1704_v26 = vsel %vm1698_vm7, %v1691_v63, 920167782  ;;  %v1708_v25 = vsel %vm1698_vm7, %v1694_v11, 1326507024  ;;  %v1542_v8 = vsel %vm1457_vm3, %v1541_v54, %v1517_v6 }
 0x37b   :  { %v7789_v36 = vadd.s32 4294967294, %v1523_v29  ;;  %vm1696_vm9 = vcmp.lt.s32.totalorder %v1676_v41, 2  ;;  %v1705_v20 = vsel %vm1697_vm6, %v1688_v50, %v1704_v26  ;;  %v1709_v35 = vsel %vm1697_vm6, %v1691_v63, %v1708_v25 }
 0x37c   :  { %v1699_v0 = vsel %vm1695_vm4, %v1679_v30, %v1682_v42  ;;  %v1706_v46 = vsel %vm1696_vm9, %v1703_v48, %v1705_v20  ;;  %v1710_v23 = vsel %vm1696_vm9, %v1707_v56, %v1709_v35  ;;  %v1701_v38 = vsel %vm1697_vm6, %v1685_v16, %v1700_v44 }
 0x37d   :  { %vm7790_vm8 = vcmp.lt.s32.totalorder %v7789_v36, 0  ;;  %v10885_v14 = vmul.u32.u64.low %v1711_v1, %v1710_v23  ;;  %v10886_v24 = vmul.u32.u64.high %v1711_v1, %v1710_v23, %v10885_v14  ;;  %v1881_v50 = vadd.s32 1, %v7803_v34 }
 0x37e   :  { %v1526_v13 = vsel %vm7790_vm8, 0, %v7789_v36  ;;  %v10888_v45 = vmul.u32.u64.low %v1711_v1, %v1706_v46  ;;  %v10889_v27 = vmul.u32.u64.high %v1711_v1, %v1706_v46, %v10888_v45  ;;  %vm1346_vm13 = vcmp.eq.s32.totalorder %v10847_v60, 2 }
 0x37f   :  { %v1511_v6 = vadd.s32 %v10807_v62, %v10801_v40  ;;  %v1527_v42 = vsub.s32 32, %v1526_v13  ;;  %v1531_v63 = vsub.s32 4294967266, %v1526_v13  ;;  %v8378_v7 = vpop.eup %8377  ;;  %v1544_v16 = vsel %vm10871_vm5, 0, %v1542_v8 }
 0x380   :  { %v1702_v54 = vsel %vm1696_vm9, %v1699_v0, %v1701_v38  ;;  %v1878_v30 = vand.u32 8388607, %v1871_v12  ;;  %vm1882_vm14 = vcmp.gt.s32.totalorder %v1881_v50, 0  ;;  %v8380_v11 = vpop.eup %8379  ;;  %v1347_v29 = vxor.u32 2147483648, %v8378_v7 }
 0x381   :  { %v1528_v34 = vshll.u32 %v10856_v31, %v1526_v13  ;;  %v1529_v48 = vshrl.u32 %v1511_v6, %v1527_v42  ;;  %v1532_v44 = vadd.s32 127, %v1531_v63  ;;  %v1344_v26 = vxor.u32 2147483648, %v8380_v11 }
 0x382   :  { %vm1720_vm10 = vc.u32 %v10886_v24, %v10888_v45  ;;  %v1721_v40 = vadd.s32 1, %v10889_v27  ;;  %v1883_v62 = vsel %vm1882_vm14, %v1881_v50, 0  ;;  %v1348_v41 = vsel %vm1346_vm13, %v1347_v29, %v8380_v11 }
 0x383   :  { %v1530_v56 = vor.u32 %v1529_v48, %v1528_v34  ;;  %v1533_v25 = vshll.u32 %v1532_v44, 23  ;;  %v1718_v36 = vmul.u32 %v1711_v1, %v1702_v54  ;;  %vm1342_vm11 = vcmp.lt.s32.totalorder %v10847_v60, 2  ;;  %v14916_v48 = vld [vmem:[#allocation61_spill] sm:$0xff] }
 0x384   :  { %v1345_v31 = vsel %vm1343_vm12, %v8378_v7, %v1344_v26  ;;  %v1722_v20 = vsel %vm1720_vm10, %v1721_v40, %v10889_v27  ;;  %v1885_v35 = vand.u32 31, %v1883_v62  ;;  %vm1339_vm15 = vweird.f32 %v10537_v19 }
 0x385   :  { %v1349_v8 = vsel %vm1342_vm11, %v1345_v31, %v1348_v41  ;;  %v1534_v0 = vor.u32 4788187, %v1533_v25  ;;  %v1723_v46 = vadd.s32 %v1722_v20, %v1718_v36  ;;  %v1548_v38 = vadd.s32 3, %v1544_v16  ;;  %v14917_v31 = vld [vmem:[#allocation62_spill] sm:$0xff] }
 0x386   :  { %v1350_v23 = vsel %vm1339_vm15, nan, %v1349_v8  ;;  %v1886_v14 = vsub.s32 32, %v1885_v35  ;;  %v1537_v50 = vcvt.s32.f32 %v1530_v56  ;;  %v1879_v1 = vor.u32 8388608, %v1878_v30 }
 0x387   :  { %v1535_v13 = vand.u32 2147483647, %v1534_v0  ;;  %v1724_v6 = vadd.s32 536870912, %v1723_v46  ;;  %4060 = vst [vmem:[#allocation13 + $0x28] sm:$0xff] %v1350_v23  ;;  %v1884_v42 = vshrl.u32 %v1883_v62, 5  ;;  %v1888_v54 = vshll.u32 %v14804_v43, %v1885_v35 }
 0x388   :  { %v1889_v60 = vshrl.u32 %v14805_v33, %v1886_v14  ;;  %v1892_v63 = vshrl.u32 %v14806_v58, %v1886_v14  ;;  %v1895_v27 = vshrl.u32 %v14807_v9, %v1886_v14  ;;  %v1898_v16 = vshrl.u32 %v14808_v39, %v1886_v14 }
 0x389   :  { %v1538_v7 = vmul.f32 %v1537_v50, %v1535_v13  ;;  %v10914_v19 = vshrl.u32 %v1724_v6, 30  ;;  %v1891_v11 = vshll.u32 %v14805_v33, %v1885_v35  ;;  %v1894_v29 = vshll.u32 %v14806_v58, %v1885_v35 }
 0x38a   :  { %v1897_v30 = vshll.u32 %v14807_v9, %v1885_v35  ;;  %v1901_v34 = vshrl.u32 %v14809_v5, %v1886_v14  ;;  %v10924_v44 = vadd.f32 %v14916_v48, %v10495_v3  ;;  %v1900_v62 = vshll.u32 %v14808_v39, %v1885_v35 }
 0x38b   :  { %v1539_v26 = vxor.u32 2147483648, %v1538_v7  ;;  %v1726_v40 = vshll.u32 %v10914_v19, 30  ;;  %v1890_v41 = vor.u32 %v1889_v60, %v1888_v54  ;;  %v1893_v56 = vor.u32 %v1892_v63, %v1891_v11  ;;  %v14918_v54 = vld [vmem:[#allocation63_spill] sm:$0xff] }
 0x38c   :  { %v1896_v25 = vor.u32 %v1895_v27, %v1894_v29  ;;  %v1899_v36 = vor.u32 %v1898_v16, %v1897_v30  ;;  %v10930_v20 = vadd.f32 %v14917_v31, %v10499_v53  ;;  %v10934_v0 = vand.u32 3, %v1548_v38 }
 0x38d   :  { %v1540_v8 = vsel %vm1457_vm3, %v1539_v26, %v1538_v7  ;;  %v10936_v3 = vsub.s32 %v1723_v46, %v1726_v40  ;;  %v1902_v35 = vor.u32 %v1901_v34, %v1900_v62  ;;  %vm1903_vm0 = vcmp.lt.s32.totalorder %v1884_v42, 1 }
 0x38e   :  { %v1543_v23 = vsel %vm10871_vm5, %v10550_v18, %v1540_v8  ;;  %v1919_v13 = vshll.u32 %v1879_v1, 8  ;;  %vm1905_vm1 = vcmp.lt.s32.totalorder %v1884_v42, 3  ;;  %vm1906_vm2 = vcmp.lt.s32.totalorder %v1884_v42, 4 }
 0x38f   :  { %8381 = vcosq.f32 %v1543_v23  ;;  %v1729_v50 = vsub.s32 0, %v10936_v3  ;;  %v1908_v53 = vsel %vm1906_vm2, %v1896_v25, 2102212464  ;;  %v1911_v6 = vsel %vm1903_vm0, %v1890_v41, %v1893_v56 }
 0x390   :  { %8383 = vsinq.f32 %v1543_v23  ;;  %v1912_v38 = vsel %vm1906_vm2, %v1899_v36, 920167782  ;;  %v1887_v60 = vshrl.u32 %v14804_v43, %v1886_v14  ;;  %vm1904_vm3 = vcmp.lt.s32.totalorder %v1884_v42, 2 }
 0x391   :  { %v7796_v46 = vmin.u32 %v1729_v50, %v10936_v3  ;;  %v1913_v59 = vsel %vm1905_vm1, %v1896_v25, %v1912_v38  ;;  %v1915_v1 = vsel %vm1903_vm0, %v1893_v56, %v1896_v25  ;;  %v1916_v27 = vsel %vm1906_vm2, %v1902_v35, 1326507024 }
 0x392   :  { %v1914_v63 = vsel %vm1904_vm3, %v1911_v6, %v1913_v59  ;;  %v2082_v7 = vand.u32 2139095040, %v10924_v44  ;;  %v10951_v16 = vadd.f32 %v14918_v54, %v10501_v17  ;;  %v1907_v29 = vsel %vm1903_vm0, %v1887_v60, %v1890_v41 }
 0x393   :  { %v1731_v11 = vclz %v7796_v46  ;;  %v1909_v30 = vsel %vm1905_vm1, %v1893_v56, %v1908_v53  ;;  %v1917_v14 = vsel %vm1905_vm1, %v1899_v36, %v1916_v27  ;;  %vm1550_vm5 = vcmp.lt.s32.totalorder %v10934_v0, 2 }
 0x394   :  { %v10956_v34 = vmul.u32.u64.low %v1919_v13, %v1914_v63  ;;  %v10957_v26 = vmul.u32.u64.high %v1919_v13, %v1914_v63, %v10956_v34  ;;  %v2083_v40 = vshrl.u32 %v2082_v7, 23  ;;  %vm1665_vm4 = vcmp.lt.s32.totalorder %v10724_v47, 0 }
 0x395   :  { %v7797_v62 = vadd.s32 4294967294, %v1731_v11  ;;  %v1918_v17 = vsel %vm1904_vm3, %v1915_v1, %v1917_v14  ;;  %v1910_v25 = vsel %vm1904_vm3, %v1907_v29, %v1909_v30  ;;  %vm1551_vm6 = vcmp.eq.s32.totalorder %v10934_v0, 0 }
 0x396   :  { %v10964_v8 = vmul.u32.u64.low %v1919_v13, %v1918_v17  ;;  %v10965_v41 = vmul.u32.u64.high %v1919_v13, %v1918_v17, %v10964_v8  ;;  %v7811_v56 = vadd.s32 4294967169, %v2083_v40  ;;  %vm1554_vm7 = vcmp.eq.s32.totalorder %v10934_v0, 2 }
 0x397   :  { %vm7798_vm12 = vcmp.lt.s32.totalorder %v7797_v62, 0  ;;  %v2079_v36 = vand.u32 2147483647, %v10924_v44  ;;  %v1749_v35 = vsub.s32 4, %v10914_v19  ;;  %v1929_v50 = vadd.s32 1, %v10957_v26  ;;  %v14919_v8 = vld [vmem:[#allocation64_spill] sm:$0xff] }
 0x398   :  { %v1734_v23 = vsel %vm7798_vm12, 0, %v7797_v62  ;;  %v2089_v53 = vadd.s32 1, %v7811_v56  ;;  %v1719_v42 = vadd.s32 %v10888_v45, %v10886_v24  ;;  %v1926_v60 = vmul.u32 %v1919_v13, %v1910_v25 }
 0x399   :  { %v8382_v6 = vpop.eup %8381  ;;  %v1735_v38 = vsub.s32 32, %v1734_v23  ;;  %v1739_v46 = vsub.s32 4294967266, %v1734_v23  ;;  %v1736_v1 = vshll.u32 %v10936_v3, %v1734_v23  ;;  %vm1928_vm9 = vc.u32 %v10965_v41, %v10956_v34 }
 0x39a   :  { %v8384_v59 = vpop.eup %8383  ;;  %v1555_v63 = vxor.u32 2147483648, %v8382_v6  ;;  %vm2090_vm8 = vcmp.gt.s32.totalorder %v2089_v53, 0  ;;  %v1930_v29 = vsel %vm1928_vm9, %v1929_v50, %v10957_v26  ;;  %v1750_v24 = vsel %vm1665_vm4, %v1749_v35, %v10914_v19 }
 0x39b   :  { %v1552_v27 = vxor.u32 2147483648, %v8384_v59  ;;  %v1737_v7 = vshrl.u32 %v1719_v42, %v1735_v38  ;;  %v1740_v11 = vadd.s32 127, %v1739_v46  ;;  %v1931_v45 = vadd.s32 %v1930_v29, %v1926_v60 }
 0x39c   :  { %v1556_v30 = vsel %vm1554_vm7, %v1555_v63, %v8384_v59  ;;  %v2091_v13 = vsel %vm2090_vm8, %v2089_v53, 0  ;;  %v2290_v62 = vand.u32 2139095040, %v10930_v20  ;;  %vm1547_vm13 = vweird.f32 %v10550_v18 }
 0x39d   :  { %v1553_v3 = vsel %vm1551_vm6, %v8382_v6, %v1552_v27  ;;  %v1738_v14 = vor.u32 %v1737_v7, %v1736_v1  ;;  %v1741_v40 = vshll.u32 %v1740_v11, 23  ;;  %v1932_v17 = vadd.s32 536870912, %v1931_v45 }
 0x39e   :  { %v1557_v26 = vsel %vm1550_vm5, %v1553_v3, %v1556_v30  ;;  %v2093_v25 = vand.u32 31, %v2091_v13  ;;  %v10991_v56 = vadd.f32 %v14919_v8, %v10503_v32  ;;  %vm10995_vm14 = vcmp.le.f32.partialorder %v1663_v49, 0.7853982 }
 0x39f   :  { %v1558_v19 = vsel %vm1547_vm13, nan, %v1557_v26  ;;  %v1742_v35 = vor.u32 4788187, %v1741_v40  ;;  %v1752_v18 = vsel %vm10995_vm14, 0, %v1750_v24  ;;  %v11001_v50 = vshrl.u32 %v1932_v17, 30 }
 0x3a0   :  { %v2086_v0 = vand.u32 8388607, %v2079_v36  ;;  %v2094_v53 = vsub.s32 32, %v2093_v25  ;;  %4062 = vst [vmem:[#allocation13 + $0x38] sm:$0xff] %v1558_v19  ;;  %v1745_v6 = vcvt.s32.f32 %v1738_v14  ;;  %v11005_v42 = vshrl.u32 %v2091_v13, 5 }
 0x3a1   :  { %v1743_v32 = vand.u32 2147483647, %v1742_v35  ;;  %v2291_v38 = vshrl.u32 %v2290_v62, 23  ;;  %v1934_v49 = vshll.u32 %v11001_v50, 30  ;;  %v2096_v46 = vshll.u32 %v14804_v43, %v2093_v25 }
 0x3a2   :  { %v2097_v60 = vshrl.u32 %v14805_v33, %v2094_v53  ;;  %v2099_v59 = vshll.u32 %v14805_v33, %v2093_v25  ;;  %v2100_v1 = vshrl.u32 %v14806_v58, %v2094_v53  ;;  %v2103_v27 = vshrl.u32 %v14807_v9, %v2094_v53 }
 0x3a3   :  { %v1746_v63 = vmul.f32 %v1745_v6, %v1743_v32  ;;  %v2106_v7 = vshrl.u32 %v14808_v39, %v2094_v53  ;;  %v11014_v11 = vsub.s32 %v1931_v45, %v1934_v49  ;;  %v2102_v29 = vshll.u32 %v14806_v58, %v2093_v25 }
 0x3a4   :  { %v2105_v30 = vshll.u32 %v14807_v9, %v2093_v25  ;;  %v2109_v24 = vshrl.u32 %v14809_v5, %v2094_v53  ;;  %v1756_v3 = vadd.s32 3, %v1752_v18  ;;  %v2098_v14 = vor.u32 %v2097_v60, %v2096_v46 }
 0x3a5   :  { %v1747_v13 = vxor.u32 2147483648, %v1746_v63  ;;  %v2101_v40 = vor.u32 %v2100_v1, %v2099_v59  ;;  %v1937_v62 = vsub.s32 0, %v11014_v11  ;;  %v2104_v26 = vor.u32 %v2103_v27, %v2102_v29 }
 0x3a6   :  { %v2107_v17 = vor.u32 %v2106_v7, %v2105_v30  ;;  %v2108_v19 = vshll.u32 %v14808_v39, %v2093_v25  ;;  %v2087_v35 = vor.u32 8388608, %v2086_v0  ;;  %vm2111_vm10 = vcmp.lt.s32.totalorder %v11005_v42, 1 }
 0x3a7   :  { %v1748_v45 = vsel %vm1665_vm4, %v1747_v13, %v1746_v63  ;;  %v7819_v32 = vadd.s32 4294967169, %v2291_v38  ;;  %v7804_v18 = vmin.u32 %v1937_v62, %v11014_v11  ;;  %vm2114_vm11 = vcmp.lt.s32.totalorder %v11005_v42, 4 }
 0x3a8   :  { %v1751_v6 = vsel %vm10995_vm14, %v10724_v47, %v1748_v45  ;;  %v2110_v49 = vor.u32 %v2109_v24, %v2108_v19  ;;  %v2095_v46 = vshrl.u32 %v14804_v43, %v2094_v53  ;;  %v2119_v25 = vsel %vm2111_vm10, %v2098_v14, %v2101_v40 }
 0x3a9   :  { %8385 = vcosq.f32 %v1751_v6  ;;  %v2120_v0 = vsel %vm2114_vm11, %v2107_v17, 920167782  ;;  %v1939_v38 = vclz %v7804_v18  ;;  %vm2113_vm15 = vcmp.lt.s32.totalorder %v11005_v42, 3 }
 0x3aa   :  { %8387 = vsinq.f32 %v1751_v6  ;;  %v2116_v23 = vsel %vm2114_vm11, %v2104_v26, 2102212464  ;;  %vm2112_vm0 = vcmp.lt.s32.totalorder %v11005_v42, 2  ;;  %v2121_v60 = vsel %vm2113_vm15, %v2104_v26, %v2120_v0 }
 0x3ab   :  { %v2123_v59 = vsel %vm2111_vm10, %v2101_v40, %v2104_v26  ;;  %v2127_v53 = vshll.u32 %v2087_v35, 8  ;;  %v7805_v63 = vadd.s32 4294967294, %v1939_v38  ;;  %v2115_v1 = vsel %vm2111_vm10, %v2095_v46, %v2098_v14 }
 0x3ac   :  { %v2122_v27 = vsel %vm2112_vm0, %v2119_v25, %v2121_v60  ;;  %v2124_v7 = vsel %vm2114_vm11, %v2110_v49, 1326507024  ;;  %v2117_v29 = vsel %vm2113_vm15, %v2101_v40, %v2116_v23  ;;  %vm11052_vm1 = vcmp.le.f32.partialorder %v1871_v12, 0.7853982 }
 0x3ad   :  { %v2125_v30 = vsel %vm2113_vm15, %v2107_v17, %v2124_v7  ;;  %v11046_v24 = vmul.u32.u64.low %v2127_v53, %v2122_v27  ;;  %v11047_v13 = vmul.u32.u64.high %v2127_v53, %v2122_v27, %v11046_v24  ;;  %vm1873_vm2 = vcmp.lt.s32.totalorder %v10728_v52, 0 }
 0x3ae   :  { %vm7806_vm3 = vcmp.lt.s32.totalorder %v7805_v63, 0  ;;  %v2126_v14 = vsel %vm2112_vm0, %v2123_v59, %v2125_v30  ;;  %v2297_v26 = vadd.s32 1, %v7819_v32  ;;  %v1957_v40 = vsub.s32 4, %v11001_v50 }
 0x3af   :  { %v1942_v19 = vsel %vm7806_vm3, 0, %v7805_v63  ;;  %v11060_v17 = vmul.u32.u64.low %v2127_v53, %v2126_v14  ;;  %v11061_v45 = vmul.u32.u64.high %v2127_v53, %v2126_v14, %v11060_v17  ;;  %vm1755_vm5 = vweird.f32 %v10724_v47 }
 0x3b0   :  { %v1927_v12 = vadd.s32 %v10956_v34, %v10965_v41  ;;  %v1943_v35 = vsub.s32 32, %v1942_v19  ;;  %v1947_v6 = vsub.s32 4294967266, %v1942_v19  ;;  %v2118_v18 = vsel %vm2112_vm0, %v2115_v1, %v2117_v29 }
 0x3b1   :  { %v1757_v49 = vand.u32 3, %v1756_v3  ;;  %v2137_v46 = vadd.s32 1, %v11047_v13  ;;  %v2287_v32 = vand.u32 2147483647, %v10930_v20  ;;  %vm2298_vm4 = vcmp.gt.s32.totalorder %v2297_v26, 0 }
 0x3b2   :  { %v1944_v25 = vshll.u32 %v11014_v11, %v1942_v19  ;;  %v1945_v0 = vshrl.u32 %v1927_v12, %v1943_v35  ;;  %v1948_v38 = vadd.s32 127, %v1947_v6  ;;  %v2299_v23 = vsel %vm2298_vm4, %v2297_v26, 0 }
 0x3b3   :  { %v8386_v60 = vpop.eup %8385  ;;  %v1958_v34 = vsel %vm1873_vm2, %v1957_v40, %v11001_v50  ;;  %v2134_v41 = vmul.u32 %v2127_v53, %v2118_v18  ;;  %vm2136_vm6 = vc.u32 %v11061_v45, %v11046_v24  ;;  %v2301_v42 = vand.u32 31, %v2299_v23 }
 0x3b4   :  { %v8388_v3 = vpop.eup %8387  ;;  %v1763_v59 = vxor.u32 2147483648, %v8386_v60  ;;  %v1946_v63 = vor.u32 %v1945_v0, %v1944_v25  ;;  %v1949_v1 = vshll.u32 %v1948_v38, 23  ;;  %v2138_v27 = vsel %vm2136_vm6, %v2137_v46, %v11047_v13 }
 0x3b5   :  { %v1760_v11 = vxor.u32 2147483648, %v8388_v3  ;;  %vm1762_vm7 = vcmp.eq.s32.totalorder %v1757_v49, 2  ;;  %v2139_v7 = vadd.s32 %v2138_v27, %v2134_v41  ;;  %v2302_v29 = vsub.s32 32, %v2301_v42 }
 0x3b6   :  { %vm1758_vm12 = vcmp.lt.s32.totalorder %v1757_v49, 2  ;;  %vm1759_vm9 = vcmp.eq.s32.totalorder %v1757_v49, 0  ;;  %v1764_v30 = vsel %vm1762_vm7, %v1763_v59, %v8388_v3  ;;  %v1950_v14 = vor.u32 4788187, %v1949_v1 }
 0x3b7   :  { %v1761_v50 = vsel %vm1759_vm9, %v8386_v60, %v1760_v11  ;;  %v1960_v53 = vsel %vm11052_vm1, 0, %v1958_v34  ;;  %v2140_v26 = vadd.s32 536870912, %v2139_v7  ;;  %v2294_v19 = vand.u32 8388607, %v2287_v32 }
 0x3b8   :  { %v1765_v40 = vsel %vm1758_vm12, %v1761_v50, %v1764_v30  ;;  %v1951_v17 = vand.u32 2147483647, %v1950_v14  ;;  %v1953_v12 = vcvt.s32.f32 %v1946_v63  ;;  %v2305_v13 = vshrl.u32 %v14805_v33, %v2302_v29 }
 0x3b9   :  { %v1766_v35 = vsel %vm1755_vm5, nan, %v1765_v40  ;;  %v2141_v6 = vshrl.u32 %v2140_v26, 30  ;;  %v2308_v18 = vshrl.u32 %v14806_v58, %v2302_v29  ;;  %v2311_v49 = vshrl.u32 %v14807_v9, %v2302_v29 }
 0x3ba   :  { %v1954_v46 = vmul.f32 %v1953_v12, %v1951_v17  ;;  %v2300_v25 = vshrl.u32 %v2299_v23, 5  ;;  %v2313_v0 = vshll.u32 %v14807_v9, %v2301_v42  ;;  %v2314_v38 = vshrl.u32 %v14808_v39, %v2302_v29  ;;  %4064 = vst [vmem:[#allocation13 + $0x48] sm:$0xff] %v1766_v35 }
 0x3bb   :  { %v2142_v60 = vshll.u32 %v2141_v6, 30  ;;  %v2304_v34 = vshll.u32 %v14804_v43, %v2301_v42  ;;  %v2307_v41 = vshll.u32 %v14805_v33, %v2301_v42  ;;  %v2310_v47 = vshll.u32 %v14806_v58, %v2301_v42 }
 0x3bc   :  { %v1955_v3 = vxor.u32 2147483648, %v1954_v46  ;;  %v2315_v59 = vor.u32 %v2314_v38, %v2313_v0  ;;  %v2316_v63 = vshll.u32 %v14808_v39, %v2301_v42  ;;  %v2317_v1 = vshrl.u32 %v14809_v5, %v2302_v29 }
 0x3bd   :  { %vm2081_vm8 = vcmp.lt.s32.totalorder %v10924_v44, 0  ;;  %v11094_v23 = vsub.s32 %v2139_v7, %v2142_v60  ;;  %v2306_v27 = vor.u32 %v2305_v13, %v2304_v34  ;;  %v2309_v11 = vor.u32 %v2308_v18, %v2307_v41 }
 0x3be   :  { %v2312_v30 = vor.u32 %v2311_v49, %v2310_v47  ;;  %v1956_v14 = vsel %vm1873_vm2, %v1955_v3, %v1954_v46  ;;  %v1964_v50 = vadd.s32 3, %v1960_v53  ;;  %v2295_v26 = vor.u32 8388608, %v2294_v19 }
 0x3bf   :  { %v2318_v40 = vor.u32 %v2317_v1, %v2316_v63  ;;  %v1959_v17 = vsel %vm11052_vm1, %v10728_v52, %v1956_v14  ;;  %v2145_v42 = vsub.s32 0, %v11094_v23  ;;  %v2303_v12 = vshrl.u32 %v14804_v43, %v2302_v29 }
 0x3c0   :  { %vm2322_vm13 = vcmp.lt.s32.totalorder %v2300_v25, 4  ;;  %8389 = vcosq.f32 %v1959_v17  ;;  %vm2319_vm14 = vcmp.lt.s32.totalorder %v2300_v25, 1  ;;  %vm2321_vm10 = vcmp.lt.s32.totalorder %v2300_v25, 3 }
 0x3c1   :  { %v2328_v7 = vsel %vm2322_vm13, %v2315_v59, 920167782  ;;  %8391 = vsinq.f32 %v1959_v17  ;;  %v7812_v13 = vmin.u32 %v2145_v42, %v11094_v23  ;;  %v2324_v35 = vsel %vm2322_vm13, %v2312_v30, 2102212464 }
 0x3c2   :  { %v2327_v53 = vsel %vm2319_vm14, %v2306_v27, %v2309_v11  ;;  %v2165_v19 = vsub.s32 4, %v2141_v6  ;;  %v2329_v18 = vsel %vm2321_vm10, %v2312_v30, %v2328_v7  ;;  %v2331_v49 = vsel %vm2319_vm14, %v2309_v11, %v2312_v30 }
 0x3c3   :  { %v2332_v62 = vsel %vm2322_vm13, %v2318_v40, 1326507024  ;;  %v1965_v46 = vand.u32 3, %v1964_v50  ;;  %v2147_v0 = vclz %v7812_v13  ;;  %vm2320_vm11 = vcmp.lt.s32.totalorder %v2300_v25, 2 }
 0x3c4   :  { %v2335_v38 = vshll.u32 %v2295_v26, 8  ;;  %v2323_v29 = vsel %vm2319_vm14, %v2303_v12, %v2306_v27  ;;  %v2325_v60 = vsel %vm2321_vm10, %v2309_v11, %v2324_v35  ;;  %v2330_v34 = vsel %vm2320_vm11, %v2327_v53, %v2329_v18 }
 0x3c5   :  { %v2333_v41 = vsel %vm2321_vm10, %v2315_v59, %v2332_v62  ;;  %v7813_v47 = vadd.s32 4294967294, %v2147_v0  ;;  %v2166_v30 = vsel %vm2081_vm8, %v2165_v19, %v2141_v6  ;;  %v2498_v27 = vand.u32 2139095040, %v10951_v16 }
 0x3c6   :  { %v2334_v3 = vsel %vm2320_vm11, %v2331_v49, %v2333_v41  ;;  %v11109_v63 = vmul.u32.u64.low %v2335_v38, %v2330_v34  ;;  %v11110_v1 = vmul.u32.u64.high %v2335_v38, %v2330_v34, %v11109_v63  ;;  %vm1963_vm15 = vweird.f32 %v10728_v52 }
 0x3c7   :  { %v11114_v14 = vmul.u32.u64.low %v2335_v38, %v2334_v3  ;;  %v11115_v50 = vmul.u32.u64.high %v2335_v38, %v2334_v3, %v11114_v14  ;;  %vm1966_vm0 = vcmp.lt.s32.totalorder %v1965_v46, 2  ;;  %vm11121_vm1 = vcmp.le.f32.partialorder %v2079_v36, 0.7853982 }
 0x3c8   :  { %vm7814_vm2 = vcmp.lt.s32.totalorder %v7813_v47, 0  ;;  %v2326_v11 = vsel %vm2320_vm11, %v2323_v29, %v2325_v60  ;;  %v2135_v6 = vadd.s32 %v11046_v24, %v11061_v45  ;;  %v2495_v40 = vand.u32 2147483647, %v10951_v16 }
 0x3c9   :  { %v2150_v26 = vsel %vm7814_vm2, 0, %v7813_v47  ;;  %v2499_v17 = vshrl.u32 %v2498_v27, 23  ;;  %v2168_v7 = vsel %vm11121_vm1, 0, %v2166_v30  ;;  %v2345_v36 = vadd.s32 1, %v11110_v1 }
 0x3ca   :  { %v2151_v42 = vsub.s32 32, %v2150_v26  ;;  %v2155_v12 = vsub.s32 4294967266, %v2150_v26  ;;  %v8390_v13 = vpop.eup %8389  ;;  %v2152_v35 = vshll.u32 %v11094_v23, %v2150_v26  ;;  %v2342_v53 = vmul.u32 %v2335_v38, %v2326_v11 }
 0x3cb   :  { %vm2344_vm3 = vc.u32 %v11115_v50, %v11109_v63  ;;  %v7827_v25 = vadd.s32 4294967169, %v2499_v17  ;;  %v8392_v19 = vpop.eup %8391  ;;  %v1971_v24 = vxor.u32 2147483648, %v8390_v13  ;;  %vm1970_vm5 = vcmp.eq.s32.totalorder %v1965_v46, 2  ;;  %v14926_v17 = vld [vmem:[#allocation65_spill] sm:$0xff] }
 0x3cc   :  { %v2153_v45 = vshrl.u32 %v2135_v6, %v2151_v42  ;;  %v2156_v18 = vadd.s32 127, %v2155_v12  ;;  %v2346_v49 = vsel %vm2344_vm3, %v2345_v36, %v11110_v1  ;;  %v1968_v62 = vxor.u32 2147483648, %v8392_v19 }
 0x3cd   :  { %v2347_v0 = vadd.s32 %v2346_v49, %v2342_v53  ;;  %v2505_v29 = vadd.s32 1, %v7827_v25  ;;  %vm1967_vm4 = vcmp.eq.s32.totalorder %v1965_v46, 0  ;;  %v1972_v60 = vsel %vm1970_vm5, %v1971_v24, %v8392_v19 }
 0x3ce   :  { %v2154_v34 = vor.u32 %v2153_v45, %v2152_v35  ;;  %v2157_v41 = vshll.u32 %v2156_v18, 23  ;;  %v1969_v47 = vsel %vm1967_vm4, %v8390_v13, %v1968_v62  ;;  %v2172_v23 = vadd.s32 3, %v2168_v7 }
 0x3cf   :  { %v2348_v38 = vadd.s32 536870912, %v2347_v0  ;;  %vm2506_vm6 = vcmp.gt.s32.totalorder %v2505_v29, 0  ;;  %v1973_v3 = vsel %vm1966_vm0, %v1969_v47, %v1972_v60  ;;  %v2502_v14 = vand.u32 8388607, %v2495_v40 }
 0x3d0   :  { %v2158_v30 = vor.u32 4788187, %v2157_v41  ;;  %v2507_v27 = vsel %vm2506_vm6, %v2505_v29, 0  ;;  %v1974_v1 = vsel %vm1963_vm15, nan, %v1973_v3  ;;  %v2706_v26 = vand.u32 2139095040, %v10991_v56 }
 0x3d1   :  { %v2349_v11 = vshrl.u32 %v2348_v38, 30  ;;  %v2509_v6 = vand.u32 31, %v2507_v27  ;;  %v11143_v42 = vadd.f32 %v14926_v17, %v10507_v2  ;;  %v2161_v7 = vcvt.s32.f32 %v2154_v34  ;;  %4066 = vst [vmem:[#allocation13 + $0x58] sm:$0xff] %v1974_v1  ;;  %v14989_v17 = vld [vmem:[#allocation52_spill] sm:$0xff] }
 0x3d2   :  { %v2159_v12 = vand.u32 2147483647, %v2158_v30  ;;  %vm2289_vm7 = vcmp.lt.s32.totalorder %v10930_v20, 0  ;;  %v11146_v46 = vand.u32 3, %v2172_v23  ;;  %vm11150_vm12 = vcmp.le.f32.partialorder %v2287_v32, 0.7853982 }
 0x3d3   :  { %v2350_v36 = vshll.u32 %v2349_v11, 30  ;;  %v2510_v13 = vsub.s32 32, %v2509_v6  ;;  %v14742_v35 = vand.u32 2147483647, %v10991_v56  ;;  %v2343_v2 = vadd.s32 %v11109_v63, %v11115_v50 }
 0x3d4   :  { %v2162_v53 = vmul.f32 %v2161_v7, %v2159_v12  ;;  %v2373_v25 = vsub.s32 4, %v2349_v11  ;;  %v2503_v19 = vor.u32 8388608, %v2502_v14  ;;  %v11158_v45 = vshrl.u32 %v2507_v27, 5 }
 0x3d5   :  { %v11156_v24 = vsub.s32 %v2347_v0, %v2350_v36  ;;  %v2513_v18 = vshrl.u32 %v14805_v33, %v2510_v13  ;;  %v2707_v49 = vshrl.u32 %v2706_v26, 23  ;;  %v2512_v62 = vshll.u32 %v14804_v43, %v2509_v6 }
 0x3d6   :  { %v2163_v32 = vxor.u32 2147483648, %v2162_v53  ;;  %v2516_v29 = vshrl.u32 %v14806_v58, %v2510_v13  ;;  %v2519_v60 = vshrl.u32 %v14807_v9, %v2510_v13  ;;  %v2515_v63 = vshll.u32 %v14805_v33, %v2509_v6 }
 0x3d7   :  { %v2353_v34 = vsub.s32 0, %v11156_v24  ;;  %v2518_v50 = vshll.u32 %v14806_v58, %v2509_v6  ;;  %v2522_v0 = vshrl.u32 %v14808_v39, %v2510_v13  ;;  %v2374_v47 = vsel %vm2289_vm7, %v2373_v25, %v2349_v11 }
 0x3d8   :  { %v2164_v41 = vsel %vm2081_vm8, %v2163_v32, %v2162_v53  ;;  %v2514_v23 = vor.u32 %v2513_v18, %v2512_v62  ;;  %v2521_v38 = vshll.u32 %v14807_v9, %v2509_v6  ;;  %v2517_v14 = vor.u32 %v2516_v29, %v2515_v63 }
 0x3d9   :  { %v2167_v3 = vsel %vm11121_vm1, %v10924_v44, %v2164_v41  ;;  %v7820_v30 = vmin.u32 %v2353_v34, %v11156_v24  ;;  %v2520_v27 = vor.u32 %v2519_v60, %v2518_v50  ;;  %v2524_v26 = vshll.u32 %v14808_v39, %v2509_v6 }
 0x3da   :  { %8393 = vcosq.f32 %v2167_v3  ;;  %v2523_v1 = vor.u32 %v2522_v0, %v2521_v38  ;;  %v2525_v12 = vshrl.u32 %v14809_v5, %v2510_v13  ;;  %v11179_v11 = vshll.u32 %v2503_v19, 8 }
 0x3db   :  { %8395 = vsinq.f32 %v2167_v3  ;;  %v2355_v7 = vclz %v7820_v30  ;;  %v7835_v36 = vadd.s32 4294967169, %v2707_v49  ;;  %v2376_v53 = vsel %vm11150_vm12, 0, %v2374_v47 }
 0x3dc   :  { %v2511_v59 = vshrl.u32 %v14804_v43, %v2510_v13  ;;  %v2526_v25 = vor.u32 %v2525_v12, %v2524_v26  ;;  %vm2527_vm9 = vcmp.lt.s32.totalorder %v11158_v45, 1  ;;  %vm2529_vm8 = vcmp.lt.s32.totalorder %v11158_v45, 3 }
 0x3dd   :  { %v7821_v18 = vadd.s32 4294967294, %v2355_v7  ;;  %vm2530_vm13 = vcmp.lt.s32.totalorder %v11158_v45, 4  ;;  %v2535_v6 = vsel %vm2527_vm9, %v2514_v23, %v2517_v14  ;;  %v2539_v29 = vsel %vm2527_vm9, %v2517_v14, %v2520_v27 }
 0x3de   :  { %v2532_v32 = vsel %vm2530_vm13, %v2520_v27, 2102212464  ;;  %v2536_v62 = vsel %vm2530_vm13, %v2523_v1, 920167782  ;;  %v2540_v19 = vsel %vm2530_vm13, %v2526_v25, 1326507024  ;;  %v2531_v34 = vsel %vm2527_vm9, %v2511_v59, %v2514_v23 }
 0x3df   :  { %vm7822_vm14 = vcmp.lt.s32.totalorder %v7821_v18, 0  ;;  %vm2528_vm10 = vcmp.lt.s32.totalorder %v11158_v45, 2  ;;  %v2537_v49 = vsel %vm2529_vm8, %v2520_v27, %v2536_v62  ;;  %v2541_v13 = vsel %vm2529_vm8, %v2523_v1, %v2540_v19 }
 0x3e0   :  { %vm2174_vm11 = vcmp.lt.s32.totalorder %v11146_v46, 2  ;;  %v2358_v60 = vsel %vm7822_vm14, 0, %v7821_v18  ;;  %v2538_v63 = vsel %vm2528_vm10, %v2535_v6, %v2537_v49  ;;  %v2542_v50 = vsel %vm2528_vm10, %v2539_v29, %v2541_v13  ;;  %v11220_v13 = vpop.f32.mrb[4].mxu0 }
 0x3e1   :  { %vm2171_vm15 = vweird.f32 %v10924_v44  ;;  %v2359_v0 = vsub.s32 32, %v2358_v60  ;;  %v2363_v41 = vsub.s32 4294967266, %v2358_v60  ;;  %v2533_v47 = vsel %vm2529_vm8, %v2517_v14, %v2532_v32 }
 0x3e2   :  { %v2713_v38 = vadd.s32 1, %v7835_v36  ;;  %v11201_v3 = vmul.u32.u64.low %v11179_v11, %v2542_v50  ;;  %v11202_v30 = vmul.u32.u64.high %v11179_v11, %v2542_v50, %v11201_v3  ;;  %v2360_v1 = vshll.u32 %v11156_v24, %v2358_v60  ;;  %v11222_v60 = vpop.f32.mrb[4].mxu1 }
 0x3e3   :  { %v11205_v23 = vmul.u32.u64.low %v11179_v11, %v2538_v63  ;;  %v11206_v27 = vmul.u32.u64.high %v11179_v11, %v2538_v63, %v11205_v23  ;;  %v2361_v26 = vshrl.u32 %v2343_v2, %v2359_v0  ;;  %v2364_v12 = vadd.s32 127, %v2363_v41 }
 0x3e4   :  { %vm2714_vm0 = vcmp.gt.s32.totalorder %v2713_v38, 0  ;;  %v8394_v7 = vpop.eup %8393  ;;  %vm2175_vm1 = vcmp.eq.s32.totalorder %v11146_v46, 0  ;;  %v2534_v14 = vsel %vm2528_vm10, %v2531_v34, %v2533_v47  ;;  %v2710_v36 = vand.u32 8388607, %v14742_v35 }
 0x3e5   :  { %v2715_v59 = vsel %vm2714_vm0, %v2713_v38, 0  ;;  %v8396_v25 = vpop.eup %8395  ;;  %vm2178_vm2 = vcmp.eq.s32.totalorder %v11146_v46, 2  ;;  %v2179_v18 = vxor.u32 2147483648, %v8394_v7  ;;  %v2362_v6 = vor.u32 %v2361_v26, %v2360_v1 }
 0x3e6   :  { %v2365_v32 = vshll.u32 %v2364_v12, 23  ;;  %v2176_v24 = vxor.u32 2147483648, %v8396_v25  ;;  %v2380_v2 = vadd.s32 3, %v2376_v53  ;;  %vm2552_vm3 = vc.u32 %v11202_v30, %v11205_v23 }
 0x3e7   :  { %v2553_v62 = vadd.s32 1, %v11206_v27  ;;  %v2180_v29 = vsel %vm2178_vm2, %v2179_v18, %v8396_v25  ;;  %v2550_v19 = vmul.u32 %v11179_v11, %v2534_v14  ;;  %v2717_v49 = vand.u32 31, %v2715_v59 }
 0x3e8   :  { %v2366_v45 = vor.u32 4788187, %v2365_v32  ;;  %v2177_v34 = vsel %vm2175_vm1, %v8394_v7, %v2176_v24  ;;  %v2369_v63 = vcvt.s32.f32 %v2362_v6  ;;  %v2711_v50 = vor.u32 8388608, %v2710_v36 }
 0x3e9   :  { %v2554_v53 = vsel %vm2552_vm3, %v2553_v62, %v11206_v27  ;;  %v2181_v0 = vsel %vm2174_vm11, %v2177_v34, %v2180_v29  ;;  %v2718_v38 = vsub.s32 32, %v2717_v49  ;;  %v11231_v3 = vand.u32 3, %v2380_v2 }
 0x3ea   :  { %v2367_v41 = vand.u32 2147483647, %v2366_v45  ;;  %v2555_v47 = vadd.s32 %v2554_v53, %v2550_v19  ;;  %v2182_v11 = vsel %vm2171_vm15, nan, %v2181_v0  ;;  %v2716_v1 = vshrl.u32 %v2715_v59, 5 }
 0x3eb   :  { %v2720_v26 = vshll.u32 %v14804_v43, %v2717_v49  ;;  %v2721_v14 = vshrl.u32 %v14805_v33, %v2718_v38  ;;  %v2723_v27 = vshll.u32 %v14805_v33, %v2717_v49  ;;  %4068 = vst [vmem:[#allocation13 + $0x68] sm:$0xff] %v2182_v11  ;;  %v2724_v46 = vshrl.u32 %v14806_v58, %v2718_v38 }
 0x3ec   :  { %v2370_v12 = vmul.f32 %v2369_v63, %v2367_v41  ;;  %v2556_v7 = vadd.s32 536870912, %v2555_v47  ;;  %v2726_v36 = vshll.u32 %v14806_v58, %v2717_v49  ;;  %v2727_v25 = vshrl.u32 %v14807_v9, %v2718_v38 }
 0x3ed   :  { %v2730_v44 = vshrl.u32 %v14808_v39, %v2718_v38  ;;  %v2722_v59 = vor.u32 %v2721_v14, %v2720_v26  ;;  %v2729_v32 = vshll.u32 %v14807_v9, %v2717_v49  ;;  %v2725_v24 = vor.u32 %v2724_v46, %v2723_v27 }
 0x3ee   :  { %v2371_v18 = vxor.u32 2147483648, %v2370_v12  ;;  %v2557_v6 = vshrl.u32 %v2556_v7, 30  ;;  %v2728_v2 = vor.u32 %v2727_v25, %v2726_v36  ;;  %v2732_v62 = vshll.u32 %v14808_v39, %v2717_v49 }
 0x3ef   :  { %v2733_v29 = vshrl.u32 %v14809_v5, %v2718_v38  ;;  %v2731_v34 = vor.u32 %v2730_v44, %v2729_v32  ;;  %v11245_v63 = vshll.u32 %v2711_v50, 8  ;;  %vm2735_vm5 = vcmp.lt.s32.totalorder %v2716_v1, 1 }
 0x3f0   :  { %v2372_v45 = vsel %vm2289_vm7, %v2371_v18, %v2370_v12  ;;  %v2558_v19 = vshll.u32 %v2557_v6, 30  ;;  %v2914_v41 = vand.u32 2139095040, %v11143_v42  ;;  %vm2736_vm4 = vcmp.lt.s32.totalorder %v2716_v1, 2 }
 0x3f1   :  { %v2375_v53 = vsel %vm11150_vm12, %v10930_v20, %v2372_v45  ;;  %v2734_v0 = vor.u32 %v2733_v29, %v2732_v62  ;;  %vm2738_vm6 = vcmp.lt.s32.totalorder %v2716_v1, 4  ;;  %v2719_v49 = vshrl.u32 %v14804_v43, %v2718_v38  ;;  %v11269_v29 = vpop.f32.mrb[5].mxu1 }
 0x3f2   :  { %8397 = vcosq.f32 %v2375_v53  ;;  %v11251_v11 = vsub.s32 %v2555_v47, %v2558_v19  ;;  %v2740_v26 = vsel %vm2738_vm6, %v2728_v2, 2102212464  ;;  %v2743_v50 = vsel %vm2735_vm5, %v2722_v59, %v2725_v24  ;;  %14930 = vst [vmem:[#allocation55_spill] sm:$0xff] %v11269_v29 }
 0x3f3   :  { %8399 = vsinq.f32 %v2375_v53  ;;  %v2581_v7 = vsub.s32 4, %v2557_v6  ;;  %vm2737_vm7 = vcmp.lt.s32.totalorder %v2716_v1, 3  ;;  %v2744_v52 = vsel %vm2738_vm6, %v2731_v34, 920167782 }
 0x3f4   :  { %v2561_v12 = vsub.s32 0, %v11251_v11  ;;  %v2739_v14 = vsel %vm2735_vm5, %v2719_v49, %v2722_v59  ;;  %v2745_v27 = vsel %vm2737_vm7, %v2728_v2, %v2744_v52  ;;  %v2747_v46 = vsel %vm2735_vm5, %v2725_v24, %v2728_v2  ;;  %v11267_v59 = vpop.f32.mrb[5].mxu0 }
 0x3f5   :  { %v2748_v47 = vsel %vm2738_vm6, %v2734_v0, 1326507024  ;;  %v2741_v25 = vsel %vm2737_vm7, %v2725_v24, %v2740_v26  ;;  %v2746_v44 = vsel %vm2736_vm4, %v2743_v50, %v2745_v27  ;;  %vm2497_vm12 = vcmp.lt.s32.totalorder %v10951_v16, 0  ;;  %14929 = vst [vmem:[#allocation54_spill] sm:$0xff] %v11267_v59  ;;  %v11279_v49 = vpop.f32.mrb[6].mxu0  ;;  %v14931_v26 = vld [vmem:[#allocation66_spill] sm:$0xff] }
 0x3f6   :  { %v7828_v36 = vmin.u32 %v2561_v12, %v11251_v11  ;;  %v2749_v38 = vsel %vm2737_vm7, %v2731_v34, %v2748_v47  ;;  %v11263_v32 = vmul.u32.u64.low %v11245_v63, %v2746_v44  ;;  %v11264_v62 = vmul.u32.u64.high %v11245_v63, %v2746_v44, %v11263_v32 }
 0x3f7   :  { %v2750_v18 = vsel %vm2736_vm4, %v2747_v46, %v2749_v38  ;;  %v2582_v24 = vsel %vm2497_vm12, %v2581_v7, %v2557_v6  ;;  %v14740_v45 = vand.u32 2147483647, %v11143_v42  ;;  %v2742_v19 = vsel %vm2736_vm4, %v2739_v14, %v2741_v25 }
 0x3f8   :  { %v2563_v2 = vclz %v7828_v36  ;;  %v11276_v34 = vmul.u32.u64.low %v11245_v63, %v2750_v18  ;;  %v11277_v53 = vmul.u32.u64.high %v11245_v63, %v2750_v18, %v11276_v34  ;;  %v2915_v0 = vshrl.u32 %v2914_v41, 23 }
 0x3f9   :  { %v11283_v50 = vadd.f32 %v14931_v26, %v10509_v21  ;;  %vm2382_vm9 = vcmp.lt.s32.totalorder %v11231_v3, 2  ;;  %vm11288_vm8 = vcmp.le.f32.partialorder %v2495_v40, 0.7853982  ;;  %vm2383_vm13 = vcmp.eq.s32.totalorder %v11231_v3, 0 }
 0x3fa   :  { %v7829_v1 = vadd.s32 4294967294, %v2563_v2  ;;  %vm2386_vm14 = vcmp.eq.s32.totalorder %v11231_v3, 2  ;;  %v2761_v41 = vadd.s32 1, %v11264_v62  ;;  %v7843_v12 = vadd.s32 4294967169, %v2915_v0 }
 0x3fb   :  { %v2551_v21 = vadd.s32 %v11205_v23, %v11202_v30  ;;  %v2584_v52 = vsel %vm11288_vm8, 0, %v2582_v24  ;;  %v2758_v40 = vmul.u32 %v11245_v63, %v2742_v19  ;;  %vm2760_vm11 = vc.u32 %v11277_v53, %v11263_v32 }
 0x3fc   :  { %v8398_v7 = vpop.eup %8397  ;;  %vm7830_vm10 = vcmp.lt.s32.totalorder %v7829_v1, 0  ;;  %v2918_v47 = vand.u32 8388607, %v14740_v45  ;;  %v3122_v30 = vand.u32 2139095040, %v11283_v50  ;;  %v2762_v63 = vsel %vm2760_vm11, %v2761_v41, %v11264_v62 }
 0x3fd   :  { %v8400_v14 = vpop.eup %8399  ;;  %v2387_v27 = vxor.u32 2147483648, %v8398_v7  ;;  %v2566_v46 = vsel %vm7830_vm10, 0, %v7829_v1  ;;  %v2921_v18 = vadd.s32 1, %v7843_v12  ;;  %v2763_v34 = vadd.s32 %v2762_v63, %v2758_v40  ;;  %v14934_v40 = vld [vmem:[#allocation67_spill] sm:$0xff] }
 0x3fe   :  { %v2384_v36 = vxor.u32 2147483648, %v8400_v14  ;;  %v2567_v25 = vsub.s32 32, %v2566_v46  ;;  %v2571_v44 = vsub.s32 4294967266, %v2566_v46  ;;  %v2568_v38 = vshll.u32 %v11251_v11, %v2566_v46 }
 0x3ff   :  { %v2388_v23 = vsel %vm2386_vm14, %v2387_v27, %v8400_v14  ;;  %vm2379_vm15 = vweird.f32 %v10930_v20  ;;  %vm2922_vm0 = vcmp.gt.s32.totalorder %v2921_v18, 0  ;;  %v2764_v27 = vadd.s32 536870912, %v2763_v34 }
 0x400   :  { %v2385_v2 = vsel %vm2383_vm13, %v8398_v7, %v2384_v36  ;;  %v2569_v24 = vshrl.u32 %v2551_v21, %v2567_v25  ;;  %v2572_v19 = vadd.s32 127, %v2571_v44  ;;  %v2588_v11 = vadd.s32 3, %v2584_v52  ;;  %v14935_v36 = vld [vmem:[#allocation68_spill] sm:$0xff] }
 0x401   :  { %v2389_v0 = vsel %vm2382_vm9, %v2385_v2, %v2388_v23  ;;  %v2923_v46 = vsel %vm2922_vm0, %v2921_v18, 0  ;;  %v14741_v62 = vand.u32 2147483647, %v11283_v50  ;;  %v2765_v12 = vshrl.u32 %v2764_v27, 30 }
 0x402   :  { %v2390_v1 = vsel %vm2379_vm15, nan, %v2389_v0  ;;  %v2570_v45 = vor.u32 %v2569_v24, %v2568_v38  ;;  %v2573_v14 = vshll.u32 %v2572_v19, 23  ;;  %v2919_v7 = vor.u32 8388608, %v2918_v47 }
 0x403   :  { %4070 = vst [vmem:[#allocation13 + $0x78] sm:$0xff] %v2390_v1  ;;  %v3123_v21 = vshrl.u32 %v3122_v30, 23  ;;  %v11317_v20 = vadd.f32 %v14934_v40, %v10513_v55  ;;  %v2925_v3 = vand.u32 31, %v2923_v46  ;;  %v11321_v25 = vadd.f32 %v14935_v36, %v10515_v61 }
 0x404   :  { %v2574_v41 = vor.u32 4788187, %v2573_v14  ;;  %v2577_v23 = vcvt.s32.f32 %v2570_v45  ;;  %v2766_v52 = vshll.u32 %v2765_v12, 30  ;;  %v11323_v38 = vand.u32 3, %v2588_v11  ;;  %v11344_v14 = vpop.f32.mrb[6].mxu1 }
 0x405   :  { %v11327_v63 = vadd.s32 %v11263_v32, %v11277_v53  ;;  %v2926_v47 = vsub.s32 32, %v2925_v3  ;;  %v11331_v30 = vand.u32 8388607, %v14741_v62  ;;  %v11335_v2 = vshll.u32 %v2919_v7, 8 }
 0x406   :  { %v2575_v44 = vand.u32 2147483647, %v2574_v41  ;;  %v11333_v18 = vsub.s32 %v2763_v34, %v2766_v52  ;;  %v7851_v61 = vadd.s32 4294967169, %v3123_v21  ;;  %v2924_v24 = vshrl.u32 %v2923_v46, 5 }
 0x407   :  { %v2928_v45 = vshll.u32 %v14804_v43, %v2925_v3  ;;  %v2929_v19 = vshrl.u32 %v14805_v33, %v2926_v47  ;;  %v2932_v0 = vshrl.u32 %v14806_v58, %v2926_v47  ;;  %vm2705_vm1 = vcmp.lt.s32.totalorder %v10991_v56, 0 }
 0x408   :  { %v2578_v55 = vmul.f32 %v2577_v23, %v2575_v44  ;;  %v2769_v53 = vsub.s32 0, %v11333_v18  ;;  %v2931_v1 = vshll.u32 %v14805_v33, %v2925_v3  ;;  %v2935_v34 = vshrl.u32 %v14807_v9, %v2926_v47 }
 0x409   :  { %v2930_v27 = vor.u32 %v2929_v19, %v2928_v45  ;;  %v2934_v11 = vshll.u32 %v14806_v58, %v2925_v3  ;;  %v2937_v46 = vshll.u32 %v14807_v9, %v2925_v3  ;;  %v2938_v41 = vshrl.u32 %v14808_v39, %v2926_v47 }
 0x40a   :  { %v2579_v32 = vxor.u32 2147483648, %v2578_v55  ;;  %v7836_v21 = vmin.u32 %v2769_v53, %v11333_v18  ;;  %v2933_v44 = vor.u32 %v2932_v0, %v2931_v1  ;;  %v2940_v23 = vshll.u32 %v14808_v39, %v2925_v3 }
 0x40b   :  { %v2936_v62 = vor.u32 %v2935_v34, %v2934_v11  ;;  %v2939_v45 = vor.u32 %v2938_v41, %v2937_v46  ;;  %v2941_v19 = vshrl.u32 %v14809_v5, %v2926_v47  ;;  %v2789_v29 = vsub.s32 4, %v2765_v12 }
 0x40c   :  { %v2580_v7 = vsel %vm2497_vm12, %v2579_v32, %v2578_v55  ;;  %v2771_v35 = vclz %v7836_v21  ;;  %v3129_v59 = vadd.s32 1, %v7851_v61  ;;  %v2927_v55 = vshrl.u32 %v14804_v43, %v2926_v47 }
 0x40d   :  { %v2583_v52 = vsel %vm11288_vm8, %v10951_v16, %v2580_v7  ;;  %v2942_v32 = vor.u32 %v2941_v19, %v2940_v23  ;;  %vm2943_vm2 = vcmp.lt.s32.totalorder %v2924_v24, 1  ;;  %v14936_v0 = vand.u32 2147483647, %v10991_v56 }
 0x40e   :  { %8401 = vcosq.f32 %v2583_v52  ;;  %v7837_v6 = vadd.s32 4294967294, %v2771_v35  ;;  %vm2945_vm5 = vcmp.lt.s32.totalorder %v2924_v24, 3  ;;  %vm2946_vm4 = vcmp.lt.s32.totalorder %v2924_v24, 4 }
 0x40f   :  { %8403 = vsinq.f32 %v2583_v52  ;;  %vm11360_vm3 = vcmp.le.f32.partialorder %v14936_v0, 0.7853982  ;;  %v2951_v53 = vsel %vm2943_vm2, %v2930_v27, %v2933_v44  ;;  %v2948_v1 = vsel %vm2946_vm4, %v2936_v62, 2102212464 }
 0x410   :  { %v2952_v34 = vsel %vm2946_vm4, %v2939_v45, 920167782  ;;  %v2955_v61 = vsel %vm2943_vm2, %v2933_v44, %v2936_v62  ;;  %v2956_v11 = vsel %vm2946_vm4, %v2942_v32, 1326507024  ;;  %vm7838_vm6 = vcmp.lt.s32.totalorder %v7837_v6, 0 }
 0x411   :  { %vm2944_vm7 = vcmp.lt.s32.totalorder %v2924_v24, 2  ;;  %v2953_v47 = vsel %vm2945_vm5, %v2936_v62, %v2952_v34  ;;  %v2957_v46 = vsel %vm2945_vm5, %v2939_v45, %v2956_v11  ;;  %v2774_v41 = vsel %vm7838_vm6, 0, %v7837_v6 }
 0x412   :  { %v2790_v7 = vsel %vm2705_vm1, %v2789_v29, %v2765_v12  ;;  %v2954_v35 = vsel %vm2944_vm7, %v2951_v53, %v2953_v47  ;;  %v2958_v21 = vsel %vm2944_vm7, %v2955_v61, %v2957_v46  ;;  %vm2590_vm12 = vcmp.lt.s32.totalorder %v11323_v38, 2 }
 0x413   :  { %v2775_v23 = vsub.s32 32, %v2774_v41  ;;  %v2779_v52 = vsub.s32 4294967266, %v2774_v41  ;;  %v2947_v19 = vsel %vm2943_vm2, %v2927_v55, %v2930_v27  ;;  %v2949_v32 = vsel %vm2945_vm5, %v2933_v44, %v2948_v1 }
 0x414   :  { %vm2587_vm9 = vweird.f32 %v10951_v16  ;;  %v11377_v62 = vmul.u32.u64.low %v11335_v2, %v2958_v21  ;;  %v11378_v45 = vmul.u32.u64.high %v11335_v2, %v2958_v21, %v11377_v62  ;;  %v2776_v0 = vshll.u32 %v11333_v18, %v2774_v41 }
 0x415   :  { %v11381_v29 = vmul.u32.u64.low %v11335_v2, %v2954_v35  ;;  %v11382_v12 = vmul.u32.u64.high %v11335_v2, %v2954_v35, %v11381_v29  ;;  %v2777_v6 = vshrl.u32 %v11327_v63, %v2775_v23  ;;  %v2780_v53 = vadd.s32 127, %v2779_v52 }
 0x416   :  { %vm3130_vm8 = vcmp.gt.s32.totalorder %v3129_v59, 0  ;;  %vm2591_vm13 = vcmp.eq.s32.totalorder %v11323_v38, 0  ;;  %v2950_v27 = vsel %vm2944_vm7, %v2947_v19, %v2949_v32  ;;  %v3127_v44 = vor.u32 8388608, %v11331_v30 }
 0x417   :  { %v3131_v55 = vsel %vm3130_vm8, %v3129_v59, 0  ;;  %vm2594_vm14 = vcmp.eq.s32.totalorder %v11323_v38, 2  ;;  %v2778_v34 = vor.u32 %v2777_v6, %v2776_v0  ;;  %v2781_v61 = vshll.u32 %v2780_v53, 23 }
 0x418   :  { %v8402_v1 = vpop.eup %8401  ;;  %v3133_v11 = vand.u32 31, %v3131_v55  ;;  %v2792_v63 = vsel %vm11360_vm3, 0, %v2790_v7  ;;  %vm2968_vm10 = vc.u32 %v11378_v45, %v11381_v29  ;;  %v2969_v18 = vadd.s32 1, %v11382_v12 }
 0x419   :  { %v8404_v47 = vpop.eup %8403  ;;  %v2595_v46 = vxor.u32 2147483648, %v8402_v1  ;;  %v2782_v41 = vor.u32 4788187, %v2781_v61  ;;  %v2966_v59 = vmul.u32 %v11335_v2, %v2950_v27  ;;  %v11398_v23 = vshll.u32 %v3127_v44, 8 }
 0x41a   :  { %v2592_v24 = vxor.u32 2147483648, %v8404_v47  ;;  %v3134_v30 = vsub.s32 32, %v3133_v11  ;;  %v2970_v21 = vsel %vm2968_vm10, %v2969_v18, %v11382_v12  ;;  %v14743_v52 = vand.u32 2147483647, %v11317_v20 }
 0x41b   :  { %v2596_v35 = vsel %vm2594_vm14, %v2595_v46, %v8404_v47  ;;  %v2783_v19 = vand.u32 2147483647, %v2782_v41  ;;  %v2785_v32 = vcvt.s32.f32 %v2778_v34  ;;  %v2971_v62 = vadd.s32 %v2970_v21, %v2966_v59 }
 0x41c   :  { %v2593_v7 = vsel %vm2591_vm13, %v8402_v1, %v2592_v24  ;;  %v2796_v6 = vadd.s32 3, %v2792_v63  ;;  %v3137_v2 = vshrl.u32 %v14805_v33, %v3134_v30  ;;  %v3140_v53 = vshrl.u32 %v14806_v58, %v3134_v30 }
 0x41d   :  { %v2597_v0 = vsel %vm2590_vm12, %v2593_v7, %v2596_v35  ;;  %v2786_v27 = vmul.f32 %v2785_v32, %v2783_v19  ;;  %v2972_v44 = vadd.s32 536870912, %v2971_v62  ;;  %v3132_v61 = vshrl.u32 %v3131_v55, 5 }
 0x41e   :  { %v2598_v12 = vsel %vm2587_vm9, nan, %v2597_v0  ;;  %vm2913_vm11 = vcmp.lt.s32.totalorder %v11143_v42, 0  ;;  %v3136_v1 = vshll.u32 %v14804_v43, %v3133_v11  ;;  %v3139_v34 = vshll.u32 %v14805_v33, %v3133_v11 }
 0x41f   :  { %v3143_v38 = vshrl.u32 %v14807_v9, %v3134_v30  ;;  %v3146_v47 = vshrl.u32 %v14808_v39, %v3134_v30  ;;  %4072 = vst [vmem:[#allocation13 + $0x88] sm:$0xff] %v2598_v12  ;;  %v2787_v46 = vxor.u32 2147483648, %v2786_v27  ;;  %v2973_v63 = vshrl.u32 %v2972_v44, 30 }
 0x420   :  { %v3142_v18 = vshll.u32 %v14806_v58, %v3133_v11  ;;  %v3145_v16 = vshll.u32 %v14807_v9, %v3133_v11  ;;  %v3138_v24 = vor.u32 %v3137_v2, %v3136_v1  ;;  %v3141_v41 = vor.u32 %v3140_v53, %v3139_v34 }
 0x421   :  { %v3148_v55 = vshll.u32 %v14808_v39, %v3133_v11  ;;  %v3149_v59 = vshrl.u32 %v14809_v5, %v3134_v30  ;;  %v2788_v35 = vsel %vm2705_vm1, %v2787_v46, %v2786_v27  ;;  %v11420_v21 = vand.u32 3, %v2796_v6 }
 0x422   :  { %v14939_v7 = vand.u32 2147483647, %v11143_v42  ;;  %v2974_v32 = vshll.u32 %v2973_v63, 30  ;;  %v3147_v0 = vor.u32 %v3146_v47, %v3145_v16  ;;  %v2791_v2 = vsel %vm11360_vm3, %v10991_v56, %v2788_v35 }
 0x423   :  { %v3144_v11 = vor.u32 %v3143_v38, %v3142_v18  ;;  %v3150_v53 = vor.u32 %v3149_v59, %v3148_v55  ;;  %v3330_v12 = vand.u32 2139095040, %v11317_v20  ;;  %8405 = vcosq.f32 %v2791_v2 }
 0x424   :  { %vm11424_vm15 = vcmp.le.f32.partialorder %v14939_v7, 0.7853982  ;;  %v11432_v27 = vsub.s32 %v2971_v62, %v2974_v32  ;;  %v2997_v6 = vsub.s32 4, %v2973_v63  ;;  %vm3151_vm0 = vcmp.lt.s32.totalorder %v3132_v61, 1 }
 0x425   :  { %8407 = vsinq.f32 %v2791_v2  ;;  %v3135_v44 = vshrl.u32 %v14804_v43, %v3134_v30  ;;  %vm3154_vm1 = vcmp.lt.s32.totalorder %v3132_v61, 4  ;;  %v3159_v1 = vsel %vm3151_vm0, %v3138_v24, %v3141_v41 }
 0x426   :  { %v2977_v34 = vsub.s32 0, %v11432_v27  ;;  %vm3152_vm2 = vcmp.lt.s32.totalorder %v3132_v61, 2  ;;  %vm3153_vm5 = vcmp.lt.s32.totalorder %v3132_v61, 3  ;;  %v3160_v3 = vsel %vm3154_vm1, %v3147_v0, 920167782 }
 0x427   :  { %v3156_v38 = vsel %vm3154_vm1, %v3144_v11, 2102212464  ;;  %v3161_v47 = vsel %vm3153_vm5, %v3144_v11, %v3160_v3  ;;  %v3163_v46 = vsel %vm3151_vm0, %v3141_v41, %v3144_v11  ;;  %v3164_v62 = vsel %vm3154_vm1, %v3150_v53, 1326507024 }
 0x428   :  { %v7844_v18 = vmin.u32 %v2977_v34, %v11432_v27  ;;  %v2998_v16 = vsel %vm2913_vm11, %v2997_v6, %v2973_v63  ;;  %v3162_v30 = vsel %vm3152_vm2, %v3159_v1, %v3161_v47  ;;  %v3165_v55 = vsel %vm3153_vm5, %v3147_v0, %v3164_v62 }
 0x429   :  { %v3166_v59 = vsel %vm3152_vm2, %v3163_v46, %v3165_v55  ;;  %v11446_v35 = vmul.u32.u64.low %v11398_v23, %v3162_v30  ;;  %v11447_v7 = vmul.u32.u64.high %v11398_v23, %v3162_v30, %v11446_v35  ;;  %v3331_v32 = vshrl.u32 %v3330_v12, 23 }
 0x42a   :  { %vm2798_vm3 = vcmp.lt.s32.totalorder %v11420_v21, 2  ;;  %v2979_v2 = vclz %v7844_v18  ;;  %v3155_v11 = vsel %vm3151_vm0, %v3135_v44, %v3138_v24  ;;  %v3157_v53 = vsel %vm3153_vm5, %v3141_v41, %v3156_v38 }
 0x42b   :  { %vm2795_vm4 = vweird.f32 %v10991_v56  ;;  %v3000_v63 = vsel %vm11424_vm15, 0, %v2998_v16  ;;  %v11456_v0 = vmul.u32.u64.low %v11398_v23, %v3166_v59  ;;  %v11457_v6 = vmul.u32.u64.high %v11398_v23, %v3166_v59, %v11456_v0 }
 0x42c   :  { %v7859_v1 = vadd.s32 4294967169, %v3331_v32  ;;  %vm2799_vm6 = vcmp.eq.s32.totalorder %v11420_v21, 0  ;;  %vm2802_vm7 = vcmp.eq.s32.totalorder %v11420_v21, 2  ;;  %v7845_v12 = vadd.s32 4294967294, %v2979_v2 }
 0x42d   :  { %v3538_v34 = vand.u32 2139095040, %v11321_v25  ;;  %v3158_v24 = vsel %vm3152_vm2, %v3155_v11, %v3157_v53  ;;  %v3177_v41 = vadd.s32 1, %v11447_v7  ;;  %v3334_v44 = vand.u32 8388607, %v14743_v52  ;;  %v8406_v38 = vpop.eup %8405 }
 0x42e   :  { %v3337_v3 = vadd.s32 1, %v7859_v1  ;;  %v2967_v47 = vadd.s32 %v11381_v29, %v11378_v45  ;;  %vm7846_vm12 = vcmp.lt.s32.totalorder %v7845_v12, 0  ;;  %v3004_v46 = vadd.s32 3, %v3000_v63 }
 0x42f   :  { %v14744_v62 = vand.u32 2147483647, %v11321_v25  ;;  %v8408_v18 = vpop.eup %8407  ;;  %v2803_v16 = vxor.u32 2147483648, %v8406_v38  ;;  %v2982_v30 = vsel %vm7846_vm12, 0, %v7845_v12  ;;  %vm3176_vm9 = vc.u32 %v11457_v6, %v11446_v35 }
 0x430   :  { %v3539_v61 = vshrl.u32 %v3538_v34, 23  ;;  %v2800_v55 = vxor.u32 2147483648, %v8408_v18  ;;  %v2983_v59 = vsub.s32 32, %v2982_v30  ;;  %v2987_v32 = vsub.s32 4294967266, %v2982_v30 }
 0x431   :  { %v3174_v2 = vmul.u32 %v11398_v23, %v3158_v24  ;;  %v2804_v11 = vsel %vm2802_vm7, %v2803_v16, %v8408_v18  ;;  %v2984_v45 = vshll.u32 %v11432_v27, %v2982_v30  ;;  %v3178_v29 = vsel %vm3176_vm9, %v3177_v41, %v11447_v7 }
 0x432   :  { %vm3338_vm8 = vcmp.gt.s32.totalorder %v3337_v3, 0  ;;  %v2801_v53 = vsel %vm2799_vm6, %v8406_v38, %v2800_v55  ;;  %v2985_v63 = vshrl.u32 %v2967_v47, %v2983_v59  ;;  %v2988_v0 = vadd.s32 127, %v2987_v32  ;;  %v14942_v38 = vld [vmem:[#allocation71_spill] sm:$0xff] }
 0x433   :  { %v3179_v1 = vadd.s32 %v3178_v29, %v3174_v2  ;;  %v2805_v12 = vsel %vm2798_vm3, %v2801_v53, %v2804_v11  ;;  %v3335_v34 = vor.u32 8388608, %v3334_v44  ;;  %v3339_v52 = vsel %vm3338_vm8, %v3337_v3, 0 }
 0x434   :  { %v7867_v23 = vadd.s32 4294967169, %v3539_v61  ;;  %v2806_v24 = vsel %vm2795_vm4, nan, %v2805_v12  ;;  %v2986_v18 = vor.u32 %v2985_v63, %v2984_v45  ;;  %v2989_v27 = vshll.u32 %v2988_v0, 23 }
 0x435   :  { %v3180_v16 = vadd.s32 536870912, %v3179_v1  ;;  %v3341_v7 = vand.u32 31, %v3339_v52  ;;  %v11483_v41 = vand.u32 8388607, %v14744_v62  ;;  %4074 = vst [vmem:[#allocation13 + $0x98] sm:$0xff] %v2806_v24  ;;  %v11487_v47 = vadd.f32 %v14942_v38, %v10517_v15 }
 0x436   :  { %v2990_v21 = vor.u32 4788187, %v2989_v27  ;;  %v11489_v3 = vand.u32 3, %v3004_v46  ;;  %v11491_v56 = vshll.u32 %v3335_v34, 8  ;;  %v3545_v61 = vadd.s32 1, %v7867_v23 }
 0x437   :  { %v3181_v44 = vshrl.u32 %v3180_v16, 30  ;;  %v3342_v30 = vsub.s32 32, %v3341_v7  ;;  %v2993_v59 = vcvt.s32.f32 %v2986_v18  ;;  %v11494_v32 = vadd.s32 %v11446_v35, %v11457_v6 }
 0x438   :  { %v2991_v55 = vand.u32 2147483647, %v2990_v21  ;;  %v3344_v63 = vshll.u32 %v14804_v43, %v3341_v7  ;;  %vm3121_vm13 = vcmp.lt.s32.totalorder %v11283_v50, 0  ;;  %v3340_v35 = vshrl.u32 %v3339_v52, 5 }
 0x439   :  { %v3182_v2 = vshll.u32 %v3181_v44, 30  ;;  %v3345_v11 = vshrl.u32 %v14805_v33, %v3342_v30  ;;  %v3348_v45 = vshrl.u32 %v14806_v58, %v3342_v30  ;;  %v3351_v15 = vshrl.u32 %v14807_v9, %v3342_v30 }
 0x43a   :  { %v2994_v46 = vmul.f32 %v2993_v59, %v2991_v55  ;;  %v3354_v0 = vshrl.u32 %v14808_v39, %v3342_v30  ;;  %v3347_v6 = vshll.u32 %v14805_v33, %v3341_v7  ;;  %v3350_v12 = vshll.u32 %v14806_v58, %v3341_v7 }
 0x43b   :  { %v11500_v53 = vsub.s32 %v3179_v1, %v3182_v2  ;;  %vm3546_vm14 = vcmp.gt.s32.totalorder %v3545_v61, 0  ;;  %v3346_v24 = vor.u32 %v3345_v11, %v3344_v63  ;;  %v3353_v18 = vshll.u32 %v14807_v9, %v3341_v7 }
 0x43c   :  { %v2995_v34 = vxor.u32 2147483648, %v2994_v46  ;;  %v3349_v1 = vor.u32 %v3348_v45, %v3347_v6  ;;  %v3352_v27 = vor.u32 %v3351_v15, %v3350_v12  ;;  %v3356_v16 = vshll.u32 %v14808_v39, %v3341_v7 }
 0x43d   :  { %v3185_v23 = vsub.s32 0, %v11500_v53  ;;  %v3357_v21 = vshrl.u32 %v14809_v5, %v3342_v30  ;;  %v14943_v55 = vand.u32 2147483647, %v11283_v50  ;;  %v3355_v11 = vor.u32 %v3354_v0, %v3353_v18 }
 0x43e   :  { %v2996_v52 = vsel %vm2913_vm11, %v2995_v34, %v2994_v46  ;;  %v3547_v63 = vsel %vm3546_vm14, %v3545_v61, 0  ;;  %v3205_v7 = vsub.s32 4, %v3181_v44  ;;  %v3343_v15 = vshrl.u32 %v14804_v43, %v3342_v30 }
 0x43f   :  { %vm11515_vm10 = vcmp.le.f32.partialorder %v14943_v55, 0.7853982  ;;  %v7852_v2 = vmin.u32 %v3185_v23, %v11500_v53  ;;  %v2999_v45 = vsel %vm11424_vm15, %v11143_v42, %v2996_v52  ;;  %v3358_v6 = vor.u32 %v3357_v21, %v3356_v16 }
 0x440   :  { %8409 = vcosq.f32 %v2999_v45  ;;  %vm3359_vm11 = vcmp.lt.s32.totalorder %v3340_v35, 1  ;;  %vm3362_vm0 = vcmp.lt.s32.totalorder %v3340_v35, 4  ;;  %vm3360_vm1 = vcmp.lt.s32.totalorder %v3340_v35, 2 }
 0x441   :  { %v3187_v46 = vclz %v7852_v2  ;;  %8411 = vsinq.f32 %v2999_v45  ;;  %v3364_v12 = vsel %vm3362_vm0, %v3352_v27, 2102212464  ;;  %v3367_v34 = vsel %vm3359_vm11, %v3346_v24, %v3349_v1 }
 0x442   :  { %vm3361_vm2 = vcmp.lt.s32.totalorder %v3340_v35, 3  ;;  %v3368_v0 = vsel %vm3362_vm0, %v3355_v11, 920167782  ;;  %v3371_v61 = vsel %vm3359_vm11, %v3349_v1, %v3352_v27  ;;  %v3363_v23 = vsel %vm3359_vm11, %v3343_v15, %v3346_v24 }
 0x443   :  { %v7853_v55 = vadd.s32 4294967294, %v3187_v46  ;;  %v3365_v18 = vsel %vm3361_vm2, %v3349_v1, %v3364_v12  ;;  %v3369_v19 = vsel %vm3361_vm2, %v3352_v27, %v3368_v0  ;;  %v3372_v52 = vsel %vm3362_vm0, %v3358_v6, 1326507024 }
 0x444   :  { %vm3010_vm15 = vcmp.eq.s32.totalorder %v11489_v3, 2  ;;  %v3206_v30 = vsel %vm3121_vm13, %v3205_v7, %v3181_v44  ;;  %v3370_v16 = vsel %vm3360_vm1, %v3367_v34, %v3369_v19  ;;  %v3373_v21 = vsel %vm3361_vm2, %v3355_v11, %v3372_v52 }
 0x445   :  { %vm7854_vm5 = vcmp.lt.s32.totalorder %v7853_v55, 0  ;;  %vm3007_vm3 = vcmp.eq.s32.totalorder %v11489_v3, 0  ;;  %v3374_v45 = vsel %vm3360_vm1, %v3371_v61, %v3373_v21  ;;  %vm3006_vm4 = vcmp.lt.s32.totalorder %v11489_v3, 2 }
 0x446   :  { %v3190_v2 = vsel %vm7854_vm5, 0, %v7853_v55  ;;  %v11531_v46 = vmul.u32.u64.low %v11491_v56, %v3370_v16  ;;  %v11532_v24 = vmul.u32.u64.high %v11491_v56, %v3370_v16, %v11531_v46  ;;  %v3366_v15 = vsel %vm3360_vm1, %v3363_v23, %v3365_v18 }
 0x447   :  { %v3191_v1 = vsub.s32 32, %v3190_v2  ;;  %v3195_v27 = vsub.s32 4294967266, %v3190_v2  ;;  %v3549_v44 = vand.u32 31, %v3547_v63  ;;  %vm3003_vm6 = vweird.f32 %v11143_v42 }
 0x448   :  { %v3208_v11 = vsel %vm11515_vm10, 0, %v3206_v30  ;;  %v11541_v7 = vmul.u32.u64.low %v11491_v56, %v3374_v45  ;;  %v11542_v6 = vmul.u32.u64.high %v11491_v56, %v3374_v45, %v11541_v7  ;;  %v11544_v12 = vshrl.u32 %v3547_v63, 5 }
 0x449   :  { %v3192_v34 = vshll.u32 %v11500_v53, %v3190_v2  ;;  %v3193_v55 = vshrl.u32 %v11494_v32, %v3191_v1  ;;  %v3196_v0 = vadd.s32 127, %v3195_v27  ;;  %v3550_v61 = vsub.s32 32, %v3549_v44 }
 0x44a   :  { %v3382_v35 = vmul.u32 %v11491_v56, %v3366_v15  ;;  %v3385_v23 = vadd.s32 1, %v11532_v24  ;;  %v3552_v18 = vshll.u32 %v14804_v43, %v3549_v44  ;;  %v3555_v19 = vshll.u32 %v14805_v33, %v3549_v44  ;;  %v8410_v52 = vpop.eup %8409 }
 0x44b   :  { %v3194_v30 = vor.u32 %v3193_v55, %v3192_v34  ;;  %v3197_v16 = vshll.u32 %v3196_v0, 23  ;;  %v3553_v63 = vshrl.u32 %v14805_v33, %v3550_v61  ;;  %v3558_v21 = vshll.u32 %v14806_v58, %v3549_v44  ;;  %v8412_v53 = vpop.eup %8411 }
 0x44c   :  { %v3011_v2 = vxor.u32 2147483648, %v8410_v52  ;;  %vm3384_vm7 = vc.u32 %v11542_v6, %v11531_v46  ;;  %v3556_v56 = vshrl.u32 %v14806_v58, %v3550_v61  ;;  %v3561_v32 = vshll.u32 %v14807_v9, %v3549_v44 }
 0x44d   :  { %v3008_v45 = vxor.u32 2147483648, %v8412_v53  ;;  %v3198_v1 = vor.u32 4788187, %v3197_v16  ;;  %v3201_v27 = vcvt.s32.f32 %v3194_v30  ;;  %v3386_v15 = vsel %vm3384_vm7, %v3385_v23, %v11532_v24 }
 0x44e   :  { %v3012_v7 = vsel %vm3010_vm15, %v3011_v2, %v8412_v53  ;;  %v3387_v34 = vadd.s32 %v3386_v15, %v3382_v35  ;;  %v3554_v55 = vor.u32 %v3553_v63, %v3552_v18  ;;  %v3557_v0 = vor.u32 %v3556_v56, %v3555_v19 }
 0x44f   :  { %v3009_v62 = vsel %vm3007_vm3, %v8410_v52, %v3008_v45  ;;  %v3199_v29 = vand.u32 2147483647, %v3198_v1  ;;  %v3559_v38 = vshrl.u32 %v14807_v9, %v3550_v61  ;;  %v3562_v36 = vshrl.u32 %v14808_v39, %v3550_v61 }
 0x450   :  { %v3013_v16 = vsel %vm3006_vm4, %v3009_v62, %v3012_v7  ;;  %v3388_v30 = vadd.s32 536870912, %v3387_v34  ;;  %v3564_v24 = vshll.u32 %v14808_v39, %v3549_v44  ;;  %v3565_v23 = vshrl.u32 %v14809_v5, %v3550_v61 }
 0x451   :  { %v3014_v35 = vsel %vm3003_vm6, nan, %v3013_v16  ;;  %v3202_v18 = vmul.f32 %v3201_v27, %v3199_v29  ;;  %v3560_v19 = vor.u32 %v3559_v38, %v3558_v21  ;;  %v3563_v63 = vor.u32 %v3562_v36, %v3561_v32 }
 0x452   :  { %v3212_v52 = vadd.s32 3, %v3208_v11  ;;  %v3389_v53 = vshrl.u32 %v3388_v30, 30  ;;  %vm3567_vm12 = vcmp.lt.s32.totalorder %v11544_v12, 1  ;;  %v14946_v2 = vor.u32 8388608, %v11483_v41  ;;  %4076 = vst [vmem:[#allocation13 + $0xa8] sm:$0xff] %v3014_v35 }
 0x453   :  { %v3203_v62 = vxor.u32 2147483648, %v3202_v18  ;;  %v3566_v3 = vor.u32 %v3565_v23, %v3564_v24  ;;  %vm3570_vm9 = vcmp.lt.s32.totalorder %v11544_v12, 4  ;;  %v3575_v44 = vsel %vm3567_vm12, %v3554_v55, %v3557_v0 }
 0x454   :  { %v3583_v56 = vshll.u32 %v14946_v2, 8  ;;  %v3390_v42 = vshll.u32 %v3389_v53, 30  ;;  %vm3568_vm8 = vcmp.lt.s32.totalorder %v11544_v12, 2  ;;  %vm3569_vm14 = vcmp.lt.s32.totalorder %v11544_v12, 3 }
 0x455   :  { %v3576_v36 = vsel %vm3570_vm9, %v3563_v63, 920167782  ;;  %v3204_v41 = vsel %vm3121_vm13, %v3203_v62, %v3202_v18  ;;  %v3551_v38 = vshrl.u32 %v14804_v43, %v3550_v61  ;;  %v3572_v29 = vsel %vm3570_vm9, %v3560_v19, 2102212464 }
 0x456   :  { %v3577_v11 = vsel %vm3569_vm14, %v3560_v19, %v3576_v36  ;;  %v3207_v21 = vsel %vm11515_vm10, %v11283_v50, %v3204_v41  ;;  %v11591_v32 = vsub.s32 %v3387_v34, %v3390_v42  ;;  %v3579_v1 = vsel %vm3567_vm12, %v3557_v0, %v3560_v19 }
 0x457   :  { %v3578_v45 = vsel %vm3568_vm8, %v3575_v44, %v3577_v11  ;;  %8413 = vcosq.f32 %v3207_v21  ;;  %v3413_v61 = vsub.s32 4, %v3389_v53  ;;  %v3571_v27 = vsel %vm3567_vm12, %v3551_v38, %v3554_v55 }
 0x458   :  { %v3580_v15 = vsel %vm3570_vm9, %v3566_v3, 1326507024  ;;  %8415 = vsinq.f32 %v3207_v21  ;;  %v3393_v59 = vsub.s32 0, %v11591_v32  ;;  %v3573_v7 = vsel %vm3569_vm14, %v3557_v0, %v3572_v29 }
 0x459   :  { %v3581_v34 = vsel %vm3569_vm14, %v3563_v63, %v3580_v15  ;;  %v11608_v30 = vmul.u32.u64.low %v3583_v56, %v3578_v45  ;;  %v11609_v24 = vmul.u32.u64.high %v3583_v56, %v3578_v45, %v11608_v30  ;;  %vm3329_vm13 = vcmp.lt.s32.totalorder %v11317_v20, 0 }
 0x45a   :  { %v3582_v16 = vsel %vm3568_vm8, %v3579_v1, %v3581_v34  ;;  %v7860_v55 = vmin.u32 %v3393_v59, %v11591_v32  ;;  %v3414_v18 = vsel %vm3329_vm13, %v3413_v61, %v3389_v53  ;;  %v3574_v0 = vsel %vm3568_vm8, %v3571_v27, %v3573_v7 }
 0x45b   :  { %v11613_v23 = vmul.u32.u64.low %v3583_v56, %v3582_v16  ;;  %v11614_v35 = vmul.u32.u64.high %v3583_v56, %v3582_v16, %v11613_v23  ;;  %v3746_v19 = vand.u32 2139095040, %v11487_v47  ;;  %v3213_v63 = vand.u32 3, %v3212_v52  ;;  %v14950_v52 = vld [vmem:[#allocation72_spill] sm:$0xff] }
 0x45c   :  { %v3395_v2 = vclz %v7860_v55  ;;  %v14947_v62 = vand.u32 2147483647, %v11317_v20  ;;  %v3593_v44 = vadd.s32 1, %v11609_v24  ;;  %v3743_v42 = vand.u32 2147483647, %v11487_v47 }
 0x45d   :  { %v3747_v36 = vshrl.u32 %v3746_v19, 23  ;;  %v3590_v53 = vmul.u32 %v3583_v56, %v3574_v0  ;;  %vm3592_vm11 = vc.u32 %v11614_v35, %v11608_v30  ;;  %v11634_v38 = vadd.f32 %v14950_v52, %v10521_v28 }
 0x45e   :  { %vm11623_vm10 = vcmp.le.f32.partialorder %v14947_v62, 0.7853982  ;;  %v7861_v41 = vadd.s32 4294967294, %v3395_v2  ;;  %vm3211_vm0 = vweird.f32 %v11283_v50  ;;  %v3594_v29 = vsel %vm3592_vm11, %v3593_v44, %v11609_v24 }
 0x45f   :  { %v3416_v12 = vsel %vm11623_vm10, 0, %v3414_v18  ;;  %v7875_v11 = vadd.s32 4294967169, %v3747_v36  ;;  %vm3215_vm1 = vcmp.eq.s32.totalorder %v3213_v63, 0  ;;  %vm3218_vm2 = vcmp.eq.s32.totalorder %v3213_v63, 2 }
 0x460   :  { %vm7862_vm15 = vcmp.lt.s32.totalorder %v7861_v41, 0  ;;  %v3595_v21 = vadd.s32 %v3594_v29, %v3590_v53  ;;  %v3383_v1 = vadd.s32 %v11531_v46, %v11542_v6  ;;  %v3420_v61 = vadd.s32 3, %v3416_v12 }
 0x461   :  { %v8414_v45 = vpop.eup %8413  ;;  %v3398_v56 = vsel %vm7862_vm15, 0, %v7861_v41  ;;  %v3753_v27 = vadd.s32 1, %v7875_v11  ;;  %v3750_v34 = vand.u32 8388607, %v3743_v42  ;;  %vm3214_vm3 = vcmp.lt.s32.totalorder %v3213_v63, 2 }
 0x462   :  { %v8416_v15 = vpop.eup %8415  ;;  %v3219_v59 = vxor.u32 2147483648, %v8414_v45  ;;  %v3399_v28 = vsub.s32 32, %v3398_v56  ;;  %v3403_v7 = vsub.s32 4294967266, %v3398_v56  ;;  %v3400_v24 = vshll.u32 %v11591_v32, %v3398_v56 }
 0x463   :  { %v3216_v16 = vxor.u32 2147483648, %v8416_v15  ;;  %v3596_v55 = vadd.s32 536870912, %v3595_v21  ;;  %vm3754_vm5 = vcmp.gt.s32.totalorder %v3753_v27, 0  ;;  %v3954_v41 = vand.u32 2139095040, %v11634_v38 }
 0x464   :  { %v3220_v23 = vsel %vm3218_vm2, %v3219_v59, %v8416_v15  ;;  %v3401_v18 = vshrl.u32 %v3383_v1, %v3399_v28  ;;  %v3404_v0 = vadd.s32 127, %v3403_v7  ;;  %v3755_v46 = vsel %vm3754_vm5, %v3753_v27, 0 }
 0x465   :  { %v3217_v6 = vsel %vm3215_vm1, %v8414_v45, %v3216_v16  ;;  %v11645_v19 = vshrl.u32 %v3596_v55, 30  ;;  %v3757_v2 = vand.u32 31, %v3755_v46  ;;  %v11651_v11 = vand.u32 3, %v3420_v61 }
 0x466   :  { %v3221_v62 = vsel %vm3214_vm3, %v3217_v6, %v3220_v23  ;;  %v3402_v44 = vor.u32 %v3401_v18, %v3400_v24  ;;  %v3405_v36 = vshll.u32 %v3404_v0, 23  ;;  %v3751_v1 = vor.u32 8388608, %v3750_v34 }
 0x467   :  { %v3222_v32 = vsel %vm3211_vm0, nan, %v3221_v62  ;;  %v3598_v12 = vshll.u32 %v11645_v19, 30  ;;  %v3758_v53 = vsub.s32 32, %v3757_v2  ;;  %v3591_v63 = vadd.s32 %v11608_v30, %v11614_v35 }
 0x468   :  { %v3406_v29 = vor.u32 4788187, %v3405_v36  ;;  %4078 = vst [vmem:[#allocation13 + $0xb8] sm:$0xff] %v3222_v32  ;;  %v14745_v27 = vand.u32 2147483647, %v11634_v38  ;;  %v3409_v59 = vcvt.s32.f32 %v3402_v44  ;;  %v3955_v28 = vshrl.u32 %v3954_v41, 23 }
 0x469   :  { %v11654_v45 = vsub.s32 %v3595_v21, %v3598_v12  ;;  %v3761_v56 = vshrl.u32 %v14805_v33, %v3758_v53  ;;  %v3764_v50 = vshrl.u32 %v14806_v58, %v3758_v53  ;;  %v3760_v61 = vshll.u32 %v14804_v43, %v3757_v2 }
 0x46a   :  { %v3407_v15 = vand.u32 2147483647, %v3406_v29  ;;  %v3763_v34 = vshll.u32 %v14805_v33, %v3757_v2  ;;  %v3767_v16 = vshrl.u32 %v14807_v9, %v3758_v53  ;;  %v3756_v35 = vshrl.u32 %v3755_v46, 5 }
 0x46b   :  { %v3601_v7 = vsub.s32 0, %v11654_v45  ;;  %v3769_v21 = vshll.u32 %v14807_v9, %v3757_v2  ;;  %v3770_v24 = vshrl.u32 %v14808_v39, %v3758_v53  ;;  %v3762_v23 = vor.u32 %v3761_v56, %v3760_v61 }
 0x46c   :  { %v3410_v30 = vmul.f32 %v3409_v59, %v3407_v15  ;;  %v3765_v18 = vor.u32 %v3764_v50, %v3763_v34  ;;  %v3766_v0 = vshll.u32 %v14806_v58, %v3757_v2  ;;  %v3772_v44 = vshll.u32 %v14808_v39, %v3757_v2 }
 0x46d   :  { %v7868_v55 = vmin.u32 %v3601_v7, %v11654_v45  ;;  %v3771_v62 = vor.u32 %v3770_v24, %v3769_v21  ;;  %v3773_v36 = vshrl.u32 %v14809_v5, %v3758_v53  ;;  %vm3537_vm4 = vcmp.lt.s32.totalorder %v11321_v25, 0 }
 0x46e   :  { %v3411_v6 = vxor.u32 2147483648, %v3410_v30  ;;  %v3768_v46 = vor.u32 %v3767_v16, %v3766_v0  ;;  %v11670_v32 = vshll.u32 %v3751_v1, 8  ;;  %v7883_v12 = vadd.s32 4294967169, %v3955_v28 }
 0x46f   :  { %v3603_v41 = vclz %v7868_v55  ;;  %v3759_v56 = vshrl.u32 %v14804_v43, %v3758_v53  ;;  %v3774_v15 = vor.u32 %v3773_v36, %v3772_v44  ;;  %vm3775_vm6 = vcmp.lt.s32.totalorder %v3756_v35, 1 }
 0x470   :  { %v3412_v29 = vsel %vm3329_vm13, %v3411_v6, %v3410_v30  ;;  %vm3776_vm7 = vcmp.lt.s32.totalorder %v3756_v35, 2  ;;  %vm3778_vm12 = vcmp.lt.s32.totalorder %v3756_v35, 4  ;;  %v14951_v50 = vand.u32 2147483647, %v11321_v25 }
 0x471   :  { %v3415_v2 = vsel %vm11623_vm10, %v11317_v20, %v3412_v29  ;;  %v7869_v59 = vadd.s32 4294967294, %v3603_v41  ;;  %vm3777_vm8 = vcmp.lt.s32.totalorder %v3756_v35, 3  ;;  %v3783_v28 = vsel %vm3775_vm6, %v3762_v23, %v3765_v18 }
 0x472   :  { %8417 = vcosq.f32 %v3415_v2  ;;  %vm11680_vm9 = vcmp.le.f32.partialorder %v14951_v50, 0.7853982  ;;  %v3784_v53 = vsel %vm3778_vm12, %v3771_v62, 920167782  ;;  %v3780_v3 = vsel %vm3778_vm12, %v3768_v46, 2102212464 }
 0x473   :  { %8419 = vsinq.f32 %v3415_v2  ;;  %vm7870_vm14 = vcmp.lt.s32.totalorder %v7869_v59, 0  ;;  %v3785_v7 = vsel %vm3777_vm8, %v3768_v46, %v3784_v53  ;;  %v3621_v34 = vsub.s32 4, %v11645_v19 }
 0x474   :  { %v3606_v61 = vsel %vm7870_vm14, 0, %v7869_v59  ;;  %v3786_v16 = vsel %vm3776_vm7, %v3783_v28, %v3785_v7  ;;  %v3787_v30 = vsel %vm3775_vm6, %v3765_v18, %v3768_v46  ;;  %v3779_v55 = vsel %vm3775_vm6, %v3759_v56, %v3762_v23 }
 0x475   :  { %v3607_v21 = vsub.s32 32, %v3606_v61  ;;  %v3611_v24 = vsub.s32 4294967266, %v3606_v61  ;;  %v3788_v0 = vsel %vm3778_vm12, %v3774_v15, 1326507024  ;;  %v3781_v6 = vsel %vm3777_vm8, %v3765_v18, %v3780_v3 }
 0x476   :  { %v3789_v44 = vsel %vm3777_vm8, %v3771_v62, %v3788_v0  ;;  %v11696_v36 = vmul.u32.u64.low %v11670_v32, %v3786_v16  ;;  %v11697_v41 = vmul.u32.u64.high %v11670_v32, %v3786_v16, %v11696_v36  ;;  %vm3423_vm13 = vcmp.eq.s32.totalorder %v11651_v11, 0 }
 0x477   :  { %v3608_v29 = vshll.u32 %v11654_v45, %v3606_v61  ;;  %v3609_v46 = vshrl.u32 %v3591_v63, %v3607_v21  ;;  %v3612_v2 = vadd.s32 127, %v3611_v24  ;;  %v3790_v59 = vsel %vm3776_vm7, %v3787_v30, %v3789_v44  ;;  %v14955_v61 = vld [vmem:[#allocation43_spill] sm:$0xff] }
 0x478   :  { %vm3422_vm10 = vcmp.lt.s32.totalorder %v11651_v11, 2  ;;  %v3622_v23 = vsel %vm3537_vm4, %v3621_v34, %v11645_v19  ;;  %v11708_v18 = vmul.u32.u64.low %v11670_v32, %v3790_v59  ;;  %v11709_v62 = vmul.u32.u64.high %v11670_v32, %v3790_v59, %v11708_v18  ;;  %v14954_v19 = vld [vmem:[#allocation44_spill] sm:$0xff] }
 0x479   :  { %v3961_v56 = vadd.s32 1, %v7883_v12  ;;  %vm3419_vm11 = vweird.f32 %v11317_v20  ;;  %vm3426_vm0 = vcmp.eq.s32.totalorder %v11651_v11, 2  ;;  %v3610_v45 = vor.u32 %v3609_v46, %v3608_v29 }
 0x47a   :  { %v3613_v63 = vshll.u32 %v3612_v2, 23  ;;  %v3782_v15 = vsel %vm3776_vm7, %v3779_v55, %v3781_v6  ;;  %v3801_v50 = vadd.s32 1, %v11697_v41  ;;  %v3958_v28 = vand.u32 8388607, %v14745_v27 }
 0x47b   :  { %vm3962_vm1 = vcmp.gt.s32.totalorder %v3961_v56, 0  ;;  %v4188_v53 = vmul.f32 %v14954_v19, %v11279_v49  ;;  %v3624_v12 = vsel %vm11680_vm9, 0, %v3622_v23  ;;  %v4186_v34 = vmul.f32 %v14955_v61, %v11220_v13 }
 0x47c   :  { %v3614_v3 = vor.u32 4788187, %v3613_v63  ;;  %v3963_v7 = vsel %vm3962_vm1, %v3961_v56, 0  ;;  %v8418_v16 = vpop.eup %8417  ;;  %v3617_v35 = vcvt.s32.f32 %v3610_v45  ;;  %v3798_v30 = vmul.u32 %v11670_v32, %v3782_v15 }
 0x47d   :  { %vm3800_vm2 = vc.u32 %v11709_v62, %v11696_v36  ;;  %v3965_v21 = vand.u32 31, %v3963_v7  ;;  %v8420_v24 = vpop.eup %8419  ;;  %v3427_v55 = vxor.u32 2147483648, %v8418_v16  ;;  %v11727_v6 = vadd.f32 %v4188_v53, %v4186_v34 }
 0x47e   :  { %v3615_v0 = vand.u32 2147483647, %v3614_v3  ;;  %v3802_v49 = vsel %vm3800_vm2, %v3801_v50, %v11697_v41  ;;  %v3424_v44 = vxor.u32 2147483648, %v8420_v24  ;;  %v3628_v29 = vadd.s32 3, %v3624_v12 }
 0x47f   :  { %v3803_v46 = vadd.s32 %v3802_v49, %v3798_v30  ;;  %v3966_v2 = vsub.s32 32, %v3965_v21  ;;  %v3428_v13 = vsel %vm3426_vm0, %v3427_v55, %v8420_v24  ;;  %v3959_v32 = vor.u32 8388608, %v3958_v28 }
 0x480   :  { %v3618_v59 = vmul.f32 %v3617_v35, %v3615_v0  ;;  %v11731_v23 = vshrl.u32 %v3963_v7, 5  ;;  %v3425_v18 = vsel %vm3423_vm13, %v8418_v16, %v3424_v44  ;;  %v3968_v45 = vshll.u32 %v14804_v43, %v3965_v21 }
 0x481   :  { %v3804_v56 = vadd.s32 536870912, %v3803_v46  ;;  %v3969_v41 = vshrl.u32 %v14805_v33, %v3966_v2  ;;  %v3429_v63 = vsel %vm3422_vm10, %v3425_v18, %v3428_v13  ;;  %v3972_v50 = vshrl.u32 %v14806_v58, %v3966_v2  ;;  %v14956_v18 = vld [vmem:[#allocation45_spill] sm:$0xff] }
 0x482   :  { %v3619_v15 = vxor.u32 2147483648, %v3618_v59  ;;  %v3975_v19 = vshrl.u32 %v14807_v9, %v3966_v2  ;;  %v3430_v28 = vsel %vm3419_vm11, nan, %v3429_v63  ;;  %v3971_v3 = vshll.u32 %v14805_v33, %v3965_v21 }
 0x483   :  { %v11743_v53 = vshrl.u32 %v3804_v56, 30  ;;  %v3974_v12 = vshll.u32 %v14806_v58, %v3965_v21  ;;  %v3970_v61 = vor.u32 %v3969_v41, %v3968_v45  ;;  %v3977_v11 = vshll.u32 %v14807_v9, %v3965_v21  ;;  %4080 = vst [vmem:[#allocation13 + $0xc8] sm:$0xff] %v3430_v28 }
 0x484   :  { %v3620_v7 = vsel %vm3537_vm4, %v3619_v15, %v3618_v59  ;;  %v3978_v34 = vshrl.u32 %v14808_v39, %v3966_v2  ;;  %v3973_v35 = vor.u32 %v3972_v50, %v3971_v3  ;;  %v3980_v55 = vshll.u32 %v14808_v39, %v3965_v21  ;;  %v14957_v21 = vld [vmem:[#allocation46_spill] sm:$0xff] }
 0x485   :  { %v3623_v20 = vsel %vm11680_vm9, %v11321_v25, %v3620_v7  ;;  %v3806_v16 = vshll.u32 %v11743_v53, 30  ;;  %v3976_v30 = vor.u32 %v3975_v19, %v3974_v12  ;;  %v3981_v0 = vshrl.u32 %v14809_v5, %v3966_v2 }
 0x486   :  { %8421 = vcosq.f32 %v3623_v20  ;;  %v3979_v24 = vor.u32 %v3978_v34, %v3977_v11  ;;  %v3629_v44 = vand.u32 3, %v3628_v29  ;;  %v3999_v59 = vshll.u32 %v3959_v32, 8 }
 0x487   :  { %8423 = vsinq.f32 %v3623_v20  ;;  %v11757_v49 = vsub.s32 %v3803_v46, %v3806_v16  ;;  %v3982_v13 = vor.u32 %v3981_v0, %v3980_v55  ;;  %v4204_v1 = vmul.f32 %v14956_v18, %v11222_v60 }
 0x488   :  { %vm3745_vm15 = vcmp.lt.s32.totalorder %v11487_v47, 0  ;;  %vm3983_vm5 = vcmp.lt.s32.totalorder %v11731_v23, 1  ;;  %vm3986_vm3 = vcmp.lt.s32.totalorder %v11731_v23, 4  ;;  %v4206_v45 = vmul.f32 %v14957_v21, %v11344_v14 }
 0x489   :  { %v3809_v56 = vsub.s32 0, %v11757_v49  ;;  %vm3985_vm4 = vcmp.lt.s32.totalorder %v11731_v23, 3  ;;  %v3988_v46 = vsel %vm3986_vm3, %v3976_v30, 2102212464  ;;  %v3991_v29 = vsel %vm3983_vm5, %v3970_v61, %v3973_v35 }
 0x48a   :  { %v3992_v32 = vsel %vm3986_vm3, %v3979_v24, 920167782  ;;  %v3967_v41 = vshrl.u32 %v14804_v43, %v3966_v2  ;;  %vm3984_vm6 = vcmp.lt.s32.totalorder %v11731_v23, 2  ;;  %vm3630_vm7 = vcmp.lt.s32.totalorder %v3629_v44, 2 }
 0x48b   :  { %v7876_v60 = vmin.u32 %v3809_v56, %v11757_v49  ;;  %v3993_v63 = vsel %vm3985_vm4, %v3976_v30, %v3992_v32  ;;  %v3995_v15 = vsel %vm3983_vm5, %v3973_v35, %v3976_v30  ;;  %v3996_v50 = vsel %vm3986_vm3, %v3982_v13, 1326507024 }
 0x48c   :  { %v3994_v14 = vsel %vm3984_vm6, %v3991_v29, %v3993_v63  ;;  %v4191_v19 = vrot.slane %v11727_v6, 4  ;;  %vm3627_vm12 = vweird.f32 %v11321_v25  ;;  %v3829_v2 = vsub.s32 4, %v11743_v53 }
 0x48d   :  { %v3811_v28 = vclz %v7876_v60  ;;  %v3987_v3 = vsel %vm3983_vm5, %v3967_v41, %v3970_v61  ;;  %v3989_v12 = vsel %vm3985_vm4, %v3973_v35, %v3988_v46  ;;  %v3997_v7 = vsel %vm3985_vm4, %v3979_v24, %v3996_v50 }
 0x48e   :  { %v11788_v11 = vmul.u32.u64.low %v3999_v59, %v3994_v14  ;;  %v11789_v34 = vmul.u32.u64.high %v3999_v59, %v3994_v14, %v11788_v11  ;;  %v4192_v20 = vadd.f32 %v4191_v19, %v11727_v6  ;;  %vm3631_vm9 = vcmp.eq.s32.totalorder %v3629_v44, 0 }
 0x48f   :  { %v7877_v16 = vadd.s32 4294967294, %v3811_v28  ;;  %v3998_v30 = vsel %vm3984_vm6, %v3995_v15, %v3997_v7  ;;  %v4208_v55 = vadd.f32 %v4206_v45, %v4204_v1  ;;  %vm3634_vm8 = vcmp.eq.s32.totalorder %v3629_v44, 2 }
 0x490   :  { %v8422_v0 = vpop.eup %8421  ;;  %v11794_v61 = vmul.u32.u64.low %v3999_v59, %v3998_v30  ;;  %v11795_v13 = vmul.u32.u64.high %v3999_v59, %v3998_v30, %v11794_v61  ;;  %v4193_v35 = vrot.slane %v4192_v20, 2  ;;  %v3799_v24 = vadd.s32 %v11696_v36, %v11709_v62 }
 0x491   :  { %v8424_v18 = vpop.eup %8423  ;;  %v3635_v56 = vxor.u32 2147483648, %v8422_v0  ;;  %vm7878_vm14 = vcmp.lt.s32.totalorder %v7877_v16, 0  ;;  %v3990_v6 = vsel %vm3984_vm6, %v3987_v3, %v3989_v12  ;;  %v3830_v1 = vsel %vm3745_vm15, %v3829_v2, %v11743_v53 }
 0x492   :  { %v3632_v21 = vxor.u32 2147483648, %v8424_v18  ;;  %v3814_v46 = vsel %vm7878_vm14, 0, %v7877_v16  ;;  %v4009_v45 = vadd.s32 1, %v11789_v34  ;;  %v4194_v41 = vadd.f32 %v4193_v35, %v4192_v20 }
 0x493   :  { %v3636_v29 = vsel %vm3634_vm8, %v3635_v56, %v8424_v18  ;;  %v3815_v32 = vsub.s32 32, %v3814_v46  ;;  %v3819_v60 = vsub.s32 4294967266, %v3814_v46  ;;  %v3816_v36 = vshll.u32 %v11757_v49, %v3814_v46 }
 0x494   :  { %v3633_v63 = vsel %vm3631_vm9, %v8422_v0, %v3632_v21  ;;  %v4006_v62 = vmul.u32 %v3999_v59, %v3990_v6  ;;  %vm4008_vm13 = vc.u32 %v11795_v13, %v11788_v11  ;;  %v4209_v28 = vrot.slane %v4208_v55, 4  ;;  %v14960_v21 = vld [vmem:[#allocation19_spill] sm:$0xff] }
 0x495   :  { %v3637_v23 = vsel %vm3630_vm7, %v3633_v63, %v3636_v29  ;;  %v3817_v14 = vshrl.u32 %v3799_v24, %v3815_v32  ;;  %v3820_v15 = vadd.s32 127, %v3819_v60  ;;  %v4010_v50 = vsel %vm4008_vm13, %v4009_v45, %v11789_v34  ;;  %v14962_v29 = vld [vmem:[#allocation20_spill] sm:$0xff]  ;;  %v14963_v63 = vld [vmem:[#allocation22_spill] sm:$0xff] }
 0x496   :  { %v3638_v53 = vsel %vm3627_vm12, nan, %v3637_v23  ;;  %v4011_v19 = vadd.s32 %v4010_v50, %v4006_v62  ;;  %vm11814_vm10 = vcmp.le.f32.partialorder %v3743_v42, 0.7853982  ;;  %v4195_v44 = vrot.slane %v4194_v41, 1  ;;  %v14964_v62 = vld [vmem:[#allocation23_spill] sm:$0xff] }
 0x497   :  { %v3818_v49 = vor.u32 %v3817_v14, %v3816_v36  ;;  %v3821_v59 = vshll.u32 %v3820_v15, 23  ;;  %4082 = vst [vmem:[#allocation13 + $0xd8] sm:$0xff] %v3638_v53  ;;  %v3832_v3 = vsel %vm11814_vm10, 0, %v3830_v1  ;;  %v4210_v25 = vadd.f32 %v4209_v28, %v4208_v55  ;;  %v14961_v1 = vld [vmem:[#allocation21_spill] sm:$0xff]  ;;  %v14965_v14 = vld [vmem:[#allocation24_spill] sm:$0xff] }
 0x498   :  { %v4012_v12 = vadd.s32 536870912, %v4011_v19  ;;  %v3836_v30 = vadd.s32 3, %v3832_v3  ;;  %v4196_v0 = vadd.f32 %v4195_v44, %v4194_v41  ;;  %vm3953_vm11 = vcmp.lt.s32.totalorder %v11634_v38, 0  ;;  %v14968_v44 = vld [vmem:[#allocation27_spill] sm:$0xff] }
 0x499   :  { %v3822_v7 = vor.u32 4788187, %v3821_v59  ;;  %v3825_v16 = vcvt.s32.f32 %v3818_v49  ;;  %v4211_v18 = vrot.slane %v4210_v25, 2  ;;  %v4007_v6 = vadd.s32 %v11788_v11, %v11795_v13  ;;  %v14967_v49 = vld [vmem:[#allocation26_spill] sm:$0xff] }
 0x49a   :  { %v4013_v34 = vshrl.u32 %v4012_v12, 30  ;;  %v11823_v24 = vand.u32 3, %v3836_v30  ;;  %v4222_v46 = vmul.f32 %v4196_v0, %v14960_v21  ;;  %v4224_v45 = vmul.f32 %v4196_v0, %v14961_v1  ;;  %v14971_v30 = vld [vmem:[#allocation30_spill] sm:$0xff] }
 0x49b   :  { %v3823_v20 = vand.u32 2147483647, %v3822_v7  ;;  %v4226_v32 = vmul.f32 %v4196_v0, %v14962_v29  ;;  %v4212_v60 = vadd.f32 %v4211_v18, %v4210_v25  ;;  %v4228_v36 = vmul.f32 %v4196_v0, %v14963_v63  ;;  %v14969_v7 = vld [vmem:[#allocation28_spill] sm:$0xff]  ;;  %v14984_v63 = vld [vmem:[#allocation47_spill] sm:$0xff] }
 0x49c   :  { %v4014_v61 = vshll.u32 %v4013_v34, 30  ;;  %v4230_v23 = vmul.f32 %v4196_v0, %v14964_v62  ;;  %v4232_v15 = vmul.f32 %v4196_v0, %v14965_v14  ;;  %v4037_v50 = vsub.s32 4, %v4013_v34  ;;  %v14973_v18 = vld [vmem:[#allocation32_spill] sm:$0xff]  ;;  %v14978_v14 = vld [vmem:[#allocation37_spill] sm:$0xff]  ;;  %v14979_v62 = vld [vmem:[#allocation38_spill] sm:$0xff] }
 0x49d   :  { %v3826_v42 = vmul.f32 %v3825_v16, %v3823_v20  ;;  %v4213_v53 = vrot.slane %v4212_v60, 1  ;;  %v4236_v59 = vmul.f32 %v4196_v0, %v14967_v49  ;;  %v4238_v3 = vmul.f32 %v4196_v0, %v14968_v44  ;;  %v14970_v20 = vld [vmem:[#allocation29_spill] sm:$0xff]  ;;  %v14985_v29 = vld [vmem:[#allocation48_spill] sm:$0xff] }
 0x49e   :  { %v11821_v35 = vsub.s32 %v4011_v19, %v4014_v61  ;;  %v14966_v19 = vld [vmem:[#allocation25_spill] sm:$0xff]  ;;  %v4240_v25 = vmul.f32 %v4196_v0, %v14969_v7  ;;  %v4242_v16 = vmul.f32 %v4196_v0, %v14970_v20  ;;  %v4244_v2 = vmul.f32 %v4196_v0, %v14971_v30  ;;  %v14972_v61 = vld [vmem:[#allocation31_spill] sm:$0xff] }
 0x49f   :  { %v3827_v56 = vxor.u32 2147483648, %v3826_v42  ;;  %v4234_v28 = vmul.f32 %v4196_v0, %v14966_v19  ;;  %v11849_v27 = vsel %vm3953_vm11, %v4037_v50, %v4013_v34  ;;  %v14974_v49 = vld [vmem:[#allocation33_spill] sm:$0xff]  ;;  %vm3842_vm0 = vcmp.eq.s32.totalorder %v11823_v24, 2  ;;  %v14976_v7 = vld [vmem:[#allocation35_spill] sm:$0xff]  ;;  %v14977_v19 = vld [vmem:[#allocation36_spill] sm:$0xff] }
 0x4a0   :  { %v4017_v55 = vsub.s32 0, %v11821_v35  ;;  %v4250_v44 = vmul.f32 %v4196_v0, %v14974_v49  ;;  %vm3839_vm1 = vcmp.eq.s32.totalorder %v11823_v24, 0  ;;  %v14981_v50 = vld [vmem:[#allocation40_spill] sm:$0xff]  ;;  %vm3835_vm5 = vweird.f32 %v11487_v47 }
 0x4a1   :  { %v3828_v41 = vsel %vm3745_vm15, %v3827_v56, %v3826_v42  ;;  %v4246_v42 = vmul.f32 %v4196_v0, %v14972_v61  ;;  %v4248_v56 = vmul.f32 %v4196_v0, %v14973_v18  ;;  %vm3838_vm15 = vcmp.lt.s32.totalorder %v11823_v24, 2 }
 0x4a2   :  { %v3831_v11 = vsel %vm11814_vm10, %v11487_v47, %v3828_v41  ;;  %v7884_v13 = vmin.u32 %v4017_v55, %v11821_v35  ;;  %v4214_v55 = vadd.f32 %v4213_v53, %v4212_v60  ;;  %v14980_v60 = vld [vmem:[#allocation39_spill] sm:$0xff]  ;;  %vm4043_vm7 = vweird.f32 %v11634_v38 }
 0x4a3   :  { %8425 = vcosq.f32 %v3831_v11 }
 0x4a4   :  { %8427 = vsinq.f32 %v3831_v11  ;;  %v4019_v12 = vclz %v7884_v13  ;;  %v14975_v11 = vld [vmem:[#allocation34_spill] sm:$0xff]  ;;  %v4254_v20 = vmul.f32 %v4214_v55, %v14976_v7  ;;  %v4256_v30 = vmul.f32 %v4214_v55, %v14977_v19 }
 0x4a5   :  { %v4252_v13 = vmul.f32 %v4196_v0, %v14975_v11  ;;  %v4258_v61 = vmul.f32 %v4214_v55, %v14978_v14  ;;  %v4260_v18 = vmul.f32 %v4214_v55, %v14979_v62  ;;  %v4262_v34 = vmul.f32 %v4214_v55, %v14980_v60  ;;  %v14983_v11 = vld [vmem:[#allocation42_spill] sm:$0xff]  ;;  %v14986_v60 = vld [vmem:[#allocation49_spill] sm:$0xff] }
 0x4a6   :  { %v7885_v41 = vadd.s32 4294967294, %v4019_v12  ;;  %v4264_v53 = vmul.f32 %v4214_v55, %v14981_v50  ;;  %v14982_v12 = vld [vmem:[#allocation41_spill] sm:$0xff]  ;;  %v4268_v7 = vmul.f32 %v4214_v55, %v14983_v11  ;;  %v4270_v19 = vmul.f32 %v4214_v55, %v14984_v63  ;;  %v14987_v50 = vld [vmem:[#allocation50_spill] sm:$0xff] }
 0x4a7   :  { %v4266_v49 = vmul.f32 %v4214_v55, %v14982_v12  ;;  %v4272_v14 = vmul.f32 %v4214_v55, %v14985_v29  ;;  %v4274_v52 = vmul.f32 %v4214_v55, %v14986_v60  ;;  %v4276_v40 = vmul.f32 %v4214_v55, %v14987_v50  ;;  %v14988_v12 = vld [vmem:[#allocation51_spill] sm:$0xff] }
 0x4a8   :  { %vm7886_vm2 = vcmp.lt.s32.totalorder %v7885_v41, 0  ;;  %v4278_v26 = vmul.f32 %v4214_v55, %v14988_v12  ;;  %v4282_v11 = vmul.f32 %v4214_v55, %v14897_v10  ;;  %v4284_v29 = vmul.f32 %v4214_v55, %v14898_v4 }
 0x4a9   :  { %v4022_v0 = vsel %vm7886_vm2, 0, %v7885_v41  ;;  %v4280_v41 = vmul.f32 %v4214_v55, %v14989_v17  ;;  %v4286_v54 = vadd.f32 %v4254_v20, %v4222_v46  ;;  %v4288_v48 = vadd.f32 %v4256_v30, %v4224_v45 }
 0x4aa   :  { %v4023_v62 = vsub.s32 32, %v4022_v0  ;;  %v4024_v1 = vshll.u32 %v11821_v35, %v4022_v0  ;;  %v4027_v21 = vsub.s32 4294967266, %v4022_v0  ;;  %v4290_v51 = vadd.f32 %v4258_v61, %v4226_v32 }
 0x4ab   :  { %v11874_v35 = vadd.f32 %v4260_v18, %v4228_v36  ;;  %v11876_v0 = vadd.f32 %v4262_v34, %v4230_v23  ;;  %v11878_v5 = vadd.f32 %v4264_v53, %v4232_v15  ;;  %v11880_v10 = vadd.f32 %v4266_v49, %v4234_v28 }
 0x4ac   :  { %v4025_v8 = vshrl.u32 %v4007_v6, %v4023_v62  ;;  %v4028_v63 = vadd.s32 127, %v4027_v21  ;;  %v11882_v6 = vadd.f32 %v4268_v7, %v4236_v59  ;;  %v11884_v21 = vadd.f32 %v4270_v19, %v4238_v3  ;;  %v14991_v3 = vld [vmem:[#allocation57_spill] sm:$0xff] }
 0x4ad   :  { %v8426_v31 = vpop.eup %8425  ;;  %v11888_v36 = vadd.f32 %v4272_v14, %v4240_v25  ;;  %v11896_v62 = vadd.f32 %v4278_v26, %v4246_v42  ;;  %v11900_v19 = vadd.f32 %v4280_v41, %v4248_v56  ;;  %v11902_v28 = vadd.f32 %v4282_v11, %v4250_v44 }
 0x4ae   :  { %v8428_v60 = vpop.eup %8427  ;;  %v3843_v50 = vxor.u32 2147483648, %v8426_v31  ;;  %v4026_v37 = vor.u32 %v4025_v8, %v4024_v1  ;;  %v4029_v12 = vshll.u32 %v4028_v63, 23  ;;  %v11892_v1 = vadd.f32 %v4274_v52, %v4242_v16 }
 0x4af   :  { %v3840_v17 = vxor.u32 2147483648, %v8428_v60  ;;  %v11894_v63 = vadd.f32 %v4276_v40, %v4244_v2  ;;  %v11906_v14 = vadd.f32 %v4284_v29, %v4252_v13  ;;  %v11911_v26 = vadd.f32 %v4286_v54, %v14900_v57 }
 0x4b0   :  { %v3844_v46 = vsel %vm3842_vm0, %v3843_v50, %v8428_v60  ;;  %v4030_v45 = vor.u32 4788187, %v4029_v12  ;;  %v4033_v32 = vcvt.s32.f32 %v4026_v37  ;;  %v11915_v24 = vadd.f32 %v4288_v48, %v14901_v22 }
 0x4b1   :  { %v3841_v8 = vsel %vm3839_vm1, %v8426_v31, %v3840_v17  ;;  %v14990_v31 = vand.u32 2147483647, %v11634_v38  ;;  %v4350_v29 = vand.u32 2147483647, %v11911_v26  ;;  %v4353_v59 = vand.u32 2139095040, %v11911_v26 }
 0x4b2   :  { %v3845_v23 = vsel %vm3838_vm15, %v3841_v8, %v3844_v46  ;;  %v4031_v15 = vand.u32 2147483647, %v4030_v45  ;;  %v11923_v7 = vadd.f32 %v4290_v51, %v14991_v3  ;;  %v4561_v25 = vand.u32 2139095040, %v11915_v24 }
 0x4b3   :  { %v3846_v37 = vsel %vm3835_vm5, nan, %v3845_v23  ;;  %vm3952_vm3 = vcmp.le.f32.partialorder %v14990_v31, 0.7853982  ;;  %v4354_v54 = vshrl.u32 %v4353_v59, 23  ;;  %v4357_v48 = vand.u32 8388607, %v4350_v29 }
 0x4b4   :  { %v4034_v17 = vmul.f32 %v4033_v32, %v4031_v15  ;;  %4084 = vst [vmem:[#allocation13 + $0xe8] sm:$0xff] %v3846_v37  ;;  %v4040_v40 = vsel %vm3952_vm3, 0, %v11849_v27  ;;  %v4558_v27 = vand.u32 2147483647, %v11915_v24  ;;  %v4562_v30 = vshrl.u32 %v4561_v25, 23 }
 0x4b5   :  { %v4044_v49 = vadd.s32 3, %v4040_v40  ;;  %v7899_v16 = vadd.s32 4294967169, %v4354_v54  ;;  %v4769_v2 = vand.u32 2139095040, %v11923_v7  ;;  %v4358_v42 = vor.u32 8388608, %v4357_v48 }
 0x4b6   :  { %v4035_v52 = vxor.u32 2147483648, %v4034_v17  ;;  %v11932_v51 = vand.u32 8388607, %v4558_v27  ;;  %v7907_v18 = vadd.s32 4294967169, %v4562_v30  ;;  %v14750_v56 = vand.u32 2147483647, %v11923_v7 }
 0x4b7   :  { %v4045_v20 = vand.u32 3, %v4044_v49  ;;  %v4360_v61 = vadd.s32 1, %v7899_v16  ;;  %v4770_v55 = vshrl.u32 %v4769_v2, 23  ;;  %v11937_v12 = vshll.u32 %v4358_v42, 8 }
 0x4b8   :  { %v4036_v47 = vsel %vm3953_vm11, %v4035_v52, %v4034_v17  ;;  %v4568_v13 = vadd.s32 1, %v7907_v18  ;;  %v4566_v53 = vor.u32 8388608, %v11932_v51  ;;  %v11941_v41 = vand.u32 8388607, %v14750_v56 }
 0x4b9   :  { %v4039_v44 = vsel %vm3952_vm3, %v11634_v38, %v4036_v47  ;;  %vm4046_vm4 = vcmp.lt.s32.totalorder %v4045_v20, 2  ;;  %vm4361_vm6 = vcmp.gt.s32.totalorder %v4360_v61, 0  ;;  %vm4047_vm12 = vcmp.eq.s32.totalorder %v4045_v20, 0 }
 0x4ba   :  { %8429 = vcosq.f32 %v4039_v44  ;;  %v4362_v11 = vsel %vm4361_vm6, %v4360_v61, 0  ;;  %v7915_v60 = vadd.s32 4294967169, %v4770_v55  ;;  %vm4050_vm9 = vcmp.eq.s32.totalorder %v4045_v20, 2 }
 0x4bb   :  { %8431 = vsinq.f32 %v4039_v44  ;;  %v4363_v34 = vshrl.u32 %v4362_v11, 5  ;;  %v4364_v50 = vand.u32 31, %v4362_v11  ;;  %vm4569_vm8 = vcmp.gt.s32.totalorder %v4568_v13, 0 }
 0x4bc   :  { %v11943_v46 = vadd.s32 1, %v7915_v60  ;;  %v14992_v25 = vmov 1326507024   ;;  %vm4352_vm6 = vcmp.lt.s32.totalorder %v11911_v26, 0 }
 0x4bd   :  { %v4365_v32 = vsub.s32 32, %v4364_v50  ;;  %v4367_v8 = vshll.u32 %v14804_v43, %v4364_v50  ;;  %v4370_v23 = vshll.u32 %v14805_v33, %v4364_v50  ;;  %v4373_v15 = vshll.u32 %v14806_v58, %v4364_v50 }
 0x4be   :  { %v4376_v17 = vshll.u32 %v14807_v9, %v4364_v50  ;;  %v4379_v40 = vshll.u32 %v14808_v39, %v4364_v50  ;;  %vm4382_vm14 = vcmp.lt.s32.totalorder %v4363_v34, 1  ;;  %vm4383_vm13 = vcmp.lt.s32.totalorder %v4363_v34, 2 }
 0x4bf   :  { %v4366_v47 = vshrl.u32 %v14804_v43, %v4365_v32  ;;  %v4368_v49 = vshrl.u32 %v14805_v33, %v4365_v32  ;;  %v4371_v59 = vshrl.u32 %v14806_v58, %v4365_v32  ;;  %v4374_v54 = vshrl.u32 %v14807_v9, %v4365_v32 }
 0x4c0   :  { %v4377_v48 = vshrl.u32 %v14808_v39, %v4365_v32  ;;  %v4380_v16 = vshrl.u32 %v14992_v25, %v4365_v32  ;;  %vm4384_vm10 = vcmp.lt.s32.totalorder %v4363_v34, 3  ;;  %vm4385_vm11 = vcmp.lt.s32.totalorder %v4363_v34, 4 }
 0x4c1   :  { %v4369_v2 = vor.u32 %v4368_v49, %v4367_v8  ;;  %v4372_v61 = vor.u32 %v4371_v59, %v4370_v23  ;;  %v4375_v42 = vor.u32 %v4374_v54, %v4373_v15  ;;  %v4570_v15 = vsel %vm4569_vm8, %v4568_v13, 0 }
 0x4c2   :  { %v4378_v18 = vor.u32 %v4377_v48, %v4376_v17  ;;  %v4381_v55 = vor.u32 %v4380_v16, %v4379_v40  ;;  %v4571_v17 = vshrl.u32 %v4570_v15, 5  ;;  %v4572_v54 = vand.u32 31, %v4570_v15  ;;  %v14993_v48 = vld [vmem:[#allocation58_spill] sm:$0xff] }
 0x4c3   :  { %v4386_v60 = vsel %vm4382_vm14, %v4366_v47, %v4369_v2  ;;  %v4387_v50 = vsel %vm4385_vm11, %v4375_v42, 2102212464  ;;  %v4390_v32 = vsel %vm4382_vm14, %v4369_v2, %v4372_v61  ;;  %v4394_v8 = vsel %vm4382_vm14, %v4372_v61, %v4375_v42 }
 0x4c4   :  { %v8430_v45 = vpop.eup %8429  ;;  %v4388_v23 = vsel %vm4384_vm10, %v4372_v61, %v4387_v50  ;;  %v11979_v13 = vadd.f32 %v11874_v35, %v14993_v48  ;;  %v11981_v16 = vshll.u32 %v4566_v53, 8  ;;  %vm4777_vm0 = vcmp.gt.s32.totalorder %v11943_v46, 0 }
 0x4c5   :  { %v8432_v37 = vpop.eup %8431  ;;  %v4051_v31 = vxor.u32 2147483648, %v8430_v45  ;;  %v4389_v40 = vsel %vm4383_vm13, %v4386_v60, %v4388_v23  ;;  %v4573_v2 = vsub.s32 32, %v4572_v54  ;;  %vm4590_vm1 = vcmp.lt.s32.totalorder %v4571_v17, 1 }
 0x4c6   :  { %v4048_v52 = vxor.u32 2147483648, %v8432_v37  ;;  %v4405_v34 = vmul.u32 %v11937_v12, %v4389_v40  ;;  %vm4592_vm2 = vcmp.lt.s32.totalorder %v4571_v17, 3  ;;  %v4581_v35 = vshll.u32 %v14806_v58, %v4572_v54 }
 0x4c7   :  { %v4052_v44 = vsel %vm4050_vm9, %v4051_v31, %v8432_v37  ;;  %v4395_v37 = vsel %vm4385_vm11, %v4381_v55, 1326507024  ;;  %v4576_v53 = vshrl.u32 %v14805_v33, %v4573_v2  ;;  %v4579_v55 = vshrl.u32 %v14806_v58, %v4573_v2 }
 0x4c8   :  { %v4049_v30 = vsel %vm4047_vm12, %v8430_v45, %v4048_v52  ;;  %v4391_v45 = vsel %vm4385_vm11, %v4378_v18, 920167782  ;;  %v4396_v38 = vsel %vm4384_vm10, %v4378_v18, %v4395_v37  ;;  %v4585_v60 = vshrl.u32 %v14808_v39, %v4573_v2 }
 0x4c9   :  { %v4053_v51 = vsel %vm4046_vm4, %v4049_v30, %v4052_v44  ;;  %v4392_v20 = vsel %vm4384_vm10, %v4375_v42, %v4391_v45  ;;  %v4397_v52 = vsel %vm4383_vm13, %v4394_v8, %v4396_v38  ;;  %v4774_v30 = vor.u32 8388608, %v11941_v41 }
 0x4ca   :  { %v4054_v11 = vsel %vm4043_vm7, nan, %v4053_v51  ;;  %v4393_v31 = vsel %vm4383_vm13, %v4390_v32, %v4392_v20  ;;  %v11974_v59 = vmul.u32.u64.low %v11937_v12, %v4397_v52  ;;  %v11975_v44 = vmul.u32.u64.high %v11937_v12, %v4397_v52, %v11974_v59 }
 0x4cb   :  { %4086 = vst [vmem:[#allocation13 + $0xf8] sm:$0xff] %v4054_v11  ;;  %v11969_v47 = vmul.u32.u64.low %v11937_v12, %v4393_v31  ;;  %v11970_v49 = vmul.u32.u64.high %v11937_v12, %v4393_v31, %v11969_v47  ;;  %v4575_v51 = vshll.u32 %v14804_v43, %v4572_v54  ;;  %v4578_v42 = vshll.u32 %v14805_v33, %v4572_v54 }
 0x4cc   :  { %v4584_v41 = vshll.u32 %v14807_v9, %v4572_v54  ;;  %v4778_v12 = vsel %vm4777_vm0, %v11943_v46, 0  ;;  %v4582_v11 = vshrl.u32 %v14807_v9, %v4573_v2  ;;  %v4587_v45 = vshll.u32 %v14808_v39, %v4572_v54 }
 0x4cd   :  { %v4408_v61 = vadd.s32 1, %v11970_v49  ;;  %vm4407_vm15 = vc.u32 %v11975_v44, %v11969_v47  ;;  %v4577_v32 = vor.u32 %v4576_v53, %v4575_v51  ;;  %v4588_v8 = vshrl.u32 %v14992_v25, %v4573_v2 }
 0x4ce   :  { %v4580_v23 = vor.u32 %v4579_v55, %v4578_v42  ;;  %v4583_v20 = vor.u32 %v4582_v11, %v4581_v35  ;;  %v4586_v37 = vor.u32 %v4585_v60, %v4584_v41  ;;  %vm4593_vm5 = vcmp.lt.s32.totalorder %v4571_v17, 4 }
 0x4cf   :  { %v4409_v18 = vsel %vm4407_vm15, %v4408_v61, %v11970_v49  ;;  %v4574_v46 = vshrl.u32 %v14804_v43, %v4573_v2  ;;  %v4589_v31 = vor.u32 %v4588_v8, %v4587_v45  ;;  %v4780_v38 = vand.u32 31, %v4778_v12 }
 0x4d0   :  { %v4410_v50 = vadd.s32 %v4409_v18, %v4405_v34  ;;  %v4595_v40 = vsel %vm4593_vm5, %v4583_v20, 2102212464  ;;  %v4598_v52 = vsel %vm4590_vm1, %v4577_v32, %v4580_v23  ;;  %v4599_v49 = vsel %vm4593_vm5, %v4586_v37, 920167782 }
 0x4d1   :  { %v4602_v59 = vsel %vm4590_vm1, %v4580_v23, %v4583_v20  ;;  %vm4591_vm3 = vcmp.lt.s32.totalorder %v4571_v17, 2  ;;  %v4600_v54 = vsel %vm4592_vm2, %v4583_v20, %v4599_v49  ;;  %v4603_v61 = vsel %vm4593_vm5, %v4589_v31, 1326507024 }
 0x4d2   :  { %v4411_v15 = vadd.s32 536870912, %v4410_v50  ;;  %v4594_v51 = vsel %vm4590_vm1, %v4574_v46, %v4577_v32  ;;  %v4601_v42 = vsel %vm4591_vm3, %v4598_v52, %v4600_v54  ;;  %v4604_v35 = vsel %vm4592_vm2, %v4586_v37, %v4603_v61 }
 0x4d3   :  { %v4977_v2 = vand.u32 2139095040, %v11979_v13  ;;  %v4596_v41 = vsel %vm4592_vm2, %v4580_v23, %v4595_v40  ;;  %v4605_v18 = vsel %vm4591_vm3, %v4602_v59, %v4604_v35  ;;  %v4781_v55 = vsub.s32 32, %v4780_v38 }
 0x4d4   :  { %v12004_v34 = vshrl.u32 %v4411_v15, 30  ;;  %v12013_v11 = vmul.u32.u64.low %v11981_v16, %v4605_v18  ;;  %v12014_v60 = vmul.u32.u64.high %v11981_v16, %v4605_v18, %v12013_v11  ;;  %v4597_v20 = vsel %vm4591_vm3, %v4594_v51, %v4596_v41 }
 0x4d5   :  { %v12017_v45 = vmul.u32.u64.low %v11981_v16, %v4601_v42  ;;  %v12018_v8 = vmul.u32.u64.high %v11981_v16, %v4601_v42, %v12017_v45  ;;  %v12023_v37 = vshll.u32 %v4774_v30, 8  ;;  %v4784_v23 = vshrl.u32 %v14805_v33, %v4781_v55 }
 0x4d6   :  { %v4413_v53 = vshll.u32 %v12004_v34, 30  ;;  %v4787_v46 = vshrl.u32 %v14806_v58, %v4781_v55  ;;  %v4790_v31 = vshrl.u32 %v14807_v9, %v4781_v55  ;;  %v4978_v52 = vshrl.u32 %v4977_v2, 23 }
 0x4d7   :  { %vm4615_vm4 = vc.u32 %v12014_v60, %v12017_v45  ;;  %v4616_v40 = vadd.s32 1, %v12018_v8  ;;  %v4783_v49 = vshll.u32 %v14804_v43, %v4780_v38  ;;  %v4786_v59 = vshll.u32 %v14805_v33, %v4780_v38 }
 0x4d8   :  { %v12021_v32 = vsub.s32 %v4410_v50, %v4413_v53  ;;  %v12033_v50 = vshrl.u32 %v4778_v12, 5  ;;  %v4789_v54 = vshll.u32 %v14806_v58, %v4780_v38  ;;  %v4613_v61 = vmul.u32 %v11981_v16, %v4597_v20 }
 0x4d9   :  { %v4617_v51 = vsel %vm4615_vm4, %v4616_v40, %v12018_v8  ;;  %v4792_v42 = vshll.u32 %v14807_v9, %v4780_v38  ;;  %v4793_v35 = vshrl.u32 %v14808_v39, %v4781_v55  ;;  %v4785_v2 = vor.u32 %v4784_v23, %v4783_v49 }
 0x4da   :  { %v4416_v17 = vsub.s32 0, %v12021_v32  ;;  %v4788_v53 = vor.u32 %v4787_v46, %v4786_v59  ;;  %v4791_v41 = vor.u32 %v4790_v31, %v4789_v54  ;;  %v4618_v18 = vadd.s32 %v4617_v51, %v4613_v61 }
 0x4db   :  { %v4794_v11 = vor.u32 %v4793_v35, %v4792_v42  ;;  %v4796_v56 = vshrl.u32 %v14992_v25, %v4781_v55  ;;  %v4406_v16 = vadd.s32 %v11969_v47, %v11975_v44  ;;  %v4436_v20 = vsub.s32 4, %v12004_v34 }
 0x4dc   :  { %v7900_v30 = vmin.u32 %v4416_v17, %v12021_v32  ;;  %v4795_v17 = vshll.u32 %v14808_v39, %v4780_v38  ;;  %vm4798_vm7 = vcmp.lt.s32.totalorder %v12033_v50, 1  ;;  %vm4560_vm12 = vcmp.lt.s32.totalorder %v11915_v24, 0 }
 0x4dd   :  { %v4619_v40 = vadd.s32 536870912, %v4618_v18  ;;  %v4782_v23 = vshrl.u32 %v14804_v43, %v4781_v55  ;;  %vm4801_vm9 = vcmp.lt.s32.totalorder %v12033_v50, 4  ;;  %vm4799_vm14 = vcmp.lt.s32.totalorder %v12033_v50, 2 }
 0x4de   :  { %v4418_v12 = vclz %v7900_v30  ;;  %v4797_v46 = vor.u32 %v4796_v56, %v4795_v17  ;;  %vm4800_vm13 = vcmp.lt.s32.totalorder %v12033_v50, 3  ;;  %v4807_v47 = vsel %vm4801_vm9, %v4794_v11, 920167782 }
 0x4df   :  { %v4620_v38 = vshrl.u32 %v4619_v40, 30  ;;  %v4803_v31 = vsel %vm4801_vm9, %v4791_v41, 2102212464  ;;  %v4806_v30 = vsel %vm4798_vm7, %v4785_v2, %v4788_v53  ;;  %v4808_v49 = vsel %vm4800_vm13, %v4791_v41, %v4807_v47 }
 0x4e0   :  { %v7901_v8 = vadd.s32 4294967294, %v4418_v12  ;;  %v4810_v59 = vsel %vm4798_vm7, %v4788_v53, %v4791_v41  ;;  %v4811_v42 = vsel %vm4801_vm9, %v4797_v46, 1326507024  ;;  %v4437_v40 = vsel %vm4352_vm6, %v4436_v20, %v12004_v34 }
 0x4e1   :  { %v4621_v61 = vshll.u32 %v4620_v38, 30  ;;  %v4644_v51 = vsub.s32 4, %v4620_v38  ;;  %v4812_v17 = vsel %vm4800_vm13, %v4794_v11, %v4811_v42  ;;  %v4809_v41 = vsel %vm4799_vm14, %v4806_v30, %v4808_v49 }
 0x4e2   :  { %vm7902_vm8 = vcmp.lt.s32.totalorder %v7901_v8, 0  ;;  %vm12093_vm10 = vcmp.le.f32.partialorder %v4350_v29, 0.7853982  ;;  %vm12099_vm11 = vcmp.le.f32.partialorder %v4558_v27, 0.7853982  ;;  %vm4768_vm15 = vcmp.lt.s32.totalorder %v11923_v7, 0 }
 0x4e3   :  { %v4421_v44 = vsel %vm7902_vm8, 0, %v7901_v8  ;;  %v7923_v8 = vadd.s32 4294967169, %v4978_v52  ;;  %v4622_v47 = vsub.s32 %v4618_v18, %v4621_v61  ;;  %v4804_v52 = vsel %vm4800_vm13, %v4788_v53, %v4803_v31 }
 0x4e4   :  { %v4422_v55 = vsub.s32 32, %v4421_v44  ;;  %v4426_v56 = vsub.s32 4294967266, %v4421_v44  ;;  %v4423_v54 = vshll.u32 %v12021_v32, %v4421_v44  ;;  %v4813_v32 = vsel %vm4799_vm14, %v4810_v59, %v4812_v17 }
 0x4e5   :  { %v4984_v46 = vadd.s32 1, %v7923_v8  ;;  %v12082_v11 = vmul.u32.u64.low %v12023_v37, %v4813_v32  ;;  %v12083_v34 = vmul.u32.u64.high %v12023_v37, %v4813_v32, %v12082_v11  ;;  %v4645_v20 = vsel %vm4560_vm12, %v4644_v51, %v4620_v38  ;;  %v14999_v32 = vld [vmem:[#allocation59_spill] sm:$0xff] }
 0x4e6   :  { %v4424_v35 = vshrl.u32 %v4406_v16, %v4422_v55  ;;  %v4427_v12 = vadd.s32 127, %v4426_v56  ;;  %v4802_v16 = vsel %vm4798_vm7, %v4782_v23, %v4785_v2  ;;  %v4624_v55 = vsub.s32 0, %v4622_v47 }
 0x4e7   :  { %v12088_v30 = vmul.u32.u64.low %v12023_v37, %v4809_v41  ;;  %v12089_v56 = vmul.u32.u64.high %v12023_v37, %v4809_v41, %v12088_v30  ;;  %vm4985_vm0 = vcmp.gt.s32.totalorder %v4984_v46, 0  ;;  %v4805_v31 = vsel %vm4799_vm14, %v4802_v16, %v4804_v52 }
 0x4e8   :  { %v4425_v44 = vor.u32 %v4424_v35, %v4423_v54  ;;  %v4428_v15 = vshll.u32 %v4427_v12, 23  ;;  %v4986_v49 = vsel %vm4985_vm0, %v4984_v46, 0  ;;  %v4439_v29 = vsel %vm12093_vm10, 0, %v4437_v40 }
 0x4e9   :  { %v4647_v54 = vsel %vm12099_vm11, 0, %v4645_v20  ;;  %vm4823_vm1 = vc.u32 %v12083_v34, %v12088_v30  ;;  %v4824_v27 = vadd.s32 1, %v12089_v56  ;;  %v14998_v51 = vand.u32 2147483647, %v11979_v13 }
 0x4ea   :  { %v4429_v18 = vor.u32 4788187, %v4428_v15  ;;  %v7908_v15 = vmin.u32 %v4624_v55, %v4622_v47  ;;  %v4432_v38 = vcvt.s32.f32 %v4425_v44  ;;  %v4821_v50 = vmul.u32 %v12023_v37, %v4805_v31 }
 0x4eb   :  { %v4981_v42 = vand.u32 8388607, %v14998_v51  ;;  %v4988_v12 = vand.u32 31, %v4986_v49  ;;  %v4443_v8 = vadd.s32 3, %v4439_v29  ;;  %v4651_v41 = vadd.s32 3, %v4647_v54 }
 0x4ec   :  { %v4430_v23 = vand.u32 2147483647, %v4429_v18  ;;  %v4626_v59 = vclz %v7908_v15  ;;  %v4825_v40 = vsel %vm4823_vm1, %v4824_v27, %v12089_v56  ;;  %v12117_v44 = vadd.f32 %v11876_v0, %v14999_v32 }
 0x4ed   :  { %v4826_v16 = vadd.s32 %v4825_v40, %v4821_v50  ;;  %v4982_v52 = vor.u32 8388608, %v4981_v42  ;;  %v4989_v11 = vsub.s32 32, %v4988_v12  ;;  %v4614_v18 = vadd.s32 %v12017_v45, %v12014_v60 }
 0x4ee   :  { %v4433_v61 = vmul.f32 %v4432_v38, %v4430_v23  ;;  %v7909_v35 = vadd.s32 4294967294, %v4626_v59  ;;  %v12126_v0 = vand.u32 3, %v4443_v8  ;;  %v12128_v15 = vand.u32 3, %v4651_v41 }
 0x4ef   :  { %v4827_v23 = vadd.s32 536870912, %v4826_v16  ;;  %v4992_v2 = vshrl.u32 %v14805_v33, %v4989_v11  ;;  %v4995_v54 = vshrl.u32 %v14806_v58, %v4989_v11  ;;  %v12133_v60 = vshll.u32 %v4982_v52, 8 }
 0x4f0   :  { %v4434_v17 = vxor.u32 2147483648, %v4433_v61  ;;  %vm7910_vm2 = vcmp.lt.s32.totalorder %v7909_v35, 0  ;;  %v5000_v27 = vshll.u32 %v14807_v9, %v4988_v12  ;;  %v5001_v51 = vshrl.u32 %v14808_v39, %v4989_v11 }
 0x4f1   :  { %v4629_v55 = vsel %vm7910_vm2, 0, %v7909_v35  ;;  %v4828_v59 = vshrl.u32 %v4827_v23, 30  ;;  %vm4449_vm5 = vcmp.eq.s32.totalorder %v12126_v0, 2  ;;  %v12141_v35 = vshrl.u32 %v4986_v49, 5 }
 0x4f2   :  { %v4435_v46 = vsel %vm4352_vm6, %v4434_v17, %v4433_v61  ;;  %v4630_v20 = vsub.s32 32, %v4629_v55  ;;  %v4634_v56 = vsub.s32 4294967266, %v4629_v55  ;;  %v4631_v38 = vshll.u32 %v4622_v47, %v4629_v55 }
 0x4f3   :  { %v4438_v37 = vsel %vm12093_vm10, %v11911_v26, %v4435_v46  ;;  %v12139_v47 = vadd.s32 %v12088_v30, %v12083_v34  ;;  %v4829_v42 = vshll.u32 %v4828_v59, 30  ;;  %v4998_v50 = vshrl.u32 %v14807_v9, %v4989_v11 }
 0x4f4   :  { %8433 = vcosq.f32 %v4438_v37  ;;  %v4632_v31 = vshrl.u32 %v4614_v18, %v4630_v20  ;;  %v4635_v29 = vadd.s32 127, %v4634_v56  ;;  %vm4446_vm3 = vcmp.eq.s32.totalorder %v12126_v0, 0 }
 0x4f5   :  { %8435 = vsinq.f32 %v4438_v37  ;;  %v4991_v8 = vshll.u32 %v14804_v43, %v4988_v12  ;;  %v4994_v41 = vshll.u32 %v14805_v33, %v4988_v12  ;;  %v5002_v40 = vor.u32 %v5001_v51, %v5000_v27 }
 0x4f6   :  { %v4633_v45 = vor.u32 %v4632_v31, %v4631_v38  ;;  %v4636_v61 = vshll.u32 %v4635_v29, 23  ;;  %vm4445_vm4 = vcmp.lt.s32.totalorder %v12126_v0, 2  ;;  %v12148_v46 = vsub.s32 %v4826_v16, %v4829_v42 }
 0x4f7   :  { %v4852_v55 = vsub.s32 4, %v4828_v59  ;;  %v4997_v34 = vshll.u32 %v14806_v58, %v4988_v12  ;;  %v5004_v30 = vshrl.u32 %v14992_v25, %v4989_v11  ;;  %vm4442_vm6 = vweird.f32 %v11911_v26 }
 0x4f8   :  { %v4637_v17 = vor.u32 4788187, %v4636_v61  ;;  %v4640_v52 = vcvt.s32.f32 %v4633_v45  ;;  %v4993_v37 = vor.u32 %v4992_v2, %v4991_v8  ;;  %v4996_v18 = vor.u32 %v4995_v54, %v4994_v41 }
 0x4f9   :  { %v4832_v20 = vsub.s32 0, %v12148_v46  ;;  %v4999_v56 = vor.u32 %v4998_v50, %v4997_v34  ;;  %v5003_v23 = vshll.u32 %v14808_v39, %v4988_v12  ;;  %vm5009_vm7 = vcmp.lt.s32.totalorder %v12141_v35, 4 }
 0x4fa   :  { %v4638_v49 = vand.u32 2147483647, %v4637_v17  ;;  %v4990_v38 = vshrl.u32 %v14804_v43, %v4989_v11  ;;  %v5015_v31 = vsel %vm5009_vm7, %v5002_v40, 920167782  ;;  %v5185_v29 = vand.u32 2139095040, %v12117_v44 }
 0x4fb   :  { %v7916_v45 = vmin.u32 %v4832_v20, %v12148_v46  ;;  %v4853_v2 = vsel %vm4768_vm15, %v4852_v55, %v4828_v59  ;;  %v5005_v54 = vor.u32 %v5004_v30, %v5003_v23  ;;  %vm5006_vm9 = vcmp.lt.s32.totalorder %v12141_v35, 1 }
 0x4fc   :  { %v4641_v16 = vmul.f32 %v4640_v52, %v4638_v49  ;;  %v15000_v42 = vand.u32 2147483647, %v11923_v7  ;;  %vm5007_vm14 = vcmp.lt.s32.totalorder %v12141_v35, 2  ;;  %vm5008_vm13 = vcmp.lt.s32.totalorder %v12141_v35, 3 }
 0x4fd   :  { %v4834_v17 = vclz %v7916_v45  ;;  %v5014_v59 = vsel %vm5006_vm9, %v4993_v37, %v4996_v18  ;;  %v5016_v8 = vsel %vm5008_vm13, %v4999_v56, %v5015_v31  ;;  %v5011_v34 = vsel %vm5009_vm7, %v4999_v56, 2102212464 }
 0x4fe   :  { %v8434_v61 = vpop.eup %8433  ;;  %v4642_v51 = vxor.u32 2147483648, %v4641_v16  ;;  %vm12166_vm8 = vcmp.le.f32.partialorder %v15000_v42, 0.7853982  ;;  %v5018_v30 = vsel %vm5006_vm9, %v4996_v18, %v4999_v56  ;;  %v5019_v23 = vsel %vm5009_vm7, %v5005_v54, 1326507024 }
 0x4ff   :  { %v8436_v12 = vpop.eup %8435  ;;  %v4450_v27 = vxor.u32 2147483648, %v8434_v61  ;;  %v7917_v20 = vadd.s32 4294967294, %v4834_v17  ;;  %v5017_v31 = vsel %vm5007_vm14, %v5014_v59, %v5016_v8  ;;  %v5020_v56 = vsel %vm5008_vm13, %v5002_v40, %v5019_v23 }
 0x500   :  { %v4447_v50 = vxor.u32 2147483648, %v8436_v12  ;;  %v4643_v55 = vsel %vm4560_vm12, %v4642_v51, %v4641_v16  ;;  %v5021_v53 = vsel %vm5007_vm14, %v5018_v30, %v5020_v56  ;;  %v5010_v40 = vsel %vm5006_vm9, %v4990_v38, %v4993_v37  ;;  %v15003_v37 = vld [vmem:[#allocation60_spill] sm:$0xff] }
 0x501   :  { %v4451_v41 = vsel %vm4449_vm5, %v4450_v27, %v8436_v12  ;;  %v4646_v52 = vsel %vm12099_vm11, %v11915_v24, %v4643_v55  ;;  %vm7918_vm12 = vcmp.lt.s32.totalorder %v7917_v20, 0  ;;  %v5186_v12 = vshrl.u32 %v5185_v29, 23 }
 0x502   :  { %v4448_v49 = vsel %vm4446_vm3, %v8434_v61, %v4447_v50  ;;  %8437 = vcosq.f32 %v4646_v52  ;;  %v4837_v45 = vsel %vm7918_vm12, 0, %v7917_v20  ;;  %v5012_v26 = vsel %vm5008_vm13, %v4996_v18, %v5011_v34 }
 0x503   :  { %v4452_v16 = vsel %vm4445_vm4, %v4448_v49, %v4451_v41  ;;  %8439 = vsinq.f32 %v4646_v52  ;;  %v12202_v54 = vmul.u32.u64.low %v12133_v60, %v5021_v53  ;;  %v12203_v0 = vmul.u32.u64.high %v12133_v60, %v5021_v53, %v12202_v54 }
 0x504   :  { %v4453_v61 = vsel %vm4442_vm6, nan, %v4452_v16  ;;  %v4838_v27 = vsub.s32 32, %v4837_v45  ;;  %v4842_v51 = vsub.s32 4294967266, %v4837_v45  ;;  %v5182_v17 = vand.u32 2147483647, %v12117_v44 }
 0x505   :  { %7679 = vst [vmem:[#allocation13 + $0x100] sm:$0xff] %v4453_v61  ;;  %v12210_v42 = vmul.u32.u64.low %v12133_v60, %v5017_v31  ;;  %v12211_v50 = vmul.u32.u64.high %v12133_v60, %v5017_v31, %v12210_v42  ;;  %v7931_v59 = vadd.s32 4294967169, %v5186_v12  ;;  %v4839_v8 = vshll.u32 %v12148_v46, %v4837_v45 }
 0x506   :  { %v4840_v29 = vshrl.u32 %v12139_v47, %v4838_v27  ;;  %v4843_v41 = vadd.s32 127, %v4842_v51  ;;  %v4855_v55 = vsel %vm12166_vm8, 0, %v4853_v2  ;;  %v12221_v38 = vadd.f32 %v11878_v5, %v15003_v37 }
 0x507   :  { %v5013_v18 = vsel %vm5007_vm14, %v5010_v40, %v5012_v26  ;;  %v5192_v34 = vadd.s32 1, %v7931_v59  ;;  %vm4650_vm10 = vweird.f32 %v11915_v24  ;;  %vm5031_vm11 = vc.u32 %v12203_v0, %v12210_v42 }
 0x508   :  { %v4841_v30 = vor.u32 %v4840_v29, %v4839_v8  ;;  %v4844_v49 = vshll.u32 %v4843_v41, 23  ;;  %v4859_v47 = vadd.s32 3, %v4855_v55  ;;  %v5032_v46 = vadd.s32 1, %v12211_v50 }
 0x509   :  { %v5189_v2 = vand.u32 8388607, %v5182_v17  ;;  %vm5193_vm0 = vcmp.gt.s32.totalorder %v5192_v34, 0  ;;  %vm4653_vm1 = vcmp.lt.s32.totalorder %v12128_v15, 2  ;;  %v5029_v35 = vmul.u32 %v12133_v60, %v5013_v18 }
 0x50a   :  { %v4845_v5 = vor.u32 4788187, %v4844_v49  ;;  %v5194_v52 = vsel %vm5193_vm0, %v5192_v34, 0  ;;  %vm4654_vm2 = vcmp.eq.s32.totalorder %v12128_v15, 0  ;;  %vm4657_vm5 = vcmp.eq.s32.totalorder %v12128_v15, 2 }
 0x50b   :  { %v5033_v23 = vsel %vm5031_vm11, %v5032_v46, %v12211_v50  ;;  %v5196_v16 = vand.u32 31, %v5194_v52  ;;  %v4848_v53 = vcvt.s32.f32 %v4841_v30  ;;  %v12236_v12 = vand.u32 3, %v4859_v47 }
 0x50c   :  { %v8438_v20 = vpop.eup %8437  ;;  %v4846_v61 = vand.u32 2147483647, %v4845_v5  ;;  %v5034_v45 = vadd.s32 %v5033_v23, %v5029_v35  ;;  %v5190_v27 = vor.u32 8388608, %v5189_v2  ;;  %v5393_v59 = vand.u32 2139095040, %v12221_v38 }
 0x50d   :  { %v8440_v31 = vpop.eup %8439  ;;  %v4658_v56 = vxor.u32 2147483648, %v8438_v20  ;;  %v5197_v51 = vsub.s32 32, %v5196_v16  ;;  %v5199_v50 = vshll.u32 %v14804_v43, %v5196_v16  ;;  %v5195_v47 = vshrl.u32 %v5194_v52, 5 }
 0x50e   :  { %v4655_v54 = vxor.u32 2147483648, %v8440_v31  ;;  %v4849_v40 = vmul.f32 %v4848_v53, %v4846_v61  ;;  %v5035_v26 = vadd.s32 536870912, %v5034_v45  ;;  %v5202_v46 = vshll.u32 %v14805_v33, %v5196_v16 }
 0x50f   :  { %v4659_v60 = vsel %vm4657_vm5, %v4658_v56, %v8440_v31  ;;  %v5200_v29 = vshrl.u32 %v14805_v33, %v5197_v51  ;;  %v5203_v41 = vshrl.u32 %v14806_v58, %v5197_v51  ;;  %v5206_v30 = vshrl.u32 %v14807_v9, %v5197_v51 }
 0x510   :  { %v4656_v8 = vsel %vm4654_vm2, %v8438_v20, %v4655_v54  ;;  %v4850_v18 = vxor.u32 2147483648, %v4849_v40  ;;  %v5036_v34 = vshrl.u32 %v5035_v26, 30  ;;  %v5205_v2 = vshll.u32 %v14806_v58, %v5196_v16 }
 0x511   :  { %v4660_v55 = vsel %vm4653_vm1, %v4656_v8, %v4659_v60  ;;  %vm4976_vm3 = vcmp.lt.s32.totalorder %v11979_v13, 0  ;;  %v5201_v15 = vor.u32 %v5200_v29, %v5199_v50  ;;  %v5208_v20 = vshll.u32 %v14807_v9, %v5196_v16 }
 0x512   :  { %v4661_v49 = vsel %vm4650_vm10, nan, %v4660_v55  ;;  %v4851_v5 = vsel %vm4768_vm15, %v4850_v18, %v4849_v40  ;;  %v5037_v35 = vshll.u32 %v5036_v34, 30  ;;  %v5209_v52 = vshrl.u32 %v14808_v39, %v5197_v51 }
 0x513   :  { %7681 = vst [vmem:[#allocation13 + $0x110] sm:$0xff] %v4661_v49  ;;  %v4854_v24 = vsel %vm12166_vm8, %v11923_v7, %v4851_v5  ;;  %v5211_v23 = vshll.u32 %v14808_v39, %v5196_v16  ;;  %v5212_v31 = vshrl.u32 %v14992_v25, %v5197_v51  ;;  %v5204_v61 = vor.u32 %v5203_v41, %v5202_v46 }
 0x514   :  { %8441 = vcosq.f32 %v4854_v24  ;;  %v12261_v56 = vsub.s32 %v5034_v45, %v5037_v35  ;;  %v5207_v53 = vor.u32 %v5206_v30, %v5205_v2  ;;  %v5210_v54 = vor.u32 %v5209_v52, %v5208_v20 }
 0x515   :  { %8443 = vsinq.f32 %v4854_v24  ;;  %v5213_v60 = vor.u32 %v5212_v31, %v5211_v23  ;;  %v5394_v40 = vshrl.u32 %v5393_v59, 23  ;;  %v15004_v26 = vand.u32 2147483647, %v11979_v13 }
 0x516   :  { %v5040_v8 = vsub.s32 0, %v12261_v56  ;;  %v5198_v16 = vshrl.u32 %v14804_v43, %v5197_v51  ;;  %v12271_v50 = vshll.u32 %v5190_v27, 8  ;;  %v5390_v45 = vand.u32 2147483647, %v12221_v38 }
 0x517   :  { %vm12265_vm15 = vcmp.le.f32.partialorder %v15004_v26, 0.7853982  ;;  %v5060_v29 = vsub.s32 4, %v5036_v34  ;;  %vm5214_vm4 = vcmp.lt.s32.totalorder %v5195_v47, 1  ;;  %vm5216_vm6 = vcmp.lt.s32.totalorder %v5195_v47, 3 }
 0x518   :  { %vm5217_vm7 = vcmp.lt.s32.totalorder %v5195_v47, 4  ;;  %vm4865_vm9 = vcmp.eq.s32.totalorder %v12236_v12, 2  ;;  %v7924_v59 = vmin.u32 %v5040_v8, %v12261_v56  ;;  %v5222_v55 = vsel %vm5214_vm4, %v5201_v15, %v5204_v61 }
 0x519   :  { %v5219_v41 = vsel %vm5217_vm7, %v5207_v53, 2102212464  ;;  %v5223_v18 = vsel %vm5217_vm7, %v5210_v54, 920167782  ;;  %vm4862_vm8 = vcmp.eq.s32.totalorder %v12236_v12, 0  ;;  %v5226_v27 = vsel %vm5214_vm4, %v5204_v61, %v5207_v53 }
 0x51a   :  { %v5224_v51 = vsel %vm5216_vm6, %v5207_v53, %v5223_v18  ;;  %v5227_v30 = vsel %vm5217_vm7, %v5213_v60, 1326507024  ;;  %v7939_v49 = vadd.s32 4294967169, %v5394_v40  ;;  %vm4861_vm14 = vcmp.lt.s32.totalorder %v12236_v12, 2 }
 0x51b   :  { %v5042_v46 = vclz %v7924_v59  ;;  %vm5215_vm13 = vcmp.lt.s32.totalorder %v5195_v47, 2  ;;  %v5218_v2 = vsel %vm5214_vm4, %v5198_v16, %v5201_v15  ;;  %v5220_v5 = vsel %vm5216_vm6, %v5204_v61, %v5219_v41 }
 0x51c   :  { %v5061_v35 = vsel %vm4976_vm3, %v5060_v29, %v5036_v34  ;;  %v5225_v20 = vsel %vm5215_vm13, %v5222_v55, %v5224_v51  ;;  %v5228_v24 = vsel %vm5216_vm6, %v5210_v54, %v5227_v30  ;;  %v5400_v52 = vadd.s32 1, %v7939_v49 }
 0x51d   :  { %v7925_v23 = vadd.s32 4294967294, %v5042_v46  ;;  %v5229_v31 = vsel %vm5215_vm13, %v5226_v27, %v5228_v24  ;;  %v12287_v53 = vmul.u32.u64.low %v12271_v50, %v5225_v20  ;;  %v12288_v60 = vmul.u32.u64.high %v12271_v50, %v5225_v20, %v12287_v53 }
 0x51e   :  { %v5221_v40 = vsel %vm5215_vm13, %v5218_v2, %v5220_v5  ;;  %v12292_v26 = vmul.u32.u64.low %v12271_v50, %v5229_v31  ;;  %v12293_v15 = vmul.u32.u64.high %v12271_v50, %v5229_v31, %v12292_v26  ;;  %vm5401_vm12 = vcmp.gt.s32.totalorder %v5400_v52, 0  ;;  %v8442_v61 = vpop.eup %8441 }
 0x51f   :  { %v5030_v34 = vadd.s32 %v12210_v42, %v12203_v0  ;;  %vm7926_vm10 = vcmp.lt.s32.totalorder %v7925_v23, 0  ;;  %v5397_v47 = vand.u32 8388607, %v5390_v45  ;;  %v5402_v54 = vsel %vm5401_vm12, %v5400_v52, 0  ;;  %v8444_v8 = vpop.eup %8443 }
 0x520   :  { %v4866_v16 = vxor.u32 2147483648, %v8442_v61  ;;  %v5045_v29 = vsel %vm7926_vm10, 0, %v7925_v23  ;;  %v5063_v59 = vsel %vm12265_vm15, 0, %v5061_v35  ;;  %v5404_v41 = vand.u32 31, %v5402_v54 }
 0x521   :  { %v4863_v55 = vxor.u32 2147483648, %v8444_v8  ;;  %v5046_v18 = vsub.s32 32, %v5045_v29  ;;  %v5050_v51 = vsub.s32 4294967266, %v5045_v29  ;;  %v5237_v27 = vmul.u32 %v12271_v50, %v5221_v40 }
 0x522   :  { %v4867_v0 = vsel %vm4865_vm9, %v4866_v16, %v8444_v8  ;;  %v5047_v42 = vshll.u32 %v12261_v56, %v5045_v29  ;;  %vm5239_vm11 = vc.u32 %v12293_v15, %v12287_v53  ;;  %v5240_v30 = vadd.s32 1, %v12288_v60 }
 0x523   :  { %v4864_v49 = vsel %vm4862_vm8, %v8442_v61, %v4863_v55  ;;  %v5048_v46 = vshrl.u32 %v5030_v34, %v5046_v18  ;;  %v5051_v2 = vadd.s32 127, %v5050_v51  ;;  %v5405_v5 = vsub.s32 32, %v5404_v41 }
 0x524   :  { %vm4858_vm0 = vweird.f32 %v11923_v7  ;;  %v4868_v50 = vsel %vm4861_vm14, %v4864_v49, %v4867_v0  ;;  %v5241_v35 = vsel %vm5239_vm11, %v5240_v30, %v12288_v60  ;;  %v5398_v20 = vor.u32 8388608, %v5397_v47  ;;  %v15007_v30 = vld [vmem:[#allocation61_spill] sm:$0xff] }
 0x525   :  { %v4869_v56 = vsel %vm4858_vm0, nan, %v4868_v50  ;;  %v5049_v24 = vor.u32 %v5048_v46, %v5047_v42  ;;  %v5052_v52 = vshll.u32 %v5051_v2, 23  ;;  %v5242_v23 = vadd.s32 %v5241_v35, %v5237_v27 }
 0x526   :  { %v5067_v31 = vadd.s32 3, %v5063_v59  ;;  %v12314_v40 = vshrl.u32 %v5402_v54, 5  ;;  %v5408_v26 = vshrl.u32 %v14805_v33, %v5405_v5  ;;  %v5411_v61 = vshrl.u32 %v14806_v58, %v5405_v5  ;;  %7683 = vst [vmem:[#allocation13 + $0x120] sm:$0xff] %v4869_v56 }
 0x527   :  { %v5053_v34 = vor.u32 4788187, %v5052_v52  ;;  %v5243_v7 = vadd.s32 536870912, %v5242_v23  ;;  %v5407_v12 = vshll.u32 %v14804_v43, %v5404_v41  ;;  %v5410_v8 = vshll.u32 %v14805_v33, %v5404_v41 }
 0x528   :  { %v5413_v60 = vshll.u32 %v14806_v58, %v5404_v41  ;;  %v5414_v47 = vshrl.u32 %v14807_v9, %v5405_v5  ;;  %v5416_v16 = vshll.u32 %v14807_v9, %v5404_v41  ;;  %v5417_v54 = vshrl.u32 %v14808_v39, %v5405_v5 }
 0x529   :  { %v5054_v29 = vand.u32 2147483647, %v5053_v34  ;;  %v5056_v59 = vcvt.s32.f32 %v5049_v24  ;;  %v5244_v55 = vshrl.u32 %v5243_v7, 30  ;;  %v5409_v18 = vor.u32 %v5408_v26, %v5407_v12 }
 0x52a   :  { %v5412_v51 = vor.u32 %v5411_v61, %v5410_v8  ;;  %v5418_v27 = vor.u32 %v5417_v54, %v5416_v16  ;;  %v5419_v0 = vshll.u32 %v14808_v39, %v5404_v41  ;;  %v5420_v42 = vshrl.u32 %v14992_v25, %v5405_v5 }
 0x52b   :  { %v12328_v49 = vadd.f32 %v11880_v10, %v15007_v30  ;;  %v5057_v46 = vmul.f32 %v5056_v59, %v5054_v29  ;;  %vm5184_vm1 = vcmp.lt.s32.totalorder %v12117_v44, 0  ;;  %v5245_v2 = vshll.u32 %v5244_v55, 30 }
 0x52c   :  { %v12331_v50 = vand.u32 3, %v5067_v31  ;;  %v5415_v35 = vor.u32 %v5414_v47, %v5413_v60  ;;  %v5421_v56 = vor.u32 %v5420_v42, %v5419_v0  ;;  %v12333_v24 = vshll.u32 %v5398_v20, 8 }
 0x52d   :  { %v5058_v52 = vxor.u32 2147483648, %v5057_v46  ;;  %v12335_v26 = vsub.s32 %v5242_v23, %v5245_v2  ;;  %vm5422_vm2 = vcmp.lt.s32.totalorder %v12314_v40, 1  ;;  %vm5425_vm5 = vcmp.lt.s32.totalorder %v12314_v40, 4 }
 0x52e   :  { %v5406_v10 = vshrl.u32 %v14804_v43, %v5405_v5  ;;  %vm5423_vm4 = vcmp.lt.s32.totalorder %v12314_v40, 2  ;;  %v5430_v41 = vsel %vm5422_vm2, %v5409_v18, %v5412_v51  ;;  %v5431_v31 = vsel %vm5425_vm5, %v5418_v27, 920167782 }
 0x52f   :  { %v5059_v61 = vsel %vm4976_vm3, %v5058_v52, %v5057_v46  ;;  %v5248_v20 = vsub.s32 0, %v12335_v26  ;;  %v5268_v34 = vsub.s32 4, %v5244_v55  ;;  %vm5424_vm6 = vcmp.lt.s32.totalorder %v12314_v40, 3  ;;  %v15008_v46 = vld [vmem:[#allocation62_spill] sm:$0xff] }
 0x530   :  { %v5062_v23 = vsel %vm12265_vm15, %v11979_v13, %v5059_v61  ;;  %v5427_v7 = vsel %vm5425_vm5, %v5415_v35, 2102212464  ;;  %v5432_v5 = vsel %vm5424_vm6, %v5415_v35, %v5431_v31  ;;  %v5435_v12 = vsel %vm5425_vm5, %v5421_v56, 1326507024  ;;  %v15011_v31 = vld [vmem:[#allocation63_spill] sm:$0xff] }
 0x531   :  { %8445 = vcosq.f32 %v5062_v23  ;;  %v7932_v8 = vmin.u32 %v5248_v20, %v12335_v26  ;;  %v5433_v60 = vsel %vm5423_vm4, %v5430_v41, %v5432_v5  ;;  %v5434_v47 = vsel %vm5422_vm2, %v5412_v51, %v5415_v35 }
 0x532   :  { %8447 = vsinq.f32 %v5062_v23  ;;  %v5436_v16 = vsel %vm5424_vm6, %v5418_v27, %v5435_v12  ;;  %v12356_v54 = vmul.u32.u64.low %v12333_v24, %v5433_v60  ;;  %v12357_v29 = vmul.u32.u64.high %v12333_v24, %v5433_v60, %v12356_v54 }
 0x533   :  { %v5250_v11 = vclz %v7932_v8  ;;  %v5269_v59 = vsel %vm5184_vm1, %v5268_v34, %v5244_v55  ;;  %v5426_v0 = vsel %vm5422_vm2, %v5406_v10, %v5409_v18  ;;  %v5428_v42 = vsel %vm5424_vm6, %v5412_v51, %v5427_v7 }
 0x534   :  { %v12366_v2 = vadd.f32 %v11882_v6, %v15008_v46  ;;  %v5437_v27 = vsel %vm5423_vm4, %v5434_v47, %v5436_v16  ;;  %v5601_v35 = vand.u32 2139095040, %v12328_v49  ;;  %vm12373_vm3 = vcmp.le.f32.partialorder %v5182_v17, 0.7853982 }
 0x535   :  { %v7933_v55 = vadd.s32 4294967294, %v5250_v11  ;;  %v12378_v52 = vmul.u32.u64.low %v12333_v24, %v5437_v27  ;;  %v12379_v18 = vmul.u32.u64.high %v12333_v24, %v5437_v27, %v12378_v52  ;;  %v5271_v6 = vsel %vm12373_vm3, 0, %v5269_v59 }
 0x536   :  { %v5429_v51 = vsel %vm5423_vm4, %v5426_v0, %v5428_v42  ;;  %v5598_v10 = vand.u32 2147483647, %v12328_v49  ;;  %v5602_v41 = vshrl.u32 %v5601_v35, 23  ;;  %v12388_v17 = vadd.f32 %v11884_v21, %v15011_v31 }
 0x537   :  { %vm5070_vm15 = vcmp.eq.s32.totalorder %v12331_v50, 0  ;;  %vm7934_vm7 = vcmp.lt.s32.totalorder %v7933_v55, 0  ;;  %v5448_v61 = vadd.s32 1, %v12357_v29  ;;  %vm5073_vm9 = vcmp.eq.s32.totalorder %v12331_v50, 2 }
 0x538   :  { %v5238_v20 = vadd.s32 %v12287_v53, %v12293_v15  ;;  %v5253_v34 = vsel %vm7934_vm7, 0, %v7933_v55  ;;  %v7947_v40 = vadd.s32 4294967169, %v5602_v41  ;;  %v5275_v5 = vadd.s32 3, %v5271_v6 }
 0x539   :  { %v5254_v23 = vsub.s32 32, %v5253_v34  ;;  %v5258_v7 = vsub.s32 4294967266, %v5253_v34  ;;  %v5445_v12 = vmul.u32 %v12333_v24, %v5429_v51  ;;  %vm5447_vm8 = vc.u32 %v12379_v18, %v12356_v54 }
 0x53a   :  { %v5605_v21 = vand.u32 8388607, %v5598_v10  ;;  %v5608_v8 = vadd.s32 1, %v7947_v40  ;;  %v5809_v60 = vand.u32 2139095040, %v12366_v2  ;;  %v5255_v16 = vshll.u32 %v12335_v26, %v5253_v34 }
 0x53b   :  { %v8446_v47 = vpop.eup %8445  ;;  %v5256_v53 = vshrl.u32 %v5238_v20, %v5254_v23  ;;  %v5259_v15 = vadd.s32 127, %v5258_v7  ;;  %v5449_v11 = vsel %vm5447_vm8, %v5448_v61, %v12357_v29  ;;  %v5806_v24 = vand.u32 2147483647, %v12366_v2 }
 0x53c   :  { %v8448_v59 = vpop.eup %8447  ;;  %v5074_v0 = vxor.u32 2147483648, %v8446_v47  ;;  %v5450_v42 = vadd.s32 %v5449_v11, %v5445_v12  ;;  %vm5609_vm14 = vcmp.gt.s32.totalorder %v5608_v8, 0  ;;  %v5810_v26 = vshrl.u32 %v5809_v60, 23 }
 0x53d   :  { %v5071_v27 = vxor.u32 2147483648, %v8448_v59  ;;  %v5257_v35 = vor.u32 %v5256_v53, %v5255_v16  ;;  %v5260_v55 = vshll.u32 %v5259_v15, 23  ;;  %v5610_v52 = vsel %vm5609_vm14, %v5608_v8, 0 }
 0x53e   :  { %v5075_v6 = vsel %vm5073_vm9, %v5074_v0, %v8448_v59  ;;  %v5451_v51 = vadd.s32 536870912, %v5450_v42  ;;  %v5612_v41 = vand.u32 31, %v5610_v52  ;;  %vm5066_vm13 = vweird.f32 %v11979_v13 }
 0x53f   :  { %vm5069_vm12 = vcmp.lt.s32.totalorder %v12331_v50, 2  ;;  %v5072_v29 = vsel %vm5070_vm15, %v8446_v47, %v5071_v27  ;;  %v5261_v61 = vor.u32 4788187, %v5260_v55  ;;  %v12410_v34 = vand.u32 3, %v5275_v5 }
 0x540   :  { %v5076_v20 = vsel %vm5069_vm12, %v5072_v29, %v5075_v6  ;;  %v12412_v40 = vshrl.u32 %v5451_v51, 30  ;;  %v5613_v23 = vsub.s32 32, %v5612_v41  ;;  %v5264_v8 = vcvt.s32.f32 %v5257_v35 }
 0x541   :  { %v5077_v7 = vsel %vm5066_vm13, nan, %v5076_v20  ;;  %v5262_v12 = vand.u32 2147483647, %v5261_v61  ;;  %v5606_v16 = vor.u32 8388608, %v5605_v21  ;;  %v7955_v53 = vadd.s32 4294967169, %v5810_v26 }
 0x542   :  { %v5453_v60 = vshll.u32 %v12412_v40, 30  ;;  %v5616_v13 = vshrl.u32 %v14805_v33, %v5613_v23  ;;  %v12418_v50 = vand.u32 8388607, %v5806_v24  ;;  %7685 = vst [vmem:[#allocation13 + $0x130] sm:$0xff] %v5077_v7  ;;  %v5615_v5 = vshll.u32 %v14804_v43, %v5612_v41 }
 0x543   :  { %v5265_v47 = vmul.f32 %v5264_v8, %v5262_v12  ;;  %v5619_v15 = vshrl.u32 %v14806_v58, %v5613_v23  ;;  %v5622_v11 = vshrl.u32 %v14807_v9, %v5613_v23  ;;  %v5618_v21 = vshll.u32 %v14805_v33, %v5612_v41 }
 0x544   :  { %v12423_v59 = vsub.s32 %v5450_v42, %v5453_v60  ;;  %v5621_v0 = vshll.u32 %v14806_v58, %v5612_v41  ;;  %v5625_v27 = vshrl.u32 %v14808_v39, %v5613_v23  ;;  %v5611_v55 = vshrl.u32 %v5610_v52, 5 }
 0x545   :  { %v5266_v35 = vxor.u32 2147483648, %v5265_v47  ;;  %v5624_v6 = vshll.u32 %v14807_v9, %v5612_v41  ;;  %v12429_v51 = vshll.u32 %v5606_v16, 8  ;;  %v5617_v29 = vor.u32 %v5616_v13, %v5615_v5 }
 0x546   :  { %v5456_v26 = vsub.s32 0, %v12423_v59  ;;  %v5620_v61 = vor.u32 %v5619_v15, %v5618_v21  ;;  %v5623_v20 = vor.u32 %v5622_v11, %v5621_v0  ;;  %vm5392_vm10 = vcmp.lt.s32.totalorder %v12221_v38, 0 }
 0x547   :  { %v5267_v42 = vsel %vm5184_vm1, %v5266_v35, %v5265_v47  ;;  %v5626_v7 = vor.u32 %v5625_v27, %v5624_v6  ;;  %v5627_v12 = vshll.u32 %v14808_v39, %v5612_v41  ;;  %v5628_v8 = vshrl.u32 %v14992_v25, %v5613_v23 }
 0x548   :  { %v5270_v52 = vsel %vm12373_vm3, %v12117_v44, %v5267_v42  ;;  %v7940_v16 = vmin.u32 %v5456_v26, %v12423_v59  ;;  %v5476_v60 = vsub.s32 4, %v12412_v40  ;;  %v5816_v13 = vadd.s32 1, %v7955_v53 }
 0x549   :  { %8449 = vcosq.f32 %v5270_v52  ;;  %v5614_v5 = vshrl.u32 %v14804_v43, %v5613_v23  ;;  %v5629_v47 = vor.u32 %v5628_v8, %v5627_v12  ;;  %vm5630_vm11 = vcmp.lt.s32.totalorder %v5611_v55, 1 }
 0x54a   :  { %8451 = vsinq.f32 %v5270_v52  ;;  %vm12445_vm0 = vcmp.le.f32.partialorder %v5390_v45, 0.7853982  ;;  %v5458_v15 = vclz %v7940_v16  ;;  %vm5631_vm1 = vcmp.lt.s32.totalorder %v5611_v55, 2 }
 0x54b   :  { %vm5633_vm2 = vcmp.lt.s32.totalorder %v5611_v55, 4  ;;  %vm5632_vm5 = vcmp.lt.s32.totalorder %v5611_v55, 3  ;;  %v5638_v11 = vsel %vm5630_vm11, %v5617_v29, %v5620_v61  ;;  %v5634_v0 = vsel %vm5630_vm11, %v5614_v5, %v5617_v29 }
 0x54c   :  { %v5635_v56 = vsel %vm5633_vm2, %v5623_v20, 2102212464  ;;  %v5639_v21 = vsel %vm5633_vm2, %v5626_v7, 920167782  ;;  %v7941_v53 = vadd.s32 4294967294, %v5458_v15  ;;  %v5642_v23 = vsel %vm5630_vm11, %v5620_v61, %v5623_v20 }
 0x54d   :  { %v5640_v27 = vsel %vm5632_vm5, %v5623_v20, %v5639_v21  ;;  %vm5281_vm4 = vcmp.eq.s32.totalorder %v12410_v34, 2  ;;  %v5636_v35 = vsel %vm5632_vm5, %v5620_v61, %v5635_v56  ;;  %v5643_v45 = vsel %vm5633_vm2, %v5629_v47, 1326507024 }
 0x54e   :  { %v5641_v6 = vsel %vm5631_vm1, %v5638_v11, %v5640_v27  ;;  %vm5817_vm6 = vcmp.gt.s32.totalorder %v5816_v13, 0  ;;  %vm5278_vm3 = vcmp.eq.s32.totalorder %v12410_v34, 0  ;;  %vm7942_vm15 = vcmp.lt.s32.totalorder %v7941_v53, 0 }
 0x54f   :  { %v5644_v26 = vsel %vm5632_vm5, %v5626_v7, %v5643_v45  ;;  %v12453_v42 = vmul.u32.u64.low %v12429_v51, %v5641_v6  ;;  %v12454_v12 = vmul.u32.u64.high %v12429_v51, %v5641_v6, %v12453_v42  ;;  %vm5277_vm7 = vcmp.lt.s32.totalorder %v12410_v34, 2 }
 0x550   :  { %v5446_v29 = vadd.s32 %v12356_v54, %v12379_v18  ;;  %v5461_v20 = vsel %vm7942_vm15, 0, %v7941_v53  ;;  %v5645_v61 = vsel %vm5631_vm1, %v5642_v23, %v5644_v26  ;;  %v5818_v8 = vsel %vm5817_vm6, %v5816_v13, 0 }
 0x551   :  { %vm5274_vm9 = vweird.f32 %v12117_v44  ;;  %v5462_v52 = vsub.s32 32, %v5461_v20  ;;  %v5466_v16 = vsub.s32 4294967266, %v5461_v20  ;;  %v5477_v7 = vsel %vm5392_vm10, %v5476_v60, %v12412_v40 }
 0x552   :  { %v5637_v5 = vsel %vm5631_vm1, %v5634_v0, %v5636_v35  ;;  %v12467_v47 = vmul.u32.u64.low %v12429_v51, %v5645_v61  ;;  %v12468_v15 = vmul.u32.u64.high %v12429_v51, %v5645_v61, %v12467_v47  ;;  %v5814_v54 = vor.u32 8388608, %v12418_v50 }
 0x553   :  { %v5820_v18 = vand.u32 31, %v5818_v8  ;;  %v5463_v56 = vshll.u32 %v12423_v59, %v5461_v20  ;;  %v5464_v13 = vshrl.u32 %v5446_v29, %v5462_v52  ;;  %v5467_v11 = vadd.s32 127, %v5466_v16  ;;  %v8450_v53 = vpop.eup %8449 }
 0x554   :  { %v5656_v21 = vadd.s32 1, %v12454_v12  ;;  %v5479_v27 = vsel %vm12445_vm0, 0, %v5477_v7  ;;  %v5653_v40 = vmul.u32 %v12429_v51, %v5637_v5  ;;  %v12476_v55 = vshrl.u32 %v5818_v8, 5  ;;  %v8452_v0 = vpop.eup %8451 }
 0x555   :  { %v5821_v60 = vsub.s32 32, %v5820_v18  ;;  %v5282_v23 = vxor.u32 2147483648, %v8450_v53  ;;  %v5465_v35 = vor.u32 %v5464_v13, %v5463_v56  ;;  %v5468_v50 = vshll.u32 %v5467_v11, 23 }
 0x556   :  { %v5823_v6 = vshll.u32 %v14804_v43, %v5820_v18  ;;  %v5279_v59 = vxor.u32 2147483648, %v8452_v0  ;;  %vm5655_vm8 = vc.u32 %v12468_v15, %v12453_v42  ;;  %v5826_v45 = vshll.u32 %v14805_v33, %v5820_v18 }
 0x557   :  { %v5832_v26 = vshll.u32 %v14807_v9, %v5820_v18  ;;  %v5283_v51 = vsel %vm5281_vm4, %v5282_v23, %v8452_v0  ;;  %v5469_v29 = vor.u32 4788187, %v5468_v50  ;;  %v5472_v20 = vcvt.s32.f32 %v5465_v35 }
 0x558   :  { %v5657_v61 = vsel %vm5655_vm8, %v5656_v21, %v12454_v12  ;;  %v5280_v8 = vsel %vm5278_vm3, %v8450_v53, %v5279_v59  ;;  %v5824_v16 = vshrl.u32 %v14805_v33, %v5821_v60  ;;  %v5827_v7 = vshrl.u32 %v14806_v58, %v5821_v60 }
 0x559   :  { %v5658_v52 = vadd.s32 %v5657_v61, %v5653_v40  ;;  %v5284_v5 = vsel %vm5277_vm7, %v5280_v8, %v5283_v51  ;;  %v5470_v47 = vand.u32 2147483647, %v5469_v29  ;;  %v5830_v56 = vshrl.u32 %v14807_v9, %v5821_v60 }
 0x55a   :  { %v5833_v13 = vshrl.u32 %v14808_v39, %v5821_v60  ;;  %v5285_v11 = vsel %vm5274_vm9, nan, %v5284_v5  ;;  %v5483_v12 = vadd.s32 3, %v5479_v27  ;;  %v5829_v53 = vshll.u32 %v14806_v58, %v5820_v18 }
 0x55b   :  { %v5659_v21 = vadd.s32 536870912, %v5658_v52  ;;  %v5473_v40 = vmul.f32 %v5472_v20, %v5470_v47  ;;  %vm5600_vm14 = vcmp.lt.s32.totalorder %v12328_v49, 0  ;;  %v5825_v0 = vor.u32 %v5824_v16, %v5823_v6  ;;  %7687 = vst [vmem:[#allocation13 + $0x140] sm:$0xff] %v5285_v11 }
 0x55c   :  { %v5828_v23 = vor.u32 %v5827_v7, %v5826_v45  ;;  %v5834_v35 = vor.u32 %v5833_v13, %v5832_v26  ;;  %v5831_v50 = vor.u32 %v5830_v56, %v5829_v53  ;;  %v5835_v59 = vshll.u32 %v14808_v39, %v5820_v18 }
 0x55d   :  { %v5660_v34 = vshrl.u32 %v5659_v21, 30  ;;  %v5836_v51 = vshrl.u32 %v14992_v25, %v5821_v60  ;;  %v5474_v29 = vxor.u32 2147483648, %v5473_v40  ;;  %v5822_v44 = vshrl.u32 %v14804_v43, %v5821_v60 }
 0x55e   :  { %vm5838_vm13 = vcmp.lt.s32.totalorder %v12476_v55, 1  ;;  %v5854_v27 = vshll.u32 %v5814_v54, 8  ;;  %vm5839_vm12 = vcmp.lt.s32.totalorder %v12476_v55, 2  ;;  %vm5841_vm11 = vcmp.lt.s32.totalorder %v12476_v55, 4 }
 0x55f   :  { %v5661_v61 = vshll.u32 %v5660_v34, 30  ;;  %v5837_v20 = vor.u32 %v5836_v51, %v5835_v59  ;;  %v5475_v6 = vsel %vm5392_vm10, %v5474_v29, %v5473_v40  ;;  %vm5840_vm1 = vcmp.lt.s32.totalorder %v12476_v55, 3 }
 0x560   :  { %v5846_v18 = vsel %vm5838_vm13, %v5825_v0, %v5828_v23  ;;  %v5847_v45 = vsel %vm5841_vm11, %v5834_v35, 920167782  ;;  %v5478_v60 = vsel %vm12445_vm0, %v12221_v38, %v5475_v6  ;;  %v5684_v26 = vsub.s32 4, %v5660_v34 }
 0x561   :  { %v12512_v54 = vsub.s32 %v5658_v52, %v5661_v61  ;;  %v5843_v8 = vsel %vm5841_vm11, %v5831_v50, 2102212464  ;;  %8453 = vcosq.f32 %v5478_v60  ;;  %v5848_v16 = vsel %vm5840_vm1, %v5831_v50, %v5847_v45 }
 0x562   :  { %v5850_v7 = vsel %vm5838_vm13, %v5828_v23, %v5831_v50  ;;  %v5851_v5 = vsel %vm5841_vm11, %v5837_v20, 1326507024  ;;  %8455 = vsinq.f32 %v5478_v60  ;;  %v5842_v56 = vsel %vm5838_vm13, %v5822_v44, %v5825_v0 }
 0x563   :  { %v5664_v47 = vsub.s32 0, %v12512_v54  ;;  %v5849_v41 = vsel %vm5839_vm12, %v5846_v18, %v5848_v16  ;;  %v5844_v52 = vsel %vm5840_vm1, %v5828_v23, %v5843_v8  ;;  %v5852_v13 = vsel %vm5840_vm1, %v5834_v35, %v5851_v5  ;;  %v15014_v23 = vld [vmem:[#allocation64_spill] sm:$0xff] }
 0x564   :  { %v12527_v11 = vmul.u32.u64.low %v5854_v27, %v5849_v41  ;;  %v12528_v21 = vmul.u32.u64.high %v5854_v27, %v5849_v41, %v12527_v11  ;;  %v5484_v53 = vand.u32 3, %v5483_v12  ;;  %v5685_v50 = vsel %vm5600_vm14, %v5684_v26, %v5660_v34 }
 0x565   :  { %v7948_v40 = vmin.u32 %v5664_v47, %v12512_v54  ;;  %v5853_v0 = vsel %vm5839_vm12, %v5850_v7, %v5852_v13  ;;  %v12541_v29 = vadd.f32 %v11888_v36, %v15014_v23  ;;  %vm12545_vm10 = vcmp.le.f32.partialorder %v5598_v10, 0.7853982  ;;  %v15080_v23 = vld [vmem:[#allocation52_spill] sm:$0xff] }
 0x566   :  { %v12536_v59 = vmul.u32.u64.low %v5854_v27, %v5853_v0  ;;  %v12537_v51 = vmul.u32.u64.high %v5854_v27, %v5853_v0, %v12536_v59  ;;  %v5845_v34 = vsel %vm5839_vm12, %v5842_v56, %v5844_v52  ;;  %v5687_v44 = vsel %vm12545_vm10, 0, %v5685_v50 }
 0x567   :  { %v5666_v12 = vclz %v7948_v40  ;;  %v5864_v61 = vadd.s32 1, %v12528_v21  ;;  %v6014_v20 = vand.u32 2147483647, %v12388_v17  ;;  %v6017_v36 = vand.u32 2139095040, %v12388_v17 }
 0x568   :  { %vm5482_vm0 = vweird.f32 %v12221_v38  ;;  %vm5485_vm2 = vcmp.lt.s32.totalorder %v5484_v53, 2  ;;  %vm5486_vm5 = vcmp.eq.s32.totalorder %v5484_v53, 0  ;;  %vm5489_vm4 = vcmp.eq.s32.totalorder %v5484_v53, 2 }
 0x569   :  { %v7949_v10 = vadd.s32 4294967294, %v5666_v12  ;;  %v5861_v6 = vmul.u32 %v5854_v27, %v5845_v34  ;;  %vm5863_vm6 = vc.u32 %v12537_v51, %v12527_v11  ;;  %v6018_v55 = vshrl.u32 %v6017_v36, 23 }
 0x56a   :  { %v5654_v18 = vadd.s32 %v12453_v42, %v12468_v15  ;;  %v5691_v45 = vadd.s32 3, %v5687_v44  ;;  %v5865_v60 = vsel %vm5863_vm6, %v5864_v61, %v12528_v21  ;;  %v6021_v5 = vand.u32 8388607, %v6014_v20 }
 0x56b   :  { %vm7950_vm3 = vcmp.lt.s32.totalorder %v7949_v10, 0  ;;  %v8454_v26 = vpop.eup %8453  ;;  %v5866_v16 = vadd.s32 %v5865_v60, %v5861_v6  ;;  %v7963_v7 = vadd.s32 4294967169, %v6018_v55  ;;  %v6222_v52 = vand.u32 2147483647, %v12541_v29 }
 0x56c   :  { %v5669_v8 = vsel %vm7950_vm3, 0, %v7949_v10  ;;  %v8456_v47 = vpop.eup %8455  ;;  %v5490_v27 = vxor.u32 2147483648, %v8454_v26  ;;  %v6225_v15 = vand.u32 2139095040, %v12541_v29  ;;  %v6022_v44 = vor.u32 8388608, %v6021_v5 }
 0x56d   :  { %v5670_v56 = vsub.s32 32, %v5669_v8  ;;  %v5674_v41 = vsub.s32 4294967266, %v5669_v8  ;;  %v5487_v13 = vxor.u32 2147483648, %v8456_v47  ;;  %v5867_v40 = vadd.s32 536870912, %v5866_v16 }
 0x56e   :  { %v6024_v42 = vadd.s32 1, %v7963_v7  ;;  %v5491_v21 = vsel %vm5489_vm4, %v5490_v27, %v8456_v47  ;;  %v5671_v50 = vshll.u32 %v12512_v54, %v5669_v8  ;;  %v6226_v47 = vshrl.u32 %v6225_v15, 23  ;;  %v15017_v27 = vld [vmem:[#allocation65_spill] sm:$0xff] }
 0x56f   :  { %v5672_v0 = vshrl.u32 %v5654_v18, %v5670_v56  ;;  %v5675_v59 = vadd.s32 127, %v5674_v41  ;;  %v5488_v12 = vsel %vm5486_vm5, %v8454_v26, %v5487_v13  ;;  %v5868_v34 = vshrl.u32 %v5867_v40, 30 }
 0x570   :  { %vm6025_vm15 = vcmp.gt.s32.totalorder %v6024_v42, 0  ;;  %v5492_v61 = vsel %vm5485_vm2, %v5488_v12, %v5491_v21  ;;  %v12574_v54 = vadd.f32 %v11892_v1, %v15017_v27  ;;  %vm5808_vm7 = vcmp.lt.s32.totalorder %v12366_v2, 0 }
 0x571   :  { %v5673_v36 = vor.u32 %v5672_v0, %v5671_v50  ;;  %v5676_v10 = vshll.u32 %v5675_v59, 23  ;;  %v6026_v6 = vsel %vm6025_vm15, %v6024_v42, 0  ;;  %v5493_v55 = vsel %vm5482_vm0, nan, %v5492_v61 }
 0x572   :  { %v5869_v60 = vshll.u32 %v5868_v34, 30  ;;  %v5892_v7 = vsub.s32 4, %v5868_v34  ;;  %v6028_v26 = vand.u32 31, %v6026_v6  ;;  %7689 = vst [vmem:[#allocation13 + $0x150] sm:$0xff] %v5493_v55  ;;  %v12577_v53 = vand.u32 3, %v5691_v45 }
 0x573   :  { %v5677_v18 = vor.u32 4788187, %v5676_v10  ;;  %v5862_v8 = vadd.s32 %v12527_v11, %v12537_v51  ;;  %v12583_v38 = vshll.u32 %v6022_v44, 8  ;;  %v5680_v41 = vcvt.s32.f32 %v5673_v36 }
 0x574   :  { %v12581_v5 = vsub.s32 %v5866_v16, %v5869_v60  ;;  %v6029_v13 = vsub.s32 32, %v6028_v26  ;;  %v12587_v1 = vand.u32 8388607, %v6222_v52  ;;  %v12592_v45 = vsel %vm5808_vm7, %v5892_v7, %v5868_v34 }
 0x575   :  { %v5678_v56 = vand.u32 2147483647, %v5677_v18  ;;  %v6027_v42 = vshrl.u32 %v6026_v6, 5  ;;  %v7971_v15 = vadd.s32 4294967169, %v6226_v47  ;;  %v6031_v51 = vshll.u32 %v14804_v43, %v6028_v26 }
 0x576   :  { %v5872_v40 = vsub.s32 0, %v12581_v5  ;;  %v6032_v16 = vshrl.u32 %v14805_v33, %v6029_v13  ;;  %v6035_v21 = vshrl.u32 %v14806_v58, %v6029_v13  ;;  %v6034_v0 = vshll.u32 %v14805_v33, %v6028_v26 }
 0x577   :  { %v5681_v11 = vmul.f32 %v5680_v41, %v5678_v56  ;;  %v6037_v59 = vshll.u32 %v14806_v58, %v6028_v26  ;;  %v6038_v12 = vshrl.u32 %v14807_v9, %v6029_v13  ;;  %v6040_v61 = vshll.u32 %v14807_v9, %v6028_v26 }
 0x578   :  { %v7956_v50 = vmin.u32 %v5872_v40, %v12581_v5  ;;  %v6033_v34 = vor.u32 %v6032_v16, %v6031_v51  ;;  %v6041_v36 = vshrl.u32 %v14808_v39, %v6029_v13  ;;  %v6030_v6 = vshrl.u32 %v14804_v43, %v6029_v13 }
 0x579   :  { %v5682_v44 = vxor.u32 2147483648, %v5681_v11  ;;  %vm6046_vm9 = vcmp.lt.s32.totalorder %v6027_v42, 1  ;;  %vm6047_vm8 = vcmp.lt.s32.totalorder %v6027_v42, 2  ;;  %v6036_v60 = vor.u32 %v6035_v21, %v6034_v0 }
 0x57a   :  { %v5874_v10 = vclz %v7956_v50  ;;  %v6039_v7 = vor.u32 %v6038_v12, %v6037_v59  ;;  %v6042_v47 = vor.u32 %v6041_v36, %v6040_v61  ;;  %v6043_v41 = vshll.u32 %v14808_v39, %v6028_v26 }
 0x57b   :  { %v5683_v55 = vsel %vm5600_vm14, %v5682_v44, %v5681_v11  ;;  %v6044_v40 = vshrl.u32 %v14992_v25, %v6029_v13  ;;  %vm6048_vm13 = vcmp.lt.s32.totalorder %v6027_v42, 3  ;;  %vm6049_vm12 = vcmp.lt.s32.totalorder %v6027_v42, 4 }
 0x57c   :  { %v5686_v18 = vsel %vm12545_vm10, %v12328_v49, %v5683_v55  ;;  %v7957_v56 = vadd.s32 4294967294, %v5874_v10  ;;  %v6050_v51 = vsel %vm6046_vm9, %v6030_v6, %v6033_v34  ;;  %v6051_v16 = vsel %vm6049_vm12, %v6039_v7, 2102212464 }
 0x57d   :  { %8457 = vcosq.f32 %v5686_v18  ;;  %v6045_v11 = vor.u32 %v6044_v40, %v6043_v41  ;;  %v6052_v50 = vsel %vm6048_vm13, %v6036_v60, %v6051_v16  ;;  %v6054_v35 = vsel %vm6046_vm9, %v6033_v34, %v6036_v60 }
 0x57e   :  { %8459 = vsinq.f32 %v5686_v18  ;;  %vm7958_vm11 = vcmp.lt.s32.totalorder %v7957_v56, 0  ;;  %v6055_v0 = vsel %vm6049_vm12, %v6042_v47, 920167782  ;;  %v6058_v12 = vsel %vm6046_vm9, %v6036_v60, %v6039_v7 }
 0x57f   :  { %v5877_v21 = vsel %vm7958_vm11, 0, %v7957_v56  ;;  %v6053_v44 = vsel %vm6047_vm8, %v6050_v51, %v6052_v50  ;;  %v6056_v61 = vsel %vm6048_vm13, %v6039_v7, %v6055_v0  ;;  %v6059_v36 = vsel %vm6049_vm12, %v6045_v11, 1326507024  ;;  %v12623_v56 = vpop.f32.mrb[7].mxu0 }
 0x580   :  { %v5878_v26 = vsub.s32 32, %v5877_v21  ;;  %v5879_v13 = vshll.u32 %v12581_v5, %v5877_v21  ;;  %v5882_v59 = vsub.s32 4294967266, %v5877_v21  ;;  %v6232_v10 = vadd.s32 1, %v7971_v15 }
 0x581   :  { %v6057_v18 = vsel %vm6047_vm8, %v6054_v35, %v6056_v61  ;;  %v6060_v34 = vsel %vm6048_vm13, %v6042_v47, %v6059_v36  ;;  %vm5690_vm1 = vweird.f32 %v12328_v49  ;;  %vm5693_vm10 = vcmp.lt.s32.totalorder %v12577_v53, 2 }
 0x582   :  { %v5880_v6 = vshrl.u32 %v5862_v8, %v5878_v26  ;;  %v5883_v55 = vadd.s32 127, %v5882_v59  ;;  %v6061_v5 = vsel %vm6047_vm8, %v6058_v12, %v6060_v34  ;;  %vm6233_vm14 = vcmp.gt.s32.totalorder %v6232_v10, 0 }
 0x583   :  { %v12627_v41 = vmul.u32.u64.low %v12583_v38, %v6057_v18  ;;  %v12628_v60 = vmul.u32.u64.high %v12583_v38, %v6057_v18, %v12627_v41  ;;  %v12632_v15 = vmul.u32.u64.low %v12583_v38, %v6061_v5  ;;  %v12633_v8 = vmul.u32.u64.high %v12583_v38, %v6061_v5, %v12632_v15 }
 0x584   :  { %v5881_v7 = vor.u32 %v5880_v6, %v5879_v13  ;;  %v5884_v40 = vshll.u32 %v5883_v55, 23  ;;  %vm12639_vm0 = vcmp.le.f32.partialorder %v5806_v24, 0.7853982  ;;  %v6234_v47 = vsel %vm6233_vm14, %v6232_v10, 0 }
 0x585   :  { %vm5694_vm2 = vcmp.eq.s32.totalorder %v12577_v53, 0  ;;  %v5895_v11 = vsel %vm12639_vm0, 0, %v12592_v45  ;;  %v6236_v16 = vand.u32 31, %v6234_v47  ;;  %vm5697_vm5 = vcmp.eq.s32.totalorder %v12577_v53, 2 }
 0x586   :  { %v5885_v51 = vor.u32 4788187, %v5884_v40  ;;  %v6069_v50 = vmul.u32 %v12583_v38, %v6053_v44  ;;  %v6072_v35 = vadd.s32 1, %v12628_v60  ;;  %v6230_v24 = vor.u32 8388608, %v12587_v1 }
 0x587   :  { %v8458_v21 = vpop.eup %8457  ;;  %v5888_v59 = vcvt.s32.f32 %v5881_v7  ;;  %vm6071_vm4 = vc.u32 %v12633_v8, %v12627_v41  ;;  %v5899_v61 = vadd.s32 3, %v5895_v11  ;;  %v6237_v36 = vsub.s32 32, %v6236_v16 }
 0x588   :  { %v8460_v0 = vpop.eup %8459  ;;  %v5698_v26 = vxor.u32 2147483648, %v8458_v21  ;;  %v5886_v13 = vand.u32 2147483647, %v5885_v51  ;;  %v6073_v45 = vsel %vm6071_vm4, %v6072_v35, %v12628_v60  ;;  %v12654_v38 = vshrl.u32 %v6234_v47, 5 }
 0x589   :  { %v5695_v12 = vxor.u32 2147483648, %v8460_v0  ;;  %v6074_v55 = vadd.s32 %v6073_v45, %v6069_v50  ;;  %v6239_v44 = vshll.u32 %v14804_v43, %v6236_v16  ;;  %v6240_v18 = vshrl.u32 %v14805_v33, %v6237_v36 }
 0x58a   :  { %v5699_v10 = vsel %vm5697_vm5, %v5698_v26, %v8460_v0  ;;  %v5889_v6 = vmul.f32 %v5888_v59, %v5886_v13  ;;  %v6243_v34 = vshrl.u32 %v14806_v58, %v6237_v36  ;;  %v6242_v40 = vshll.u32 %v14805_v33, %v6236_v16  ;;  %v15020_v59 = vld [vmem:[#allocation66_spill] sm:$0xff] }
 0x58b   :  { %v5696_v1 = vsel %vm5694_vm2, %v8458_v21, %v5695_v12  ;;  %v6075_v60 = vadd.s32 536870912, %v6074_v55  ;;  %v6241_v47 = vor.u32 %v6240_v18, %v6239_v44  ;;  %v6245_v51 = vshll.u32 %v14806_v58, %v6236_v16 }
 0x58c   :  { %v5700_v5 = vsel %vm5693_vm10, %v5696_v1, %v5699_v10  ;;  %v5890_v7 = vxor.u32 2147483648, %v5889_v6  ;;  %v6246_v11 = vshrl.u32 %v14807_v9, %v6237_v36  ;;  %v6248_v35 = vshll.u32 %v14807_v9, %v6236_v16 }
 0x58d   :  { %v5701_v15 = vsel %vm5690_vm1, nan, %v5700_v5  ;;  %v6076_v50 = vshrl.u32 %v6075_v60, 30  ;;  %v6249_v53 = vshrl.u32 %v14808_v39, %v6237_v36  ;;  %v6244_v49 = vor.u32 %v6243_v34, %v6242_v40 }
 0x58e   :  { %v5891_v21 = vsel %vm5808_vm7, %v5890_v7, %v5889_v6  ;;  %7691 = vst [vmem:[#allocation13 + $0x160] sm:$0xff] %v5701_v15  ;;  %v6251_v26 = vshll.u32 %v14808_v39, %v6236_v16  ;;  %v6252_v13 = vshrl.u32 %v14992_v25, %v6237_v36  ;;  %v12679_v12 = vadd.f32 %v11894_v63, %v15020_v59  ;;  %v15077_v59 = vld [vmem:[#allocation49_spill] sm:$0xff] }
 0x58f   :  { %v5894_v0 = vsel %vm12639_vm0, %v12366_v2, %v5891_v21  ;;  %v6077_v45 = vshll.u32 %v6076_v50, 30  ;;  %v6250_v10 = vor.u32 %v6249_v53, %v6248_v35  ;;  %vm6016_vm6 = vcmp.lt.s32.totalorder %v12388_v17, 0 }
 0x590   :  { %8461 = vcosq.f32 %v5894_v0  ;;  %v6247_v6 = vor.u32 %v6246_v11, %v6245_v51  ;;  %v6253_v1 = vor.u32 %v6252_v13, %v6251_v26  ;;  %v5900_v44 = vand.u32 3, %v5899_v61 }
 0x591   :  { %8463 = vsinq.f32 %v5894_v0  ;;  %v12682_v42 = vsub.s32 %v6074_v55, %v6077_v45  ;;  %vm6254_vm3 = vcmp.lt.s32.totalorder %v12654_v38, 1  ;;  %v6270_v16 = vshll.u32 %v6230_v24, 8 }
 0x592   :  { %v6100_v18 = vsub.s32 4, %v6076_v50  ;;  %vm6257_vm15 = vcmp.lt.s32.totalorder %v12654_v38, 4  ;;  %v6262_v63 = vsel %vm6254_vm3, %v6241_v47, %v6244_v49  ;;  %v6433_v34 = vand.u32 2139095040, %v12574_v54 }
 0x593   :  { %v6080_v5 = vsub.s32 0, %v12682_v42  ;;  %vm6255_vm7 = vcmp.lt.s32.totalorder %v12654_v38, 2  ;;  %vm6256_vm9 = vcmp.lt.s32.totalorder %v12654_v38, 3  ;;  %v6263_v61 = vsel %vm6257_vm15, %v6250_v10, 920167782 }
 0x594   :  { %v6259_v55 = vsel %vm6257_vm15, %v6247_v6, 2102212464  ;;  %v6264_v7 = vsel %vm6256_vm9, %v6247_v6, %v6263_v61  ;;  %v6266_v24 = vsel %vm6254_vm3, %v6244_v49, %v6247_v6  ;;  %v6267_v60 = vsel %vm6257_vm15, %v6253_v1, 1326507024 }
 0x595   :  { %v7964_v40 = vmin.u32 %v6080_v5, %v12682_v42  ;;  %v6238_v15 = vshrl.u32 %v14804_v43, %v6237_v36  ;;  %v6265_v51 = vsel %vm6255_vm7, %v6262_v63, %v6264_v7  ;;  %v6268_v11 = vsel %vm6256_vm9, %v6250_v10, %v6267_v60 }
 0x596   :  { %vm5898_vm8 = vweird.f32 %v12366_v2  ;;  %vm12705_vm13 = vcmp.le.f32.partialorder %v6014_v20, 0.7853982  ;;  %v6269_v35 = vsel %vm6255_vm7, %v6266_v24, %v6268_v11  ;;  %v6260_v13 = vsel %vm6256_vm9, %v6244_v49, %v6259_v55 }
 0x597   :  { %v12711_v53 = vmul.u32.u64.low %v6270_v16, %v6265_v51  ;;  %v12712_v0 = vmul.u32.u64.high %v6270_v16, %v6265_v51, %v12711_v53  ;;  %v6082_v36 = vclz %v7964_v40  ;;  %v6258_v26 = vsel %vm6254_vm3, %v6238_v15, %v6241_v47 }
 0x598   :  { %v14752_v45 = vand.u32 2147483647, %v12574_v54  ;;  %v6101_v20 = vsel %vm6016_vm6, %v6100_v18, %v6076_v50  ;;  %v12721_v10 = vmul.u32.u64.low %v6270_v16, %v6269_v35  ;;  %v12722_v6 = vmul.u32.u64.high %v6270_v16, %v6269_v35, %v12721_v10 }
 0x599   :  { %v6434_v1 = vshrl.u32 %v6433_v34, 23  ;;  %vm5901_vm12 = vcmp.lt.s32.totalorder %v5900_v44, 2  ;;  %vm5902_vm11 = vcmp.eq.s32.totalorder %v5900_v44, 0  ;;  %vm5905_vm14 = vcmp.eq.s32.totalorder %v5900_v44, 2 }
 0x59a   :  { %v8462_v63 = vpop.eup %8461  ;;  %v7965_v5 = vadd.s32 4294967294, %v6082_v36  ;;  %v6261_v47 = vsel %vm6255_vm7, %v6258_v26, %v6260_v13  ;;  %v6280_v49 = vadd.s32 1, %v12712_v0  ;;  %v6070_v50 = vadd.s32 %v12627_v41, %v12633_v8 }
 0x59b   :  { %v8464_v61 = vpop.eup %8463  ;;  %v5906_v7 = vxor.u32 2147483648, %v8462_v63  ;;  %v7979_v55 = vadd.s32 4294967169, %v6434_v1  ;;  %v6103_v18 = vsel %vm12705_vm13, 0, %v6101_v20  ;;  %vm6279_vm10 = vc.u32 %v12722_v6, %v12711_v53 }
 0x59c   :  { %v5903_v24 = vxor.u32 2147483648, %v8464_v61  ;;  %vm7966_vm1 = vcmp.lt.s32.totalorder %v7965_v5, 0  ;;  %v6437_v40 = vand.u32 8388607, %v14752_v45  ;;  %v6277_v11 = vmul.u32 %v6270_v16, %v6261_v47 }
 0x59d   :  { %v5907_v34 = vsel %vm5905_vm14, %v5906_v7, %v8464_v61  ;;  %v6085_v60 = vsel %vm7966_vm1, 0, %v7965_v5  ;;  %v6281_v8 = vsel %vm6279_vm10, %v6280_v49, %v12712_v0  ;;  %v6440_v36 = vadd.s32 1, %v7979_v55  ;;  %v15024_v49 = vld [vmem:[#allocation68_spill] sm:$0xff] }
 0x59e   :  { %v5904_v38 = vsel %vm5902_vm11, %v8462_v63, %v5903_v24  ;;  %v6086_v15 = vsub.s32 32, %v6085_v60  ;;  %v6090_v51 = vsub.s32 4294967266, %v6085_v60  ;;  %v6087_v41 = vshll.u32 %v12682_v42, %v6085_v60  ;;  %v15023_v42 = vld [vmem:[#allocation67_spill] sm:$0xff] }
 0x59f   :  { %v5908_v35 = vsel %vm5901_vm12, %v5904_v38, %v5907_v34  ;;  %v6282_v10 = vadd.s32 %v6281_v8, %v6277_v11  ;;  %v6107_v1 = vadd.s32 3, %v6103_v18  ;;  %v6438_v5 = vor.u32 8388608, %v6437_v40 }
 0x5a0   :  { %v5909_v26 = vsel %vm5898_vm8, nan, %v5908_v35  ;;  %v6088_v13 = vshrl.u32 %v6070_v50, %v6086_v15  ;;  %v6091_v20 = vadd.s32 127, %v6090_v51  ;;  %vm6441_vm0 = vcmp.gt.s32.totalorder %v6440_v36, 0 }
 0x5a1   :  { %v6641_v63 = vand.u32 2139095040, %v12679_v12  ;;  %7693 = vst [vmem:[#allocation13 + $0x170] sm:$0xff] %v5909_v26  ;;  %v6283_v61 = vadd.s32 536870912, %v6282_v10  ;;  %v6442_v7 = vsel %vm6441_vm0, %v6440_v36, 0  ;;  %v12743_v0 = vadd.f32 %v11896_v62, %v15023_v42  ;;  %v15076_v42 = vld [vmem:[#allocation48_spill] sm:$0xff] }
 0x5a2   :  { %v6089_v16 = vor.u32 %v6088_v13, %v6087_v41  ;;  %v6092_v44 = vshll.u32 %v6091_v20, 23  ;;  %v6444_v47 = vand.u32 31, %v6442_v7  ;;  %v14751_v2 = vand.u32 2147483647, %v12679_v12 }
 0x5a3   :  { %v12748_v55 = vadd.f32 %v11900_v19, %v15024_v49  ;;  %vm6224_vm2 = vcmp.lt.s32.totalorder %v12541_v29, 0  ;;  %v6284_v50 = vshrl.u32 %v6283_v61, 30  ;;  %v12751_v18 = vand.u32 3, %v6107_v1  ;;  %v15074_v49 = vld [vmem:[#allocation42_spill] sm:$0xff] }
 0x5a4   :  { %v6093_v24 = vor.u32 4788187, %v6092_v44  ;;  %v12754_v34 = vadd.s32 %v12711_v53, %v12722_v6  ;;  %v6445_v60 = vsub.s32 32, %v6444_v47  ;;  %v12756_v40 = vshll.u32 %v6438_v5, 8 }
 0x5a5   :  { %v6096_v38 = vcvt.s32.f32 %v6089_v16  ;;  %v6285_v15 = vshll.u32 %v6284_v50, 30  ;;  %v6642_v51 = vshrl.u32 %v6641_v63, 23  ;;  %v12763_v41 = vand.u32 8388607, %v14751_v2 }
 0x5a6   :  { %v6094_v62 = vand.u32 2147483647, %v6093_v24  ;;  %v6448_v11 = vshrl.u32 %v14805_v33, %v6445_v60  ;;  %v6451_v19 = vshrl.u32 %v14806_v58, %v6445_v60  ;;  %v6454_v35 = vshrl.u32 %v14807_v9, %v6445_v60 }
 0x5a7   :  { %v12765_v53 = vsub.s32 %v6282_v10, %v6285_v15  ;;  %v6447_v6 = vshll.u32 %v14804_v43, %v6444_v47  ;;  %v6457_v36 = vshrl.u32 %v14808_v39, %v6445_v60  ;;  %v6308_v26 = vsub.s32 4, %v6284_v50 }
 0x5a8   :  { %v6097_v8 = vmul.f32 %v6096_v38, %v6094_v62  ;;  %v6443_v13 = vshrl.u32 %v6442_v7, 5  ;;  %v6450_v20 = vshll.u32 %v14805_v33, %v6444_v47  ;;  %v6453_v1 = vshll.u32 %v14806_v58, %v6444_v47 }
 0x5a9   :  { %v6288_v63 = vsub.s32 0, %v12765_v53  ;;  %v6449_v16 = vor.u32 %v6448_v11, %v6447_v6  ;;  %v6456_v44 = vshll.u32 %v14807_v9, %v6444_v47  ;;  %vm12775_vm5 = vcmp.le.f32.partialorder %v6222_v52, 0.7853982 }
 0x5aa   :  { %v6098_v5 = vxor.u32 2147483648, %v6097_v8  ;;  %v6452_v61 = vor.u32 %v6451_v19, %v6450_v20  ;;  %v6455_v24 = vor.u32 %v6454_v35, %v6453_v1  ;;  %v6459_v7 = vshll.u32 %v14808_v39, %v6444_v47  ;;  %v12790_v47 = vpop.f32.mrb[7].mxu1 }
 0x5ab   :  { %v6460_v62 = vshrl.u32 %v14992_v25, %v6445_v60  ;;  %v7972_v15 = vmin.u32 %v6288_v63, %v12765_v53  ;;  %v6458_v11 = vor.u32 %v6457_v36, %v6456_v44  ;;  %v7987_v6 = vadd.s32 4294967169, %v6642_v51 }
 0x5ac   :  { %v6099_v38 = vsel %vm6016_vm6, %v6098_v5, %v6097_v8  ;;  %v6309_v2 = vsel %vm6224_vm2, %v6308_v26, %v6284_v50  ;;  %v6446_v19 = vshrl.u32 %v14804_v43, %v6445_v60  ;;  %vm6462_vm4 = vcmp.lt.s32.totalorder %v6443_v13, 1 }
 0x5ad   :  { %v6102_v52 = vsel %vm12705_vm13, %v12388_v17, %v6099_v38  ;;  %v6461_v35 = vor.u32 %v6460_v62, %v6459_v7  ;;  %v6290_v20 = vclz %v7972_v15  ;;  %vm6465_vm6 = vcmp.lt.s32.totalorder %v6443_v13, 4 }
 0x5ae   :  { %8465 = vcosq.f32 %v6102_v52  ;;  %vm6463_vm3 = vcmp.lt.s32.totalorder %v6443_v13, 2  ;;  %v6467_v8 = vsel %vm6465_vm6, %v6455_v24, 2102212464  ;;  %v6470_v51 = vsel %vm6462_vm4, %v6449_v16, %v6452_v61 }
 0x5af   :  { %8467 = vsinq.f32 %v6102_v52  ;;  %v7973_v36 = vadd.s32 4294967294, %v6290_v20  ;;  %vm6464_vm15 = vcmp.lt.s32.totalorder %v6443_v13, 3  ;;  %v6471_v21 = vsel %vm6465_vm6, %v6458_v11, 920167782 }
 0x5b0   :  { %v6474_v1 = vsel %vm6462_vm4, %v6452_v61, %v6455_v24  ;;  %v6466_v5 = vsel %vm6462_vm4, %v6446_v19, %v6449_v16  ;;  %v6472_v63 = vsel %vm6464_vm15, %v6455_v24, %v6471_v21  ;;  %v6475_v50 = vsel %vm6465_vm6, %v6461_v35, 1326507024 }
 0x5b1   :  { %v6648_v26 = vadd.s32 1, %v7987_v6  ;;  %vm7974_vm7 = vcmp.lt.s32.totalorder %v7973_v36, 0  ;;  %v6468_v60 = vsel %vm6464_vm15, %v6452_v61, %v6467_v8  ;;  %v6473_v44 = vsel %vm6463_vm3, %v6470_v51, %v6472_v63 }
 0x5b2   :  { %v6476_v7 = vsel %vm6464_vm15, %v6458_v11, %v6475_v50  ;;  %v6293_v62 = vsel %vm7974_vm7, 0, %v7973_v36  ;;  %v12795_v15 = vmul.u32.u64.low %v12756_v40, %v6473_v44  ;;  %v12796_v52 = vmul.u32.u64.high %v12756_v40, %v6473_v44, %v12795_v15 }
 0x5b3   :  { %v6477_v38 = vsel %vm6463_vm3, %v6474_v1, %v6476_v7  ;;  %v6294_v20 = vsub.s32 32, %v6293_v62  ;;  %v6298_v45 = vsub.s32 4294967266, %v6293_v62  ;;  %v6311_v16 = vsel %vm12775_vm5, 0, %v6309_v2 }
 0x5b4   :  { %vm6649_vm9 = vcmp.gt.s32.totalorder %v6648_v26, 0  ;;  %v6469_v24 = vsel %vm6463_vm3, %v6466_v5, %v6468_v60  ;;  %v12803_v61 = vmul.u32.u64.low %v12756_v40, %v6477_v38  ;;  %v12804_v6 = vmul.u32.u64.high %v12756_v40, %v6477_v38, %v12803_v61 }
 0x5b5   :  { %v6650_v11 = vsel %vm6649_vm9, %v6648_v26, 0  ;;  %v6295_v19 = vshll.u32 %v12765_v53, %v6293_v62  ;;  %v6296_v35 = vshrl.u32 %v12754_v34, %v6294_v20  ;;  %v6299_v8 = vadd.s32 127, %v6298_v45 }
 0x5b6   :  { %v6652_v51 = vand.u32 31, %v6650_v11  ;;  %vm6106_vm8 = vweird.f32 %v12388_v17  ;;  %vm6109_vm13 = vcmp.lt.s32.totalorder %v12751_v18, 2  ;;  %v6315_v36 = vadd.s32 3, %v6311_v16 }
 0x5b7   :  { %v6488_v2 = vadd.s32 1, %v12796_v52  ;;  %vm6110_vm12 = vcmp.eq.s32.totalorder %v12751_v18, 0  ;;  %vm6113_vm11 = vcmp.eq.s32.totalorder %v12751_v18, 2  ;;  %v6297_v21 = vor.u32 %v6296_v35, %v6295_v19 }
 0x5b8   :  { %v8466_v13 = vpop.eup %8465  ;;  %v6300_v1 = vshll.u32 %v6299_v8, 23  ;;  %v6485_v34 = vmul.u32 %v12756_v40, %v6469_v24  ;;  %vm6487_vm14 = vc.u32 %v12804_v6, %v12795_v15  ;;  %v6653_v45 = vsub.s32 32, %v6652_v51 }
 0x5b9   :  { %v8468_v5 = vpop.eup %8467  ;;  %v6114_v53 = vxor.u32 2147483648, %v8466_v13  ;;  %v6489_v26 = vsel %vm6487_vm14, %v6488_v2, %v12796_v52  ;;  %v6646_v60 = vor.u32 8388608, %v12763_v41  ;;  %v12818_v7 = vand.u32 3, %v6315_v36 }
 0x5ba   :  { %v6111_v63 = vxor.u32 2147483648, %v8468_v5  ;;  %v6301_v50 = vor.u32 4788187, %v6300_v1  ;;  %v6490_v62 = vadd.s32 %v6489_v26, %v6485_v34  ;;  %v6304_v16 = vcvt.s32.f32 %v6297_v21 }
 0x5bb   :  { %v6115_v44 = vsel %vm6113_vm11, %v6114_v53, %v8468_v5  ;;  %vm6432_vm1 = vcmp.lt.s32.totalorder %v12574_v54, 0  ;;  %v12824_v24 = vshrl.u32 %v6650_v11, 5  ;;  %v6656_v41 = vshrl.u32 %v14805_v33, %v6653_v45 }
 0x5bc   :  { %v6112_v20 = vsel %vm6110_vm12, %v8466_v13, %v6111_v63  ;;  %v6302_v40 = vand.u32 2147483647, %v6301_v50  ;;  %v6491_v61 = vadd.s32 536870912, %v6490_v62  ;;  %v6659_v19 = vshrl.u32 %v14806_v58, %v6653_v45 }
 0x5bd   :  { %v6116_v52 = vsel %vm6109_vm13, %v6112_v20, %v6115_v44  ;;  %v6655_v36 = vshll.u32 %v14804_v43, %v6652_v51  ;;  %v6662_v2 = vshrl.u32 %v14807_v9, %v6653_v45  ;;  %v6658_v11 = vshll.u32 %v14805_v33, %v6652_v51 }
 0x5be   :  { %v6117_v35 = vsel %vm6106_vm8, nan, %v6116_v52  ;;  %v6305_v8 = vmul.f32 %v6304_v16, %v6302_v40  ;;  %v6492_v13 = vshrl.u32 %v6491_v61, 30  ;;  %v6661_v21 = vshll.u32 %v14806_v58, %v6652_v51 }
 0x5bf   :  { %v6665_v18 = vshrl.u32 %v14808_v39, %v6653_v45  ;;  %7695 = vst [vmem:[#allocation13 + $0x180] sm:$0xff] %v6117_v35  ;;  %v15027_v5 = vand.u32 2147483647, %v12574_v54  ;;  %v6664_v17 = vshll.u32 %v14807_v9, %v6652_v51  ;;  %v6667_v34 = vshll.u32 %v14808_v39, %v6652_v51 }
 0x5c0   :  { %v6306_v1 = vxor.u32 2147483648, %v6305_v8  ;;  %v6668_v63 = vshrl.u32 %v14992_v25, %v6653_v45  ;;  %v6493_v50 = vshll.u32 %v6492_v13, 30  ;;  %v6516_v26 = vsub.s32 4, %v6492_v13 }
 0x5c1   :  { %vm12839_vm10 = vcmp.le.f32.partialorder %v15027_v5, 0.7853982  ;;  %v6657_v44 = vor.u32 %v6656_v41, %v6655_v36  ;;  %v6660_v20 = vor.u32 %v6659_v19, %v6658_v11  ;;  %v6663_v16 = vor.u32 %v6662_v2, %v6661_v21 }
 0x5c2   :  { %v6307_v40 = vsel %vm6224_vm2, %v6306_v1, %v6305_v8  ;;  %v6666_v52 = vor.u32 %v6665_v18, %v6664_v17  ;;  %v6669_v61 = vor.u32 %v6668_v63, %v6667_v34  ;;  %v12851_v5 = vsub.s32 %v6490_v62, %v6493_v50 }
 0x5c3   :  { %v6310_v35 = vsel %vm12775_vm5, %v12541_v29, %v6307_v40  ;;  %v6654_v51 = vshrl.u32 %v14804_v43, %v6653_v45  ;;  %v6849_v38 = vand.u32 2139095040, %v12743_v0  ;;  %vm6670_vm0 = vcmp.lt.s32.totalorder %v12824_v24, 1 }
 0x5c4   :  { %8469 = vcosq.f32 %v6310_v35  ;;  %vm6672_vm4 = vcmp.lt.s32.totalorder %v12824_v24, 3  ;;  %vm6673_vm2 = vcmp.lt.s32.totalorder %v12824_v24, 4  ;;  %v6496_v41 = vsub.s32 0, %v12851_v5 }
 0x5c5   :  { %8471 = vsinq.f32 %v6310_v35  ;;  %v6517_v10 = vsel %vm6432_vm1, %v6516_v26, %v6492_v13  ;;  %v6678_v62 = vsel %vm6670_vm0, %v6657_v44, %v6660_v20  ;;  %v6675_v19 = vsel %vm6673_vm2, %v6663_v16, 2102212464  ;;  %v15030_v35 = vld [vmem:[#allocation71_spill] sm:$0xff] }
 0x5c6   :  { %v6679_v45 = vsel %vm6673_vm2, %v6666_v52, 920167782  ;;  %v6682_v8 = vsel %vm6670_vm0, %v6660_v20, %v6663_v16  ;;  %v6683_v36 = vsel %vm6673_vm2, %v6669_v61, 1326507024  ;;  %v7980_v2 = vmin.u32 %v6496_v41, %v12851_v5 }
 0x5c7   :  { %vm6671_vm5 = vcmp.lt.s32.totalorder %v12824_v24, 2  ;;  %v6680_v11 = vsel %vm6672_vm4, %v6663_v16, %v6679_v45  ;;  %v6684_v21 = vsel %vm6672_vm4, %v6666_v52, %v6683_v36  ;;  %v6686_v1 = vshll.u32 %v6646_v60, 8 }
 0x5c8   :  { %v6681_v13 = vsel %vm6671_vm5, %v6678_v62, %v6680_v11  ;;  %v6685_v18 = vsel %vm6671_vm5, %v6682_v8, %v6684_v21  ;;  %v6850_v17 = vshrl.u32 %v6849_v38, 23  ;;  %v6498_v34 = vclz %v7980_v2 }
 0x5c9   :  { %v6519_v63 = vsel %vm12839_vm10, 0, %v6517_v10  ;;  %v6674_v50 = vsel %vm6670_vm0, %v6654_v51, %v6657_v44  ;;  %v6676_v26 = vsel %vm6672_vm4, %v6660_v20, %v6675_v19  ;;  %v12889_v60 = vadd.f32 %v11902_v28, %v15030_v35 }
 0x5ca   :  { %v12881_v40 = vmul.u32.u64.low %v6686_v1, %v6685_v18  ;;  %v12882_v16 = vmul.u32.u64.high %v6686_v1, %v6685_v18, %v12881_v40  ;;  %v12884_v52 = vmul.u32.u64.low %v6686_v1, %v6681_v13  ;;  %v12885_v61 = vmul.u32.u64.high %v6686_v1, %v6681_v13, %v12884_v52 }
 0x5cb   :  { %vm6314_vm6 = vweird.f32 %v12541_v29  ;;  %v7981_v38 = vadd.s32 4294967294, %v6498_v34  ;;  %v7995_v41 = vadd.s32 4294967169, %v6850_v17  ;;  %vm6317_vm3 = vcmp.lt.s32.totalorder %v12818_v7, 2 }
 0x5cc   :  { %vm6318_vm15 = vcmp.eq.s32.totalorder %v12818_v7, 0  ;;  %vm6321_vm7 = vcmp.eq.s32.totalorder %v12818_v7, 2  ;;  %v6677_v44 = vsel %vm6671_vm5, %v6674_v50, %v6676_v26  ;;  %v6486_v20 = vadd.s32 %v12795_v15, %v12804_v6 }
 0x5cd   :  { %vm7982_vm9 = vcmp.lt.s32.totalorder %v7981_v38, 0  ;;  %v6523_v51 = vadd.s32 3, %v6519_v63  ;;  %v6856_v28 = vadd.s32 1, %v7995_v41  ;;  %vm6695_vm8 = vc.u32 %v12882_v16, %v12884_v52 }
 0x5ce   :  { %v8470_v10 = vpop.eup %8469  ;;  %v6501_v62 = vsel %vm7982_vm9, 0, %v7981_v38  ;;  %v6696_v19 = vadd.s32 1, %v12885_v61  ;;  %v15031_v45 = vand.u32 2147483647, %v12743_v0  ;;  %v6693_v21 = vmul.u32 %v6686_v1, %v6677_v44 }
 0x5cf   :  { %v8472_v36 = vpop.eup %8471  ;;  %v6322_v2 = vxor.u32 2147483648, %v8470_v10  ;;  %v6502_v11 = vsub.s32 32, %v6501_v62  ;;  %v6506_v24 = vsub.s32 4294967266, %v6501_v62  ;;  %v6503_v15 = vshll.u32 %v12851_v5, %v6501_v62 }
 0x5d0   :  { %v6853_v8 = vand.u32 8388607, %v15031_v45  ;;  %v6319_v13 = vxor.u32 2147483648, %v8472_v36  ;;  %v6697_v6 = vsel %vm6695_vm8, %v6696_v19, %v12885_v61  ;;  %vm6857_vm13 = vcmp.gt.s32.totalorder %v6856_v28, 0 }
 0x5d1   :  { %v6323_v18 = vsel %vm6321_vm7, %v6322_v2, %v8472_v36  ;;  %v6504_v17 = vshrl.u32 %v6486_v20, %v6502_v11  ;;  %v6507_v34 = vadd.s32 127, %v6506_v24  ;;  %v6698_v63 = vadd.s32 %v6697_v6, %v6693_v21 }
 0x5d2   :  { %v6320_v50 = vsel %vm6318_vm15, %v8470_v10, %v6319_v13  ;;  %v6854_v26 = vor.u32 8388608, %v6853_v8  ;;  %v6858_v40 = vsel %vm6857_vm13, %v6856_v28, 0  ;;  %v7057_v38 = vand.u32 2139095040, %v12748_v55 }
 0x5d3   :  { %v6324_v1 = vsel %vm6317_vm3, %v6320_v50, %v6323_v18  ;;  %v6505_v5 = vor.u32 %v6504_v17, %v6503_v15  ;;  %v6508_v41 = vshll.u32 %v6507_v34, 23  ;;  %v6699_v61 = vadd.s32 536870912, %v6698_v63 }
 0x5d4   :  { %v6325_v44 = vsel %vm6314_vm6, nan, %v6324_v1  ;;  %vm6640_vm12 = vcmp.lt.s32.totalorder %v12679_v12, 0  ;;  %v6860_v20 = vand.u32 31, %v6858_v40  ;;  %v14753_v62 = vand.u32 2147483647, %v12748_v55 }
 0x5d5   :  { %v6509_v19 = vor.u32 4788187, %v6508_v41  ;;  %v12916_v10 = vand.u32 3, %v6523_v51  ;;  %v15032_v28 = vand.u32 2147483647, %v12679_v12  ;;  %v6700_v7 = vshrl.u32 %v6699_v61, 30 }
 0x5d6   :  { %7697 = vst [vmem:[#allocation13 + $0x190] sm:$0xff] %v6325_v44  ;;  %v12925_v8 = vadd.s32 %v12884_v52, %v12882_v16  ;;  %v6861_v29 = vsub.s32 32, %v6860_v20  ;;  %v12927_v36 = vshll.u32 %v6854_v26, 8  ;;  %v7058_v2 = vshrl.u32 %v7057_v38, 23 }
 0x5d7   :  { %vm12920_vm11 = vcmp.le.f32.partialorder %v15032_v28, 0.7853982  ;;  %v6510_v11 = vand.u32 2147483647, %v6509_v19  ;;  %v6512_v24 = vcvt.s32.f32 %v6505_v5  ;;  %v6701_v21 = vshll.u32 %v6700_v7, 30 }
 0x5d8   :  { %v6724_v51 = vsub.s32 4, %v6700_v7  ;;  %v6864_v13 = vshrl.u32 %v14805_v33, %v6861_v29  ;;  %v6867_v15 = vshrl.u32 %v14806_v58, %v6861_v29  ;;  %v6870_v6 = vshrl.u32 %v14807_v9, %v6861_v29 }
 0x5d9   :  { %v12934_v18 = vand.u32 8388607, %v14753_v62  ;;  %v6513_v16 = vmul.f32 %v6512_v24, %v6510_v11  ;;  %v12936_v52 = vsub.s32 %v6698_v63, %v6701_v21  ;;  %v6863_v17 = vshll.u32 %v14804_v43, %v6860_v20 }
 0x5da   :  { %v6873_v34 = vshrl.u32 %v14808_v39, %v6861_v29  ;;  %v6859_v50 = vshrl.u32 %v6858_v40, 5  ;;  %v6866_v26 = vshll.u32 %v14805_v33, %v6860_v20  ;;  %v6869_v38 = vshll.u32 %v14806_v58, %v6860_v20 }
 0x5db   :  { %v6872_v1 = vshll.u32 %v14807_v9, %v6860_v20  ;;  %v6514_v5 = vxor.u32 2147483648, %v6513_v16  ;;  %v6704_v41 = vsub.s32 0, %v12936_v52  ;;  %v6725_v61 = vsel %vm6640_vm12, %v6724_v51, %v6700_v7 }
 0x5dc   :  { %v6865_v44 = vor.u32 %v6864_v13, %v6863_v17  ;;  %v6868_v63 = vor.u32 %v6867_v15, %v6866_v26  ;;  %v6871_v19 = vor.u32 %v6870_v6, %v6869_v38  ;;  %v6875_v28 = vshll.u32 %v14808_v39, %v6860_v20 }
 0x5dd   :  { %v6876_v11 = vshrl.u32 %v14992_v25, %v6861_v29  ;;  %v6515_v40 = vsel %vm6432_vm1, %v6514_v5, %v6513_v16  ;;  %v7988_v24 = vmin.u32 %v6704_v41, %v12936_v52  ;;  %v6874_v21 = vor.u32 %v6873_v34, %v6872_v1 }
 0x5de   :  { %v8003_v62 = vadd.s32 4294967169, %v7058_v2  ;;  %v6518_v35 = vsel %vm12839_vm10, %v12574_v54, %v6515_v40  ;;  %v6727_v7 = vsel %vm12920_vm11, 0, %v6725_v61  ;;  %v6862_v51 = vshrl.u32 %v14804_v43, %v6861_v29 }
 0x5df   :  { %v6877_v13 = vor.u32 %v6876_v11, %v6875_v28  ;;  %8473 = vcosq.f32 %v6518_v35  ;;  %v6706_v20 = vclz %v7988_v24  ;;  %vm6878_vm14 = vcmp.lt.s32.totalorder %v6859_v50, 1 }
 0x5e0   :  { %vm6881_vm0 = vcmp.lt.s32.totalorder %v6859_v50, 4  ;;  %8475 = vsinq.f32 %v6518_v35  ;;  %vm6879_vm1 = vcmp.lt.s32.totalorder %v6859_v50, 2  ;;  %v6886_v6 = vsel %vm6878_vm14, %v6865_v44, %v6868_v63 }
 0x5e1   :  { %v6883_v15 = vsel %vm6881_vm0, %v6871_v19, 2102212464  ;;  %v7989_v16 = vadd.s32 4294967294, %v6706_v20  ;;  %vm6880_vm4 = vcmp.lt.s32.totalorder %v6859_v50, 3  ;;  %v6887_v2 = vsel %vm6881_vm0, %v6874_v21, 920167782 }
 0x5e2   :  { %v6890_v17 = vsel %vm6878_vm14, %v6868_v63, %v6871_v19  ;;  %v6882_v53 = vsel %vm6878_vm14, %v6862_v51, %v6865_v44  ;;  %v6888_v34 = vsel %vm6880_vm4, %v6871_v19, %v6887_v2  ;;  %v6891_v26 = vsel %vm6881_vm0, %v6877_v13, 1326507024 }
 0x5e3   :  { %v7064_v38 = vadd.s32 1, %v8003_v62  ;;  %vm7990_vm10 = vcmp.lt.s32.totalorder %v7989_v16, 0  ;;  %v6884_v1 = vsel %vm6880_vm4, %v6868_v63, %v6883_v15  ;;  %v6889_v29 = vsel %vm6879_vm1, %v6886_v6, %v6888_v34 }
 0x5e4   :  { %v6892_v5 = vsel %vm6880_vm4, %v6874_v21, %v6891_v26  ;;  %v6709_v41 = vsel %vm7990_vm10, 0, %v7989_v16  ;;  %v12960_v35 = vmul.u32.u64.low %v12927_v36, %v6889_v29  ;;  %v12961_v28 = vmul.u32.u64.high %v12927_v36, %v6889_v29, %v12960_v35 }
 0x5e5   :  { %v6893_v61 = vsel %vm6879_vm1, %v6890_v17, %v6892_v5  ;;  %v6710_v11 = vsub.s32 32, %v6709_v41  ;;  %v6714_v40 = vsub.s32 4294967266, %v6709_v41  ;;  %v6731_v24 = vadd.s32 3, %v6727_v7 }
 0x5e6   :  { %vm7065_vm2 = vcmp.gt.s32.totalorder %v7064_v38, 0  ;;  %vm6522_vm5 = vweird.f32 %v12574_v54  ;;  %v6885_v62 = vsel %vm6879_vm1, %v6882_v53, %v6884_v1  ;;  %v6711_v21 = vshll.u32 %v12936_v52, %v6709_v41 }
 0x5e7   :  { %v12967_v44 = vmul.u32.u64.low %v12927_v36, %v6893_v61  ;;  %v12968_v63 = vmul.u32.u64.high %v12927_v36, %v6893_v61, %v12967_v44  ;;  %v7066_v19 = vsel %vm7065_vm2, %v7064_v38, 0  ;;  %v6712_v51 = vshrl.u32 %v12925_v8, %v6710_v11 }
 0x5e8   :  { %v6715_v13 = vadd.s32 127, %v6714_v40  ;;  %v7068_v20 = vand.u32 31, %v7066_v19  ;;  %vm6525_vm6 = vcmp.lt.s32.totalorder %v12916_v10, 2  ;;  %vm6526_vm3 = vcmp.eq.s32.totalorder %v12916_v10, 0 }
 0x5e9   :  { %v6904_v7 = vadd.s32 1, %v12961_v28  ;;  %v7062_v50 = vor.u32 8388608, %v12934_v18  ;;  %v8474_v15 = vpop.eup %8473  ;;  %vm6529_vm15 = vcmp.eq.s32.totalorder %v12916_v10, 2  ;;  %v6713_v6 = vor.u32 %v6712_v51, %v6711_v21 }
 0x5ea   :  { %v6716_v16 = vshll.u32 %v6715_v13, 23  ;;  %v7069_v2 = vsub.s32 32, %v7068_v20  ;;  %v8476_v17 = vpop.eup %8475  ;;  %v6530_v52 = vxor.u32 2147483648, %v8474_v15  ;;  %v6901_v8 = vmul.u32 %v12927_v36, %v6885_v62 }
 0x5eb   :  { %vm6903_vm7 = vc.u32 %v12968_v63, %v12960_v35  ;;  %v14755_v53 = vand.u32 2147483647, %v12889_v60  ;;  %v6527_v34 = vxor.u32 2147483648, %v8476_v17  ;;  %v12981_v38 = vand.u32 3, %v6731_v24 }
 0x5ec   :  { %v6717_v26 = vor.u32 4788187, %v6716_v16  ;;  %v6905_v18 = vsel %vm6903_vm7, %v6904_v7, %v12961_v28  ;;  %v6531_v1 = vsel %vm6529_vm15, %v6530_v52, %v8476_v17  ;;  %v12984_v5 = vshrl.u32 %v7066_v19, 5 }
 0x5ed   :  { %v6906_v29 = vadd.s32 %v6905_v18, %v6901_v8  ;;  %v12986_v41 = vshll.u32 %v7062_v50, 8  ;;  %v6528_v36 = vsel %vm6526_vm3, %v8474_v15, %v6527_v34  ;;  %v6720_v11 = vcvt.s32.f32 %v6713_v6 }
 0x5ee   :  { %v6718_v61 = vand.u32 2147483647, %v6717_v26  ;;  %v7072_v40 = vshrl.u32 %v14805_v33, %v7069_v2  ;;  %v6532_v62 = vsel %vm6525_vm6, %v6528_v36, %v6531_v1  ;;  %vm6848_vm9 = vcmp.lt.s32.totalorder %v12743_v0, 0 }
 0x5ef   :  { %v6907_v24 = vadd.s32 536870912, %v6906_v29  ;;  %v7075_v28 = vshrl.u32 %v14806_v58, %v7069_v2  ;;  %v7078_v44 = vshrl.u32 %v14807_v9, %v7069_v2  ;;  %v6533_v19 = vsel %vm6522_vm5, nan, %v6532_v62 }
 0x5f0   :  { %v6721_v21 = vmul.f32 %v6720_v11, %v6718_v61  ;;  %v7071_v51 = vshll.u32 %v14804_v43, %v7068_v20  ;;  %v7265_v13 = vand.u32 2139095040, %v12889_v60  ;;  %v7074_v50 = vshll.u32 %v14805_v33, %v7068_v20  ;;  %7699 = vst [vmem:[#allocation13 + $0x1a0] sm:$0xff] %v6533_v19 }
 0x5f1   :  { %v6908_v7 = vshrl.u32 %v6907_v24, 30  ;;  %v7077_v10 = vshll.u32 %v14806_v58, %v7068_v20  ;;  %v7081_v15 = vshrl.u32 %v14808_v39, %v7069_v2  ;;  %v15035_v16 = vand.u32 2147483647, %v12743_v0 }
 0x5f2   :  { %v6722_v6 = vxor.u32 2147483648, %v6721_v21  ;;  %v7080_v54 = vshll.u32 %v14807_v9, %v7068_v20  ;;  %v7083_v52 = vshll.u32 %v14808_v39, %v7068_v20  ;;  %v7084_v8 = vshrl.u32 %v14992_v25, %v7069_v2 }
 0x5f3   :  { %vm13005_vm8 = vcmp.le.f32.partialorder %v15035_v16, 0.7853982  ;;  %v6909_v34 = vshll.u32 %v6908_v7, 30  ;;  %v7073_v26 = vor.u32 %v7072_v40, %v7071_v51  ;;  %v7076_v18 = vor.u32 %v7075_v28, %v7074_v50 }
 0x5f4   :  { %v7079_v1 = vor.u32 %v7078_v44, %v7077_v10  ;;  %v6723_v36 = vsel %vm6640_vm12, %v6722_v6, %v6721_v21  ;;  %v6932_v61 = vsub.s32 4, %v6908_v7  ;;  %v7082_v11 = vor.u32 %v7081_v15, %v7080_v54 }
 0x5f5   :  { %v7085_v62 = vor.u32 %v7084_v8, %v7083_v52  ;;  %v6726_v24 = vsel %vm12920_vm11, %v12679_v12, %v6723_v36  ;;  %v13017_v19 = vsub.s32 %v6906_v29, %v6909_v34  ;;  %v7070_v20 = vshrl.u32 %v14804_v43, %v7069_v2  ;;  %v15038_v8 = vld [vmem:[#allocation54_spill] sm:$0xff]  ;;  %v15039_v34 = vld [vmem:[#allocation69_spill] sm:$0xff] }
 0x5f6   :  { %vm7086_vm13 = vcmp.lt.s32.totalorder %v12984_v5, 1  ;;  %8477 = vcosq.f32 %v6726_v24  ;;  %vm7087_vm14 = vcmp.lt.s32.totalorder %v12984_v5, 2  ;;  %vm7088_vm0 = vcmp.lt.s32.totalorder %v12984_v5, 3 }
 0x5f7   :  { %vm7089_vm12 = vcmp.lt.s32.totalorder %v12984_v5, 4  ;;  %8479 = vsinq.f32 %v6726_v24  ;;  %v6912_v40 = vsub.s32 0, %v13017_v19  ;;  %v7094_v44 = vsel %vm7086_vm13, %v7073_v26, %v7076_v18 }
 0x5f8   :  { %v7091_v28 = vsel %vm7089_vm12, %v7079_v1, 2102212464  ;;  %v6933_v45 = vsel %vm6848_vm9, %v6932_v61, %v6908_v7  ;;  %v7095_v29 = vsel %vm7089_vm12, %v7082_v11, 920167782  ;;  %v7098_v21 = vsel %vm7086_vm13, %v7076_v18, %v7079_v1  ;;  %v15040_v7 = vld [vmem:[#allocation55_spill] sm:$0xff]  ;;  %v15041_v61 = vld [vmem:[#allocation70_spill] sm:$0xff] }
 0x5f9   :  { %v7099_v2 = vsel %vm7089_vm12, %v7085_v62, 1326507024  ;;  %v7996_v51 = vmin.u32 %v6912_v40, %v13017_v19  ;;  %v7090_v50 = vsel %vm7086_vm13, %v7070_v20, %v7073_v26  ;;  %v7096_v10 = vsel %vm7088_vm0, %v7079_v1, %v7095_v29  ;;  %v15042_v29 = vld [vmem:[#allocation72_spill] sm:$0xff] }
 0x5fa   :  { %v7100_v15 = vsel %vm7088_vm0, %v7082_v11, %v7099_v2  ;;  %v7092_v6 = vsel %vm7088_vm0, %v7076_v18, %v7091_v28  ;;  %v7097_v16 = vsel %vm7087_vm14, %v7094_v44, %v7096_v10  ;;  %v7266_v52 = vshrl.u32 %v7265_v13, 23 }
 0x5fb   :  { %v7101_v54 = vsel %vm7087_vm14, %v7098_v21, %v7100_v15  ;;  %v13034_v36 = vmul.f32 %v15039_v34, %v15038_v8  ;;  %v13038_v62 = vmul.f32 %v15041_v61, %v15040_v7  ;;  %v6914_v24 = vclz %v7996_v51 }
 0x5fc   :  { %v6935_v26 = vsel %vm13005_vm8, 0, %v6933_v45  ;;  %v13043_v18 = vmul.u32.u64.low %v12986_v41, %v7101_v54  ;;  %v13044_v1 = vmul.u32.u64.high %v12986_v41, %v7101_v54, %v13043_v18  ;;  %v7093_v40 = vsel %vm7087_vm14, %v7090_v50, %v7092_v6 }
 0x5fd   :  { %v13047_v11 = vmul.u32.u64.low %v12986_v41, %v7097_v16  ;;  %v13048_v20 = vmul.u32.u64.high %v12986_v41, %v7097_v16, %v13047_v11  ;;  %v7997_v13 = vadd.s32 4294967294, %v6914_v24  ;;  %v8011_v28 = vadd.s32 4294967169, %v7266_v52 }
 0x5fe   :  { %v7269_v44 = vand.u32 8388607, %v14755_v53  ;;  %v13056_v21 = vadd.f32 %v11906_v14, %v15042_v29  ;;  %vm6730_vm11 = vweird.f32 %v12679_v12  ;;  %vm6734_vm1 = vcmp.eq.s32.totalorder %v12981_v38, 0 }
 0x5ff   :  { %vm6737_vm4 = vcmp.eq.s32.totalorder %v12981_v38, 2  ;;  %v6902_v45 = vadd.s32 %v12960_v35, %v12968_v63  ;;  %vm7998_vm10 = vcmp.lt.s32.totalorder %v7997_v13, 0  ;;  %v6939_v5 = vadd.s32 3, %v6935_v26 }
 0x600   :  { %v7272_v2 = vadd.s32 1, %v8011_v28  ;;  %v8478_v51 = vpop.eup %8477  ;;  %v6917_v50 = vsel %vm7998_vm10, 0, %v7997_v13  ;;  %v7109_v10 = vmul.u32 %v12986_v41, %v7093_v40  ;;  %vm7111_vm2 = vc.u32 %v13044_v1, %v13047_v11 }
 0x601   :  { %v7112_v14 = vadd.s32 1, %v13048_v20  ;;  %v8480_v15 = vpop.eup %8479  ;;  %v6738_v6 = vxor.u32 2147483648, %v8478_v51  ;;  %v6918_v16 = vsub.s32 32, %v6917_v50  ;;  %v6922_v54 = vsub.s32 4294967266, %v6917_v50 }
 0x602   :  { %v7270_v52 = vor.u32 8388608, %v7269_v44  ;;  %v6735_v8 = vxor.u32 2147483648, %v8480_v15  ;;  %v6919_v34 = vshll.u32 %v13017_v19, %v6917_v50  ;;  %vm7273_vm5 = vcmp.gt.s32.totalorder %v7272_v2, 0 }
 0x603   :  { %v7113_v35 = vsel %vm7111_vm2, %v7112_v14, %v13048_v20  ;;  %v6739_v63 = vsel %vm6737_vm4, %v6738_v6, %v8480_v15  ;;  %v6920_v7 = vshrl.u32 %v6902_v45, %v6918_v16  ;;  %v6923_v41 = vadd.s32 127, %v6922_v54  ;;  %v15046_v16 = vld [vmem:[#allocation73_spill] sm:$0xff] }
 0x604   :  { %v7114_v61 = vadd.s32 %v7113_v35, %v7109_v10  ;;  %vm6733_vm6 = vcmp.lt.s32.totalorder %v12981_v38, 2  ;;  %v6736_v24 = vsel %vm6734_vm1, %v8478_v51, %v6735_v8  ;;  %v7274_v26 = vsel %vm7273_vm5, %v7272_v2, 0 }
 0x605   :  { %v7473_v18 = vand.u32 2139095040, %v13056_v21  ;;  %v6740_v13 = vsel %vm6733_vm6, %v6736_v24, %v6739_v63  ;;  %v6921_v40 = vor.u32 %v6920_v7, %v6919_v34  ;;  %v6924_v19 = vshll.u32 %v6923_v41, 23 }
 0x606   :  { %v7115_v28 = vadd.s32 536870912, %v7114_v61  ;;  %v6741_v20 = vsel %vm6730_vm11, nan, %v6740_v13  ;;  %vm7056_vm3 = vcmp.lt.s32.totalorder %v12748_v55, 0  ;;  %v7276_v44 = vand.u32 31, %v7274_v26 }
 0x607   :  { %v14754_v45 = vand.u32 2147483647, %v13056_v21  ;;  %v6925_v50 = vor.u32 4788187, %v6924_v19  ;;  %v13078_v10 = vand.u32 3, %v6939_v5  ;;  %v13086_v14 = vshll.u32 %v7270_v52, 8 }
 0x608   :  { %v15043_v38 = vand.u32 2147483647, %v12748_v55  ;;  %v7116_v51 = vshrl.u32 %v7115_v28, 30  ;;  %7701 = vst [vmem:[#allocation13 + $0x1b0] sm:$0xff] %v6741_v20  ;;  %v13089_v12 = vadd.s32 %v13047_v11, %v13044_v1  ;;  %v7277_v15 = vsub.s32 32, %v7276_v44 }
 0x609   :  { %v7474_v6 = vshrl.u32 %v7473_v18, 23  ;;  %v13093_v54 = vmul.f32 %v15046_v16, %v12623_v56  ;;  %v6926_v5 = vand.u32 2147483647, %v6925_v50  ;;  %v6928_v8 = vcvt.s32.f32 %v6921_v40 }
 0x60a   :  { %vm13082_vm15 = vcmp.le.f32.partialorder %v15043_v38, 0.7853982  ;;  %v7117_v34 = vshll.u32 %v7116_v51, 30  ;;  %v7140_v35 = vsub.s32 4, %v7116_v51  ;;  %v7280_v63 = vshrl.u32 %v14805_v33, %v7277_v15 }
 0x60b   :  { %v7283_v7 = vshrl.u32 %v14806_v58, %v7277_v15  ;;  %v7286_v52 = vshrl.u32 %v14807_v9, %v7277_v15  ;;  %v13100_v1 = vand.u32 8388607, %v14754_v45  ;;  %v6929_v11 = vmul.f32 %v6928_v8, %v6926_v5 }
 0x60c   :  { %v13102_v41 = vsub.s32 %v7114_v61, %v7117_v34  ;;  %v7279_v56 = vshll.u32 %v14804_v43, %v7276_v44  ;;  %v7289_v24 = vshrl.u32 %v14808_v39, %v7277_v15  ;;  %v7275_v18 = vshrl.u32 %v7274_v26, 5 }
 0x60d   :  { %v7282_v13 = vshll.u32 %v14805_v33, %v7276_v44  ;;  %v7285_v40 = vshll.u32 %v14806_v58, %v7276_v44  ;;  %v7288_v19 = vshll.u32 %v14807_v9, %v7276_v44  ;;  %v6930_v28 = vxor.u32 2147483648, %v6929_v11 }
 0x60e   :  { %v7120_v20 = vsub.s32 0, %v13102_v41  ;;  %v7141_v50 = vsel %vm7056_vm3, %v7140_v35, %v7116_v51  ;;  %v7281_v38 = vor.u32 %v7280_v63, %v7279_v56  ;;  %v7291_v5 = vshll.u32 %v14808_v39, %v7276_v44 }
 0x60f   :  { %v7284_v61 = vor.u32 %v7283_v7, %v7282_v13  ;;  %v7287_v16 = vor.u32 %v7286_v52, %v7285_v40  ;;  %v7292_v8 = vshrl.u32 %v14992_v25, %v7277_v15  ;;  %v6931_v26 = vsel %vm6848_vm9, %v6930_v28, %v6929_v11 }
 0x610   :  { %v8004_v34 = vmin.u32 %v7120_v20, %v13102_v41  ;;  %v7290_v45 = vor.u32 %v7289_v24, %v7288_v19  ;;  %v8019_v53 = vadd.s32 4294967169, %v7474_v6  ;;  %v6934_v29 = vsel %vm13005_vm8, %v12743_v0, %v6931_v26 }
 0x611   :  { %v7143_v51 = vsel %vm13082_vm15, 0, %v7141_v50  ;;  %v7278_v35 = vshrl.u32 %v14804_v43, %v7277_v15  ;;  %v7293_v63 = vor.u32 %v7292_v8, %v7291_v5  ;;  %8481 = vcosq.f32 %v6934_v29 }
 0x612   :  { %v7122_v44 = vclz %v8004_v34  ;;  %vm7294_vm7 = vcmp.lt.s32.totalorder %v7275_v18, 1  ;;  %vm7297_vm13 = vcmp.lt.s32.totalorder %v7275_v18, 4  ;;  %8483 = vsinq.f32 %v6934_v29 }
 0x613   :  { %vm7295_vm9 = vcmp.lt.s32.totalorder %v7275_v18, 2  ;;  %v7299_v7 = vsel %vm7297_vm13, %v7287_v16, 2102212464  ;;  %v7302_v52 = vsel %vm7294_vm7, %v7281_v38, %v7284_v61  ;;  %vm7296_vm14 = vcmp.lt.s32.totalorder %v7275_v18, 3 }
 0x614   :  { %v8005_v11 = vadd.s32 4294967294, %v7122_v44  ;;  %v7303_v6 = vsel %vm7297_vm13, %v7290_v45, 920167782  ;;  %v7306_v56 = vsel %vm7294_vm7, %v7284_v61, %v7287_v16  ;;  %v7298_v17 = vsel %vm7294_vm7, %v7278_v35, %v7281_v38 }
 0x615   :  { %v7304_v24 = vsel %vm7296_vm14, %v7287_v16, %v7303_v6  ;;  %v7307_v13 = vsel %vm7297_vm13, %v7293_v63, 1326507024  ;;  %v7480_v40 = vadd.s32 1, %v8019_v53  ;;  %v7300_v19 = vsel %vm7296_vm14, %v7284_v61, %v7299_v7 }
 0x616   :  { %vm8006_vm8 = vcmp.lt.s32.totalorder %v8005_v11, 0  ;;  %v7305_v15 = vsel %vm7295_vm9, %v7302_v52, %v7304_v24  ;;  %v7308_v28 = vsel %vm7296_vm14, %v7290_v45, %v7307_v13  ;;  %v7147_v34 = vadd.s32 3, %v7143_v51 }
 0x617   :  { %v7125_v20 = vsel %vm8006_vm8, 0, %v8005_v11  ;;  %v7309_v50 = vsel %vm7295_vm9, %v7306_v56, %v7308_v28  ;;  %v13126_v29 = vmul.u32.u64.low %v13086_v14, %v7305_v15  ;;  %v13127_v5 = vmul.u32.u64.high %v13086_v14, %v7305_v15, %v13126_v29 }
 0x618   :  { %v7126_v8 = vsub.s32 32, %v7125_v20  ;;  %v7130_v26 = vsub.s32 4294967266, %v7125_v20  ;;  %vm7481_vm0 = vcmp.gt.s32.totalorder %v7480_v40, 0  ;;  %vm6938_vm12 = vweird.f32 %v12743_v0 }
 0x619   :  { %v7301_v53 = vsel %vm7295_vm9, %v7298_v17, %v7300_v19  ;;  %v13133_v38 = vmul.u32.u64.low %v13086_v14, %v7309_v50  ;;  %v13134_v61 = vmul.u32.u64.high %v13086_v14, %v7309_v50, %v13133_v38  ;;  %v7482_v45 = vsel %vm7481_vm0, %v7480_v40, 0 }
 0x61a   :  { %v7127_v16 = vshll.u32 %v13102_v41, %v7125_v20  ;;  %v7128_v35 = vshrl.u32 %v13089_v12, %v7126_v8  ;;  %v7131_v63 = vadd.s32 127, %v7130_v26  ;;  %v7484_v44 = vand.u32 31, %v7482_v45 }
 0x61b   :  { %vm6941_vm11 = vcmp.lt.s32.totalorder %v13078_v10, 2  ;;  %v7320_v51 = vadd.s32 1, %v13127_v5  ;;  %v7478_v7 = vor.u32 8388608, %v13100_v1  ;;  %v13143_v18 = vadd.f32 %v13093_v54, %v13034_v36  ;;  %v8482_v52 = vpop.eup %8481 }
 0x61c   :  { %vm6942_vm1 = vcmp.eq.s32.totalorder %v13078_v10, 0  ;;  %v7129_v11 = vor.u32 %v7128_v35, %v7127_v16  ;;  %v7132_v6 = vshll.u32 %v7131_v63, 23  ;;  %v7485_v41 = vsub.s32 32, %v7484_v44  ;;  %v8484_v56 = vpop.eup %8483 }
 0x61d   :  { %vm6945_vm4 = vcmp.eq.s32.totalorder %v13078_v10, 2  ;;  %v6946_v12 = vxor.u32 2147483648, %v8482_v52  ;;  %v7317_v17 = vmul.u32 %v13086_v14, %v7301_v53  ;;  %vm7319_vm10 = vc.u32 %v13134_v61, %v13126_v29 }
 0x61e   :  { %v6943_v1 = vxor.u32 2147483648, %v8484_v56  ;;  %v7133_v24 = vor.u32 4788187, %v7132_v6  ;;  %v13150_v13 = vand.u32 3, %v7147_v34  ;;  %v7321_v36 = vsel %vm7319_vm10, %v7320_v51, %v13127_v5 }
 0x61f   :  { %v6947_v54 = vsel %vm6945_vm4, %v6946_v12, %v8484_v56  ;;  %v7322_v40 = vadd.s32 %v7321_v36, %v7317_v17  ;;  %v13153_v19 = vshrl.u32 %v7482_v45, 5  ;;  %v13155_v15 = vshll.u32 %v7478_v7, 8  ;;  %v15047_v17 = vld [vmem:[#allocation74_spill] sm:$0xff] }
 0x620   :  { %v6944_v28 = vsel %vm6942_vm1, %v8482_v52, %v6943_v1  ;;  %v7134_v20 = vand.u32 2147483647, %v7133_v24  ;;  %v7136_v14 = vcvt.s32.f32 %v7129_v11  ;;  %v7488_v50 = vshrl.u32 %v14805_v33, %v7485_v41 }
 0x621   :  { %v6948_v8 = vsel %vm6941_vm11, %v6944_v28, %v6947_v54  ;;  %v7323_v26 = vadd.s32 536870912, %v7322_v40  ;;  %v7491_v34 = vshrl.u32 %v14806_v58, %v7485_v41  ;;  %v7494_v5 = vshrl.u32 %v14807_v9, %v7485_v41 }
 0x622   :  { %v6949_v53 = vsel %vm6938_vm12, nan, %v6948_v8  ;;  %v7137_v38 = vmul.f32 %v7136_v14, %v7134_v20  ;;  %v7487_v45 = vshll.u32 %v14804_v43, %v7484_v44  ;;  %v7493_v16 = vshll.u32 %v14806_v58, %v7484_v44 }
 0x623   :  { %v7324_v35 = vshrl.u32 %v7323_v26, 30  ;;  %v7490_v63 = vshll.u32 %v14805_v33, %v7484_v44  ;;  %v7496_v51 = vshll.u32 %v14807_v9, %v7484_v44  ;;  %v7497_v10 = vshrl.u32 %v14808_v39, %v7485_v41  ;;  %7703 = vst [vmem:[#allocation13 + $0x1c0] sm:$0xff] %v6949_v53 }
 0x624   :  { %v7138_v7 = vxor.u32 2147483648, %v7137_v38  ;;  %vm7264_vm2 = vcmp.lt.s32.totalorder %v12889_v60, 0  ;;  %v7495_v52 = vor.u32 %v7494_v5, %v7493_v16  ;;  %v7499_v0 = vshll.u32 %v14808_v39, %v7484_v44 }
 0x625   :  { %v7500_v11 = vshrl.u32 %v14992_v25, %v7485_v41  ;;  %v7325_v6 = vshll.u32 %v7324_v35, 30  ;;  %v7489_v56 = vor.u32 %v7488_v50, %v7487_v45  ;;  %v7492_v12 = vor.u32 %v7491_v34, %v7490_v63 }
 0x626   :  { %v4207_v1 = vmul.f32 %v15047_v17, %v12790_v47  ;;  %v7139_v24 = vsel %vm7056_vm3, %v7138_v7, %v7137_v38  ;;  %v7486_v36 = vshrl.u32 %v14804_v43, %v7485_v41  ;;  %v7498_v54 = vor.u32 %v7497_v10, %v7496_v51 }
 0x627   :  { %v7501_v28 = vor.u32 %v7500_v11, %v7499_v0  ;;  %v7142_v20 = vsel %vm13082_vm15, %v12748_v55, %v7139_v24  ;;  %v13182_v44 = vsub.s32 %v7322_v40, %v7325_v6  ;;  %vm7502_vm5 = vcmp.lt.s32.totalorder %v13153_v19, 1 }
 0x628   :  { %vm7505_vm6 = vcmp.lt.s32.totalorder %v13153_v19, 4  ;;  %8485 = vcosq.f32 %v7142_v20  ;;  %v7348_v14 = vsub.s32 4, %v7324_v35  ;;  %vm7503_vm7 = vcmp.lt.s32.totalorder %v13153_v19, 2 }
 0x629   :  { %v7507_v47 = vsel %vm7505_vm6, %v7495_v52, 2102212464  ;;  %8487 = vsinq.f32 %v7142_v20  ;;  %v7328_v41 = vsub.s32 0, %v13182_v44  ;;  %vm7504_vm3 = vcmp.lt.s32.totalorder %v13153_v19, 3 }
 0x62a   :  { %v7510_v50 = vsel %vm7502_vm5, %v7489_v56, %v7492_v12  ;;  %v7506_v8 = vsel %vm7502_vm5, %v7486_v36, %v7489_v56  ;;  %v7511_v2 = vsel %vm7505_vm6, %v7498_v54, 920167782  ;;  %v7514_v26 = vsel %vm7502_vm5, %v7492_v12, %v7495_v52 }
 0x62b   :  { %v7515_v40 = vsel %vm7505_vm6, %v7501_v28, 1326507024  ;;  %v8012_v34 = vmin.u32 %v7328_v41, %v13182_v44  ;;  %v7508_v5 = vsel %vm7504_vm3, %v7492_v12, %v7507_v47  ;;  %v7512_v53 = vsel %vm7504_vm3, %v7495_v52, %v7511_v2 }
 0x62c   :  { %v7516_v38 = vsel %vm7504_vm3, %v7498_v54, %v7515_v40  ;;  %v7513_v45 = vsel %vm7503_vm7, %v7510_v50, %v7512_v53  ;;  %v4198_v63 = vrot.slane %v13143_v18, 4  ;;  %v4215_v51 = vadd.f32 %v4207_v1, %v13038_v62 }
 0x62d   :  { %v7517_v16 = vsel %vm7503_vm7, %v7514_v26, %v7516_v38  ;;  %v7330_v10 = vclz %v8012_v34  ;;  %v7349_v7 = vsel %vm7264_vm2, %v7348_v14, %v7324_v35  ;;  %v7509_v12 = vsel %vm7503_vm7, %v7506_v8, %v7508_v5 }
 0x62e   :  { %v13199_v0 = vmul.u32.u64.low %v13155_v15, %v7517_v16  ;;  %v13200_v11 = vmul.u32.u64.high %v13155_v15, %v7517_v16, %v13199_v0  ;;  %v13203_v52 = vmul.u32.u64.low %v13155_v15, %v7513_v45  ;;  %v13204_v6 = vmul.u32.u64.high %v13155_v15, %v7513_v45, %v13203_v52 }
 0x62f   :  { %v8013_v56 = vadd.s32 4294967294, %v7330_v10  ;;  %v4199_v17 = vadd.f32 %v4198_v63, %v13143_v18  ;;  %v4216_v24 = vrot.slane %v4215_v51, 4  ;;  %vm7150_vm15 = vcmp.eq.s32.totalorder %v13150_v13, 0 }
 0x630   :  { %vm7153_vm13 = vcmp.eq.s32.totalorder %v13150_v13, 2  ;;  %v15048_v62 = vand.u32 2147483647, %v12889_v60  ;;  %v7318_v1 = vadd.s32 %v13126_v29, %v13134_v61  ;;  %v7525_v20 = vmul.u32 %v13155_v15, %v7509_v12 }
 0x631   :  { %vm8014_vm14 = vcmp.lt.s32.totalorder %v8013_v56, 0  ;;  %v4200_v36 = vrot.slane %v4199_v17, 2  ;;  %v4217_v18 = vadd.f32 %v4216_v24, %v4215_v51  ;;  %vm7527_vm8 = vc.u32 %v13200_v11, %v13203_v52 }
 0x632   :  { %vm13213_vm9 = vcmp.le.f32.partialorder %v15048_v62, 0.7853982  ;;  %v8486_v54 = vpop.eup %8485  ;;  %v7333_v28 = vsel %vm8014_vm14, 0, %v8013_v56  ;;  %v7528_v14 = vadd.s32 1, %v13204_v6  ;;  %vm7146_vm0 = vweird.f32 %v12748_v55 }
 0x633   :  { %v7351_v19 = vsel %vm13213_vm9, 0, %v7349_v7  ;;  %v8488_v47 = vpop.eup %8487  ;;  %v7154_v41 = vxor.u32 2147483648, %v8486_v54  ;;  %v7334_v50 = vsub.s32 32, %v7333_v28  ;;  %v7335_v8 = vshll.u32 %v13182_v44, %v7333_v28 }
 0x634   :  { %v7338_v29 = vsub.s32 4294967266, %v7333_v28  ;;  %v7151_v61 = vxor.u32 2147483648, %v8488_v47  ;;  %v7529_v2 = vsel %vm7527_vm8, %v7528_v14, %v13204_v6  ;;  %v4201_v26 = vadd.f32 %v4200_v36, %v4199_v17  ;;  %v15053_v14 = vld [vmem:[#allocation20_spill] sm:$0xff] }
 0x635   :  { %v4218_v40 = vrot.slane %v4217_v18, 2  ;;  %v7155_v34 = vsel %vm7153_vm13, %v7154_v41, %v8488_v47  ;;  %v7336_v5 = vshrl.u32 %v7318_v1, %v7334_v50  ;;  %v7530_v53 = vadd.s32 %v7529_v2, %v7525_v20  ;;  %v15051_v1 = vld [vmem:[#allocation19_spill] sm:$0xff]  ;;  %v15054_v50 = vld [vmem:[#allocation22_spill] sm:$0xff]  ;;  %v15056_v2 = vld [vmem:[#allocation24_spill] sm:$0xff] }
 0x636   :  { %v7339_v15 = vadd.s32 127, %v7338_v29  ;;  %vm7149_vm12 = vcmp.lt.s32.totalorder %v13150_v13, 2  ;;  %v7152_v38 = vsel %vm7150_vm15, %v8486_v54, %v7151_v61  ;;  %v4202_v44 = vrot.slane %v4201_v26, 1  ;;  %v15055_v29 = vld [vmem:[#allocation23_spill] sm:$0xff]  ;;  %v15073_v41 = vld [vmem:[#allocation41_spill] sm:$0xff] }
 0x637   :  { %v7156_v45 = vsel %vm7149_vm12, %v7152_v38, %v7155_v34  ;;  %v7337_v16 = vor.u32 %v7336_v5, %v7335_v8  ;;  %v7531_v51 = vadd.s32 536870912, %v7530_v53  ;;  %v7355_v7 = vadd.s32 3, %v7351_v19  ;;  %v15052_v19 = vld [vmem:[#allocation21_spill] sm:$0xff]  ;;  %v15058_v5 = vld [vmem:[#allocation26_spill] sm:$0xff] }
 0x638   :  { %v7340_v63 = vshll.u32 %v7339_v15, 23  ;;  %v7157_v10 = vsel %vm7146_vm0, nan, %v7156_v45  ;;  %v4203_v0 = vadd.f32 %v4202_v44, %v4201_v26  ;;  %v4219_v6 = vadd.f32 %v4218_v40, %v4217_v18  ;;  %v15060_v44 = vld [vmem:[#allocation28_spill] sm:$0xff] }
 0x639   :  { %v13232_v12 = vshrl.u32 %v7531_v51, 30  ;;  %7705 = vst [vmem:[#allocation13 + $0x1d0] sm:$0xff] %v7157_v10  ;;  %v7344_v55 = vcvt.s32.f32 %v7337_v16  ;;  %v13235_v62 = vand.u32 3, %v7355_v7  ;;  %v7526_v13 = vadd.s32 %v13203_v52, %v13200_v11  ;;  %v15057_v52 = vld [vmem:[#allocation25_spill] sm:$0xff] }
 0x63a   :  { %v7341_v56 = vor.u32 4788187, %v7340_v63  ;;  %v4223_v36 = vmul.f32 %v4203_v0, %v15051_v1  ;;  %v4220_v54 = vrot.slane %v4219_v6, 1  ;;  %v4225_v18 = vmul.f32 %v4203_v0, %v15052_v19  ;;  %v15061_v16 = vld [vmem:[#allocation29_spill] sm:$0xff]  ;;  %v15064_v19 = vld [vmem:[#allocation32_spill] sm:$0xff] }
 0x63b   :  { %v7533_v24 = vshll.u32 %v13232_v12, 30  ;;  %v4227_v47 = vmul.f32 %v4203_v0, %v15053_v14  ;;  %v4229_v8 = vmul.f32 %v4203_v0, %v15054_v50  ;;  %v4231_v61 = vmul.f32 %v4203_v0, %v15055_v29  ;;  %v15065_v50 = vld [vmem:[#allocation33_spill] sm:$0xff] }
 0x63c   :  { %v7342_v17 = vand.u32 2147483647, %v7341_v56  ;;  %v4233_v26 = vmul.f32 %v4203_v0, %v15056_v2  ;;  %v4235_v34 = vmul.f32 %v4203_v0, %v15057_v52  ;;  %v4237_v15 = vmul.f32 %v4203_v0, %v15058_v5  ;;  %v15062_v56 = vld [vmem:[#allocation30_spill] sm:$0xff]  ;;  %v15069_v5 = vld [vmem:[#allocation37_spill] sm:$0xff] }
 0x63d   :  { %v13239_v20 = vsub.s32 %v7530_v53, %v7533_v24  ;;  %v15059_v53 = vld [vmem:[#allocation27_spill] sm:$0xff]  ;;  %v4241_v45 = vmul.f32 %v4203_v0, %v15060_v44  ;;  %v4243_v63 = vmul.f32 %v4203_v0, %v15061_v16  ;;  %v4221_v51 = vadd.f32 %v4220_v54, %v4219_v6  ;;  %v15066_v2 = vld [vmem:[#allocation34_spill] sm:$0xff] }
 0x63e   :  { %v7345_v28 = vmul.f32 %v7344_v55, %v7342_v17  ;;  %v4239_v38 = vmul.f32 %v4203_v0, %v15059_v53  ;;  %v4245_v17 = vmul.f32 %v4203_v0, %v15062_v56  ;;  %v15063_v55 = vld [vmem:[#allocation31_spill] sm:$0xff]  ;;  %v4249_v14 = vmul.f32 %v4203_v0, %v15064_v19  ;;  %v15070_v44 = vld [vmem:[#allocation38_spill] sm:$0xff] }
 0x63f   :  { %v7536_v11 = vsub.s32 0, %v13239_v20  ;;  %v4247_v24 = vmul.f32 %v4203_v0, %v15063_v55  ;;  %v4251_v29 = vmul.f32 %v4203_v0, %v15065_v50  ;;  %v4253_v52 = vmul.f32 %v4203_v0, %v15066_v2  ;;  %v15067_v54 = vld [vmem:[#allocation35_spill] sm:$0xff]  ;;  %v15072_v55 = vld [vmem:[#allocation40_spill] sm:$0xff] }
 0x640   :  { %v7346_v40 = vxor.u32 2147483648, %v7345_v28  ;;  %v4259_v53 = vmul.f32 %v4221_v51, %v15069_v5  ;;  %v4261_v16 = vmul.f32 %v4221_v51, %v15070_v44  ;;  %v15071_v56 = vld [vmem:[#allocation39_spill] sm:$0xff]  ;;  %v4265_v19 = vmul.f32 %v4221_v51, %v15072_v55 }
 0x641   :  { %v8020_v7 = vmin.u32 %v7536_v11, %v13239_v20  ;;  %v4263_v35 = vmul.f32 %v4221_v51, %v15071_v56  ;;  %v4267_v50 = vmul.f32 %v4221_v51, %v15073_v41  ;;  %v4269_v0 = vmul.f32 %v4221_v51, %v15074_v49  ;;  %v15075_v2 = vld [vmem:[#allocation47_spill] sm:$0xff] }
 0x642   :  { %v7347_v10 = vsel %vm7264_vm2, %v7346_v40, %v7345_v28  ;;  %v4255_v28 = vmul.f32 %v4221_v51, %v15067_v54  ;;  %v15068_v40 = vld [vmem:[#allocation36_spill] sm:$0xff]  ;;  %v4273_v54 = vmul.f32 %v4221_v51, %v15076_v42  ;;  %v15079_v5 = vld [vmem:[#allocation51_spill] sm:$0xff]  ;;  %v4281_v56 = vmul.f32 %v4221_v51, %v15080_v23 }
 0x643   :  { %v7350_v1 = vsel %vm13213_vm9, %v12889_v60, %v7347_v10  ;;  %v7538_v6 = vclz %v8020_v7  ;;  %v4257_v11 = vmul.f32 %v4221_v51, %v15068_v40  ;;  %v4271_v7 = vmul.f32 %v4221_v51, %v15075_v2 }
 0x644   :  { %8489 = vcosq.f32 %v7350_v1  ;;  %v4275_v40 = vmul.f32 %v4221_v51, %v15077_v59  ;;  %v4279_v44 = vmul.f32 %v4221_v51, %v15079_v5  ;;  %v4285_v41 = vmul.f32 %v4221_v51, %v14898_v4 }
 0x645   :  { %8491 = vsinq.f32 %v7350_v1  ;;  %v8021_v10 = vadd.s32 4294967294, %v7538_v6  ;;  %v15078_v1 = vld [vmem:[#allocation50_spill] sm:$0xff]  ;;  %v15081_v6 = vld [vmem:[#allocation53_spill] sm:$0xff]  ;;  %v4287_v46 = vadd.f32 %v4255_v28, %v4223_v36  ;;  %v4289_v49 = vadd.f32 %v4257_v11, %v4225_v18 }
 0x646   :  { %v4277_v27 = vmul.f32 %v4221_v51, %v15078_v1  ;;  %v4283_v31 = vmul.f32 %v4221_v51, %v15081_v6  ;;  %v4291_v37 = vadd.f32 %v4259_v53, %v4227_v47  ;;  %v13281_v59 = vadd.f32 %v4261_v16, %v4229_v8 }
 0x647   :  { %vm8022_vm11 = vcmp.lt.s32.totalorder %v8021_v10, 0  ;;  %v13283_v1 = vadd.f32 %v4263_v35, %v4231_v61  ;;  %v13285_v32 = vadd.f32 %v4265_v19, %v4233_v26  ;;  %v13287_v5 = vadd.f32 %v4267_v50, %v4235_v34 }
 0x648   :  { %v7541_v55 = vsel %vm8022_vm11, 0, %v8021_v10  ;;  %v13289_v10 = vadd.f32 %v4269_v0, %v4237_v15  ;;  %v13291_v4 = vadd.f32 %v4271_v7, %v4239_v38  ;;  %v13293_v36 = vadd.f32 %v4273_v54, %v4241_v45 }
 0x649   :  { %v7542_v30 = vsub.s32 32, %v7541_v55  ;;  %v7543_v2 = vshll.u32 %v13239_v20, %v7541_v55  ;;  %v7546_v42 = vsub.s32 4294967266, %v7541_v55  ;;  %v13295_v18 = vadd.f32 %v4275_v40, %v4243_v63 }
 0x64a   :  { %v13297_v20 = vadd.f32 %v4277_v27, %v4245_v17  ;;  %v13299_v47 = vadd.f32 %v4279_v44, %v4247_v24  ;;  %v13301_v51 = vadd.f32 %v4281_v56, %v4249_v14  ;;  %v13303_v34 = vadd.f32 %v4283_v31, %v4251_v29 }
 0x64b   :  { %v7544_v23 = vshrl.u32 %v7526_v13, %v7542_v30  ;;  %v7547_v6 = vadd.s32 127, %v7546_v42  ;;  %v13305_v15 = vadd.f32 %v4285_v41, %v4253_v52  ;;  %vm7361_vm1 = vcmp.eq.s32.totalorder %v13235_v62, 2 }
 0x64c   :  { %vm7472_vm4 = vcmp.lt.s32.totalorder %v13056_v21, 0  ;;  %vm7358_vm10 = vcmp.eq.s32.totalorder %v13235_v62, 0  ;;  %v15082_v63 = vsub.s32 4, %v13232_v12  ;;  %v13316_v17 = vadd.f32 %v4287_v46, %v14900_v57 }
 0x64d   :  { %v7545_v61 = vor.u32 %v7544_v23, %v7543_v2  ;;  %v7548_v26 = vshll.u32 %v7547_v6, 23  ;;  %vm7357_vm2 = vcmp.lt.s32.totalorder %v13235_v62, 2  ;;  %vm7354_vm5 = vweird.f32 %v12889_v60 }
 0x64e   :  { %v8490_v8 = vpop.eup %8489  ;;  %v7557_v31 = vsel %vm7472_vm4, %v15082_v63, %v13232_v12  ;;  %v15083_v28 = vand.u32 2147483647, %v13056_v21  ;;  %v13323_v11 = vadd.f32 %v4289_v49, %v14901_v22  ;;  %v4454_v57 = vand.u32 2147483647, %v13316_v17 }
 0x64f   :  { %v8492_v30 = vpop.eup %8491  ;;  %v7362_v13 = vxor.u32 2147483648, %v8490_v8  ;;  %v7549_v27 = vor.u32 4788187, %v7548_v26  ;;  %v7552_v29 = vcvt.s32.f32 %v7545_v61  ;;  %v4457_v62 = vand.u32 2139095040, %v13316_v17 }
 0x650   :  { %v7359_v38 = vxor.u32 2147483648, %v8492_v30  ;;  %vm7471_vm6 = vcmp.le.f32.partialorder %v15083_v28, 0.7853982  ;;  %v4662_v19 = vand.u32 2147483647, %v13323_v11  ;;  %v4665_v0 = vand.u32 2139095040, %v13323_v11 }
 0x651   :  { %v7363_v45 = vsel %vm7361_vm1, %v7362_v13, %v8492_v30  ;;  %v7550_v14 = vand.u32 2147483647, %v7549_v27  ;;  %v7559_v12 = vsel %vm7471_vm6, 0, %v7557_v31  ;;  %v4458_v50 = vshrl.u32 %v4457_v62, 23 }
 0x652   :  { %v7360_v24 = vsel %vm7358_vm10, %v8490_v8, %v7359_v38  ;;  %v7563_v35 = vadd.s32 3, %v7559_v12  ;;  %v13333_v7 = vadd.f32 %v4291_v37, %v14991_v3  ;;  %v4461_v54 = vand.u32 8388607, %v4454_v57 }
 0x653   :  { %v7364_v52 = vsel %vm7357_vm2, %v7360_v24, %v7363_v45  ;;  %v7553_v16 = vmul.f32 %v7552_v29, %v7550_v14  ;;  %v4669_v40 = vand.u32 8388607, %v4662_v19  ;;  %v7903_v44 = vadd.s32 4294967169, %v4458_v50 }
 0x654   :  { %v7365_v53 = vsel %vm7354_vm5, nan, %v7364_v52  ;;  %v4666_v56 = vshrl.u32 %v4665_v0, 23  ;;  %v7564_v55 = vand.u32 3, %v7563_v35  ;;  %v4462_v2 = vor.u32 8388608, %v4461_v54 }
 0x655   :  { %7707 = vst [vmem:[#allocation13 + $0x1e0] sm:$0xff] %v7365_v53  ;;  %v7554_v46 = vxor.u32 2147483648, %v7553_v16  ;;  %v4464_v41 = vadd.s32 1, %v7903_v44  ;;  %v4670_v42 = vor.u32 8388608, %v4669_v40  ;;  %v4873_v23 = vand.u32 2139095040, %v13333_v7 }
 0x656   :  { %v7911_v49 = vadd.s32 4294967169, %v4666_v56  ;;  %vm7566_vm3 = vcmp.eq.s32.totalorder %v7564_v55, 0  ;;  %vm7569_vm15 = vcmp.eq.s32.totalorder %v7564_v55, 2  ;;  %vm7565_vm13 = vcmp.lt.s32.totalorder %v7564_v55, 2 }
 0x657   :  { %v7555_v60 = vsel %vm7472_vm4, %v7554_v46, %v7553_v16  ;;  %vm4465_vm7 = vcmp.gt.s32.totalorder %v4464_v41, 0  ;;  %v13342_v6 = vadd.f32 %v13281_v59, %v14993_v48  ;;  %vm7562_vm14 = vweird.f32 %v13056_v21 }
 0x658   :  { %v7558_v22 = vsel %vm7471_vm6, %v13056_v21, %v7555_v60  ;;  %v4672_v3 = vadd.s32 1, %v7911_v49  ;;  %v4466_v37 = vsel %vm4465_vm7, %v4464_v41, 0  ;;  %v13345_v26 = vshll.u32 %v4462_v2, 8 }
 0x659   :  { %8493 = vcosq.f32 %v7558_v22  ;;  %v4467_v8 = vshrl.u32 %v4466_v37, 5  ;;  %v4468_v61 = vand.u32 31, %v4466_v37  ;;  %v13347_v30 = vshll.u32 %v4670_v42, 8 }
 0x65a   :  { %8495 = vsinq.f32 %v7558_v22  ;;  %vm4673_vm9 = vcmp.gt.s32.totalorder %v4672_v3, 0  ;;  %v4870_v13 = vand.u32 2147483647, %v13333_v7  ;;  %v4874_v38 = vshrl.u32 %v4873_v23, 23 }
 0x65b   :  { %v4469_v27 = vsub.s32 32, %v4468_v61  ;;  %v4471_v45 = vshll.u32 %v14804_v43, %v4468_v61  ;;  %v4474_v63 = vshll.u32 %v14805_v33, %v4468_v61  ;;  %v4674_v31 = vsel %vm4673_vm9, %v4672_v3, 0 }
 0x65c   :  { %v4477_v48 = vshll.u32 %v14806_v58, %v4468_v61  ;;  %v4480_v59 = vshll.u32 %v14807_v9, %v4468_v61  ;;  %v4483_v24 = vshll.u32 %v14808_v39, %v4468_v61  ;;  %vm4486_vm8 = vcmp.lt.s32.totalorder %v4467_v8, 1 }
 0x65d   :  { %v4470_v29 = vshrl.u32 %v14804_v43, %v4469_v27  ;;  %v4472_v52 = vshrl.u32 %v14805_v33, %v4469_v27  ;;  %v4475_v28 = vshrl.u32 %v14806_v58, %v4469_v27  ;;  %v4478_v53 = vshrl.u32 %v14807_v9, %v4469_v27 }
 0x65e   :  { %v4481_v46 = vshrl.u32 %v14808_v39, %v4469_v27  ;;  %v4484_v62 = vshrl.u32 %v14992_v25, %v4469_v27  ;;  %vm4488_vm0 = vcmp.lt.s32.totalorder %v4467_v8, 3  ;;  %vm4489_vm12 = vcmp.lt.s32.totalorder %v4467_v8, 4 }
 0x65f   :  { %v4473_v60 = vor.u32 %v4472_v52, %v4471_v45  ;;  %v4476_v50 = vor.u32 %v4475_v28, %v4474_v63  ;;  %v4479_v0 = vor.u32 %v4478_v53, %v4477_v48  ;;  %vm4487_vm11 = vcmp.lt.s32.totalorder %v4467_v8, 2 }
 0x660   :  { %v4482_v54 = vor.u32 %v4481_v46, %v4480_v59  ;;  %v4485_v40 = vor.u32 %v4484_v62, %v4483_v24  ;;  %v4675_v59 = vshrl.u32 %v4674_v31, 5  ;;  %v7919_v28 = vadd.s32 4294967169, %v4874_v38 }
 0x661   :  { %v4490_v56 = vsel %vm4486_vm8, %v4470_v29, %v4473_v60  ;;  %v4491_v41 = vsel %vm4489_vm12, %v4479_v0, 2102212464  ;;  %v4494_v49 = vsel %vm4486_vm8, %v4473_v60, %v4476_v50  ;;  %v4498_v3 = vsel %vm4486_vm8, %v4476_v50, %v4479_v0 }
 0x662   :  { %v4492_v42 = vsel %vm4488_vm0, %v4476_v50, %v4491_v41  ;;  %v4495_v23 = vsel %vm4489_vm12, %v4482_v54, 920167782  ;;  %v4499_v27 = vsel %vm4489_vm12, %v4485_v40, 1326507024  ;;  %v4676_v29 = vand.u32 31, %v4674_v31 }
 0x663   :  { %v8494_v14 = vpop.eup %8493  ;;  %v4496_v61 = vsel %vm4488_vm0, %v4479_v0, %v4495_v23  ;;  %v4493_v45 = vsel %vm4487_vm11, %v4490_v56, %v4492_v42  ;;  %v4500_v48 = vsel %vm4488_vm0, %v4482_v54, %v4499_v27  ;;  %v5081_v53 = vand.u32 2139095040, %v13342_v6 }
 0x664   :  { %v8496_v16 = vpop.eup %8495  ;;  %v7570_v12 = vxor.u32 2147483648, %v8494_v14  ;;  %v4497_v63 = vsel %vm4487_vm11, %v4494_v49, %v4496_v61  ;;  %v4501_v55 = vsel %vm4487_vm11, %v4498_v3, %v4500_v48  ;;  %vm4694_vm1 = vcmp.lt.s32.totalorder %v4675_v59, 1 }
 0x665   :  { %v7567_v35 = vxor.u32 2147483648, %v8496_v16  ;;  %v13378_v21 = vmul.u32.u64.low %v13345_v26, %v4501_v55  ;;  %v13379_v52 = vmul.u32.u64.high %v13345_v26, %v4501_v55, %v13378_v21  ;;  %vm4695_vm4 = vcmp.lt.s32.totalorder %v4675_v59, 2 }
 0x666   :  { %v7571_v22 = vsel %vm7569_vm15, %v7570_v12, %v8496_v16  ;;  %v4509_v16 = vmul.u32 %v13345_v26, %v4493_v45  ;;  %v4677_v12 = vsub.s32 32, %v4676_v29  ;;  %v4679_v8 = vshll.u32 %v14804_v43, %v4676_v29 }
 0x667   :  { %v7568_v44 = vsel %vm7566_vm3, %v8494_v14, %v7567_v35  ;;  %v13373_v24 = vmul.u32.u64.low %v13345_v26, %v4497_v63  ;;  %v13374_v14 = vmul.u32.u64.high %v13345_v26, %v4497_v63, %v13373_v24  ;;  %v4682_v46 = vshll.u32 %v14805_v33, %v4676_v29 }
 0x668   :  { %v7572_v2 = vsel %vm7565_vm13, %v7568_v44, %v7571_v22  ;;  %v4685_v62 = vshll.u32 %v14806_v58, %v4676_v29  ;;  %v4688_v31 = vshll.u32 %v14807_v9, %v4676_v29  ;;  %v4680_v60 = vshrl.u32 %v14805_v33, %v4677_v12 }
 0x669   :  { %v7573_v37 = vsel %vm7562_vm14, nan, %v7572_v2  ;;  %v4512_v35 = vadd.s32 1, %v13374_v14  ;;  %v4683_v38 = vshrl.u32 %v14806_v58, %v4677_v12  ;;  %v4691_v50 = vshll.u32 %v14808_v39, %v4676_v29 }
 0x66a   :  { %7709 = vst [vmem:[#allocation13 + $0x1f0] sm:$0xff] %v7573_v37  ;;  %vm4511_vm10 = vc.u32 %v13379_v52, %v13373_v24  ;;  %v4686_v26 = vshrl.u32 %v14807_v9, %v4677_v12  ;;  %v4689_v0 = vshrl.u32 %v14808_v39, %v4677_v12  ;;  %vm4696_vm2 = vcmp.lt.s32.totalorder %v4675_v59, 3 }
 0x66b   :  { %v4513_v22 = vsel %vm4511_vm10, %v4512_v35, %v13374_v14  ;;  %v4681_v54 = vor.u32 %v4680_v60, %v4679_v8  ;;  %v4684_v40 = vor.u32 %v4683_v38, %v4682_v46  ;;  %v4692_v44 = vshrl.u32 %v14992_v25, %v4677_v12 }
 0x66c   :  { %v4514_v56 = vadd.s32 %v4513_v22, %v4509_v16  ;;  %v4687_v41 = vor.u32 %v4686_v26, %v4685_v62  ;;  %v4690_v49 = vor.u32 %v4689_v0, %v4688_v31  ;;  %v4880_v2 = vadd.s32 1, %v7919_v28 }
 0x66d   :  { %v4678_v42 = vshrl.u32 %v14804_v43, %v4677_v12  ;;  %v4693_v23 = vor.u32 %v4692_v44, %v4691_v50  ;;  %vm4697_vm5 = vcmp.lt.s32.totalorder %v4675_v59, 4  ;;  %v4702_v3 = vsel %vm4694_vm1, %v4681_v54, %v4684_v40 }
 0x66e   :  { %v4515_v37 = vadd.s32 536870912, %v4514_v56  ;;  %v4699_v61 = vsel %vm4697_vm5, %v4687_v41, 2102212464  ;;  %v4703_v27 = vsel %vm4697_vm5, %v4690_v49, 920167782  ;;  %v4706_v45 = vsel %vm4694_vm1, %v4684_v40, %v4687_v41 }
 0x66f   :  { %v4698_v63 = vsel %vm4694_vm1, %v4678_v42, %v4681_v54  ;;  %v4700_v48 = vsel %vm4696_vm2, %v4684_v40, %v4699_v61  ;;  %v4704_v55 = vsel %vm4696_vm2, %v4687_v41, %v4703_v27  ;;  %v4707_v14 = vsel %vm4697_vm5, %v4693_v23, 1326507024 }
 0x670   :  { %v4516_v29 = vshrl.u32 %v4515_v37, 30  ;;  %v4705_v21 = vsel %vm4695_vm4, %v4702_v3, %v4704_v55  ;;  %v4708_v28 = vsel %vm4696_vm2, %v4690_v49, %v4707_v14  ;;  %vm4881_vm6 = vcmp.gt.s32.totalorder %v4880_v2, 0 }
 0x671   :  { %v4709_v16 = vsel %vm4695_vm4, %v4706_v45, %v4708_v28  ;;  %v13407_v12 = vmul.u32.u64.low %v13347_v30, %v4705_v21  ;;  %v13408_v8 = vmul.u32.u64.high %v13347_v30, %v4705_v21, %v13407_v12  ;;  %v4877_v46 = vand.u32 8388607, %v4870_v13 }
 0x672   :  { %v4517_v62 = vshll.u32 %v4516_v29, 30  ;;  %v13414_v31 = vmul.u32.u64.low %v13347_v30, %v4709_v16  ;;  %v13415_v35 = vmul.u32.u64.high %v13347_v30, %v4709_v16, %v13414_v31  ;;  %v4701_v60 = vsel %vm4695_vm4, %v4698_v63, %v4700_v48 }
 0x673   :  { %v4882_v38 = vsel %vm4881_vm6, %v4880_v2, 0  ;;  %v5082_v50 = vshrl.u32 %v5081_v53, 23  ;;  %v4720_v22 = vadd.s32 1, %v13408_v8  ;;  %v4878_v54 = vor.u32 8388608, %v4877_v46  ;;  %v15084_v2 = vld [vmem:[#allocation59_spill] sm:$0xff] }
 0x674   :  { %v4518_v26 = vsub.s32 %v4514_v56, %v4517_v62  ;;  %v4884_v0 = vand.u32 31, %v4882_v38  ;;  %v5078_v40 = vand.u32 2147483647, %v13342_v6  ;;  %v4540_v41 = vsub.s32 4, %v4516_v29 }
 0x675   :  { %v4717_v49 = vmul.u32 %v13347_v30, %v4701_v60  ;;  %vm4719_vm7 = vc.u32 %v13415_v35, %v13407_v12  ;;  %v7927_v23 = vadd.s32 4294967169, %v5082_v50  ;;  %v13426_v53 = vadd.f32 %v13283_v1, %v15084_v2 }
 0x676   :  { %v4520_v44 = vsub.s32 0, %v4518_v26  ;;  %v4721_v42 = vsel %vm4719_vm7, %v4720_v22, %v13408_v8  ;;  %v4885_v59 = vsub.s32 32, %v4884_v0  ;;  %vm4456_vm3 = vcmp.lt.s32.totalorder %v13316_v17, 0 }
 0x677   :  { %v4722_v3 = vadd.s32 %v4721_v42, %v4717_v49  ;;  %vm13431_vm15 = vcmp.le.f32.partialorder %v4454_v57, 0.7853982  ;;  %v4510_v30 = vadd.s32 %v13373_v24, %v13379_v52  ;;  %v13437_v61 = vshll.u32 %v4878_v54, 8 }
 0x678   :  { %v7904_v56 = vmin.u32 %v4520_v44, %v4518_v26  ;;  %v13441_v27 = vand.u32 8388607, %v5078_v40  ;;  %v13445_v45 = vsel %vm4456_vm3, %v4540_v41, %v4516_v29  ;;  %v4888_v63 = vshrl.u32 %v14805_v33, %v4885_v59 }
 0x679   :  { %v4891_v57 = vshrl.u32 %v14806_v58, %v4885_v59  ;;  %v4723_v48 = vadd.s32 536870912, %v4722_v3  ;;  %v4883_v55 = vshrl.u32 %v4882_v38, 5  ;;  %v4887_v14 = vshll.u32 %v14804_v43, %v4884_v0 }
 0x67a   :  { %v4522_v1 = vclz %v7904_v56  ;;  %v5088_v24 = vadd.s32 1, %v7927_v23  ;;  %v4890_v21 = vshll.u32 %v14805_v33, %v4884_v0  ;;  %v4894_v28 = vshrl.u32 %v14807_v9, %v4885_v59 }
 0x67b   :  { %v4897_v16 = vshrl.u32 %v14808_v39, %v4885_v59  ;;  %v4543_v29 = vsel %vm13431_vm15, 0, %v13445_v45  ;;  %v13456_v8 = vshrl.u32 %v4723_v48, 30  ;;  %v4896_v46 = vshll.u32 %v14807_v9, %v4884_v0 }
 0x67c   :  { %v7905_v52 = vadd.s32 4294967294, %v4522_v1  ;;  %v4900_v62 = vshrl.u32 %v14992_v25, %v4885_v59  ;;  %v4889_v31 = vor.u32 %v4888_v63, %v4887_v14  ;;  %v4892_v60 = vor.u32 %v4891_v57, %v4890_v21 }
 0x67d   :  { %v4893_v38 = vshll.u32 %v14806_v58, %v4884_v0  ;;  %v4725_v22 = vshll.u32 %v13456_v8, 30  ;;  %v4898_v54 = vor.u32 %v4897_v16, %v4896_v46  ;;  %v4899_v44 = vshll.u32 %v14808_v39, %v4884_v0 }
 0x67e   :  { %vm7906_vm13 = vcmp.lt.s32.totalorder %v7905_v52, 0  ;;  %v4886_v42 = vshrl.u32 %v14804_v43, %v4885_v59  ;;  %vm4902_vm9 = vcmp.lt.s32.totalorder %v4883_v55, 1  ;;  %vm4905_vm14 = vcmp.lt.s32.totalorder %v4883_v55, 4 }
 0x67f   :  { %v4525_v50 = vsel %vm7906_vm13, 0, %v7905_v52  ;;  %v4895_v23 = vor.u32 %v4894_v28, %v4893_v38  ;;  %v13464_v2 = vsub.s32 %v4722_v3, %v4725_v22  ;;  %v4901_v56 = vor.u32 %v4900_v62, %v4899_v44 }
 0x680   :  { %v4526_v41 = vsub.s32 32, %v4525_v50  ;;  %v4530_v49 = vsub.s32 4294967266, %v4525_v50  ;;  %v4527_v1 = vshll.u32 %v4518_v26, %v4525_v50  ;;  %v4910_v57 = vsel %vm4902_vm9, %v4889_v31, %v4892_v60 }
 0x681   :  { %v4728_v48 = vsub.s32 0, %v13464_v2  ;;  %vm4903_vm8 = vcmp.lt.s32.totalorder %v4883_v55, 2  ;;  %vm4904_vm0 = vcmp.lt.s32.totalorder %v4883_v55, 3  ;;  %v4911_v0 = vsel %vm4905_vm14, %v4898_v54, 920167782 }
 0x682   :  { %v4528_v45 = vshrl.u32 %v4510_v30, %v4526_v41  ;;  %v4531_v63 = vadd.s32 127, %v4530_v49  ;;  %v4907_v59 = vsel %vm4905_vm14, %v4895_v23, 2102212464  ;;  %v4912_v3 = vsel %vm4904_vm0, %v4895_v23, %v4911_v0 }
 0x683   :  { %v7912_v21 = vmin.u32 %v4728_v48, %v13464_v2  ;;  %v4913_v26 = vsel %vm4903_vm8, %v4910_v57, %v4912_v3  ;;  %v4914_v30 = vsel %vm4902_vm9, %v4892_v60, %v4895_v23  ;;  %v4915_v28 = vsel %vm4905_vm14, %v4901_v56, 1326507024  ;;  %v15087_v57 = vld [vmem:[#allocation60_spill] sm:$0xff] }
 0x684   :  { %v4529_v14 = vor.u32 %v4528_v45, %v4527_v1  ;;  %v4532_v52 = vshll.u32 %v4531_v63, 23  ;;  %v4748_v46 = vsub.s32 4, %v13456_v8  ;;  %v4916_v62 = vsel %vm4904_vm0, %v4898_v54, %v4915_v28 }
 0x685   :  { %vm5089_vm12 = vcmp.gt.s32.totalorder %v5088_v24, 0  ;;  %v4730_v50 = vclz %v7912_v21  ;;  %v4906_v22 = vsel %vm4902_vm9, %v4886_v42, %v4889_v31  ;;  %v4908_v44 = vsel %vm4904_vm0, %v4892_v60, %v4907_v59 }
 0x686   :  { %v4533_v16 = vor.u32 4788187, %v4532_v52  ;;  %v4536_v38 = vcvt.s32.f32 %v4529_v14  ;;  %v4917_v49 = vsel %vm4903_vm8, %v4914_v30, %v4916_v62  ;;  %v5090_v54 = vsel %vm5089_vm12, %v5088_v24, 0 }
 0x687   :  { %v13481_v1 = vmul.u32.u64.low %v13437_v61, %v4913_v26  ;;  %v13482_v23 = vmul.u32.u64.high %v13437_v61, %v4913_v26, %v13481_v1  ;;  %v7913_v56 = vadd.s32 4294967294, %v4730_v50  ;;  %v13491_v48 = vadd.f32 %v13285_v32, %v15087_v57 }
 0x688   :  { %v4534_v41 = vand.u32 2147483647, %v4533_v16  ;;  %v13486_v45 = vmul.u32.u64.low %v13437_v61, %v4917_v49  ;;  %v13487_v63 = vmul.u32.u64.high %v13437_v61, %v4917_v49, %v13486_v45  ;;  %v4909_v60 = vsel %vm4903_vm8, %v4906_v22, %v4908_v44 }
 0x689   :  { %v5092_v42 = vand.u32 31, %v5090_v54  ;;  %v4547_v0 = vadd.s32 3, %v4543_v29  ;;  %vm4664_vm11 = vcmp.lt.s32.totalorder %v13323_v11, 0  ;;  %vm7914_vm1 = vcmp.lt.s32.totalorder %v7913_v56, 0 }
 0x68a   :  { %v4537_v31 = vmul.f32 %v4536_v38, %v4534_v41  ;;  %v5086_v14 = vor.u32 8388608, %v13441_v27  ;;  %v4718_v59 = vadd.s32 %v13407_v12, %v13415_v35  ;;  %v4733_v3 = vsel %vm7914_vm1, 0, %v7913_v56 }
 0x68b   :  { %v4928_v24 = vadd.s32 1, %v13482_v23  ;;  %v4734_v21 = vsub.s32 32, %v4733_v3  ;;  %v4738_v32 = vsub.s32 4294967266, %v4733_v3  ;;  %v4749_v55 = vsel %vm4664_vm11, %v4748_v46, %v13456_v8 }
 0x68c   :  { %v4538_v52 = vxor.u32 2147483648, %v4537_v31  ;;  %v4925_v29 = vmul.u32 %v13437_v61, %v4909_v60  ;;  %v4735_v27 = vshll.u32 %v13464_v2, %v4733_v3  ;;  %vm4927_vm4 = vc.u32 %v13487_v63, %v13481_v1 }
 0x68d   :  { %v5093_v12 = vsub.s32 32, %v5092_v42  ;;  %v4736_v30 = vshrl.u32 %v4718_v59, %v4734_v21  ;;  %v4739_v28 = vadd.s32 127, %v4738_v32  ;;  %v4929_v16 = vsel %vm4927_vm4, %v4928_v24, %v13482_v23 }
 0x68e   :  { %v4539_v26 = vsel %vm4456_vm3, %v4538_v52, %v4537_v31  ;;  %v13512_v8 = vand.u32 3, %v4547_v0  ;;  %vm13516_vm10 = vcmp.le.f32.partialorder %v4662_v19, 0.7853982  ;;  %v4930_v2 = vadd.s32 %v4929_v16, %v4925_v29 }
 0x68f   :  { %v4542_v35 = vsel %vm13431_vm15, %v13316_v17, %v4539_v26  ;;  %v4737_v46 = vor.u32 %v4736_v30, %v4735_v27  ;;  %v4740_v62 = vshll.u32 %v4739_v28, 23  ;;  %v13520_v38 = vshll.u32 %v5086_v14, 8 }
 0x690   :  { %8497 = vcosq.f32 %v4542_v35  ;;  %v4751_v37 = vsel %vm13516_vm10, 0, %v4749_v55  ;;  %v4931_v50 = vadd.s32 536870912, %v4930_v2  ;;  %v13524_v22 = vshrl.u32 %v5090_v54, 5 }
 0x691   :  { %8499 = vsinq.f32 %v4542_v35  ;;  %v5096_v44 = vshrl.u32 %v14805_v33, %v5093_v12  ;;  %v4741_v41 = vor.u32 4788187, %v4740_v62  ;;  %v5095_v19 = vshll.u32 %v14804_v43, %v5092_v42 }
 0x692   :  { %v5099_v49 = vshrl.u32 %v14806_v58, %v5093_v12  ;;  %v5102_v23 = vshrl.u32 %v14807_v9, %v5093_v12  ;;  %vm4553_vm2 = vcmp.eq.s32.totalorder %v13512_v8, 2  ;;  %v13531_v56 = vshrl.u32 %v4931_v50, 30 }
 0x693   :  { %v5098_v45 = vshll.u32 %v14805_v33, %v5092_v42  ;;  %v5104_v57 = vshll.u32 %v14807_v9, %v5092_v42  ;;  %v5105_v54 = vshrl.u32 %v14808_v39, %v5093_v12  ;;  %vm4550_vm5 = vcmp.eq.s32.totalorder %v13512_v8, 0 }
 0x694   :  { %v4742_v31 = vand.u32 2147483647, %v4741_v41  ;;  %v4744_v60 = vcvt.s32.f32 %v4737_v46  ;;  %v5101_v0 = vshll.u32 %v14806_v58, %v5092_v42  ;;  %v5108_v14 = vshrl.u32 %v14992_v25, %v5093_v12 }
 0x695   :  { %vm4549_vm6 = vcmp.lt.s32.totalorder %v13512_v8, 2  ;;  %v4755_v52 = vadd.s32 3, %v4751_v37  ;;  %v4933_v59 = vshll.u32 %v13531_v56, 30  ;;  %v5097_v3 = vor.u32 %v5096_v44, %v5095_v19 }
 0x696   :  { %v5106_v24 = vor.u32 %v5105_v54, %v5104_v57  ;;  %vm4546_vm7 = vweird.f32 %v13316_v17  ;;  %v4745_v21 = vmul.f32 %v4744_v60, %v4742_v31  ;;  %v5100_v32 = vor.u32 %v5099_v49, %v5098_v45 }
 0x697   :  { %v5103_v55 = vor.u32 %v5102_v23, %v5101_v0  ;;  %v5107_v29 = vshll.u32 %v14808_v39, %v5092_v42  ;;  %v13543_v26 = vsub.s32 %v4930_v2, %v4933_v59  ;;  %v5094_v27 = vshrl.u32 %v14804_v43, %v5093_v12 }
 0x698   :  { %vm5113_vm3 = vcmp.lt.s32.totalorder %v13524_v22, 4  ;;  %v5289_v35 = vand.u32 2139095040, %v13426_v53  ;;  %v4746_v30 = vxor.u32 2147483648, %v4745_v21  ;;  %vm4872_vm15 = vcmp.lt.s32.totalorder %v13333_v7, 0 }
 0x699   :  { %v5109_v28 = vor.u32 %v5108_v14, %v5107_v29  ;;  %vm5110_vm13 = vcmp.lt.s32.totalorder %v13524_v22, 1  ;;  %v5119_v16 = vsel %vm5113_vm3, %v5106_v24, 920167782  ;;  %v4936_v42 = vsub.s32 0, %v13543_v26 }
 0x69a   :  { %v8498_v46 = vpop.eup %8497  ;;  %v4956_v2 = vsub.s32 4, %v13531_v56  ;;  %vm5111_vm9 = vcmp.lt.s32.totalorder %v13524_v22, 2  ;;  %vm5112_vm14 = vcmp.lt.s32.totalorder %v13524_v22, 3  ;;  %v4747_v37 = vsel %vm4664_vm11, %v4746_v30, %v4745_v21 }
 0x69b   :  { %v8500_v12 = vpop.eup %8499  ;;  %v4554_v62 = vxor.u32 2147483648, %v8498_v46  ;;  %v5118_v50 = vsel %vm5110_vm13, %v5097_v3, %v5100_v32  ;;  %v5120_v44 = vsel %vm5112_vm14, %v5103_v55, %v5119_v16  ;;  %v4750_v19 = vsel %vm13516_vm10, %v13323_v11, %v4747_v37 }
 0x69c   :  { %v4551_v41 = vxor.u32 2147483648, %v8500_v12  ;;  %v7920_v49 = vmin.u32 %v4936_v42, %v13543_v26  ;;  %v5115_v23 = vsel %vm5113_vm3, %v5103_v55, 2102212464  ;;  %8501 = vcosq.f32 %v4750_v19 }
 0x69d   :  { %v4555_v45 = vsel %vm4553_vm2, %v4554_v62, %v8500_v12  ;;  %v5122_v57 = vsel %vm5110_vm13, %v5100_v32, %v5103_v55  ;;  %v5123_v54 = vsel %vm5113_vm3, %v5109_v28, 1326507024  ;;  %8503 = vsinq.f32 %v4750_v19 }
 0x69e   :  { %v4552_v31 = vsel %vm4550_vm5, %v8498_v46, %v4551_v41  ;;  %v4938_v61 = vclz %v7920_v49  ;;  %v5121_v60 = vsel %vm5111_vm9, %v5118_v50, %v5120_v44  ;;  %v5114_v14 = vsel %vm5110_vm13, %v5094_v27, %v5097_v3 }
 0x69f   :  { %v4556_v0 = vsel %vm4549_vm6, %v4552_v31, %v4555_v45  ;;  %v5116_v59 = vsel %vm5112_vm14, %v5100_v32, %v5115_v23  ;;  %v5124_v21 = vsel %vm5112_vm14, %v5106_v24, %v5123_v54  ;;  %vm13590_vm8 = vcmp.le.f32.partialorder %v4870_v13, 0.7853982 }
 0x6a0   :  { %v4557_v55 = vsel %vm4546_vm7, nan, %v4556_v0  ;;  %v7921_v8 = vadd.s32 4294967294, %v4938_v61  ;;  %v5125_v30 = vsel %vm5111_vm9, %v5122_v57, %v5124_v21  ;;  %v4957_v17 = vsel %vm4872_vm15, %v4956_v2, %v13531_v56 }
 0x6a1   :  { %v13597_v3 = vmul.u32.u64.low %v13520_v38, %v5125_v30  ;;  %v13598_v27 = vmul.u32.u64.high %v13520_v38, %v5125_v30, %v13597_v3  ;;  %v13601_v32 = vmul.u32.u64.low %v13520_v38, %v5121_v60  ;;  %v13602_v24 = vmul.u32.u64.high %v13520_v38, %v5121_v60, %v13601_v32  ;;  %7680 = vst [vmem:[#allocation13 + $0x108] sm:$0xff] %v4557_v55 }
 0x6a2   :  { %vm7922_vm0 = vcmp.lt.s32.totalorder %v7921_v8, 0  ;;  %v5117_v13 = vsel %vm5111_vm9, %v5114_v14, %v5116_v59  ;;  %v5290_v28 = vshrl.u32 %v5289_v35, 23  ;;  %v4756_v16 = vand.u32 3, %v4755_v52 }
 0x6a3   :  { %v4941_v46 = vsel %vm7922_vm0, 0, %v7921_v8  ;;  %v5286_v42 = vand.u32 2147483647, %v13426_v53  ;;  %v5497_v12 = vand.u32 2139095040, %v13491_v48  ;;  %vm4754_vm12 = vweird.f32 %v13323_v11 }
 0x6a4   :  { %v4926_v62 = vadd.s32 %v13481_v1, %v13487_v63  ;;  %v4942_v37 = vsub.s32 32, %v4941_v46  ;;  %v4946_v50 = vsub.s32 4294967266, %v4941_v46  ;;  %v7935_v44 = vadd.s32 4294967169, %v5290_v28 }
 0x6a5   :  { %v4959_v56 = vsel %vm13590_vm8, 0, %v4957_v17  ;;  %v5133_v22 = vmul.u32 %v13520_v38, %v5117_v13  ;;  %vm5135_vm11 = vc.u32 %v13598_v27, %v13601_v32  ;;  %v5136_v52 = vadd.s32 1, %v13602_v24  ;;  %v15092_v13 = vld [vmem:[#allocation61_spill] sm:$0xff] }
 0x6a6   :  { %v4943_v35 = vshll.u32 %v13543_v26, %v4941_v46  ;;  %v4944_v2 = vshrl.u32 %v4926_v62, %v4942_v37  ;;  %v4947_v41 = vadd.s32 127, %v4946_v50  ;;  %v5296_v19 = vadd.s32 1, %v7935_v44  ;;  %v8502_v49 = vpop.eup %8501 }
 0x6a7   :  { %vm4757_vm1 = vcmp.lt.s32.totalorder %v4756_v16, 2  ;;  %vm4758_vm4 = vcmp.eq.s32.totalorder %v4756_v16, 0  ;;  %v5137_v1 = vsel %vm5135_vm11, %v5136_v52, %v13602_v24  ;;  %v5498_v63 = vshrl.u32 %v5497_v12, 23  ;;  %v8504_v23 = vpop.eup %8503 }
 0x6a8   :  { %v4762_v45 = vxor.u32 2147483648, %v8502_v49  ;;  %v4945_v57 = vor.u32 %v4944_v2, %v4943_v35  ;;  %v4948_v54 = vshll.u32 %v4947_v41, 23  ;;  %v5138_v38 = vadd.s32 %v5137_v1, %v5133_v22 }
 0x6a9   :  { %v4759_v31 = vxor.u32 2147483648, %v8504_v23  ;;  %vm4761_vm10 = vcmp.eq.s32.totalorder %v4756_v16, 2  ;;  %v4963_v61 = vadd.s32 3, %v4959_v56  ;;  %vm5297_vm2 = vcmp.gt.s32.totalorder %v5296_v19, 0 }
 0x6aa   :  { %v4763_v60 = vsel %vm4761_vm10, %v4762_v45, %v8504_v23  ;;  %v4949_v26 = vor.u32 4788187, %v4948_v54  ;;  %v5139_v0 = vadd.s32 536870912, %v5138_v38  ;;  %v5293_v14 = vand.u32 8388607, %v5286_v42 }
 0x6ab   :  { %v4760_v59 = vsel %vm4758_vm4, %v8502_v49, %v4759_v31  ;;  %v5298_v21 = vsel %vm5297_vm2, %v5296_v19, 0  ;;  %v5494_v55 = vand.u32 2147483647, %v13491_v48  ;;  %v7943_v8 = vadd.s32 4294967169, %v5498_v63 }
 0x6ac   :  { %v4764_v30 = vsel %vm4757_vm1, %v4760_v59, %v4763_v60  ;;  %v4950_v3 = vand.u32 2147483647, %v4949_v26  ;;  %v4952_v24 = vcvt.s32.f32 %v4945_v57  ;;  %v5140_v17 = vshrl.u32 %v5139_v0, 30 }
 0x6ad   :  { %v13628_v28 = vadd.f32 %v13287_v5, %v15092_v13  ;;  %v4765_v46 = vsel %vm4754_vm12, nan, %v4764_v30  ;;  %v5300_v12 = vand.u32 31, %v5298_v21  ;;  %v13632_v37 = vand.u32 3, %v4963_v61 }
 0x6ae   :  { %v4953_v62 = vmul.f32 %v4952_v24, %v4950_v3  ;;  %vm5080_vm5 = vcmp.lt.s32.totalorder %v13342_v6, 0  ;;  %v13636_v50 = vadd.s32 %v13601_v32, %v13598_v27  ;;  %v5141_v16 = vshll.u32 %v5140_v17, 30  ;;  %7682 = vst [vmem:[#allocation13 + $0x118] sm:$0xff] %v4765_v46 }
 0x6af   :  { %v5294_v44 = vor.u32 8388608, %v5293_v14  ;;  %v5301_v56 = vsub.s32 32, %v5300_v12  ;;  %v13640_v5 = vand.u32 8388607, %v5494_v55  ;;  %v5504_v22 = vadd.s32 1, %v7943_v8 }
 0x6b0   :  { %v4954_v11 = vxor.u32 2147483648, %v4953_v62  ;;  %v13642_v52 = vsub.s32 %v5138_v38, %v5141_v16  ;;  %v5164_v35 = vsub.s32 4, %v5140_v17  ;;  %v13644_v2 = vshrl.u32 %v5298_v21, 5 }
 0x6b1   :  { %v5303_v41 = vshll.u32 %v14804_v43, %v5300_v12  ;;  %v5304_v27 = vshrl.u32 %v14805_v33, %v5301_v56  ;;  %v5306_v32 = vshll.u32 %v14805_v33, %v5300_v12  ;;  %v5307_v19 = vshrl.u32 %v14806_v58, %v5301_v56 }
 0x6b2   :  { %v4955_v49 = vsel %vm4872_vm15, %v4954_v11, %v4953_v62  ;;  %v5144_v1 = vsub.s32 0, %v13642_v52  ;;  %v5309_v63 = vshll.u32 %v14806_v58, %v5300_v12  ;;  %v5310_v23 = vshrl.u32 %v14807_v9, %v5301_v56 }
 0x6b3   :  { %v4958_v45 = vsel %vm13590_vm8, %v13333_v7, %v4955_v49  ;;  %v5305_v57 = vor.u32 %v5304_v27, %v5303_v41  ;;  %v5312_v54 = vshll.u32 %v14807_v9, %v5300_v12  ;;  %v5313_v38 = vshrl.u32 %v14808_v39, %v5301_v56 }
 0x6b4   :  { %8505 = vcosq.f32 %v4958_v45  ;;  %v7928_v31 = vmin.u32 %v5144_v1, %v13642_v52  ;;  %v5308_v61 = vor.u32 %v5307_v19, %v5306_v32  ;;  %v5311_v60 = vor.u32 %v5310_v23, %v5309_v63 }
 0x6b5   :  { %8507 = vsinq.f32 %v4958_v45  ;;  %v5314_v26 = vor.u32 %v5313_v38, %v5312_v54  ;;  %v5315_v0 = vshll.u32 %v14808_v39, %v5300_v12  ;;  %v5316_v14 = vshrl.u32 %v14992_v25, %v5301_v56 }
 0x6b6   :  { %vm13665_vm6 = vcmp.le.f32.partialorder %v5078_v40, 0.7853982  ;;  %v5146_v59 = vclz %v7928_v31  ;;  %v13669_v21 = vshll.u32 %v5294_v44, 8  ;;  %v5502_v8 = vor.u32 8388608, %v13640_v5 }
 0x6b7   :  { %vm5505_vm7 = vcmp.gt.s32.totalorder %v5504_v22, 0  ;;  %v5165_v30 = vsel %vm5080_vm5, %v5164_v35, %v5140_v17  ;;  %v5302_v3 = vshrl.u32 %v14804_v43, %v5301_v56  ;;  %v5317_v24 = vor.u32 %v5316_v14, %v5315_v0 }
 0x6b8   :  { %vm5318_vm3 = vcmp.lt.s32.totalorder %v13644_v2, 1  ;;  %v7929_v13 = vadd.s32 4294967294, %v5146_v59  ;;  %vm5320_vm15 = vcmp.lt.s32.totalorder %v13644_v2, 3  ;;  %vm5321_vm13 = vcmp.lt.s32.totalorder %v13644_v2, 4 }
 0x6b9   :  { %v5326_v40 = vsel %vm5318_vm3, %v5305_v57, %v5308_v61  ;;  %vm4966_vm9 = vcmp.eq.s32.totalorder %v13632_v37, 0  ;;  %v5323_v46 = vsel %vm5321_vm13, %v5311_v60, 2102212464  ;;  %v5327_v12 = vsel %vm5321_vm13, %v5314_v26, 920167782 }
 0x6ba   :  { %v5330_v17 = vsel %vm5318_vm3, %v5308_v61, %v5311_v60  ;;  %v5331_v62 = vsel %vm5321_vm13, %v5317_v24, 1326507024  ;;  %vm4965_vm14 = vcmp.lt.s32.totalorder %v13632_v37, 2  ;;  %vm7930_vm8 = vcmp.lt.s32.totalorder %v7929_v13, 0 }
 0x6bb   :  { %vm5319_vm0 = vcmp.lt.s32.totalorder %v13644_v2, 2  ;;  %v5328_v16 = vsel %vm5320_vm15, %v5311_v60, %v5327_v12  ;;  %v5332_v44 = vsel %vm5320_vm15, %v5314_v26, %v5331_v62  ;;  %vm4962_vm12 = vweird.f32 %v13333_v7 }
 0x6bc   :  { %v5149_v56 = vsel %vm7930_vm8, 0, %v7929_v13  ;;  %v5322_v5 = vsel %vm5318_vm3, %v5302_v3, %v5305_v57  ;;  %v5329_v11 = vsel %vm5319_vm0, %v5326_v40, %v5328_v16  ;;  %v5333_v35 = vsel %vm5319_vm0, %v5330_v17, %v5332_v44 }
 0x6bd   :  { %v5150_v41 = vsub.s32 32, %v5149_v56  ;;  %v5154_v27 = vsub.s32 4294967266, %v5149_v56  ;;  %v5324_v32 = vsel %vm5320_vm15, %v5308_v61, %v5323_v46  ;;  %v5506_v19 = vsel %vm5505_vm7, %v5504_v22, 0 }
 0x6be   :  { %v13700_v49 = vmul.u32.u64.low %v13669_v21, %v5333_v35  ;;  %v13701_v1 = vmul.u32.u64.high %v13669_v21, %v5333_v35, %v13700_v49  ;;  %v13704_v63 = vmul.u32.u64.low %v13669_v21, %v5329_v11  ;;  %v13705_v23 = vmul.u32.u64.high %v13669_v21, %v5329_v11, %v13704_v63  ;;  %v8506_v45 = vpop.eup %8505 }
 0x6bf   :  { %v5151_v57 = vshll.u32 %v13642_v52, %v5149_v56  ;;  %v5152_v54 = vshrl.u32 %v13636_v50, %v5150_v41  ;;  %v5155_v38 = vadd.s32 127, %v5154_v27  ;;  %v5508_v31 = vand.u32 31, %v5506_v19  ;;  %v8508_v60 = vpop.eup %8507 }
 0x6c0   :  { %vm4969_vm11 = vcmp.eq.s32.totalorder %v13632_v37, 2  ;;  %v4970_v22 = vxor.u32 2147483648, %v8506_v45  ;;  %v5167_v61 = vsel %vm13665_vm6, 0, %v5165_v30  ;;  %v5325_v26 = vsel %vm5319_vm0, %v5322_v5, %v5324_v32 }
 0x6c1   :  { %v4967_v0 = vxor.u32 2147483648, %v8508_v60  ;;  %v5153_v14 = vor.u32 %v5152_v54, %v5151_v57  ;;  %v5156_v59 = vshll.u32 %v5155_v38, 23  ;;  %v5509_v3 = vsub.s32 32, %v5508_v31 }
 0x6c2   :  { %v4971_v24 = vsel %vm4969_vm11, %v4970_v22, %v8508_v60  ;;  %vm5343_vm1 = vc.u32 %v13701_v1, %v13704_v63  ;;  %v5344_v50 = vadd.s32 1, %v13705_v23  ;;  %v13718_v52 = vshll.u32 %v5502_v8, 8 }
 0x6c3   :  { %v4968_v13 = vsel %vm4966_vm9, %v8506_v45, %v4967_v0  ;;  %v5157_v40 = vor.u32 4788187, %v5156_v59  ;;  %v5171_v30 = vadd.s32 3, %v5167_v61  ;;  %v5341_v2 = vmul.u32 %v13669_v21, %v5325_v26 }
 0x6c4   :  { %v4972_v46 = vsel %vm4965_vm14, %v4968_v13, %v4971_v24  ;;  %v5345_v12 = vsel %vm5343_vm1, %v5344_v50, %v13705_v23  ;;  %v13726_v17 = vshrl.u32 %v5506_v19, 5  ;;  %v5512_v62 = vshrl.u32 %v14805_v33, %v5509_v3 }
 0x6c5   :  { %v4973_v8 = vsel %vm4962_vm12, nan, %v4972_v46  ;;  %v5158_v16 = vand.u32 2147483647, %v5157_v40  ;;  %v5160_v44 = vcvt.s32.f32 %v5153_v14  ;;  %v5346_v56 = vadd.s32 %v5345_v12, %v5341_v2 }
 0x6c6   :  { %v5511_v5 = vshll.u32 %v14804_v43, %v5508_v31  ;;  %v5514_v11 = vshll.u32 %v14805_v33, %v5508_v31  ;;  %v5515_v21 = vshrl.u32 %v14806_v58, %v5509_v3  ;;  %v5518_v37 = vshrl.u32 %v14807_v9, %v5509_v3  ;;  %7684 = vst [vmem:[#allocation13 + $0x128] sm:$0xff] %v4973_v8 }
 0x6c7   :  { %v5161_v35 = vmul.f32 %v5160_v44, %v5158_v16  ;;  %vm5288_vm4 = vcmp.lt.s32.totalorder %v13426_v53, 0  ;;  %v5347_v41 = vadd.s32 536870912, %v5346_v56  ;;  %v5520_v27 = vshll.u32 %v14807_v9, %v5508_v31 }
 0x6c8   :  { %v5521_v7 = vshrl.u32 %v14808_v39, %v5509_v3  ;;  %v5513_v32 = vor.u32 %v5512_v62, %v5511_v5  ;;  %v5516_v19 = vor.u32 %v5515_v21, %v5514_v11  ;;  %v5517_v49 = vshll.u32 %v14806_v58, %v5508_v31 }
 0x6c9   :  { %v5524_v23 = vshrl.u32 %v14992_v25, %v5509_v3  ;;  %v5162_v45 = vxor.u32 2147483648, %v5161_v35  ;;  %v5348_v57 = vshrl.u32 %v5347_v41, 30  ;;  %v5523_v38 = vshll.u32 %v14808_v39, %v5508_v31 }
 0x6ca   :  { %v5522_v54 = vor.u32 %v5521_v7, %v5520_v27  ;;  %v13741_v60 = vand.u32 3, %v5171_v30  ;;  %v5519_v22 = vor.u32 %v5518_v37, %v5517_v49  ;;  %vm5526_vm10 = vcmp.lt.s32.totalorder %v13726_v17, 1 }
 0x6cb   :  { %v5705_v61 = vand.u32 2139095040, %v13628_v28  ;;  %v5163_v26 = vsel %vm5080_vm5, %v5162_v45, %v5161_v35  ;;  %v5349_v0 = vshll.u32 %v5348_v57, 30  ;;  %v5525_v14 = vor.u32 %v5524_v23, %v5523_v38  ;;  %v15097_v23 = vld [vmem:[#allocation62_spill] sm:$0xff] }
 0x6cc   :  { %vm5529_vm2 = vcmp.lt.s32.totalorder %v13726_v17, 4  ;;  %v5166_v59 = vsel %vm13665_vm6, %v13342_v6, %v5163_v26  ;;  %v5372_v24 = vsub.s32 4, %v5348_v57  ;;  %v5534_v31 = vsel %vm5526_vm10, %v5513_v32, %v5516_v19 }
 0x6cd   :  { %v5535_v50 = vsel %vm5529_vm2, %v5522_v54, 920167782  ;;  %8509 = vcosq.f32 %v5166_v59  ;;  %v13755_v13 = vsub.s32 %v5346_v56, %v5349_v0  ;;  %v5510_v40 = vshrl.u32 %v14804_v43, %v5509_v3 }
 0x6ce   :  { %vm5528_vm5 = vcmp.lt.s32.totalorder %v13726_v17, 3  ;;  %8511 = vsinq.f32 %v5166_v59  ;;  %vm5527_vm7 = vcmp.lt.s32.totalorder %v13726_v17, 2  ;;  %v5531_v29 = vsel %vm5529_vm2, %v5519_v22, 2102212464 }
 0x6cf   :  { %v5536_v30 = vsel %vm5528_vm5, %v5519_v22, %v5535_v50  ;;  %v5352_v2 = vsub.s32 0, %v13755_v13  ;;  %v5530_v46 = vsel %vm5526_vm10, %v5510_v40, %v5513_v32  ;;  %v5538_v3 = vsel %vm5526_vm10, %v5516_v19, %v5519_v22 }
 0x6d0   :  { %v5537_v12 = vsel %vm5527_vm7, %v5534_v31, %v5536_v30  ;;  %v5373_v62 = vsel %vm5288_vm4, %v5372_v24, %v5348_v57  ;;  %v5539_v8 = vsel %vm5529_vm2, %v5525_v14, 1326507024  ;;  %v5532_v5 = vsel %vm5528_vm5, %v5516_v19, %v5531_v29 }
 0x6d1   :  { %v13774_v16 = vmul.u32.u64.low %v13718_v52, %v5537_v12  ;;  %v13775_v44 = vmul.u32.u64.high %v13718_v52, %v5537_v12, %v13774_v16  ;;  %v7936_v56 = vmin.u32 %v5352_v2, %v13755_v13  ;;  %v5540_v11 = vsel %vm5528_vm5, %v5522_v54, %v5539_v8 }
 0x6d2   :  { %v5706_v21 = vshrl.u32 %v5705_v61, 23  ;;  %vm13781_vm6 = vcmp.le.f32.partialorder %v5286_v42, 0.7853982  ;;  %v5541_v35 = vsel %vm5527_vm7, %v5538_v3, %v5540_v11  ;;  %v5702_v7 = vand.u32 2147483647, %v13628_v28 }
 0x6d3   :  { %v5354_v41 = vclz %v7936_v56  ;;  %v5375_v27 = vsel %vm13781_vm6, 0, %v5373_v62  ;;  %v5533_v32 = vsel %vm5527_vm7, %v5530_v46, %v5532_v5  ;;  %v13798_v45 = vadd.f32 %v13289_v10, %v15097_v23 }
 0x6d4   :  { %v13793_v19 = vmul.u32.u64.low %v13718_v52, %v5541_v35  ;;  %v13794_v49 = vmul.u32.u64.high %v13718_v52, %v5541_v35, %v13793_v19  ;;  %v7951_v42 = vadd.s32 4294967169, %v5706_v21  ;;  %vm5170_vm3 = vweird.f32 %v13342_v6 }
 0x6d5   :  { %vm5173_vm15 = vcmp.lt.s32.totalorder %v13741_v60, 2  ;;  %v7937_v57 = vadd.s32 4294967294, %v5354_v41  ;;  %vm5174_vm13 = vcmp.eq.s32.totalorder %v13741_v60, 0  ;;  %vm5177_vm9 = vcmp.eq.s32.totalorder %v13741_v60, 2 }
 0x6d6   :  { %v5552_v17 = vadd.s32 1, %v13775_v44  ;;  %v5712_v54 = vadd.s32 1, %v7951_v42  ;;  %v5342_v22 = vadd.s32 %v13704_v63, %v13701_v1  ;;  %v5379_v61 = vadd.s32 3, %v5375_v27 }
 0x6d7   :  { %v8510_v38 = vpop.eup %8509  ;;  %vm7938_vm14 = vcmp.lt.s32.totalorder %v7937_v57, 0  ;;  %v5549_v10 = vmul.u32 %v13718_v52, %v5533_v32  ;;  %vm5551_vm8 = vc.u32 %v13794_v49, %v13774_v16  ;;  %v5709_v59 = vand.u32 8388607, %v5702_v7 }
 0x6d8   :  { %v8512_v26 = vpop.eup %8511  ;;  %v5178_v0 = vxor.u32 2147483648, %v8510_v38  ;;  %v5357_v14 = vsel %vm7938_vm14, 0, %v7937_v57  ;;  %v5913_v40 = vand.u32 2139095040, %v13798_v45  ;;  %v5553_v52 = vsel %vm5551_vm8, %v5552_v17, %v13775_v44 }
 0x6d9   :  { %v5175_v24 = vxor.u32 2147483648, %v8512_v26  ;;  %v5358_v31 = vsub.s32 32, %v5357_v14  ;;  %v5362_v50 = vsub.s32 4294967266, %v5357_v14  ;;  %v5359_v63 = vshll.u32 %v13755_v13, %v5357_v14 }
 0x6da   :  { %v5179_v1 = vsel %vm5177_vm9, %v5178_v0, %v8512_v26  ;;  %vm5713_vm0 = vcmp.gt.s32.totalorder %v5712_v54, 0  ;;  %v5554_v46 = vadd.s32 %v5553_v52, %v5549_v10  ;;  %v5710_v3 = vor.u32 8388608, %v5709_v59 }
 0x6db   :  { %v5176_v29 = vsel %vm5174_vm13, %v8510_v38, %v5175_v24  ;;  %v5360_v30 = vshrl.u32 %v5342_v22, %v5358_v31  ;;  %v5363_v2 = vadd.s32 127, %v5362_v50  ;;  %v5714_v62 = vsel %vm5713_vm0, %v5712_v54, 0 }
 0x6dc   :  { %v5180_v12 = vsel %vm5173_vm15, %v5176_v29, %v5179_v1  ;;  %v5910_v8 = vand.u32 2147483647, %v13798_v45  ;;  %v5555_v44 = vadd.s32 536870912, %v5554_v46  ;;  %v5716_v11 = vand.u32 31, %v5714_v62 }
 0x6dd   :  { %v5181_v56 = vsel %vm5170_vm3, nan, %v5180_v12  ;;  %v5361_v13 = vor.u32 %v5360_v30, %v5359_v63  ;;  %v5364_v5 = vshll.u32 %v5363_v2, 23  ;;  %v5914_v21 = vshrl.u32 %v5913_v40, 23 }
 0x6de   :  { %7686 = vst [vmem:[#allocation13 + $0x138] sm:$0xff] %v5181_v56  ;;  %v13824_v41 = vshrl.u32 %v5555_v44, 30  ;;  %v13826_v27 = vand.u32 3, %v5379_v61  ;;  %v5717_v60 = vsub.s32 32, %v5716_v11  ;;  %v13830_v32 = vand.u32 8388607, %v5910_v8 }
 0x6df   :  { %v5365_v35 = vor.u32 4788187, %v5364_v5  ;;  %v5368_v42 = vcvt.s32.f32 %v5361_v13  ;;  %v13833_v23 = vshll.u32 %v5710_v3, 8  ;;  %v7959_v38 = vadd.s32 4294967169, %v5914_v21 }
 0x6e0   :  { %v5557_v6 = vshll.u32 %v13824_v41, 30  ;;  %v5720_v57 = vshrl.u32 %v14805_v33, %v5717_v60  ;;  %v5723_v17 = vshrl.u32 %v14806_v58, %v5717_v60  ;;  %v5726_v54 = vshrl.u32 %v14807_v9, %v5717_v60 }
 0x6e1   :  { %v5366_v19 = vand.u32 2147483647, %v5365_v35  ;;  %v5719_v10 = vshll.u32 %v14804_v43, %v5716_v11  ;;  %v5729_v26 = vshrl.u32 %v14808_v39, %v5717_v60  ;;  %v5550_v0 = vadd.s32 %v13774_v16, %v13794_v49 }
 0x6e2   :  { %v13838_v61 = vsub.s32 %v5554_v46, %v5557_v6  ;;  %v5715_v14 = vshrl.u32 %v5714_v62, 5  ;;  %v5722_v59 = vshll.u32 %v14805_v33, %v5716_v11  ;;  %v5725_v24 = vshll.u32 %v14806_v58, %v5716_v11 }
 0x6e3   :  { %v5369_v22 = vmul.f32 %v5368_v42, %v5366_v19  ;;  %v5721_v40 = vor.u32 %v5720_v57, %v5719_v10  ;;  %v5728_v1 = vshll.u32 %v14807_v9, %v5716_v11  ;;  %v5731_v29 = vshll.u32 %v14808_v39, %v5716_v11 }
 0x6e4   :  { %v5560_v50 = vsub.s32 0, %v13838_v61  ;;  %v5724_v63 = vor.u32 %v5723_v17, %v5722_v59  ;;  %v5727_v52 = vor.u32 %v5726_v54, %v5725_v24  ;;  %v5732_v30 = vshrl.u32 %v14992_v25, %v5717_v60 }
 0x6e5   :  { %v5370_v31 = vxor.u32 2147483648, %v5369_v22  ;;  %v5730_v2 = vor.u32 %v5729_v26, %v5728_v1  ;;  %v5920_v46 = vadd.s32 1, %v7959_v38  ;;  %v5718_v3 = vshrl.u32 %v14804_v43, %v5717_v60 }
 0x6e6   :  { %v7944_v49 = vmin.u32 %v5560_v50, %v13838_v61  ;;  %v5733_v62 = vor.u32 %v5732_v30, %v5731_v29  ;;  %vm5734_vm12 = vcmp.lt.s32.totalorder %v5715_v14, 1  ;;  %vm5496_vm11 = vcmp.lt.s32.totalorder %v13491_v48, 0 }
 0x6e7   :  { %v5371_v16 = vsel %vm5288_vm4, %v5370_v31, %v5369_v22  ;;  %vm5735_vm1 = vcmp.lt.s32.totalorder %v5715_v14, 2  ;;  %vm5737_vm10 = vcmp.lt.s32.totalorder %v5715_v14, 4  ;;  %vm5736_vm4 = vcmp.lt.s32.totalorder %v5715_v14, 3 }
 0x6e8   :  { %v5374_v12 = vsel %vm13781_vm6, %v13426_v53, %v5371_v16  ;;  %v5562_v56 = vclz %v7944_v49  ;;  %v5739_v13 = vsel %vm5737_vm10, %v5727_v52, 2102212464  ;;  %v5742_v5 = vsel %vm5734_vm12, %v5721_v40, %v5724_v63 }
 0x6e9   :  { %8513 = vcosq.f32 %v5374_v12  ;;  %v5738_v11 = vsel %vm5734_vm12, %v5718_v3, %v5721_v40  ;;  %v5743_v21 = vsel %vm5737_vm10, %v5730_v2, 920167782  ;;  %v5746_v35 = vsel %vm5734_vm12, %v5724_v63, %v5727_v52 }
 0x6ea   :  { %8515 = vsinq.f32 %v5374_v12  ;;  %v7945_v44 = vadd.s32 4294967294, %v5562_v56  ;;  %v5740_v37 = vsel %vm5736_vm4, %v5724_v63, %v5739_v13  ;;  %v5744_v19 = vsel %vm5736_vm4, %v5727_v52, %v5743_v21 }
 0x6eb   :  { %v5747_v42 = vsel %vm5737_vm10, %v5733_v62, 1326507024  ;;  %vm5921_vm2 = vcmp.gt.s32.totalorder %v5920_v46, 0  ;;  %v5580_v60 = vsub.s32 4, %v13824_v41  ;;  %v5745_v6 = vsel %vm5735_vm1, %v5742_v5, %v5744_v19 }
 0x6ec   :  { %vm7946_vm5 = vcmp.lt.s32.totalorder %v7945_v44, 0  ;;  %v5748_v57 = vsel %vm5736_vm4, %v5730_v2, %v5747_v42  ;;  %vm5382_vm7 = vcmp.eq.s32.totalorder %v13826_v27, 0  ;;  %vm5381_vm6 = vcmp.lt.s32.totalorder %v13826_v27, 2 }
 0x6ed   :  { %v5565_v17 = vsel %vm7946_vm5, 0, %v7945_v44  ;;  %v5749_v54 = vsel %vm5735_vm1, %v5746_v35, %v5748_v57  ;;  %v13863_v38 = vmul.u32.u64.low %v13833_v23, %v5745_v6  ;;  %v13864_v22 = vmul.u32.u64.high %v13833_v23, %v5745_v6, %v13863_v38 }
 0x6ee   :  { %v5566_v10 = vsub.s32 32, %v5565_v17  ;;  %v5570_v26 = vsub.s32 4294967266, %v5565_v17  ;;  %v5741_v59 = vsel %vm5735_vm1, %v5738_v11, %v5740_v37  ;;  %v5922_v24 = vsel %vm5921_vm2, %v5920_v46, 0 }
 0x6ef   :  { %vm5378_vm3 = vweird.f32 %v13426_v53  ;;  %vm5385_vm15 = vcmp.eq.s32.totalorder %v13826_v27, 2  ;;  %v13872_v31 = vmul.u32.u64.low %v13833_v23, %v5749_v54  ;;  %v13873_v50 = vmul.u32.u64.high %v13833_v23, %v5749_v54, %v13872_v31 }
 0x6f0   :  { %v5924_v40 = vand.u32 31, %v5922_v24  ;;  %v5567_v1 = vshll.u32 %v13838_v61, %v5565_v17  ;;  %v5568_v63 = vshrl.u32 %v5550_v0, %v5566_v10  ;;  %v5571_v52 = vadd.s32 127, %v5570_v26 }
 0x6f1   :  { %v5918_v29 = vor.u32 8388608, %v13830_v32  ;;  %v5581_v14 = vsel %vm5496_vm11, %v5580_v60, %v13824_v41  ;;  %v5757_v30 = vmul.u32 %v13833_v23, %v5741_v59  ;;  %v5760_v16 = vadd.s32 1, %v13864_v22 }
 0x6f2   :  { %v13882_v49 = vsub.s32 32, %v5924_v40  ;;  %v5569_v46 = vor.u32 %v5568_v63, %v5567_v1  ;;  %v5572_v12 = vshll.u32 %v5571_v52, 23  ;;  %v13884_v3 = vshrl.u32 %v5922_v24, 5  ;;  %v15098_v24 = vld [vmem:[#allocation63_spill] sm:$0xff] }
 0x6f3   :  { %v8514_v2 = vpop.eup %8513  ;;  %v5927_v61 = vshll.u32 %v14804_v43, %v5924_v40  ;;  %vm5759_vm13 = vc.u32 %v13873_v50, %v13863_v38  ;;  %v5930_v41 = vshll.u32 %v14805_v33, %v5924_v40  ;;  %v5936_v32 = vshll.u32 %v14807_v9, %v5924_v40 }
 0x6f4   :  { %v8516_v0 = vpop.eup %8515  ;;  %v5386_v62 = vxor.u32 2147483648, %v8514_v2  ;;  %v5573_v56 = vor.u32 4788187, %v5572_v12  ;;  %v5576_v13 = vcvt.s32.f32 %v5569_v46  ;;  %v5761_v5 = vsel %vm5759_vm13, %v5760_v16, %v13864_v22 }
 0x6f5   :  { %v5383_v23 = vxor.u32 2147483648, %v8516_v0  ;;  %v5762_v11 = vadd.s32 %v5761_v5, %v5757_v30  ;;  %v5928_v21 = vshrl.u32 %v14805_v33, %v13882_v49  ;;  %v5931_v35 = vshrl.u32 %v14806_v58, %v13882_v49 }
 0x6f6   :  { %v5387_v44 = vsel %vm5385_vm15, %v5386_v62, %v8516_v0  ;;  %v5574_v19 = vand.u32 2147483647, %v5573_v56  ;;  %v5934_v42 = vshrl.u32 %v14807_v9, %v13882_v49  ;;  %v5937_v60 = vshrl.u32 %v14808_v39, %v13882_v49 }
 0x6f7   :  { %v5384_v37 = vsel %vm5382_vm7, %v8514_v2, %v5383_v23  ;;  %v5763_v57 = vadd.s32 536870912, %v5762_v11  ;;  %v5929_v17 = vor.u32 %v5928_v21, %v5927_v61  ;;  %v5933_v54 = vshll.u32 %v14806_v58, %v5924_v40 }
 0x6f8   :  { %v5388_v6 = vsel %vm5381_vm6, %v5384_v37, %v5387_v44  ;;  %v5577_v10 = vmul.f32 %v5576_v13, %v5574_v19  ;;  %v5932_v26 = vor.u32 %v5931_v35, %v5930_v41  ;;  %v5938_v59 = vor.u32 %v5937_v60, %v5936_v32  ;;  %v15101_v19 = vld [vmem:[#allocation64_spill] sm:$0xff]  ;;  %v15102_v60 = vld [vmem:[#allocation65_spill] sm:$0xff] }
 0x6f9   :  { %v5389_v22 = vsel %vm5378_vm3, nan, %v5388_v6  ;;  %v13911_v31 = vadd.f32 %v13291_v4, %v15098_v24  ;;  %vm13915_vm9 = vcmp.le.f32.partialorder %v5494_v55, 0.7853982  ;;  %v13919_v27 = vshrl.u32 %v5763_v57, 30 }
 0x6fa   :  { %v5940_v63 = vshrl.u32 %v14992_v25, %v13882_v49  ;;  %7688 = vst [vmem:[#allocation13 + $0x148] sm:$0xff] %v5389_v22  ;;  %v5578_v53 = vxor.u32 2147483648, %v5577_v10  ;;  %v5583_v52 = vsel %vm13915_vm9, 0, %v5581_v14  ;;  %v5935_v30 = vor.u32 %v5934_v42, %v5933_v54 }
 0x6fb   :  { %v5939_v4 = vshll.u32 %v14808_v39, %v5924_v40  ;;  %v5765_v16 = vshll.u32 %v13919_v27, 30  ;;  %vm5942_vm14 = vcmp.lt.s32.totalorder %v13884_v3, 1  ;;  %vm5945_vm8 = vcmp.lt.s32.totalorder %v13884_v3, 4 }
 0x6fc   :  { %v13929_v55 = vshll.u32 %v5918_v29, 8  ;;  %v5579_v2 = vsel %vm5496_vm11, %v5578_v53, %v5577_v10  ;;  %v5950_v12 = vsel %vm5942_vm14, %v5929_v17, %v5932_v26  ;;  %v5951_v14 = vsel %vm5945_vm8, %v5938_v59, 920167782 }
 0x6fd   :  { %v5941_v46 = vor.u32 %v5940_v63, %v5939_v4  ;;  %v5582_v40 = vsel %vm13915_vm9, %v13491_v48, %v5579_v2  ;;  %v5587_v61 = vadd.s32 3, %v5583_v52  ;;  %v13940_v0 = vsub.s32 %v5762_v11, %v5765_v16 }
 0x6fe   :  { %vm5944_vm0 = vcmp.lt.s32.totalorder %v13884_v3, 3  ;;  %8517 = vcosq.f32 %v5582_v40  ;;  %vm5943_vm12 = vcmp.lt.s32.totalorder %v13884_v3, 2  ;;  %v6121_v62 = vand.u32 2139095040, %v13911_v31 }
 0x6ff   :  { %v5952_v29 = vsel %vm5944_vm0, %v5935_v30, %v5951_v14  ;;  %8519 = vsinq.f32 %v5582_v40  ;;  %v5768_v41 = vsub.s32 0, %v13940_v0  ;;  %v5947_v32 = vsel %vm5945_vm8, %v5935_v30, 2102212464 }
 0x700   :  { %v5953_v23 = vsel %vm5943_vm12, %v5950_v12, %v5952_v29  ;;  %v5954_v56 = vsel %vm5942_vm14, %v5932_v26, %v5935_v30  ;;  %v5955_v13 = vsel %vm5945_vm8, %v5941_v46, 1326507024  ;;  %v5588_v11 = vand.u32 3, %v5587_v61 }
 0x701   :  { %v13957_v5 = vmul.u32.u64.low %v13929_v55, %v5953_v23  ;;  %v13958_v44 = vmul.u32.u64.high %v13929_v55, %v5953_v23, %v13957_v5  ;;  %v7952_v21 = vmin.u32 %v5768_v41, %v13940_v0  ;;  %v5926_v35 = vshrl.u32 %v14804_v43, %v13882_v49 }
 0x702   :  { %v5956_v37 = vsel %vm5944_vm0, %v5938_v59, %v5955_v13  ;;  %v13968_v42 = vadd.f32 %v13293_v36, %v15101_v19  ;;  %v13972_v6 = vadd.f32 %v13295_v18, %v15102_v60  ;;  %v6122_v54 = vshrl.u32 %v6121_v62, 23  ;;  %v15106_v60 = vld [vmem:[#allocation67_spill] sm:$0xff] }
 0x703   :  { %v5957_v57 = vsel %vm5943_vm12, %v5954_v56, %v5956_v37  ;;  %v5770_v22 = vclz %v7952_v21  ;;  %v5946_v10 = vsel %vm5942_vm14, %v5926_v35, %v5929_v17  ;;  %v5948_v49 = vsel %vm5944_vm0, %v5932_v26, %v5947_v32 }
 0x704   :  { %v6118_v59 = vand.u32 2147483647, %v13911_v31  ;;  %v5788_v36 = vsub.s32 4, %v13919_v27  ;;  %v13983_v24 = vmul.u32.u64.low %v13929_v55, %v5957_v57  ;;  %v13984_v1 = vmul.u32.u64.high %v13929_v55, %v5957_v57, %v13983_v24 }
 0x705   :  { %v7967_v18 = vadd.s32 4294967169, %v6122_v54  ;;  %vm5586_vm11 = vweird.f32 %v13491_v48  ;;  %vm5589_vm1 = vcmp.lt.s32.totalorder %v5588_v11, 2  ;;  %vm13989_vm10 = vcmp.le.f32.partialorder %v5702_v7, 0.7853982 }
 0x706   :  { %vm5704_vm4 = vcmp.lt.s32.totalorder %v13628_v28, 0  ;;  %v7953_v17 = vadd.s32 4294967294, %v5770_v22  ;;  %vm5590_vm2 = vcmp.eq.s32.totalorder %v5588_v11, 0  ;;  %v5949_v26 = vsel %vm5943_vm12, %v5946_v10, %v5948_v49 }
 0x707   :  { %v5968_v53 = vadd.s32 1, %v13958_v44  ;;  %v6128_v52 = vadd.s32 1, %v7967_v18  ;;  %vm5593_vm5 = vcmp.eq.s32.totalorder %v5588_v11, 2  ;;  %v5758_v30 = vadd.s32 %v13863_v38, %v13873_v50 }
 0x708   :  { %vm7954_vm7 = vcmp.lt.s32.totalorder %v7953_v17, 0  ;;  %v14001_v7 = vand.u32 8388607, %v6118_v59  ;;  %v8518_v4 = vpop.eup %8517  ;;  %v5789_v2 = vsel %vm5704_vm4, %v5788_v36, %v13919_v27  ;;  %vm5967_vm6 = vc.u32 %v13984_v1, %v13957_v5 }
 0x709   :  { %v5773_v16 = vsel %vm7954_vm7, 0, %v7953_v17  ;;  %vm6129_vm3 = vcmp.gt.s32.totalorder %v6128_v52, 0  ;;  %v8520_v3 = vpop.eup %8519  ;;  %v5594_v46 = vxor.u32 2147483648, %v8518_v4  ;;  %v5965_v38 = vmul.u32 %v13929_v55, %v5949_v26 }
 0x70a   :  { %v5774_v12 = vsub.s32 32, %v5773_v16  ;;  %v5778_v14 = vsub.s32 4294967266, %v5773_v16  ;;  %v5591_v50 = vxor.u32 2147483648, %v8520_v3  ;;  %v5775_v40 = vshll.u32 %v13940_v0, %v5773_v16 }
 0x70b   :  { %v5969_v61 = vsel %vm5967_vm6, %v5968_v53, %v13958_v44  ;;  %v6130_v29 = vsel %vm6129_vm3, %v6128_v52, 0  ;;  %v5595_v62 = vsel %vm5593_vm5, %v5594_v46, %v8520_v3  ;;  %v5791_v56 = vsel %vm13989_vm10, 0, %v5789_v2  ;;  %v15105_v44 = vld [vmem:[#allocation66_spill] sm:$0xff] }
 0x70c   :  { %v5776_v41 = vshrl.u32 %v5758_v30, %v5774_v12  ;;  %v5779_v27 = vadd.s32 127, %v5778_v14  ;;  %v5970_v32 = vadd.s32 %v5969_v61, %v5965_v38  ;;  %v5592_v23 = vsel %vm5590_vm2, %v8518_v4, %v5591_v50 }
 0x70d   :  { %v6132_v13 = vand.u32 31, %v6130_v29  ;;  %v6329_v21 = vand.u32 2139095040, %v13968_v42  ;;  %v5596_v55 = vsel %vm5589_vm1, %v5592_v23, %v5595_v62  ;;  %v14019_v19 = vadd.f32 %v13297_v20, %v15105_v44 }
 0x70e   :  { %v5777_v35 = vor.u32 %v5776_v41, %v5775_v40  ;;  %v5780_v0 = vshll.u32 %v5779_v27, 23  ;;  %v5971_v37 = vadd.s32 536870912, %v5970_v32  ;;  %v14023_v57 = vadd.f32 %v13299_v47, %v15106_v60 }
 0x70f   :  { %v5597_v54 = vsel %vm5586_vm11, nan, %v5596_v55  ;;  %v6133_v22 = vsub.s32 32, %v6132_v13  ;;  %v5795_v49 = vadd.s32 3, %v5791_v56  ;;  %v6126_v11 = vor.u32 8388608, %v14001_v7 }
 0x710   :  { %v5781_v10 = vor.u32 4788187, %v5780_v0  ;;  %v5972_v36 = vshrl.u32 %v5971_v37, 30  ;;  %7690 = vst [vmem:[#allocation13 + $0x158] sm:$0xff] %v5597_v54  ;;  %v14028_v24 = vshrl.u32 %v6130_v29, 5  ;;  %v6330_v17 = vshrl.u32 %v6329_v21, 23 }
 0x711   :  { %v6136_v18 = vshrl.u32 %v14805_v33, %v6133_v22  ;;  %v6139_v20 = vshrl.u32 %v14806_v58, %v6133_v22  ;;  %v5784_v47 = vcvt.s32.f32 %v5777_v35  ;;  %v6142_v48 = vshrl.u32 %v14807_v9, %v6133_v22 }
 0x712   :  { %v5782_v26 = vand.u32 2147483647, %v5781_v10  ;;  %v5973_v53 = vshll.u32 %v5972_v36, 30  ;;  %v6135_v52 = vshll.u32 %v14804_v43, %v6132_v13  ;;  %v6138_v30 = vshll.u32 %v14805_v33, %v6132_v13 }
 0x713   :  { %v6144_v4 = vshll.u32 %v14807_v9, %v6132_v13  ;;  %v6145_v7 = vshrl.u32 %v14808_v39, %v6133_v22  ;;  %v14037_v2 = vand.u32 3, %v5795_v49  ;;  %v6141_v46 = vshll.u32 %v14806_v58, %v6132_v13 }
 0x714   :  { %v5785_v16 = vmul.f32 %v5784_v47, %v5782_v26  ;;  %v14039_v3 = vsub.s32 %v5970_v32, %v5973_v53  ;;  %v6137_v12 = vor.u32 %v6136_v18, %v6135_v52  ;;  %v6140_v14 = vor.u32 %v6139_v20, %v6138_v30 }
 0x715   :  { %v6146_v38 = vor.u32 %v6145_v7, %v6144_v4  ;;  %v6148_v50 = vshrl.u32 %v14992_v25, %v6133_v22  ;;  %vm5912_vm15 = vcmp.lt.s32.totalorder %v13798_v45, 0  ;;  %v6143_v29 = vor.u32 %v6142_v48, %v6141_v46 }
 0x716   :  { %v5786_v40 = vxor.u32 2147483648, %v5785_v16  ;;  %v5976_v61 = vsub.s32 0, %v14039_v3  ;;  %v6147_v62 = vshll.u32 %v14808_v39, %v6132_v13  ;;  %v6134_v41 = vshrl.u32 %v14804_v43, %v6133_v22 }
 0x717   :  { %vm6150_vm13 = vcmp.lt.s32.totalorder %v14028_v24, 1  ;;  %v6166_v27 = vshll.u32 %v6126_v11, 8  ;;  %v7975_v32 = vadd.s32 4294967169, %v6330_v17  ;;  %vm6153_vm9 = vcmp.lt.s32.totalorder %v14028_v24, 4 }
 0x718   :  { %v5787_v23 = vsel %vm5704_vm4, %v5786_v40, %v5785_v16  ;;  %v7960_v56 = vmin.u32 %v5976_v61, %v14039_v3  ;;  %v6149_v21 = vor.u32 %v6148_v50, %v6147_v62  ;;  %v5996_v35 = vsub.s32 4, %v5972_v36 }
 0x719   :  { %v5790_v55 = vsel %vm13989_vm10, %v13628_v28, %v5787_v23  ;;  %v6158_v13 = vsel %vm6150_vm13, %v6137_v12, %v6140_v14  ;;  %v6159_v0 = vsel %vm6153_vm9, %v6146_v38, 920167782  ;;  %vm6152_vm14 = vcmp.lt.s32.totalorder %v14028_v24, 3 }
 0x71a   :  { %8521 = vcosq.f32 %v5790_v55  ;;  %v5978_v37 = vclz %v7960_v56  ;;  %v6155_v44 = vsel %vm6153_vm9, %v6143_v29, 2102212464  ;;  %vm6151_vm8 = vcmp.lt.s32.totalorder %v14028_v24, 2 }
 0x71b   :  { %8523 = vsinq.f32 %v5790_v55  ;;  %v6154_v63 = vsel %vm6150_vm13, %v6134_v41, %v6137_v12  ;;  %v6160_v60 = vsel %vm6152_vm14, %v6143_v29, %v6159_v0  ;;  %v6162_v10 = vsel %vm6150_vm13, %v6140_v14, %v6143_v29 }
 0x71c   :  { %v7961_v54 = vadd.s32 4294967294, %v5978_v37  ;;  %v6161_v22 = vsel %vm6151_vm8, %v6158_v13, %v6160_v60  ;;  %v6163_v49 = vsel %vm6153_vm9, %v6149_v21, 1326507024  ;;  %v6156_v11 = vsel %vm6152_vm14, %v6140_v14, %v6155_v44 }
 0x71d   :  { %v6164_v18 = vsel %vm6152_vm14, %v6146_v38, %v6163_v49  ;;  %v14071_v20 = vmul.u32.u64.low %v6166_v27, %v6161_v22  ;;  %v14072_v17 = vmul.u32.u64.high %v6166_v27, %v6161_v22, %v14071_v20  ;;  %v5966_v26 = vadd.s32 %v13957_v5, %v13984_v1 }
 0x71e   :  { %vm7962_vm0 = vcmp.lt.s32.totalorder %v7961_v54, 0  ;;  %v6165_v47 = vsel %vm6151_vm8, %v6162_v10, %v6164_v18  ;;  %v6336_v53 = vadd.s32 1, %v7975_v32  ;;  %v5997_v52 = vsel %vm5912_vm15, %v5996_v35, %v5972_v36 }
 0x71f   :  { %v5981_v48 = vsel %vm7962_vm0, 0, %v7961_v54  ;;  %v14081_v30 = vmul.u32.u64.low %v6166_v27, %v6165_v47  ;;  %v14082_v4 = vmul.u32.u64.high %v6166_v27, %v6165_v47, %v14081_v30  ;;  %v6157_v46 = vsel %vm6151_vm8, %v6154_v63, %v6156_v11 }
 0x720   :  { %v5982_v7 = vsub.s32 32, %v5981_v48  ;;  %v5986_v16 = vsub.s32 4294967266, %v5981_v48  ;;  %vm6337_vm12 = vcmp.gt.s32.totalorder %v6336_v53, 0  ;;  %vm5794_vm11 = vweird.f32 %v13628_v28 }
 0x721   :  { %vm14089_vm1 = vcmp.le.f32.partialorder %v5910_v8, 0.7853982  ;;  %v6176_v1 = vadd.s32 1, %v14072_v17  ;;  %v6326_v36 = vand.u32 2147483647, %v13968_v42  ;;  %v6338_v12 = vsel %vm6337_vm12, %v6336_v53, 0 }
 0x722   :  { %v5983_v14 = vshll.u32 %v14039_v3, %v5981_v48  ;;  %v5984_v38 = vshrl.u32 %v5966_v26, %v5982_v7  ;;  %v5987_v50 = vadd.s32 127, %v5986_v16  ;;  %v6340_v24 = vand.u32 31, %v6338_v12 }
 0x723   :  { %vm5797_vm10 = vcmp.lt.s32.totalorder %v14037_v2, 2  ;;  %v5999_v40 = vsel %vm14089_vm1, 0, %v5997_v52  ;;  %v6173_v61 = vmul.u32 %v6166_v27, %v6157_v46  ;;  %vm6175_vm4 = vc.u32 %v14082_v4, %v14071_v20 }
 0x724   :  { %v8522_v8 = vpop.eup %8521  ;;  %v5985_v29 = vor.u32 %v5984_v38, %v5983_v14  ;;  %v5988_v62 = vshll.u32 %v5987_v50, 23  ;;  %v6177_v41 = vsel %vm6175_vm4, %v6176_v1, %v14072_v17  ;;  %v6341_v32 = vsub.s32 32, %v6340_v24 }
 0x725   :  { %v8524_v23 = vpop.eup %8523  ;;  %vm5798_vm2 = vcmp.eq.s32.totalorder %v14037_v2, 0  ;;  %vm5801_vm5 = vcmp.eq.s32.totalorder %v14037_v2, 2  ;;  %v5802_v3 = vxor.u32 2147483648, %v8522_v8  ;;  %v6178_v56 = vadd.s32 %v6177_v41, %v6173_v61 }
 0x726   :  { %v5799_v21 = vxor.u32 2147483648, %v8524_v23  ;;  %v5989_v55 = vor.u32 4788187, %v5988_v62  ;;  %v6003_v35 = vadd.s32 3, %v5999_v40  ;;  %v6333_v27 = vand.u32 8388607, %v6326_v36 }
 0x727   :  { %v5803_v13 = vsel %vm5801_vm5, %v5802_v3, %v8524_v23  ;;  %v6179_v0 = vadd.s32 536870912, %v6178_v56  ;;  %v14106_v37 = vshrl.u32 %v6338_v12, 5  ;;  %v6537_v44 = vand.u32 2139095040, %v13972_v6 }
 0x728   :  { %v5800_v63 = vsel %vm5798_vm2, %v8522_v8, %v5799_v21  ;;  %v5990_v60 = vand.u32 2147483647, %v5989_v55  ;;  %v5992_v54 = vcvt.s32.f32 %v5985_v29  ;;  %v6344_v22 = vshrl.u32 %v14805_v33, %v6341_v32 }
 0x729   :  { %v5804_v10 = vsel %vm5797_vm10, %v5800_v63, %v5803_v13  ;;  %v14112_v49 = vshrl.u32 %v6179_v0, 30  ;;  %v6347_v11 = vshrl.u32 %v14806_v58, %v6341_v32  ;;  %v6350_v18 = vshrl.u32 %v14807_v9, %v6341_v32 }
 0x72a   :  { %v5805_v17 = vsel %vm5794_vm11, nan, %v5804_v10  ;;  %v5993_v26 = vmul.f32 %v5992_v54, %v5990_v60  ;;  %v6343_v47 = vshll.u32 %v14804_v43, %v6340_v24  ;;  %v6346_v53 = vshll.u32 %v14805_v33, %v6340_v24 }
 0x72b   :  { %v6181_v48 = vshll.u32 %v14112_v49, 30  ;;  %v6349_v52 = vshll.u32 %v14806_v58, %v6340_v24  ;;  %v6352_v2 = vshll.u32 %v14807_v9, %v6340_v24  ;;  %v6353_v30 = vshrl.u32 %v14808_v39, %v6341_v32  ;;  %7692 = vst [vmem:[#allocation13 + $0x168] sm:$0xff] %v5805_v17 }
 0x72c   :  { %v5994_v7 = vxor.u32 2147483648, %v5993_v26  ;;  %v6345_v16 = vor.u32 %v6344_v22, %v6343_v47  ;;  %v6355_v46 = vshll.u32 %v14808_v39, %v6340_v24  ;;  %v6356_v28 = vshrl.u32 %v14992_v25, %v6341_v32 }
 0x72d   :  { %v14126_v1 = vsub.s32 %v6178_v56, %v6181_v48  ;;  %v6348_v12 = vor.u32 %v6347_v11, %v6346_v53  ;;  %v6351_v14 = vor.u32 %v6350_v18, %v6349_v52  ;;  %v6354_v38 = vor.u32 %v6353_v30, %v6352_v2 }
 0x72e   :  { %v5995_v50 = vsel %vm5912_vm15, %v5994_v7, %v5993_v26  ;;  %v6334_v40 = vor.u32 8388608, %v6333_v27  ;;  %v6357_v61 = vor.u32 %v6356_v28, %v6355_v46  ;;  %v6538_v8 = vshrl.u32 %v6537_v44, 23 }
 0x72f   :  { %v5998_v29 = vsel %vm14089_vm1, %v13798_v45, %v5995_v50  ;;  %v6184_v62 = vsub.s32 0, %v14126_v1  ;;  %v6342_v24 = vshrl.u32 %v14804_v43, %v6341_v32  ;;  %vm6361_vm7 = vcmp.lt.s32.totalorder %v14106_v37, 4 }
 0x730   :  { %8525 = vcosq.f32 %v5998_v29  ;;  %vm6358_vm6 = vcmp.lt.s32.totalorder %v14106_v37, 1  ;;  %vm6360_vm3 = vcmp.lt.s32.totalorder %v14106_v37, 3  ;;  %v6367_v41 = vsel %vm6361_vm7, %v6354_v38, 920167782 }
 0x731   :  { %8527 = vsinq.f32 %v5998_v29  ;;  %v7968_v23 = vmin.u32 %v6184_v62, %v14126_v1  ;;  %v6363_v3 = vsel %vm6361_vm7, %v6351_v14, 2102212464  ;;  %v6366_v56 = vsel %vm6358_vm6, %v6345_v16, %v6348_v12 }
 0x732   :  { %v6004_v21 = vand.u32 3, %v6003_v35  ;;  %v6368_v5 = vsel %vm6360_vm3, %v6351_v14, %v6367_v41  ;;  %v6370_v55 = vsel %vm6358_vm6, %v6348_v12, %v6351_v14  ;;  %v6371_v27 = vsel %vm6361_vm7, %v6357_v61, 1326507024 }
 0x733   :  { %v6186_v32 = vclz %v7968_v23  ;;  %vm6359_vm15 = vcmp.lt.s32.totalorder %v14106_v37, 2  ;;  %v6362_v13 = vsel %vm6358_vm6, %v6342_v24, %v6345_v16  ;;  %v6374_v0 = vshll.u32 %v6334_v40, 8 }
 0x734   :  { %v6364_v44 = vsel %vm6360_vm3, %v6348_v12, %v6363_v3  ;;  %v6369_v63 = vsel %vm6359_vm15, %v6366_v56, %v6368_v5  ;;  %v6372_v60 = vsel %vm6360_vm3, %v6354_v38, %v6371_v27  ;;  %v7983_v35 = vadd.s32 4294967169, %v6538_v8 }
 0x735   :  { %v7969_v54 = vadd.s32 4294967294, %v6186_v32  ;;  %v6373_v22 = vsel %vm6359_vm15, %v6370_v55, %v6372_v60  ;;  %v14150_v10 = vmul.u32.u64.low %v6374_v0, %v6369_v63  ;;  %v14151_v11 = vmul.u32.u64.high %v6374_v0, %v6369_v63, %v14150_v10 }
 0x736   :  { %vm6120_vm13 = vcmp.lt.s32.totalorder %v13911_v31, 0  ;;  %v14155_v18 = vmul.u32.u64.low %v6374_v0, %v6373_v22  ;;  %v14156_v17 = vmul.u32.u64.high %v6374_v0, %v6373_v22, %v14155_v18  ;;  %v6544_v26 = vadd.s32 1, %v7983_v35 }
 0x737   :  { %vm6002_vm9 = vweird.f32 %v13798_v45  ;;  %vm14161_vm14 = vcmp.le.f32.partialorder %v6118_v59, 0.7853982  ;;  %vm7970_vm8 = vcmp.lt.s32.totalorder %v7969_v54, 0  ;;  %v6365_v53 = vsel %vm6359_vm15, %v6362_v13, %v6364_v44 }
 0x738   :  { %v6534_v48 = vand.u32 2147483647, %v13972_v6  ;;  %vm6009_vm0 = vcmp.eq.s32.totalorder %v6004_v21, 2  ;;  %v6189_v52 = vsel %vm7970_vm8, 0, %v7969_v54  ;;  %v6204_v2 = vsub.s32 4, %v14112_v49 }
 0x739   :  { %vm6545_vm12 = vcmp.gt.s32.totalorder %v6544_v26, 0  ;;  %v6174_v30 = vadd.s32 %v14071_v20, %v14082_v4  ;;  %v6190_v7 = vsub.s32 32, %v6189_v52  ;;  %v6194_v16 = vsub.s32 4294967266, %v6189_v52 }
 0x73a   :  { %v6384_v59 = vadd.s32 1, %v14151_v11  ;;  %v8526_v46 = vpop.eup %8525  ;;  %v6191_v28 = vshll.u32 %v14126_v1, %v6189_v52  ;;  %v6381_v12 = vmul.u32 %v6374_v0, %v6365_v53  ;;  %vm6383_vm11 = vc.u32 %v14156_v17, %v14150_v10  ;;  %v15111_v52 = vld [vmem:[#allocation68_spill] sm:$0xff] }
 0x73b   :  { %v6546_v37 = vsel %vm6545_vm12, %v6544_v26, 0  ;;  %v8528_v14 = vpop.eup %8527  ;;  %v6010_v38 = vxor.u32 2147483648, %v8526_v46  ;;  %v6192_v50 = vshrl.u32 %v6174_v30, %v6190_v7  ;;  %v6195_v40 = vadd.s32 127, %v6194_v16 }
 0x73c   :  { %v6385_v61 = vsel %vm6383_vm11, %v6384_v59, %v14151_v11  ;;  %v6007_v8 = vxor.u32 2147483648, %v8528_v14  ;;  %v6205_v20 = vsel %vm6120_vm13, %v6204_v2, %v14112_v49  ;;  %v6548_v29 = vand.u32 31, %v6546_v37 }
 0x73d   :  { %v6386_v4 = vadd.s32 %v6385_v61, %v6381_v12  ;;  %vm6006_vm1 = vcmp.eq.s32.totalorder %v6004_v21, 0  ;;  %v6011_v1 = vsel %vm6009_vm0, %v6010_v38, %v8528_v14  ;;  %v6193_v62 = vor.u32 %v6192_v50, %v6191_v28 }
 0x73e   :  { %v6196_v24 = vshll.u32 %v6195_v40, 23  ;;  %vm6005_vm10 = vcmp.lt.s32.totalorder %v6004_v21, 2  ;;  %v6008_v41 = vsel %vm6006_vm1, %v8526_v46, %v6007_v8  ;;  %v6549_v3 = vsub.s32 32, %v6548_v29 }
 0x73f   :  { %v6387_v23 = vadd.s32 536870912, %v6386_v4  ;;  %v6012_v56 = vsel %vm6005_vm10, %v6008_v41, %v6011_v1  ;;  %v6207_v55 = vsel %vm14161_vm14, 0, %v6205_v20  ;;  %v6541_v27 = vand.u32 8388607, %v6534_v48 }
 0x740   :  { %v6197_v5 = vor.u32 4788187, %v6196_v24  ;;  %v6013_v49 = vsel %vm6002_vm9, nan, %v6012_v56  ;;  %v6552_v13 = vshrl.u32 %v14805_v33, %v6549_v3  ;;  %v6745_v21 = vand.u32 2139095040, %v14019_v19 }
 0x741   :  { %v14186_v32 = vshrl.u32 %v6387_v23, 30  ;;  %v6200_v44 = vcvt.s32.f32 %v6193_v62  ;;  %v6555_v63 = vshrl.u32 %v14806_v58, %v6549_v3  ;;  %v6558_v60 = vshrl.u32 %v14807_v9, %v6549_v3  ;;  %7694 = vst [vmem:[#allocation13 + $0x178] sm:$0xff] %v6013_v49 }
 0x742   :  { %v6198_v0 = vand.u32 2147483647, %v6197_v5  ;;  %v6547_v54 = vshrl.u32 %v6546_v37, 5  ;;  %v6551_v22 = vshll.u32 %v14804_v43, %v6548_v29  ;;  %v6554_v45 = vshll.u32 %v14805_v33, %v6548_v29 }
 0x743   :  { %v6389_v35 = vshll.u32 %v14186_v32, 30  ;;  %v6557_v18 = vshll.u32 %v14806_v58, %v6548_v29  ;;  %v6560_v26 = vshll.u32 %v14807_v9, %v6548_v29  ;;  %v6561_v53 = vshrl.u32 %v14808_v39, %v6549_v3 }
 0x744   :  { %v6201_v11 = vmul.f32 %v6200_v44, %v6198_v0  ;;  %v14200_v2 = vadd.f32 %v13301_v51, %v15111_v52  ;;  %v6553_v7 = vor.u32 %v6552_v13, %v6551_v22  ;;  %v6564_v16 = vshrl.u32 %v14992_v25, %v6549_v3 }
 0x745   :  { %v14202_v30 = vsub.s32 %v6386_v4, %v6389_v35  ;;  %v6556_v46 = vor.u32 %v6555_v63, %v6554_v45  ;;  %v6559_v28 = vor.u32 %v6558_v60, %v6557_v18  ;;  %v6562_v12 = vor.u32 %v6561_v53, %v6560_v26 }
 0x746   :  { %v6202_v59 = vxor.u32 2147483648, %v6201_v11  ;;  %v6211_v37 = vadd.s32 3, %v6207_v55  ;;  %v6542_v38 = vor.u32 8388608, %v6541_v27  ;;  %v6563_v50 = vshll.u32 %v14808_v39, %v6548_v29 }
 0x747   :  { %v6392_v14 = vsub.s32 0, %v14202_v30  ;;  %v6550_v51 = vshrl.u32 %v14804_v43, %v6549_v3  ;;  %vm6566_vm4 = vcmp.lt.s32.totalorder %v6547_v54, 1  ;;  %v6746_v61 = vshrl.u32 %v6745_v21, 23 }
 0x748   :  { %v6203_v40 = vsel %vm6120_vm13, %v6202_v59, %v6201_v11  ;;  %v6565_v4 = vor.u32 %v6564_v16, %v6563_v50  ;;  %vm6569_vm2 = vcmp.lt.s32.totalorder %v6547_v54, 4  ;;  %v6574_v29 = vsel %vm6566_vm4, %v6553_v7, %v6556_v46 }
 0x749   :  { %v6206_v8 = vsel %vm14161_vm14, %v13911_v31, %v6203_v40  ;;  %v7976_v20 = vmin.u32 %v6392_v14, %v14202_v30  ;;  %v6571_v1 = vsel %vm6569_vm2, %v6559_v28, 2102212464  ;;  %v6575_v62 = vsel %vm6569_vm2, %v6562_v12, 920167782 }
 0x74a   :  { %8529 = vcosq.f32 %v6206_v8  ;;  %vm6328_vm5 = vcmp.lt.s32.totalorder %v13968_v42, 0  ;;  %vm6568_vm7 = vcmp.lt.s32.totalorder %v6547_v54, 3  ;;  %v6582_v41 = vshll.u32 %v6542_v38, 8 }
 0x74b   :  { %8531 = vsinq.f32 %v6206_v8  ;;  %v6394_v24 = vclz %v7976_v20  ;;  %vm6567_vm6 = vcmp.lt.s32.totalorder %v6547_v54, 2  ;;  %v6570_v47 = vsel %vm6566_vm4, %v6550_v51, %v6553_v7 }
 0x74c   :  { %v6576_v23 = vsel %vm6568_vm7, %v6559_v28, %v6575_v62  ;;  %v6578_v3 = vsel %vm6566_vm4, %v6556_v46, %v6559_v28  ;;  %v6572_v5 = vsel %vm6568_vm7, %v6556_v46, %v6571_v1  ;;  %v6579_v27 = vsel %vm6569_vm2, %v6565_v4, 1326507024 }
 0x74d   :  { %v7977_v56 = vadd.s32 4294967294, %v6394_v24  ;;  %v6577_v55 = vsel %vm6567_vm6, %v6574_v29, %v6576_v23  ;;  %v6580_v49 = vsel %vm6568_vm7, %v6562_v12, %v6579_v27  ;;  %v7991_v0 = vadd.s32 4294967169, %v6746_v61 }
 0x74e   :  { %v14222_v13 = vmul.u32.u64.low %v6582_v41, %v6577_v55  ;;  %v14223_v21 = vmul.u32.u64.high %v6582_v41, %v6577_v55, %v14222_v13  ;;  %vm14228_vm3 = vcmp.le.f32.partialorder %v6326_v36, 0.7853982  ;;  %v6412_v63 = vsub.s32 4, %v14186_v32 }
 0x74f   :  { %vm7978_vm15 = vcmp.lt.s32.totalorder %v7977_v56, 0  ;;  %v6581_v60 = vsel %vm6567_vm6, %v6578_v3, %v6580_v49  ;;  %v6752_v11 = vadd.s32 1, %v7991_v0  ;;  %vm6210_vm13 = vweird.f32 %v13911_v31 }
 0x750   :  { %v6397_v35 = vsel %vm7978_vm15, 0, %v7977_v56  ;;  %v14234_v22 = vmul.u32.u64.low %v6582_v41, %v6581_v60  ;;  %v14235_v45 = vmul.u32.u64.high %v6582_v41, %v6581_v60, %v14234_v22  ;;  %v6382_v18 = vadd.s32 %v14150_v10, %v14156_v17 }
 0x751   :  { %v6398_v26 = vsub.s32 32, %v6397_v35  ;;  %v6402_v36 = vsub.s32 4294967266, %v6397_v35  ;;  %v6573_v53 = vsel %vm6567_vm6, %v6570_v47, %v6572_v5  ;;  %v6212_v52 = vand.u32 3, %v6211_v37 }
 0x752   :  { %v6592_v7 = vadd.s32 1, %v14223_v21  ;;  %v6742_v16 = vand.u32 2147483647, %v14019_v19  ;;  %vm6753_vm9 = vcmp.gt.s32.totalorder %v6752_v11, 0  ;;  %v6399_v59 = vshll.u32 %v14202_v30, %v6397_v35 }
 0x753   :  { %v6400_v46 = vshrl.u32 %v6382_v18, %v6398_v26  ;;  %v6403_v28 = vadd.s32 127, %v6402_v36  ;;  %v6754_v12 = vsel %vm6753_vm9, %v6752_v11, 0  ;;  %v6413_v10 = vsel %vm6328_vm5, %v6412_v63, %v14186_v32 }
 0x754   :  { %v8530_v14 = vpop.eup %8529  ;;  %v6589_v17 = vmul.u32 %v6582_v41, %v6573_v53  ;;  %vm6591_vm14 = vc.u32 %v14235_v45, %v14222_v13  ;;  %v6756_v54 = vand.u32 31, %v6754_v12  ;;  %vm6217_vm8 = vcmp.eq.s32.totalorder %v6212_v52, 2 }
 0x755   :  { %v8532_v37 = vpop.eup %8531  ;;  %v6218_v38 = vxor.u32 2147483648, %v8530_v14  ;;  %v6401_v50 = vor.u32 %v6400_v46, %v6399_v59  ;;  %v6404_v40 = vshll.u32 %v6403_v28, 23  ;;  %v6593_v51 = vsel %vm6591_vm14, %v6592_v7, %v14223_v21 }
 0x756   :  { %v6215_v30 = vxor.u32 2147483648, %v8532_v37  ;;  %v6594_v61 = vadd.s32 %v6593_v51, %v6589_v17  ;;  %v6757_v8 = vsub.s32 32, %v6756_v54  ;;  %vm6213_vm0 = vcmp.lt.s32.totalorder %v6212_v52, 2 }
 0x757   :  { %vm6214_vm12 = vcmp.eq.s32.totalorder %v6212_v52, 0  ;;  %v6219_v20 = vsel %vm6217_vm8, %v6218_v38, %v8532_v37  ;;  %v6405_v4 = vor.u32 4788187, %v6404_v40  ;;  %v6415_v1 = vsel %vm14228_vm3, 0, %v6413_v10 }
 0x758   :  { %v6216_v32 = vsel %vm6214_vm12, %v8530_v14, %v6215_v30  ;;  %v6595_v29 = vadd.s32 536870912, %v6594_v61  ;;  %v6749_v62 = vand.u32 8388607, %v6742_v16  ;;  %v6408_v47 = vcvt.s32.f32 %v6401_v50 }
 0x759   :  { %v6220_v24 = vsel %vm6213_vm0, %v6216_v32, %v6219_v20  ;;  %v6406_v41 = vand.u32 2147483647, %v6405_v4  ;;  %v6760_v23 = vshrl.u32 %v14805_v33, %v6757_v8  ;;  %v6763_v5 = vshrl.u32 %v14806_v58, %v6757_v8 }
 0x75a   :  { %v6221_v3 = vsel %vm6210_vm13, nan, %v6220_v24  ;;  %v6596_v56 = vshrl.u32 %v6595_v29, 30  ;;  %v6766_v55 = vshrl.u32 %v14807_v9, %v6757_v8  ;;  %v6755_v49 = vshrl.u32 %v6754_v12, 5 }
 0x75b   :  { %v6409_v27 = vmul.f32 %v6408_v47, %v6406_v41  ;;  %v6768_v21 = vshll.u32 %v14807_v9, %v6756_v54  ;;  %v6769_v0 = vshrl.u32 %v14808_v39, %v6757_v8  ;;  %7696 = vst [vmem:[#allocation13 + $0x188] sm:$0xff] %v6221_v3  ;;  %v6759_v60 = vshll.u32 %v14804_v43, %v6756_v54 }
 0x75c   :  { %v6597_v63 = vshll.u32 %v6596_v56, 30  ;;  %v6762_v35 = vshll.u32 %v14805_v33, %v6756_v54  ;;  %v6765_v31 = vshll.u32 %v14806_v58, %v6756_v54  ;;  %v6771_v18 = vshll.u32 %v14808_v39, %v6756_v54 }
 0x75d   :  { %v6410_v22 = vxor.u32 2147483648, %v6409_v27  ;;  %v6770_v11 = vor.u32 %v6769_v0, %v6768_v21  ;;  %v6772_v26 = vshrl.u32 %v14992_v25, %v6757_v8  ;;  %vm6536_vm11 = vcmp.lt.s32.totalorder %v13972_v6, 0 }
 0x75e   :  { %v14267_v36 = vsub.s32 %v6594_v61, %v6597_v63  ;;  %v6761_v53 = vor.u32 %v6760_v23, %v6759_v60  ;;  %v6764_v52 = vor.u32 %v6763_v5, %v6762_v35  ;;  %v6767_v7 = vor.u32 %v6766_v55, %v6765_v31 }
 0x75f   :  { %v6411_v59 = vsel %vm6328_vm5, %v6410_v22, %v6409_v27  ;;  %v6419_v46 = vadd.s32 3, %v6415_v1  ;;  %v6750_v28 = vor.u32 8388608, %v6749_v62  ;;  %v6773_v12 = vor.u32 %v6772_v26, %v6771_v18 }
 0x760   :  { %v6414_v14 = vsel %vm14228_vm3, %v13968_v42, %v6411_v59  ;;  %v6600_v10 = vsub.s32 0, %v14267_v36  ;;  %v6758_v17 = vshrl.u32 %v14804_v43, %v6757_v8  ;;  %vm6777_vm1 = vcmp.lt.s32.totalorder %v6755_v49, 4 }
 0x761   :  { %8533 = vcosq.f32 %v6414_v14  ;;  %vm6774_vm10 = vcmp.lt.s32.totalorder %v6755_v49, 1  ;;  %vm6776_vm4 = vcmp.lt.s32.totalorder %v6755_v49, 3  ;;  %v6783_v54 = vsel %vm6777_vm1, %v6770_v11, 920167782 }
 0x762   :  { %8535 = vsinq.f32 %v6414_v14  ;;  %v7984_v37 = vmin.u32 %v6600_v10, %v14267_v36  ;;  %v6779_v38 = vsel %vm6777_vm1, %v6767_v7, 2102212464  ;;  %v6782_v50 = vsel %vm6774_vm10, %v6761_v53, %v6764_v52 }
 0x763   :  { %v6620_v40 = vsub.s32 4, %v6596_v56  ;;  %v6784_v51 = vsel %vm6776_vm4, %v6767_v7, %v6783_v54  ;;  %v6786_v30 = vsel %vm6774_vm10, %v6764_v52, %v6767_v7  ;;  %v6787_v44 = vsel %vm6777_vm1, %v6773_v12, 1326507024 }
 0x764   :  { %v6420_v61 = vand.u32 3, %v6419_v46  ;;  %v6602_v20 = vclz %v7984_v37  ;;  %vm6775_vm2 = vcmp.lt.s32.totalorder %v6755_v49, 2  ;;  %v6790_v4 = vshll.u32 %v6750_v28, 8 }
 0x765   :  { %v6778_v8 = vsel %vm6774_vm10, %v6758_v17, %v6761_v53  ;;  %v6780_v32 = vsel %vm6776_vm4, %v6764_v52, %v6779_v38  ;;  %v6785_v1 = vsel %vm6775_vm2, %v6782_v50, %v6784_v51  ;;  %v6788_v29 = vsel %vm6776_vm4, %v6770_v11, %v6787_v44 }
 0x766   :  { %v7985_v62 = vadd.s32 4294967294, %v6602_v20  ;;  %v6789_v24 = vsel %vm6775_vm2, %v6786_v30, %v6788_v29  ;;  %v14282_v41 = vmul.u32.u64.low %v6790_v4, %v6785_v1  ;;  %v14283_v47 = vmul.u32.u64.high %v6790_v4, %v6785_v1, %v14282_v41 }
 0x767   :  { %v6621_v23 = vsel %vm6536_vm11, %v6620_v40, %v6596_v56  ;;  %v14287_v3 = vmul.u32.u64.low %v6790_v4, %v6789_v24  ;;  %v14288_v5 = vmul.u32.u64.high %v6790_v4, %v6789_v24, %v14287_v3  ;;  %v6953_v55 = vand.u32 2139095040, %v14023_v57 }
 0x768   :  { %vm6418_vm5 = vweird.f32 %v13968_v42  ;;  %vm6421_vm7 = vcmp.lt.s32.totalorder %v6420_v61, 2  ;;  %vm14294_vm6 = vcmp.le.f32.partialorder %v6534_v48, 0.7853982  ;;  %vm7986_vm3 = vcmp.lt.s32.totalorder %v7985_v62, 0 }
 0x769   :  { %v6781_v21 = vsel %vm6775_vm2, %v6778_v8, %v6780_v32  ;;  %v6590_v56 = vadd.s32 %v14222_v13, %v14235_v45  ;;  %v6605_v0 = vsel %vm7986_vm3, 0, %v7985_v62  ;;  %v6950_v63 = vand.u32 2147483647, %v14023_v57 }
 0x76a   :  { %v6954_v60 = vshrl.u32 %v6953_v55, 23  ;;  %v6606_v35 = vsub.s32 32, %v6605_v0  ;;  %v6610_v31 = vsub.s32 4294967266, %v6605_v0  ;;  %v6623_v22 = vsel %vm14294_vm6, 0, %v6621_v23 }
 0x76b   :  { %v6800_v48 = vadd.s32 1, %v14283_v47  ;;  %v8534_v11 = vpop.eup %8533  ;;  %v6607_v18 = vshll.u32 %v14267_v36, %v6605_v0  ;;  %v6797_v26 = vmul.u32 %v6790_v4, %v6781_v21  ;;  %vm6799_vm15 = vc.u32 %v14288_v5, %v14282_v41  ;;  %v15116_v4 = vld [vmem:[#allocation71_spill] sm:$0xff] }
 0x76c   :  { %v7999_v49 = vadd.s32 4294967169, %v6954_v60  ;;  %v8536_v53 = vpop.eup %8535  ;;  %v6426_v13 = vxor.u32 2147483648, %v8534_v11  ;;  %v6608_v45 = vshrl.u32 %v6590_v56, %v6606_v35  ;;  %v6611_v52 = vadd.s32 127, %v6610_v31 }
 0x76d   :  { %v6801_v7 = vsel %vm6799_vm15, %v6800_v48, %v14283_v47  ;;  %v6423_v59 = vxor.u32 2147483648, %v8536_v53  ;;  %vm6425_vm13 = vcmp.eq.s32.totalorder %v6420_v61, 2  ;;  %vm6422_vm9 = vcmp.eq.s32.totalorder %v6420_v61, 0 }
 0x76e   :  { %v6802_v46 = vadd.s32 %v6801_v7, %v6797_v26  ;;  %v6960_v28 = vadd.s32 1, %v7999_v49  ;;  %v6427_v12 = vsel %vm6425_vm13, %v6426_v13, %v8536_v53  ;;  %v6609_v14 = vor.u32 %v6608_v45, %v6607_v18 }
 0x76f   :  { %v6612_v10 = vshll.u32 %v6611_v52, 23  ;;  %v6424_v17 = vsel %vm6422_vm9, %v8534_v11, %v6423_v59  ;;  %v6627_v36 = vadd.s32 3, %v6623_v22  ;;  %v6957_v50 = vand.u32 8388607, %v6950_v63 }
 0x770   :  { %v6803_v54 = vadd.s32 536870912, %v6802_v46  ;;  %vm6961_vm14 = vcmp.gt.s32.totalorder %v6960_v28, 0  ;;  %v6428_v37 = vsel %vm6421_vm7, %v6424_v17, %v6427_v12  ;;  %v7161_v20 = vand.u32 2139095040, %v14200_v2 }
 0x771   :  { %v6613_v38 = vor.u32 4788187, %v6612_v10  ;;  %v6962_v40 = vsel %vm6961_vm14, %v6960_v28, 0  ;;  %v6429_v51 = vsel %vm6418_vm5, nan, %v6428_v37  ;;  %v14316_v8 = vadd.f32 %v13303_v34, %v15116_v4 }
 0x772   :  { %v6804_v30 = vshrl.u32 %v6803_v54, 30  ;;  %v6964_v44 = vand.u32 31, %v6962_v40  ;;  %v6616_v1 = vcvt.s32.f32 %v6609_v14  ;;  %vm6744_vm8 = vcmp.lt.s32.totalorder %v14019_v19, 0  ;;  %7698 = vst [vmem:[#allocation13 + $0x198] sm:$0xff] %v6429_v51 }
 0x773   :  { %v6614_v32 = vand.u32 2147483647, %v6613_v38  ;;  %v14319_v61 = vand.u32 3, %v6627_v36  ;;  %vm14323_vm0 = vcmp.le.f32.partialorder %v6742_v16, 0.7853982  ;;  %v6798_v34 = vadd.s32 %v14282_v41, %v14288_v5 }
 0x774   :  { %v6805_v29 = vshll.u32 %v6804_v30, 30  ;;  %v6965_v62 = vsub.s32 32, %v6964_v44  ;;  %v7158_v24 = vand.u32 2147483647, %v14200_v2  ;;  %v6828_v23 = vsub.s32 4, %v6804_v30 }
 0x775   :  { %v6617_v47 = vmul.f32 %v6616_v1, %v6614_v32  ;;  %v6958_v3 = vor.u32 8388608, %v6957_v50  ;;  %v14331_v21 = vshrl.u32 %v6962_v40, 5  ;;  %v7162_v0 = vshrl.u32 %v7161_v20, 23 }
 0x776   :  { %v14329_v55 = vsub.s32 %v6802_v46, %v6805_v29  ;;  %v6968_v56 = vshrl.u32 %v14805_v33, %v6965_v62  ;;  %v6967_v60 = vshll.u32 %v14804_v43, %v6964_v44  ;;  %v6971_v35 = vshrl.u32 %v14806_v58, %v6965_v62 }
 0x777   :  { %v6618_v16 = vxor.u32 2147483648, %v6617_v47  ;;  %v6974_v31 = vshrl.u32 %v14807_v9, %v6965_v62  ;;  %v6970_v41 = vshll.u32 %v14805_v33, %v6964_v44  ;;  %v6973_v5 = vshll.u32 %v14806_v58, %v6964_v44 }
 0x778   :  { %v6808_v22 = vsub.s32 0, %v14329_v55  ;;  %v6977_v48 = vshrl.u32 %v14808_v39, %v6965_v62  ;;  %v6829_v18 = vsel %vm6744_vm8, %v6828_v23, %v6804_v30  ;;  %v6969_v26 = vor.u32 %v6968_v56, %v6967_v60 }
 0x779   :  { %v6619_v11 = vsel %vm6536_vm11, %v6618_v16, %v6617_v47  ;;  %v6976_v49 = vshll.u32 %v14807_v9, %v6964_v44  ;;  %v6972_v45 = vor.u32 %v6971_v35, %v6970_v41  ;;  %v6975_v52 = vor.u32 %v6974_v31, %v6973_v5 }
 0x77a   :  { %v6622_v53 = vsel %vm14294_vm6, %v13972_v6, %v6619_v11  ;;  %v7992_v13 = vmin.u32 %v6808_v22, %v14329_v55  ;;  %v6979_v59 = vshll.u32 %v14808_v39, %v6964_v44  ;;  %v6980_v46 = vshrl.u32 %v14992_v25, %v6965_v62 }
 0x77b   :  { %8537 = vcosq.f32 %v6622_v53  ;;  %v6978_v7 = vor.u32 %v6977_v48, %v6976_v49  ;;  %v6998_v12 = vshll.u32 %v6958_v3, 8  ;;  %v8007_v14 = vadd.s32 4294967169, %v7162_v0 }
 0x77c   :  { %8539 = vsinq.f32 %v6622_v53  ;;  %v6810_v28 = vclz %v7992_v13  ;;  %v6831_v10 = vsel %vm14323_vm0, 0, %v6829_v18  ;;  %v6966_v27 = vshrl.u32 %v14804_v43, %v6965_v62 }
 0x77d   :  { %v6981_v17 = vor.u32 %v6980_v46, %v6979_v59  ;;  %vm6982_vm12 = vcmp.lt.s32.totalorder %v14331_v21, 1  ;;  %vm6984_vm11 = vcmp.lt.s32.totalorder %v14331_v21, 3  ;;  %vm6985_vm1 = vcmp.lt.s32.totalorder %v14331_v21, 4 }
 0x77e   :  { %v7993_v36 = vadd.s32 4294967294, %v6810_v28  ;;  %v6990_v54 = vsel %vm6982_vm12, %v6969_v26, %v6972_v45  ;;  %v6987_v37 = vsel %vm6985_vm1, %v6975_v52, 2102212464  ;;  %v6991_v38 = vsel %vm6985_vm1, %v6978_v7, 920167782 }
 0x77f   :  { %v6994_v50 = vsel %vm6982_vm12, %v6972_v45, %v6975_v52  ;;  %v6995_v40 = vsel %vm6985_vm1, %v6981_v17, 1326507024  ;;  %vm6983_vm4 = vcmp.lt.s32.totalorder %v14331_v21, 2  ;;  %v6992_v51 = vsel %vm6984_vm11, %v6975_v52, %v6991_v38 }
 0x780   :  { %vm7994_vm10 = vcmp.lt.s32.totalorder %v7993_v36, 0  ;;  %v6996_v30 = vsel %vm6984_vm11, %v6978_v7, %v6995_v40  ;;  %v6986_v20 = vsel %vm6982_vm12, %v6966_v27, %v6969_v26  ;;  %v6993_v4 = vsel %vm6983_vm4, %v6990_v54, %v6992_v51 }
 0x781   :  { %v6813_v44 = vsel %vm7994_vm10, 0, %v7993_v36  ;;  %v6997_v32 = vsel %vm6983_vm4, %v6994_v50, %v6996_v30  ;;  %vm6626_vm2 = vweird.f32 %v13972_v6  ;;  %v6988_v62 = vsel %vm6984_vm11, %v6972_v45, %v6987_v37 }
 0x782   :  { %v6814_v1 = vsub.s32 32, %v6813_v44  ;;  %v6818_v29 = vsub.s32 4294967266, %v6813_v44  ;;  %v7168_v47 = vadd.s32 1, %v8007_v14  ;;  %v6815_v16 = vshll.u32 %v14329_v55, %v6813_v44 }
 0x783   :  { %v14370_v23 = vmul.u32.u64.low %v6998_v12, %v6997_v32  ;;  %v14371_v3 = vmul.u32.u64.high %v6998_v12, %v6997_v32, %v14370_v23  ;;  %v14373_v56 = vmul.u32.u64.low %v6998_v12, %v6993_v4  ;;  %v14374_v0 = vmul.u32.u64.high %v6998_v12, %v6993_v4, %v14373_v56 }
 0x784   :  { %v6816_v60 = vshrl.u32 %v6798_v34, %v6814_v1  ;;  %v6819_v35 = vadd.s32 127, %v6818_v29  ;;  %vm7169_vm5 = vcmp.gt.s32.totalorder %v7168_v47, 0  ;;  %vm6630_vm7 = vcmp.eq.s32.totalorder %v14319_v61, 0 }
 0x785   :  { %v8538_v31 = vpop.eup %8537  ;;  %vm6633_vm6 = vcmp.eq.s32.totalorder %v14319_v61, 2  ;;  %v6989_v22 = vsel %vm6983_vm4, %v6986_v20, %v6988_v62  ;;  %v7170_v41 = vsel %vm7169_vm5, %v7168_v47, 0  ;;  %v7165_v26 = vand.u32 8388607, %v7158_v24 }
 0x786   :  { %v8540_v5 = vpop.eup %8539  ;;  %v6634_v48 = vxor.u32 2147483648, %v8538_v31  ;;  %v6817_v11 = vor.u32 %v6816_v60, %v6815_v16  ;;  %v6820_v18 = vshll.u32 %v6819_v35, 23  ;;  %v6835_v34 = vadd.s32 3, %v6831_v10 }
 0x787   :  { %v6631_v55 = vxor.u32 2147483648, %v8540_v5  ;;  %vm7007_vm3 = vc.u32 %v14371_v3, %v14373_v56  ;;  %v7008_v49 = vadd.s32 1, %v14374_v0  ;;  %v7005_v45 = vmul.u32 %v6998_v12, %v6989_v22 }
 0x788   :  { %v6635_v53 = vsel %vm6633_vm6, %v6634_v48, %v8540_v5  ;;  %v6821_v13 = vor.u32 4788187, %v6820_v18  ;;  %v7172_v21 = vand.u32 31, %v7170_v41  ;;  %vm6629_vm15 = vcmp.lt.s32.totalorder %v14319_v61, 2 }
 0x789   :  { %v6632_v52 = vsel %vm6630_vm7, %v8538_v31, %v6631_v55  ;;  %v6824_v7 = vcvt.s32.f32 %v6817_v11  ;;  %v7009_v59 = vsel %vm7007_vm3, %v7008_v49, %v14374_v0  ;;  %v14393_v17 = vand.u32 3, %v6835_v34 }
 0x78a   :  { %v6636_v46 = vsel %vm6629_vm15, %v6632_v52, %v6635_v53  ;;  %v6822_v28 = vand.u32 2147483647, %v6821_v13  ;;  %v7010_v14 = vadd.s32 %v7009_v59, %v7005_v45  ;;  %v7173_v10 = vsub.s32 32, %v7172_v21 }
 0x78b   :  { %v6637_v27 = vsel %vm6626_vm2, nan, %v6636_v46  ;;  %v7166_v36 = vor.u32 8388608, %v7165_v26  ;;  %v7171_v12 = vshrl.u32 %v7170_v41, 5  ;;  %v7175_v38 = vshll.u32 %v14804_v43, %v7172_v21 }
 0x78c   :  { %v6825_v54 = vmul.f32 %v6824_v7, %v6822_v28  ;;  %v7011_v37 = vadd.s32 536870912, %v7010_v14  ;;  %v7176_v61 = vshrl.u32 %v14805_v33, %v7173_v10  ;;  %7700 = vst [vmem:[#allocation13 + $0x1a8] sm:$0xff] %v6637_v27  ;;  %v7178_v50 = vshll.u32 %v14805_v33, %v7172_v21  ;;  %v15119_v28 = vld [vmem:[#allocation72_spill] sm:$0xff] }
 0x78d   :  { %v7179_v40 = vshrl.u32 %v14806_v58, %v7173_v10  ;;  %v7182_v51 = vshrl.u32 %v14807_v9, %v7173_v10  ;;  %v7185_v6 = vshrl.u32 %v14808_v39, %v7173_v10  ;;  %v7181_v20 = vshll.u32 %v14806_v58, %v7172_v21 }
 0x78e   :  { %v6826_v30 = vxor.u32 2147483648, %v6825_v54  ;;  %v7012_v44 = vshrl.u32 %v7011_v37, 30  ;;  %v7184_v4 = vshll.u32 %v14807_v9, %v7172_v21  ;;  %v7177_v32 = vor.u32 %v7176_v61, %v7175_v38 }
 0x78f   :  { %v7180_v1 = vor.u32 %v7179_v40, %v7178_v50  ;;  %v7187_v29 = vshll.u32 %v14808_v39, %v7172_v21  ;;  %v7188_v62 = vshrl.u32 %v14992_v25, %v7173_v10  ;;  %v7183_v0 = vor.u32 %v7182_v51, %v7181_v20 }
 0x790   :  { %v6827_v47 = vsel %vm6744_vm8, %v6826_v30, %v6825_v54  ;;  %v7013_v23 = vshll.u32 %v7012_v44, 30  ;;  %v7186_v16 = vor.u32 %v7185_v6, %v7184_v4  ;;  %v14410_v31 = vshll.u32 %v7166_v36, 8 }
 0x791   :  { %v6830_v60 = vsel %vm14323_vm0, %v14019_v19, %v6827_v47  ;;  %v7189_v35 = vor.u32 %v7188_v62, %v7187_v29  ;;  %v7369_v22 = vand.u32 2139095040, %v14316_v8  ;;  %vm7190_vm13 = vcmp.lt.s32.totalorder %v7171_v12, 1 }
 0x792   :  { %8541 = vcosq.f32 %v6830_v60  ;;  %v14413_v41 = vsub.s32 %v7010_v14, %v7013_v23  ;;  %vm7191_vm9 = vcmp.lt.s32.totalorder %v7171_v12, 2  ;;  %v7174_v5 = vshrl.u32 %v14804_v43, %v7173_v10 }
 0x793   :  { %8543 = vsinq.f32 %v6830_v60  ;;  %vm7193_vm14 = vcmp.lt.s32.totalorder %v7171_v12, 4  ;;  %v7198_v48 = vsel %vm7190_vm13, %v7177_v32, %v7180_v1  ;;  %vm7192_vm8 = vcmp.lt.s32.totalorder %v7171_v12, 3 }
 0x794   :  { %v7016_v11 = vsub.s32 0, %v14413_v41  ;;  %v7195_v42 = vsel %vm7193_vm14, %v7183_v0, 2102212464  ;;  %v7199_v18 = vsel %vm7193_vm14, %v7186_v16, 920167782  ;;  %v7036_v26 = vsub.s32 4, %v7012_v44 }
 0x795   :  { %v7200_v55 = vsel %vm7192_vm8, %v7183_v0, %v7199_v18  ;;  %v7202_v34 = vsel %vm7190_vm13, %v7180_v1, %v7183_v0  ;;  %v7203_v49 = vsel %vm7193_vm14, %v7189_v35, 1326507024  ;;  %v7194_v13 = vsel %vm7190_vm13, %v7174_v5, %v7177_v32 }
 0x796   :  { %v8000_v53 = vmin.u32 %v7016_v11, %v14413_v41  ;;  %v7201_v45 = vsel %vm7191_vm9, %v7198_v48, %v7200_v55  ;;  %v7204_v21 = vsel %vm7192_vm8, %v7186_v16, %v7203_v49  ;;  %v7196_v52 = vsel %vm7192_vm8, %v7180_v1, %v7195_v42 }
 0x797   :  { %v7205_v7 = vsel %vm7191_vm9, %v7202_v34, %v7204_v21  ;;  %v14421_v59 = vmul.u32.u64.low %v14410_v31, %v7201_v45  ;;  %v14422_v46 = vmul.u32.u64.high %v14410_v31, %v7201_v45, %v14421_v59  ;;  %v14427_v14 = vadd.f32 %v13305_v15, %v15119_v28 }
 0x798   :  { %vm6952_vm0 = vcmp.lt.s32.totalorder %v14023_v57, 0  ;;  %v7018_v10 = vclz %v8000_v53  ;;  %v14433_v36 = vmul.u32.u64.low %v14410_v31, %v7205_v7  ;;  %v14434_v54 = vmul.u32.u64.high %v14410_v31, %v7205_v7, %v14433_v36 }
 0x799   :  { %v7037_v27 = vsel %vm6952_vm0, %v7036_v26, %v7012_v44  ;;  %v7370_v37 = vshrl.u32 %v7369_v22, 23  ;;  %vm6837_vm12 = vcmp.lt.s32.totalorder %v14393_v17, 2  ;;  %vm14439_vm11 = vcmp.le.f32.partialorder %v6950_v63, 0.7853982 }
 0x79a   :  { %v8001_v15 = vadd.s32 4294967294, %v7018_v10  ;;  %v7197_v61 = vsel %vm7191_vm9, %v7194_v13, %v7196_v52  ;;  %vm6838_vm1 = vcmp.eq.s32.totalorder %v14393_v17, 0  ;;  %vm6841_vm10 = vcmp.eq.s32.totalorder %v14393_v17, 2 }
 0x79b   :  { %v7216_v50 = vadd.s32 1, %v14422_v46  ;;  %v8015_v40 = vadd.s32 4294967169, %v7370_v37  ;;  %v7006_v6 = vadd.s32 %v14373_v56, %v14371_v3  ;;  %v7039_v63 = vsel %vm14439_vm11, 0, %v7037_v27 }
 0x79c   :  { %v8542_v51 = vpop.eup %8541  ;;  %vm8002_vm4 = vcmp.lt.s32.totalorder %v8001_v15, 0  ;;  %v7366_v30 = vand.u32 2147483647, %v14316_v8  ;;  %v7213_v4 = vmul.u32 %v14410_v31, %v7197_v61  ;;  %vm7215_vm2 = vc.u32 %v14434_v54, %v14421_v59 }
 0x79d   :  { %v8544_v44 = vpop.eup %8543  ;;  %v6842_v12 = vxor.u32 2147483648, %v8542_v51  ;;  %v7021_v20 = vsel %vm8002_vm4, 0, %v8001_v15  ;;  %v7577_v62 = vand.u32 2139095040, %v14427_v14  ;;  %v7217_v47 = vsel %vm7215_vm2, %v7216_v50, %v14422_v46 }
 0x79e   :  { %v6839_v32 = vxor.u32 2147483648, %v8544_v44  ;;  %v7022_v1 = vsub.s32 32, %v7021_v20  ;;  %v7026_v29 = vsub.s32 4294967266, %v7021_v20  ;;  %v7023_v56 = vshll.u32 %v14413_v41, %v7021_v20 }
 0x79f   :  { %v6843_v3 = vsel %vm6841_vm10, %v6842_v12, %v8544_v44  ;;  %v7376_v23 = vadd.s32 1, %v8015_v40  ;;  %v7218_v35 = vadd.s32 %v7217_v47, %v7213_v4  ;;  %vm6834_vm5 = vweird.f32 %v14019_v19 }
 0x7a0   :  { %v6840_v0 = vsel %vm6838_vm1, %v8542_v51, %v6839_v32  ;;  %v7024_v16 = vshrl.u32 %v7006_v6, %v7022_v1  ;;  %v7027_v60 = vadd.s32 127, %v7026_v29  ;;  %v7043_v41 = vadd.s32 3, %v7039_v63 }
 0x7a1   :  { %v6844_v31 = vsel %vm6837_vm12, %v6840_v0, %v6843_v3  ;;  %vm7377_vm7 = vcmp.gt.s32.totalorder %v7376_v23, 0  ;;  %v7219_v11 = vadd.s32 536870912, %v7218_v35  ;;  %v7373_v55 = vand.u32 8388607, %v7366_v30 }
 0x7a2   :  { %v6845_v22 = vsel %vm6834_vm5, nan, %v6844_v31  ;;  %v7025_v5 = vor.u32 %v7024_v16, %v7023_v56  ;;  %v7028_v48 = vshll.u32 %v7027_v60, 23  ;;  %v7378_v42 = vsel %vm7377_vm7, %v7376_v23, 0 }
 0x7a3   :  { %7702 = vst [vmem:[#allocation13 + $0x1b8] sm:$0xff] %v6845_v22  ;;  %v14465_v26 = vshrl.u32 %v7219_v11, 30  ;;  %v7578_v34 = vshrl.u32 %v7577_v62, 23  ;;  %v7380_v49 = vand.u32 31, %v7378_v42  ;;  %v14470_v13 = vand.u32 3, %v7043_v41 }
 0x7a4   :  { %v7029_v18 = vor.u32 4788187, %v7028_v48  ;;  %v7032_v53 = vcvt.s32.f32 %v7025_v5  ;;  %v7574_v21 = vand.u32 2147483647, %v14427_v14  ;;  %v7374_v46 = vor.u32 8388608, %v7373_v55 }
 0x7a5   :  { %v7221_v17 = vshll.u32 %v14465_v26, 30  ;;  %v7381_v45 = vsub.s32 32, %v7380_v49  ;;  %v8023_v28 = vadd.s32 4294967169, %v7578_v34  ;;  %v7379_v10 = vshrl.u32 %v7378_v42, 5 }
 0x7a6   :  { %v7030_v19 = vand.u32 2147483647, %v7029_v18  ;;  %v7383_v27 = vshll.u32 %v14804_v43, %v7380_v49  ;;  %v7386_v50 = vshll.u32 %v14805_v33, %v7380_v49  ;;  %v7389_v6 = vshll.u32 %v14806_v58, %v7380_v49 }
 0x7a7   :  { %v14473_v7 = vsub.s32 %v7218_v35, %v7221_v17  ;;  %v7384_v36 = vshrl.u32 %v14805_v33, %v7381_v45  ;;  %v7387_v37 = vshrl.u32 %v14806_v58, %v7381_v45  ;;  %v7390_v40 = vshrl.u32 %v14807_v9, %v7381_v45 }
 0x7a8   :  { %v7033_v52 = vmul.f32 %v7032_v53, %v7030_v19  ;;  %v7392_v63 = vshll.u32 %v14807_v9, %v7380_v49  ;;  %v7393_v44 = vshrl.u32 %v14808_v39, %v7381_v45  ;;  %v7395_v32 = vshll.u32 %v14808_v39, %v7380_v49 }
 0x7a9   :  { %v7224_v61 = vsub.s32 0, %v14473_v7  ;;  %v7385_v51 = vor.u32 %v7384_v36, %v7383_v27  ;;  %v7388_v4 = vor.u32 %v7387_v37, %v7386_v50  ;;  %v7391_v29 = vor.u32 %v7390_v40, %v7389_v6 }
 0x7aa   :  { %v7034_v15 = vxor.u32 2147483648, %v7033_v52  ;;  %v7394_v62 = vor.u32 %v7393_v44, %v7392_v63  ;;  %v7396_v3 = vshrl.u32 %v14992_v25, %v7381_v45  ;;  %v7214_v56 = vadd.s32 %v14421_v59, %v14434_v54 }
 0x7ab   :  { %v8008_v20 = vmin.u32 %v7224_v61, %v14473_v7  ;;  %v7584_v23 = vadd.s32 1, %v8023_v28  ;;  %v7382_v0 = vshrl.u32 %v14804_v43, %v7381_v45  ;;  %vm7398_vm6 = vcmp.lt.s32.totalorder %v7379_v10, 1 }
 0x7ac   :  { %v7035_v12 = vsel %vm6952_vm0, %v7034_v15, %v7033_v52  ;;  %v7397_v16 = vor.u32 %v7396_v3, %v7395_v32  ;;  %vm7400_vm3 = vcmp.lt.s32.totalorder %v7379_v10, 3  ;;  %vm7401_vm15 = vcmp.lt.s32.totalorder %v7379_v10, 4 }
 0x7ad   :  { %v7038_v1 = vsel %vm14439_vm11, %v14023_v57, %v7035_v12  ;;  %v7226_v47 = vclz %v8008_v20  ;;  %v7406_v38 = vsel %vm7398_vm6, %v7385_v51, %v7388_v4  ;;  %v7403_v35 = vsel %vm7401_vm15, %v7391_v29, 2102212464 }
 0x7ae   :  { %8545 = vcosq.f32 %v7038_v1  ;;  %v7407_v31 = vsel %vm7401_vm15, %v7394_v62, 920167782  ;;  %v7410_v22 = vsel %vm7398_vm6, %v7388_v4, %v7391_v29  ;;  %v7411_v5 = vsel %vm7401_vm15, %v7397_v16, 1326507024 }
 0x7af   :  { %8547 = vsinq.f32 %v7038_v1  ;;  %v8009_v60 = vadd.s32 4294967294, %v7226_v47  ;;  %vm7399_vm9 = vcmp.lt.s32.totalorder %v7379_v10, 2  ;;  %v7408_v59 = vsel %vm7400_vm3, %v7391_v29, %v7407_v31 }
 0x7b0   :  { %v7412_v54 = vsel %vm7400_vm3, %v7394_v62, %v7411_v5  ;;  %v7409_v11 = vsel %vm7399_vm9, %v7406_v38, %v7408_v59  ;;  %v7414_v42 = vshll.u32 %v7374_v46, 8  ;;  %vm7160_vm14 = vcmp.lt.s32.totalorder %v14200_v2, 0 }
 0x7b1   :  { %vm8010_vm13 = vcmp.lt.s32.totalorder %v8009_v60, 0  ;;  %v7413_v41 = vsel %vm7399_vm9, %v7410_v22, %v7412_v54  ;;  %v7402_v34 = vsel %vm7398_vm6, %v7382_v0, %v7385_v51  ;;  %v7404_v49 = vsel %vm7400_vm3, %v7388_v4, %v7403_v35 }
 0x7b2   :  { %v7229_v48 = vsel %vm8010_vm13, 0, %v8009_v60  ;;  %vm7042_vm8 = vweird.f32 %v14023_v57  ;;  %v14505_v19 = vmul.u32.u64.low %v7414_v42, %v7413_v41  ;;  %v14506_v53 = vmul.u32.u64.high %v7414_v42, %v7413_v41, %v14505_v19 }
 0x7b3   :  { %v7230_v18 = vsub.s32 32, %v7229_v48  ;;  %v7234_v55 = vsub.s32 4294967266, %v7229_v48  ;;  %v14508_v17 = vmul.u32.u64.low %v7414_v42, %v7409_v11  ;;  %v14509_v45 = vmul.u32.u64.high %v7414_v42, %v7409_v11, %v14508_v17 }
 0x7b4   :  { %v7231_v52 = vshll.u32 %v14473_v7, %v7229_v48  ;;  %vm7585_vm0 = vcmp.gt.s32.totalorder %v7584_v23, 0  ;;  %vm7045_vm12 = vcmp.lt.s32.totalorder %v14470_v13, 2  ;;  %v7405_v27 = vsel %vm7399_vm9, %v7402_v34, %v7404_v49 }
 0x7b5   :  { %v7232_v46 = vshrl.u32 %v7214_v56, %v7230_v18  ;;  %v7235_v28 = vadd.s32 127, %v7234_v55  ;;  %v7581_v36 = vand.u32 8388607, %v7574_v21  ;;  %v7586_v37 = vsel %vm7585_vm0, %v7584_v23, 0 }
 0x7b6   :  { %vm7049_vm11 = vcmp.eq.s32.totalorder %v14470_v13, 2  ;;  %v7588_v40 = vand.u32 31, %v7586_v37  ;;  %vm14520_vm1 = vcmp.le.f32.partialorder %v7158_v24, 0.7853982  ;;  %v7244_v10 = vsub.s32 4, %v14465_v26 }
 0x7b7   :  { %v7233_v61 = vor.u32 %v7232_v46, %v7231_v52  ;;  %v7236_v50 = vshll.u32 %v7235_v28, 23  ;;  %vm7423_vm10 = vc.u32 %v14506_v53, %v14508_v17  ;;  %v7424_v63 = vadd.s32 1, %v14509_v45 }
 0x7b8   :  { %v8546_v15 = vpop.eup %8545  ;;  %v7421_v20 = vmul.u32 %v7414_v42, %v7405_v27  ;;  %v7589_v4 = vsub.s32 32, %v7588_v40  ;;  %vm7046_vm4 = vcmp.eq.s32.totalorder %v14470_v13, 0  ;;  %v7582_v24 = vor.u32 8388608, %v7581_v36 }
 0x7b9   :  { %v8548_v51 = vpop.eup %8547  ;;  %v7050_v6 = vxor.u32 2147483648, %v8546_v15  ;;  %v7237_v12 = vor.u32 4788187, %v7236_v50  ;;  %v7425_v1 = vsel %vm7423_vm10, %v7424_v63, %v14509_v45  ;;  %v7240_v3 = vcvt.s32.f32 %v7233_v61 }
 0x7ba   :  { %v7047_v44 = vxor.u32 2147483648, %v8548_v51  ;;  %v7426_v56 = vadd.s32 %v7425_v1, %v7421_v20  ;;  %v7245_v23 = vsel %vm7160_vm14, %v7244_v10, %v14465_v26  ;;  %v7592_v0 = vshrl.u32 %v14805_v33, %v7589_v4 }
 0x7bb   :  { %v7051_v32 = vsel %vm7049_vm11, %v7050_v6, %v8548_v51  ;;  %v7238_v62 = vand.u32 2147483647, %v7237_v12  ;;  %v7595_v16 = vshrl.u32 %v14806_v58, %v7589_v4  ;;  %v7587_v31 = vshrl.u32 %v7586_v37, 5 }
 0x7bc   :  { %v7048_v29 = vsel %vm7046_vm4, %v8546_v15, %v7047_v44  ;;  %v7427_v35 = vadd.s32 536870912, %v7426_v56  ;;  %v7591_v22 = vshll.u32 %v14804_v43, %v7588_v40  ;;  %v7594_v5 = vshll.u32 %v14805_v33, %v7588_v40 }
 0x7bd   :  { %v7052_v47 = vsel %vm7045_vm12, %v7048_v29, %v7051_v32  ;;  %v7241_v38 = vmul.f32 %v7240_v3, %v7238_v62  ;;  %v7598_v13 = vshrl.u32 %v14807_v9, %v7589_v4  ;;  %v7601_v59 = vshrl.u32 %v14808_v39, %v7589_v4 }
 0x7be   :  { %v7053_v60 = vsel %vm7042_vm8, nan, %v7052_v47  ;;  %v14543_v54 = vshrl.u32 %v7427_v35, 30  ;;  %v7597_v48 = vshll.u32 %v14806_v58, %v7588_v40  ;;  %v7600_v57 = vshll.u32 %v14807_v9, %v7588_v40 }
 0x7bf   :  { %7704 = vst [vmem:[#allocation13 + $0x1c8] sm:$0xff] %v7053_v60  ;;  %v7242_v26 = vxor.u32 2147483648, %v7241_v38  ;;  %v7593_v11 = vor.u32 %v7592_v0, %v7591_v22  ;;  %v7596_v41 = vor.u32 %v7595_v16, %v7594_v5  ;;  %v7603_v42 = vshll.u32 %v14808_v39, %v7588_v40 }
 0x7c0   :  { %v7604_v18 = vshrl.u32 %v14992_v25, %v7589_v4  ;;  %v7247_v55 = vsel %vm14520_vm1, 0, %v7245_v23  ;;  %v7429_v34 = vshll.u32 %v14543_v54, 30  ;;  %v7602_v49 = vor.u32 %v7601_v59, %v7600_v57 }
 0x7c1   :  { %v7243_v33 = vsel %vm7160_vm14, %v7242_v26, %v7241_v38  ;;  %v7599_v9 = vor.u32 %v7598_v13, %v7597_v48  ;;  %vm7606_vm2 = vcmp.lt.s32.totalorder %v7587_v31, 1  ;;  %v7622_v39 = vshll.u32 %v7582_v24, 8 }
 0x7c2   :  { %v7246_v58 = vsel %vm14520_vm1, %v14200_v2, %v7243_v33  ;;  %v7605_v19 = vor.u32 %v7604_v18, %v7603_v42  ;;  %v7430_v45 = vsub.s32 %v7426_v56, %v7429_v34  ;;  %v7251_v25 = vadd.s32 3, %v7247_v55 }
 0x7c3   :  { %8549 = vcosq.f32 %v7246_v58  ;;  %vm7609_vm5 = vcmp.lt.s32.totalorder %v7587_v31, 4  ;;  %v7614_v52 = vsel %vm7606_vm2, %v7593_v11, %v7596_v41  ;;  %vm7607_vm7 = vcmp.lt.s32.totalorder %v7587_v31, 2 }
 0x7c4   :  { %8551 = vsinq.f32 %v7246_v58  ;;  %v7432_v46 = vsub.s32 0, %v7430_v45  ;;  %vm7608_vm6 = vcmp.lt.s32.totalorder %v7587_v31, 3  ;;  %v7615_v28 = vsel %vm7609_vm5, %v7602_v49, 920167782 }
 0x7c5   :  { %v7611_v27 = vsel %vm7609_vm5, %v7599_v9, 2102212464  ;;  %v7616_v36 = vsel %vm7608_vm6, %v7599_v9, %v7615_v28  ;;  %v7618_v37 = vsel %vm7606_vm2, %v7596_v41, %v7599_v9  ;;  %v7619_v15 = vsel %vm7609_vm5, %v7605_v19, 1326507024 }
 0x7c6   :  { %v8016_v61 = vmin.u32 %v7432_v46, %v7430_v45  ;;  %v7590_v50 = vshrl.u32 %v14804_v43, %v7589_v4  ;;  %v7617_v40 = vsel %vm7607_vm7, %v7614_v52, %v7616_v36  ;;  %v7620_v51 = vsel %vm7608_vm6, %v7602_v49, %v7619_v15 }
 0x7c7   :  { %v7621_v6 = vsel %vm7607_vm7, %v7618_v37, %v7620_v51  ;;  %v14562_v7 = vmul.u32.u64.low %v7622_v39, %v7617_v40  ;;  %v14563_v10 = vmul.u32.u64.high %v7622_v39, %v7617_v40, %v14562_v7  ;;  %v7252_v63 = vand.u32 3, %v7251_v25 }
 0x7c8   :  { %v7434_v44 = vclz %v8016_v61  ;;  %v7610_v12 = vsel %vm7606_vm2, %v7590_v50, %v7593_v11  ;;  %v7612_v20 = vsel %vm7608_vm6, %v7596_v41, %v7611_v27  ;;  %v7422_v56 = vadd.s32 %v14508_v17, %v14506_v53 }
 0x7c9   :  { %v14567_v32 = vmul.u32.u64.low %v7622_v39, %v7621_v6  ;;  %v14568_v1 = vmul.u32.u64.high %v7622_v39, %v7621_v6, %v14567_v32  ;;  %v7613_v43 = vsel %vm7607_vm7, %v7610_v12, %v7612_v20  ;;  %v7632_v4 = vadd.s32 1, %v14563_v10 }
 0x7ca   :  { %v8017_v24 = vadd.s32 4294967294, %v7434_v44  ;;  %vm7253_vm3 = vcmp.lt.s32.totalorder %v7252_v63, 2  ;;  %vm7257_vm15 = vcmp.eq.s32.totalorder %v7252_v63, 2  ;;  %v7629_v60 = vmul.u32 %v7622_v39, %v7613_v43 }
 0x7cb   :  { %vm7631_vm9 = vc.u32 %v14568_v1, %v14562_v7  ;;  %vm7254_vm14 = vcmp.eq.s32.totalorder %v7252_v63, 0  ;;  %vm7250_vm8 = vweird.f32 %v14200_v2  ;;  %v7452_v34 = vsub.s32 4, %v14543_v54 }
 0x7cc   :  { %vm8018_vm13 = vcmp.lt.s32.totalorder %v8017_v24, 0  ;;  %v7633_v31 = vsel %vm7631_vm9, %v7632_v4, %v14563_v10  ;;  %vm7368_vm0 = vcmp.lt.s32.totalorder %v14316_v8, 0  ;;  %vm7367_vm12 = vcmp.le.f32.partialorder %v7366_v30, 0.7853982 }
 0x7cd   :  { %v8550_v29 = vpop.eup %8549  ;;  %v7437_v47 = vsel %vm8018_vm13, 0, %v8017_v24  ;;  %v7634_v59 = vadd.s32 %v7633_v31, %v7629_v60  ;;  %v7453_v19 = vsel %vm7368_vm0, %v7452_v34, %v14543_v54  ;;  %v7630_v36 = vadd.s32 %v14562_v7, %v14568_v1 }
 0x7ce   :  { %v8552_v62 = vpop.eup %8551  ;;  %v7258_v3 = vxor.u32 2147483648, %v8550_v29  ;;  %v7438_v0 = vsub.s32 32, %v7437_v47  ;;  %v7442_v16 = vsub.s32 4294967266, %v7437_v47  ;;  %v7439_v35 = vshll.u32 %v7430_v45, %v7437_v47 }
 0x7cf   :  { %v7255_v23 = vxor.u32 2147483648, %v8552_v62  ;;  %v7635_v57 = vadd.s32 536870912, %v7634_v59  ;;  %v7455_v52 = vsel %vm7367_vm12, 0, %v7453_v19  ;;  %vm7458_vm2 = vweird.f32 %v14316_v8 }
 0x7d0   :  { %v7259_v38 = vsel %vm7257_vm15, %v7258_v3, %v8552_v62  ;;  %v7440_v5 = vshrl.u32 %v7422_v56, %v7438_v0  ;;  %v7443_v13 = vadd.s32 127, %v7442_v16  ;;  %v7459_v28 = vadd.s32 3, %v7455_v52 }
 0x7d1   :  { %v7256_v22 = vsel %vm7254_vm14, %v8550_v29, %v7255_v23  ;;  %v7636_v41 = vshrl.u32 %v7635_v57, 30  ;;  %vm7576_vm5 = vcmp.lt.s32.totalorder %v14427_v14, 0  ;;  %vm7575_vm7 = vcmp.le.f32.partialorder %v7574_v21, 0.7853982 }
 0x7d2   :  { %v7260_v53 = vsel %vm7253_vm3, %v7256_v22, %v7259_v38  ;;  %v7441_v26 = vor.u32 %v7440_v5, %v7439_v35  ;;  %v7444_v48 = vshll.u32 %v7443_v13, 23  ;;  %v7460_v30 = vand.u32 3, %v7459_v28 }
 0x7d3   :  { %v7261_v17 = vsel %vm7250_vm8, nan, %v7260_v53  ;;  %v7637_v33 = vshll.u32 %v7636_v41, 30  ;;  %v7660_v29 = vsub.s32 4, %v7636_v41  ;;  %vm7666_vm13 = vweird.f32 %v14427_v14 }
 0x7d4   :  { %7706 = vst [vmem:[#allocation13 + $0x1d8] sm:$0xff] %v7261_v17  ;;  %v7445_v11 = vor.u32 4788187, %v7444_v48  ;;  %v7448_v18 = vcvt.s32.f32 %v7441_v26  ;;  %vm7465_vm1 = vcmp.eq.s32.totalorder %v7460_v30, 2  ;;  %vm7462_vm10 = vcmp.eq.s32.totalorder %v7460_v30, 0 }
 0x7d5   :  { %v7638_v49 = vsub.s32 %v7634_v59, %v7637_v33  ;;  %vm7461_vm4 = vcmp.lt.s32.totalorder %v7460_v30, 2  ;;  %v7661_v56 = vsel %vm7576_vm5, %v7660_v29, %v7636_v41 }
 0x7d6   :  { %v7446_v42 = vand.u32 2147483647, %v7445_v11  ;;  %v7663_v23 = vsel %vm7575_vm7, 0, %v7661_v56 }
 0x7d7   :  { %v7640_v9 = vsub.s32 0, %v7638_v49  ;;  %v7667_v0 = vadd.s32 3, %v7663_v23 }
 0x7d8   :  { %v7449_v55 = vmul.f32 %v7448_v18, %v7446_v42 }
 0x7d9   :  { %v8024_v45 = vmin.u32 %v7640_v9, %v7638_v49 }
 0x7da   :  { %v7450_v58 = vxor.u32 2147483648, %v7449_v55 }
 0x7db   :  { %v7642_v25 = vclz %v8024_v45 }
 0x7dc   :  { %v7451_v2 = vsel %vm7368_vm0, %v7450_v58, %v7449_v55 }
 0x7dd   :  { %v7454_v39 = vsel %vm7367_vm12, %v14316_v8, %v7451_v2  ;;  %v8025_v46 = vadd.s32 4294967294, %v7642_v25  ;;  %v7668_v8 = vand.u32 3, %v7667_v0 }
 0x7de   :  { %8553 = vcosq.f32 %v7454_v39 }
 0x7df   :  { %8555 = vsinq.f32 %v7454_v39  ;;  %vm8026_vm11 = vcmp.lt.s32.totalorder %v8025_v46, 0  ;;  %vm7673_vm6 = vcmp.eq.s32.totalorder %v7668_v8, 2  ;;  %vm7670_vm3 = vcmp.eq.s32.totalorder %v7668_v8, 0 }
 0x7e0   :  { %v7645_v27 = vsel %vm8026_vm11, 0, %v8025_v46  ;;  %vm7669_vm15 = vcmp.lt.s32.totalorder %v7668_v8, 2 }
 0x7e1   :  { %v7646_v37 = vsub.s32 32, %v7645_v27  ;;  %v7650_v15 = vsub.s32 4294967266, %v7645_v27  ;;  %v7647_v61 = vshll.u32 %v7638_v49, %v7645_v27 }
 0x7e3   :  { %v7648_v50 = vshrl.u32 %v7630_v36, %v7646_v37  ;;  %v7651_v54 = vadd.s32 127, %v7650_v15 }
 0x7e5   :  { %v7649_v51 = vor.u32 %v7648_v50, %v7647_v61  ;;  %v7652_v6 = vshll.u32 %v7651_v54, 23 }
 0x7e7   :  { %v7653_v12 = vor.u32 4788187, %v7652_v6  ;;  %v7656_v7 = vcvt.s32.f32 %v7649_v51 }
 0x7e8   :  { %v8554_v40 = vpop.eup %8553 }
 0x7e9   :  { %v8556_v10 = vpop.eup %8555  ;;  %v7466_v63 = vxor.u32 2147483648, %v8554_v40  ;;  %v7654_v24 = vand.u32 2147483647, %v7653_v12 }
 0x7ea   :  { %v7463_v44 = vxor.u32 2147483648, %v8556_v10 }
 0x7eb   :  { %v7467_v20 = vsel %vm7465_vm1, %v7466_v63, %v8556_v10  ;;  %v7657_v4 = vmul.f32 %v7656_v7, %v7654_v24 }
 0x7ec   :  { %v7464_v32 = vsel %vm7462_vm10, %v8554_v40, %v7463_v44 }
 0x7ed   :  { %v7468_v1 = vsel %vm7461_vm4, %v7464_v32, %v7467_v20  ;;  %v7658_v62 = vxor.u32 2147483648, %v7657_v4 }
 0x7ee   :  { %v7469_v43 = vsel %vm7458_vm2, nan, %v7468_v1 }
 0x7ef   :  { %7708 = vst [vmem:[#allocation13 + $0x1e8] sm:$0xff] %v7469_v43  ;;  %v7659_v3 = vsel %vm7576_vm5, %v7658_v62, %v7657_v4 }
 0x7f0   :  { %v7662_v47 = vsel %vm7575_vm7, %v14427_v14, %v7659_v3 }
 0x7f1   :  { %8557 = vcosq.f32 %v7662_v47 }
 0x7f2   :  { %8559 = vsinq.f32 %v7662_v47 }
 0x7fb   :  { %v8558_v16 = vpop.eup %8557 }
 0x7fc   :  { %v8560_v60 = vpop.eup %8559  ;;  %v7674_v38 = vxor.u32 2147483648, %v8558_v16 }
 0x7fd   :  { %v7671_v35 = vxor.u32 2147483648, %v8560_v60 }
 0x7fe   :  { %v7675_v31 = vsel %vm7673_vm6, %v7674_v38, %v8560_v60 }
 0x7ff   :  { %v7672_v21 = vsel %vm7670_vm3, %v8558_v16, %v7671_v35 }
 0x800   :  { %v7676_v22 = vsel %vm7669_vm15, %v7672_v21, %v7675_v31 }
 0x801   :  { %v7677_v5 = vsel %vm7666_vm13, nan, %v7676_v22 }
 0x802   :  { %7710 = vst [vmem:[#allocation13 + $0x1f8] sm:$0xff] %v7677_v5 }
 0x803   :  { %8705 = shalt.err (!%p8702_p10)
}
 0x804   :  { %s8706_s0 = scalar_lea.hbm %s14611_s6, 8192 }
 0x805   :  { %p8707_p11 = scmp.ne.s32.totalorder %s14611_s6, %s8706_s0  ;;  %p8710_p12 = scmp.lt.u32.totalorder %s8706_s0, %s14611_s6 }
 0x807   :  { %p8712_p13 = pnand %p8710_p12, %p8707_p11 }
 0x809   :  { %8715 = shalt.err (!%p8712_p13)
}
 0x80a   :  { %s8744_s25 = smov 256   ;;  %s8745_s26 = smov 16  }
 0x80b   :  { %7722 = dma.vmem_to_hbm [thread:$0]  %s7717_s20, 8192, %s14611_s6, [#allocation4], %s8744_s25, %s8744_s25, %s8745_s26  }
 0x80c   :  { %8724 = dma.done.wait [#allocation4], 8192  }
 0x80d   :  { %8725 = vsyncadd [#allocation4], 4294959104 }
 0x80e   :  { %7726 = vsyncpa [#allocation3], 1 }
 0x80f   :  { %7727 = vsyncpa [#allocation6], 1 }
 0x810   :  { %7728 = vsyncpa [#allocation9], 1 }
 0x811   :  { %7729 = vsyncpa [#allocation12], 1 }
 0x812   :  { %7730 = vsyncpa [#allocation4], 1 }

</bundles_post_ra>
